<compile_context>
chip_gen: v7x
topology: tpu7x:2x2x1
jax: 0.10.0
libtpu: 0.0.40
codegen_flags: <defaults>
</compile_context>

<pallas_src>
import jax
import jax.numpy as jnp
from jax.experimental import pallas as pl
from jax.experimental.pallas import tpu as pltpu

_TB = 8  # samples per grid step; multiple of 8 keeps every in-kernel row slice
         # (conv2 tap shifts, fc position blocks) sublane-aligned.


# ---------------------------------------------------------------------------
# Fused kernel: conv1 + ReLU + conv2 + ReLU + fc + ReLU for one batch tile
# ---------------------------------------------------------------------------
def _fused_cnn_kernel(cols1_ref, w1_ref, b1_ref, w2_ref, b2_ref, w3_ref, b3_ref,
                      o_ref):
    """
    cols1_ref : (1, 400*TB, 64*C) bf16  conv1 im2col rows, ordered (py,px,by,bx,s)
    w1_ref    : (64*C, 16)  bf16        conv1 weight (x/255 folded in)
    b1_ref    : (1, 16)     f32
    w2_ref    : (256, 32)   bf16        conv2 weight, K order (ti,tj,py,px,c1)
    b2_ref    : (1, 32)     f32
    w3_ref    : (2592, 256) bf16        fc weight, rows ordered (Y, X, c2)
    b3_ref    : (1, 256)    f32
    o_ref     : (1, TB, 256) f32
    """
    TB = o_ref.shape[1]
    NB = 100 * TB          # rows per (py, px) chunk of the conv1 output
    M2 = 89 * TB           # rows covering every valid conv2 output position

    # ---- conv1 + ReLU: one MXU matmul for the whole batch tile ---------------
    h1 = jnp.dot(cols1_ref[0], w1_ref[...], preferred_element_type=jnp.float32)
    h1 = jnp.maximum(h1 + b1_ref[...], 0.0)                    # (4*NB, 16) f32

    # ---- space-to-depth regroup of the conv1 output --------------------------
    # s2[(by*10+bx)*TB + s, (py,px,c1)]: single lane-concat of the 4 (py,px)
    # chunks (each chunk is a contiguous, aligned row block of h1).
    s2 = jnp.concatenate([h1[p * NB:(p + 1) * NB, :] for p in range(4)],
                         axis=-1)                               # (NB, 64) f32

    # ---- conv2 + ReLU ---------------------------------------------------------
    # k=4, s=2 conv == 2x2 stride-1 conv on the 10x10 block grid: the 4 taps are
    # row-shifted views of s2 (shift = (ti*10+tj)*TB, all multiples of 8 rows).
    cols2 = jnp.concatenate(
        [s2[(ti * 10 + tj) * TB:(ti * 10 + tj) * TB + M2, :]
         for ti in (0, 1) for tj in (0, 1)], axis=-1)           # (M2, 256) f32
    h2 = jnp.dot(cols2.astype(jnp.bfloat16), w2_ref[...],
                 preferred_element_type=jnp.float32)
    h2 = jnp.maximum(h2 + b2_ref[...], 0.0)                     # (M2, 32) f32
    # h2 rows are ordered (q = Y*10 + X, s); rows with X == 9 are unused garbage.

    # ---- fc + ReLU ------------------------------------------------------------
    # Contract over the 81 valid spatial positions with per-position (32, 256)
    # weight tiles (fc rows pre-permuted to (Y, X, c2) order).  Every LHS is a
    # contiguous aligned (TB, 32) row block -> no flatten / transpose needed.
    acc = jnp.zeros((TB, 256), jnp.float32)
    for Y in range(9):
        for X in range(9):
            q = Y * 10 + X
            g = Y * 9 + X
            lhs = h2[q * TB:(q + 1) * TB, :].astype(jnp.bfloat16)
            acc += jnp.dot(lhs, w3_ref[g * 32:(g + 1) * 32, :],
                           preferred_element_type=jnp.float32)
    out = jnp.maximum(acc + b3_ref[...], 0.0)                   # (TB, 256)
    o_ref[0] = out.astype(o_ref.dtype)


# ---------------------------------------------------------------------------
# One-time weight repack (hoisted out of the per-call hot path)
# ---------------------------------------------------------------------------
def prepare_params(params):
    w1, b1 = params["w1"], params["b1"]      # (16, C, 8, 8), (16,)
    w2, b2 = params["w2"], params["b2"]      # (32, 16, 4, 4), (32,)
    w3, b3 = params["w3"], params["b3"]      # (256, 2592),   (256,)
    C = w1.shape[1]

    # conv1: kernel index (i, j) = (4*ti + qy, 4*tj + qx).  K order matches the
    # wrapper's cols1 lane order (ti, tj, c, qy, qx).  Fold x/255 into the weight.
    w1m = (w1.reshape(16, C, 2, 4, 2, 4)      # (oc, c, ti, qy, tj, qx)
             .transpose(2, 4, 1, 3, 5, 0)     # (ti, tj, c, qy, qx, oc)
             .reshape(64 * C, 16) / 255.0).astype(jnp.bfloat16)

    # conv2: kernel index (i, j) = (2*ti + py, 2*tj + px).  K order matches the
    # in-kernel cols2 lane order (ti, tj, py, px, c1).
    w2m = (w2.reshape(32, 16, 2, 2, 2, 2)     # (oc, c, ti, py, tj, px)
             .transpose(2, 4, 3, 5, 1, 0)     # (ti, tj, py, px, c, oc)
             .reshape(256, 32)).astype(jnp.bfloat16)

    # fc: PyTorch flattens NCHW -> (oc, Y, X); the kernel contracts in
    # (Y, X, oc) order, so permute the weight rows once here.
    w3m = (w3.reshape(256, 32, 9, 9)          # (n, oc, Y, X)
             .transpose(2, 3, 1, 0)           # (Y, X, oc, n)
             .reshape(2592, 256)).astype(jnp.bfloat16)

    return dict(w1m=w1m, b1=b1.reshape(1, 16).astype(jnp.float32),
                w2m=w2m, b2=b2.reshape(1, 32).astype(jnp.float32),
                w3m=w3m, b3=b3.reshape(1, 256).astype(jnp.float32))


# ---------------------------------------------------------------------------
# Forward pass (mirrors CNN.forward)
# ---------------------------------------------------------------------------
@jax.jit
def cnn_forward(x, prepared):
    if x.ndim < 4:
        x = x[None]                                   # unsqueeze(0)
    B, C, H, W = x.shape
    assert H == 84 and W == 84, "CNN implies 84x84 inputs (Linear(32*9*9, 256))"
    K1 = 64 * C

    n_tiles = -(-B // _TB)
    b_pad = n_tiles * _TB
    if b_pad != B:
        x = jnp.pad(x, ((0, b_pad - B), (0, 0), (0, 0), (0, 0)))

    # space-to-depth (factor 4): (b, u, v, (c, qy, qx)) over a 21x21 block grid.
    s2d = (x.reshape(b_pad, C, 21, 4, 21, 4)
             .transpose(0, 2, 4, 1, 3, 5)
             .reshape(b_pad, 21, 21, 16 * C))
    # conv1 (k=8, s=4) == 2x2 stride-1 conv on the block grid; build its im2col
    # from 4 shifted views (cheap XLA layout plumbing).  Lanes: (ti, tj, c, qy, qx).
    cols1 = jnp.concatenate(
        [s2d[:, 0:20, 0:20], s2d[:, 0:20, 1:21],
         s2d[:, 1:21, 0:20], s2d[:, 1:21, 1:21]], axis=-1)       # (b, 20, 20, K1)
    # Rows within each batch tile ordered (py, px, by, bx, s) so every in-kernel
    # regroup is a contiguous, aligned row slice.
    cols1 = (cols1.reshape(n_tiles, _TB, 10, 2, 10, 2, K1)       # (t,s,by,py,bx,px,K)
                   .transpose(0, 3, 5, 2, 4, 1, 6)               # (t,py,px,by,bx,s,K)
                   .reshape(n_tiles, 400 * _TB, K1)
                   .astype(jnp.bfloat16))

    out = pl.pallas_call(
        _fused_cnn_kernel,
        out_shape=jax.ShapeDtypeStruct((n_tiles, _TB, 256), jnp.float32),
        grid=(n_tiles,),
        in_specs=[
            pl.BlockSpec((1, 400 * _TB, K1), lambda t: (t, 0, 0)),  # per-tile cols
            pl.BlockSpec((K1, 16), lambda t: (0, 0)),               # weights stay
            pl.BlockSpec((1, 16), lambda t: (0, 0)),                # VMEM-resident
            pl.BlockSpec((256, 32), lambda t: (0, 0)),
            pl.BlockSpec((1, 32), lambda t: (0, 0)),
            pl.BlockSpec((2592, 256), lambda t: (0, 0)),
            pl.BlockSpec((1, 256), lambda t: (0, 0)),
        ],
        out_specs=pl.BlockSpec((1, _TB, 256), lambda t: (t, 0, 0)),
        compiler_params=pltpu.CompilerParams(
            dimension_semantics=("parallel",)),
    )(cols1, prepared["w1m"], prepared["b1"], prepared["w2m"], prepared["b2"],
      prepared["w3m"], prepared["b3"])
    return out.reshape(b_pad, 256)[:B]


# ---------------------------------------------------------------------------
# Parameters (deterministic init, PyTorch-like fan-in scaling)
# ---------------------------------------------------------------------------
def init_params(channels, key):
    k1, k2, k3 = jax.random.split(key, 3)

    def _uniform(key, shape, fan_in):
        bound = 1.0 / jnp.sqrt(fan_in)
        return jax.random.uniform(key, shape, jnp.float32, -bound, bound)

    ka, kb = jax.random.split(k1)
    w1 = _uniform(ka, (16, channels, 8, 8), channels * 8 * 8)
    b1 = _uniform(kb, (16,), channels * 8 * 8)

    ka, kb = jax.random.split(k2)
    w2 = _uniform(ka, (32, 16, 4, 4), 16 * 4 * 4)
    b2 = _uniform(kb, (32,), 16 * 4 * 4)

    ka, kb = jax.random.split(k3)
    w3 = _uniform(ka, (256, 32 * 9 * 9), 32 * 9 * 9)   # PyTorch Linear: (out, in)
    b3 = _uniform(kb, (256,), 32 * 9 * 9)

    return dict(w1=w1, b1=b1, w2=w2, b2=b2, w3=w3, b3=b3)


# ---------------------------------------------------------------------------
# Plain-XLA f32 reference (correctness cross-check only)
# ---------------------------------------------------------------------------
def _reference_forward(x, params):
    if x.ndim < 4:
        x = x[None]
    B = x.shape[0]
    x = x.astype(jnp.float32) / 255.0
    dn = ("NCHW", "OIHW", "NCHW")
    y = jax.lax.conv_general_dilated(
        x, params["w1"], (4, 4), "VALID", dimension_numbers=dn,
        precision=jax.lax.Precision.HIGHEST)
    y = jax.nn.relu(y + params["b1"][None, :, None, None])
    y = jax.lax.conv_general_dilated(
        y, params["w2"], (2, 2), "VALID", dimension_numbers=dn,
        precision=jax.lax.Precision.HIGHEST)
    y = jax.nn.relu(y + params["b2"][None, :, None, None])
    y = y.reshape(B, -1)
    return jax.nn.relu(y @ params["w3"].T + params["b3"])


if __name__ == "__main__":
    # TODO(synk): the module's Python-side bookkeeping (epoch counter, image
    # dumping, "weight CHANGED" debug check) has no kernel equivalent.
    key = jax.random.PRNGKey(0)
    kx, kp = jax.random.split(key)

    batch, channels = 2, 4
    # 84x84 is what the module implies: (84-8)/4+1 = 20, (20-4)/2+1 = 9.
    x = jax.random.uniform(kx, (batch, channels, 84, 84), jnp.float32, 0.0, 255.0)
    params = init_params(channels, kp)
    prepared = prepare_params(params)

    out = jax.block_until_ready(cnn_forward(x, prepared))
    assert out.shape == (batch, 256), out.shape
    assert bool(jnp.all(jnp.isfinite(out)))

    # cross-check against the f32 XLA reference (bf16 MXU inputs -> small error)
    ref = jax.block_until_ready(_reference_forward(x, params))
    rel_err = float(jnp.max(jnp.abs(out - ref)) / (jnp.max(jnp.abs(ref)) + 1e-6))
    assert rel_err < 5e-2, f"mismatch vs reference: rel-max err {rel_err}"

    print("KERNEL_OK")
</pallas_src>

<mosaic_0001>
module attributes {stable_mosaic.version = 11 : i64} {
  func.func @_fused_cnn_kernel(%arg0: i32, %arg1: memref<1x3200x256xbf16, #tpu.memory_space<vmem>>, %arg2: memref<256x16xbf16, #tpu.memory_space<vmem>>, %arg3: memref<1x16xf32, #tpu.memory_space<vmem>>, %arg4: memref<256x32xbf16, #tpu.memory_space<vmem>>, %arg5: memref<1x32xf32, #tpu.memory_space<vmem>>, %arg6: memref<2592x256xbf16, #tpu.memory_space<vmem>>, %arg7: memref<1x256xf32, #tpu.memory_space<vmem>>, %arg8: memref<1x8x256xf32, #tpu.memory_space<vmem>>) attributes {dimension_semantics = [#tpu.dimension_semantics<parallel>], iteration_bounds = array<i64: 1>, scalar_prefetch = 0 : i64, scratch_operands = 0 : i64, tpu.core_type = #tpu.core_type<tc>, window_params = [{transform_indices = @transform_0, window_bounds = array<i64: 1, 3200, 256>}, {pipeline_mode = #tpu.pipeline_mode<synchronous>, transform_indices = @transform_1, window_bounds = array<i64: 256, 16>}, {pipeline_mode = #tpu.pipeline_mode<synchronous>, transform_indices = @transform_2, window_bounds = array<i64: 1, 16>}, {pipeline_mode = #tpu.pipeline_mode<synchronous>, transform_indices = @transform_3, window_bounds = array<i64: 256, 32>}, {pipeline_mode = #tpu.pipeline_mode<synchronous>, transform_indices = @transform_4, window_bounds = array<i64: 1, 32>}, {pipeline_mode = #tpu.pipeline_mode<synchronous>, transform_indices = @transform_5, window_bounds = array<i64: 2592, 256>}, {pipeline_mode = #tpu.pipeline_mode<synchronous>, transform_indices = @transform_6, window_bounds = array<i64: 1, 256>}, {transform_indices = @transform_7, window_bounds = array<i64: 1, 8, 256>}]} {
    %c0 = arith.constant 0 : index
    %c0_0 = arith.constant 0 : index
    %c0_1 = arith.constant 0 : index
    %0 = vector.load %arg1[%c0, %c0_0, %c0_1] : memref<1x3200x256xbf16, #tpu.memory_space<vmem>>, vector<1x3200x256xbf16>
    %1 = vector.shape_cast %0 : vector<1x3200x256xbf16> to vector<3200x256xbf16>
    %c0_2 = arith.constant 0 : index
    %c0_3 = arith.constant 0 : index
    %2 = vector.load %arg2[%c0_2, %c0_3] : memref<256x16xbf16, #tpu.memory_space<vmem>>, vector<256x16xbf16>
    %cst = arith.constant dense<0.000000e+00> : vector<3200x16xf32>
    %3 = tpu.matmul %1, %2, %cst {dimension_numbers = #tpu.dot_dimension_numbers<[1], [0], [0], [1], [0, 0, 1, 1], [], []>} : vector<3200x256xbf16>, vector<256x16xbf16>, vector<3200x16xf32> -> vector<3200x16xf32>
    %c0_4 = arith.constant 0 : index
    %c0_5 = arith.constant 0 : index
    %4 = vector.load %arg3[%c0_4, %c0_5] : memref<1x16xf32, #tpu.memory_space<vmem>>, vector<1x16xf32>
    %5 = vector.broadcast %4 : vector<1x16xf32> to vector<3200x16xf32>
    %6 = arith.addf %3, %5 : vector<3200x16xf32>
    %cst_6 = arith.constant 0.000000e+00 : f32
    %7 = vector.broadcast %cst_6 : f32 to vector<3200x16xf32>
    %8 = arith.maximumf %6, %7 : vector<3200x16xf32>
    %9 = vector.extract_strided_slice %8 {offsets = [0, 0], sizes = [800, 16], strides = [1, 1]} : vector<3200x16xf32> to vector<800x16xf32>
    %10 = vector.extract_strided_slice %8 {offsets = [800, 0], sizes = [800, 16], strides = [1, 1]} : vector<3200x16xf32> to vector<800x16xf32>
    %11 = vector.extract_strided_slice %8 {offsets = [1600, 0], sizes = [800, 16], strides = [1, 1]} : vector<3200x16xf32> to vector<800x16xf32>
    %12 = vector.extract_strided_slice %8 {offsets = [2400, 0], sizes = [800, 16], strides = [1, 1]} : vector<3200x16xf32> to vector<800x16xf32>
    %13 = tpu.concatenate %9, %10, %11, %12 in 1 : vector<800x16xf32>, vector<800x16xf32>, vector<800x16xf32>, vector<800x16xf32> -> vector<800x64xf32>
    %14 = vector.extract_strided_slice %13 {offsets = [0, 0], sizes = [712, 64], strides = [1, 1]} : vector<800x64xf32> to vector<712x64xf32>
    %15 = vector.extract_strided_slice %13 {offsets = [8, 0], sizes = [712, 64], strides = [1, 1]} : vector<800x64xf32> to vector<712x64xf32>
    %16 = vector.extract_strided_slice %13 {offsets = [80, 0], sizes = [712, 64], strides = [1, 1]} : vector<800x64xf32> to vector<712x64xf32>
    %17 = vector.extract_strided_slice %13 {offsets = [88, 0], sizes = [712, 64], strides = [1, 1]} : vector<800x64xf32> to vector<712x64xf32>
    %18 = tpu.concatenate %14, %15, %16, %17 in 1 : vector<712x64xf32>, vector<712x64xf32>, vector<712x64xf32>, vector<712x64xf32> -> vector<712x256xf32>
    %19 = arith.truncf %18 : vector<712x256xf32> to vector<712x256xbf16>
    %c0_7 = arith.constant 0 : index
    %c0_8 = arith.constant 0 : index
    %20 = vector.load %arg4[%c0_7, %c0_8] : memref<256x32xbf16, #tpu.memory_space<vmem>>, vector<256x32xbf16>
    %cst_9 = arith.constant dense<0.000000e+00> : vector<712x32xf32>
    %21 = tpu.matmul %19, %20, %cst_9 {dimension_numbers = #tpu.dot_dimension_numbers<[1], [0], [0], [1], [0, 0, 1, 1], [], []>} : vector<712x256xbf16>, vector<256x32xbf16>, vector<712x32xf32> -> vector<712x32xf32>
    %c0_10 = arith.constant 0 : index
    %c0_11 = arith.constant 0 : index
    %22 = vector.load %arg5[%c0_10, %c0_11] : memref<1x32xf32, #tpu.memory_space<vmem>>, vector<1x32xf32>
    %23 = vector.broadcast %22 : vector<1x32xf32> to vector<712x32xf32>
    %24 = arith.addf %21, %23 : vector<712x32xf32>
    %cst_12 = arith.constant 0.000000e+00 : f32
    %25 = vector.broadcast %cst_12 : f32 to vector<712x32xf32>
    %26 = arith.maximumf %24, %25 : vector<712x32xf32>
    %cst_13 = arith.constant 0.000000e+00 : f32
    %27 = vector.broadcast %cst_13 : f32 to vector<8x256xf32>
    %28 = vector.extract_strided_slice %26 {offsets = [0, 0], sizes = [8, 32], strides = [1, 1]} : vector<712x32xf32> to vector<8x32xf32>
    %29 = arith.truncf %28 : vector<8x32xf32> to vector<8x32xbf16>
    %c0_14 = arith.constant 0 : index
    %c0_15 = arith.constant 0 : index
    %30 = vector.load %arg6[%c0_14, %c0_15] : memref<2592x256xbf16, #tpu.memory_space<vmem>>, vector<32x256xbf16>
    %cst_16 = arith.constant dense<0.000000e+00> : vector<8x256xf32>
    %31 = tpu.matmul %29, %30, %cst_16 {dimension_numbers = #tpu.dot_dimension_numbers<[1], [0], [0], [1], [0, 0, 1, 1], [], []>} : vector<8x32xbf16>, vector<32x256xbf16>, vector<8x256xf32> -> vector<8x256xf32>
    %32 = arith.addf %27, %31 : vector<8x256xf32>
    %33 = vector.extract_strided_slice %26 {offsets = [8, 0], sizes = [8, 32], strides = [1, 1]} : vector<712x32xf32> to vector<8x32xf32>
    %34 = arith.truncf %33 : vector<8x32xf32> to vector<8x32xbf16>
    %c32 = arith.constant 32 : index
    %c0_17 = arith.constant 0 : index
    %35 = vector.load %arg6[%c32, %c0_17] : memref<2592x256xbf16, #tpu.memory_space<vmem>>, vector<32x256xbf16>
    %cst_18 = arith.constant dense<0.000000e+00> : vector<8x256xf32>
    %36 = tpu.matmul %34, %35, %cst_18 {dimension_numbers = #tpu.dot_dimension_numbers<[1], [0], [0], [1], [0, 0, 1, 1], [], []>} : vector<8x32xbf16>, vector<32x256xbf16>, vector<8x256xf32> -> vector<8x256xf32>
    %37 = arith.addf %32, %36 : vector<8x256xf32>
    %38 = vector.extract_strided_slice %26 {offsets = [16, 0], sizes = [8, 32], strides = [1, 1]} : vector<712x32xf32> to vector<8x32xf32>
    %39 = arith.truncf %38 : vector<8x32xf32> to vector<8x32xbf16>
    %c64 = arith.constant 64 : index
    %c0_19 = arith.constant 0 : index
    %40 = vector.load %arg6[%c64, %c0_19] : memref<2592x256xbf16, #tpu.memory_space<vmem>>, vector<32x256xbf16>
    %cst_20 = arith.constant dense<0.000000e+00> : vector<8x256xf32>
    %41 = tpu.matmul %39, %40, %cst_20 {dimension_numbers = #tpu.dot_dimension_numbers<[1], [0], [0], [1], [0, 0, 1, 1], [], []>} : vector<8x32xbf16>, vector<32x256xbf16>, vector<8x256xf32> -> vector<8x256xf32>
    %42 = arith.addf %37, %41 : vector<8x256xf32>
    %43 = vector.extract_strided_slice %26 {offsets = [24, 0], sizes = [8, 32], strides = [1, 1]} : vector<712x32xf32> to vector<8x32xf32>
    %44 = arith.truncf %43 : vector<8x32xf32> to vector<8x32xbf16>
    %c96 = arith.constant 96 : index
    %c0_21 = arith.constant 0 : index
    %45 = vector.load %arg6[%c96, %c0_21] : memref<2592x256xbf16, #tpu.memory_space<vmem>>, vector<32x256xbf16>
    %cst_22 = arith.constant dense<0.000000e+00> : vector<8x256xf32>
    %46 = tpu.matmul %44, %45, %cst_22 {dimension_numbers = #tpu.dot_dimension_numbers<[1], [0], [0], [1], [0, 0, 1, 1], [], []>} : vector<8x32xbf16>, vector<32x256xbf16>, vector<8x256xf32> -> vector<8x256xf32>
    %47 = arith.addf %42, %46 : vector<8x256xf32>
    %48 = vector.extract_strided_slice %26 {offsets = [32, 0], sizes = [8, 32], strides = [1, 1]} : vector<712x32xf32> to vector<8x32xf32>
    %49 = arith.truncf %48 : vector<8x32xf32> to vector<8x32xbf16>
    %c128 = arith.constant 128 : index
    %c0_23 = arith.constant 0 : index
    %50 = vector.load %arg6[%c128, %c0_23] : memref<2592x256xbf16, #tpu.memory_space<vmem>>, vector<32x256xbf16>
    %cst_24 = arith.constant dense<0.000000e+00> : vector<8x256xf32>
    %51 = tpu.matmul %49, %50, %cst_24 {dimension_numbers = #tpu.dot_dimension_numbers<[1], [0], [0], [1], [0, 0, 1, 1], [], []>} : vector<8x32xbf16>, vector<32x256xbf16>, vector<8x256xf32> -> vector<8x256xf32>
    %52 = arith.addf %47, %51 : vector<8x256xf32>
    %53 = vector.extract_strided_slice %26 {offsets = [40, 0], sizes = [8, 32], strides = [1, 1]} : vector<712x32xf32> to vector<8x32xf32>
    %54 = arith.truncf %53 : vector<8x32xf32> to vector<8x32xbf16>
    %c160 = arith.constant 160 : index
    %c0_25 = arith.constant 0 : index
    %55 = vector.load %arg6[%c160, %c0_25] : memref<2592x256xbf16, #tpu.memory_space<vmem>>, vector<32x256xbf16>
    %cst_26 = arith.constant dense<0.000000e+00> : vector<8x256xf32>
    %56 = tpu.matmul %54, %55, %cst_26 {dimension_numbers = #tpu.dot_dimension_numbers<[1], [0], [0], [1], [0, 0, 1, 1], [], []>} : vector<8x32xbf16>, vector<32x256xbf16>, vector<8x256xf32> -> vector<8x256xf32>
    %57 = arith.addf %52, %56 : vector<8x256xf32>
    %58 = vector.extract_strided_slice %26 {offsets = [48, 0], sizes = [8, 32], strides = [1, 1]} : vector<712x32xf32> to vector<8x32xf32>
    %59 = arith.truncf %58 : vector<8x32xf32> to vector<8x32xbf16>
    %c192 = arith.constant 192 : index
    %c0_27 = arith.constant 0 : index
    %60 = vector.load %arg6[%c192, %c0_27] : memref<2592x256xbf16, #tpu.memory_space<vmem>>, vector<32x256xbf16>
    %cst_28 = arith.constant dense<0.000000e+00> : vector<8x256xf32>
    %61 = tpu.matmul %59, %60, %cst_28 {dimension_numbers = #tpu.dot_dimension_numbers<[1], [0], [0], [1], [0, 0, 1, 1], [], []>} : vector<8x32xbf16>, vector<32x256xbf16>, vector<8x256xf32> -> vector<8x256xf32>
    %62 = arith.addf %57, %61 : vector<8x256xf32>
    %63 = vector.extract_strided_slice %26 {offsets = [56, 0], sizes = [8, 32], strides = [1, 1]} : vector<712x32xf32> to vector<8x32xf32>
    %64 = arith.truncf %63 : vector<8x32xf32> to vector<8x32xbf16>
    %c224 = arith.constant 224 : index
    %c0_29 = arith.constant 0 : index
    %65 = vector.load %arg6[%c224, %c0_29] : memref<2592x256xbf16, #tpu.memory_space<vmem>>, vector<32x256xbf16>
    %cst_30 = arith.constant dense<0.000000e+00> : vector<8x256xf32>
    %66 = tpu.matmul %64, %65, %cst_30 {dimension_numbers = #tpu.dot_dimension_numbers<[1], [0], [0], [1], [0, 0, 1, 1], [], []>} : vector<8x32xbf16>, vector<32x256xbf16>, vector<8x256xf32> -> vector<8x256xf32>
    %67 = arith.addf %62, %66 : vector<8x256xf32>
    %68 = vector.extract_strided_slice %26 {offsets = [64, 0], sizes = [8, 32], strides = [1, 1]} : vector<712x32xf32> to vector<8x32xf32>
    %69 = arith.truncf %68 : vector<8x32xf32> to vector<8x32xbf16>
    %c256 = arith.constant 256 : index
    %c0_31 = arith.constant 0 : index
    %70 = vector.load %arg6[%c256, %c0_31] : memref<2592x256xbf16, #tpu.memory_space<vmem>>, vector<32x256xbf16>
    %cst_32 = arith.constant dense<0.000000e+00> : vector<8x256xf32>
    %71 = tpu.matmul %69, %70, %cst_32 {dimension_numbers = #tpu.dot_dimension_numbers<[1], [0], [0], [1], [0, 0, 1, 1], [], []>} : vector<8x32xbf16>, vector<32x256xbf16>, vector<8x256xf32> -> vector<8x256xf32>
    %72 = arith.addf %67, %71 : vector<8x256xf32>
    %73 = vector.extract_strided_slice %26 {offsets = [80, 0], sizes = [8, 32], strides = [1, 1]} : vector<712x32xf32> to vector<8x32xf32>
    %74 = arith.truncf %73 : vector<8x32xf32> to vector<8x32xbf16>
    %c288 = arith.constant 288 : index
    %c0_33 = arith.constant 0 : index
    %75 = vector.load %arg6[%c288, %c0_33] : memref<2592x256xbf16, #tpu.memory_space<vmem>>, vector<32x256xbf16>
    %cst_34 = arith.constant dense<0.000000e+00> : vector<8x256xf32>
    %76 = tpu.matmul %74, %75, %cst_34 {dimension_numbers = #tpu.dot_dimension_numbers<[1], [0], [0], [1], [0, 0, 1, 1], [], []>} : vector<8x32xbf16>, vector<32x256xbf16>, vector<8x256xf32> -> vector<8x256xf32>
    %77 = arith.addf %72, %76 : vector<8x256xf32>
    %78 = vector.extract_strided_slice %26 {offsets = [88, 0], sizes = [8, 32], strides = [1, 1]} : vector<712x32xf32> to vector<8x32xf32>
    %79 = arith.truncf %78 : vector<8x32xf32> to vector<8x32xbf16>
    %c320 = arith.constant 320 : index
    %c0_35 = arith.constant 0 : index
    %80 = vector.load %arg6[%c320, %c0_35] : memref<2592x256xbf16, #tpu.memory_space<vmem>>, vector<32x256xbf16>
    %cst_36 = arith.constant dense<0.000000e+00> : vector<8x256xf32>
    %81 = tpu.matmul %79, %80, %cst_36 {dimension_numbers = #tpu.dot_dimension_numbers<[1], [0], [0], [1], [0, 0, 1, 1], [], []>} : vector<8x32xbf16>, vector<32x256xbf16>, vector<8x256xf32> -> vector<8x256xf32>
    %82 = arith.addf %77, %81 : vector<8x256xf32>
    %83 = vector.extract_strided_slice %26 {offsets = [96, 0], sizes = [8, 32], strides = [1, 1]} : vector<712x32xf32> to vector<8x32xf32>
    %84 = arith.truncf %83 : vector<8x32xf32> to vector<8x32xbf16>
    %c352 = arith.constant 352 : index
    %c0_37 = arith.constant 0 : index
    %85 = vector.load %arg6[%c352, %c0_37] : memref<2592x256xbf16, #tpu.memory_space<vmem>>, vector<32x256xbf16>
    %cst_38 = arith.constant dense<0.000000e+00> : vector<8x256xf32>
    %86 = tpu.matmul %84, %85, %cst_38 {dimension_numbers = #tpu.dot_dimension_numbers<[1], [0], [0], [1], [0, 0, 1, 1], [], []>} : vector<8x32xbf16>, vector<32x256xbf16>, vector<8x256xf32> -> vector<8x256xf32>
    %87 = arith.addf %82, %86 : vector<8x256xf32>
    %88 = vector.extract_strided_slice %26 {offsets = [104, 0], sizes = [8, 32], strides = [1, 1]} : vector<712x32xf32> to vector<8x32xf32>
    %89 = arith.truncf %88 : vector<8x32xf32> to vector<8x32xbf16>
    %c384 = arith.constant 384 : index
    %c0_39 = arith.constant 0 : index
    %90 = vector.load %arg6[%c384, %c0_39] : memref<2592x256xbf16, #tpu.memory_space<vmem>>, vector<32x256xbf16>
    %cst_40 = arith.constant dense<0.000000e+00> : vector<8x256xf32>
    %91 = tpu.matmul %89, %90, %cst_40 {dimension_numbers = #tpu.dot_dimension_numbers<[1], [0], [0], [1], [0, 0, 1, 1], [], []>} : vector<8x32xbf16>, vector<32x256xbf16>, vector<8x256xf32> -> vector<8x256xf32>
    %92 = arith.addf %87, %91 : vector<8x256xf32>
    %93 = vector.extract_strided_slice %26 {offsets = [112, 0], sizes = [8, 32], strides = [1, 1]} : vector<712x32xf32> to vector<8x32xf32>
    %94 = arith.truncf %93 : vector<8x32xf32> to vector<8x32xbf16>
    %c416 = arith.constant 416 : index
    %c0_41 = arith.constant 0 : index
    %95 = vector.load %arg6[%c416, %c0_41] : memref<2592x256xbf16, #tpu.memory_space<vmem>>, vector<32x256xbf16>
    %cst_42 = arith.constant dense<0.000000e+00> : vector<8x256xf32>
    %96 = tpu.matmul %94, %95, %cst_42 {dimension_numbers = #tpu.dot_dimension_numbers<[1], [0], [0], [1], [0, 0, 1, 1], [], []>} : vector<8x32xbf16>, vector<32x256xbf16>, vector<8x256xf32> -> vector<8x256xf32>
    %97 = arith.addf %92, %96 : vector<8x256xf32>
    %98 = vector.extract_strided_slice %26 {offsets = [120, 0], sizes = [8, 32], strides = [1, 1]} : vector<712x32xf32> to vector<8x32xf32>
    %99 = arith.truncf %98 : vector<8x32xf32> to vector<8x32xbf16>
    %c448 = arith.constant 448 : index
    %c0_43 = arith.constant 0 : index
    %100 = vector.load %arg6[%c448, %c0_43] : memref<2592x256xbf16, #tpu.memory_space<vmem>>, vector<32x256xbf16>
    %cst_44 = arith.constant dense<0.000000e+00> : vector<8x256xf32>
    %101 = tpu.matmul %99, %100, %cst_44 {dimension_numbers = #tpu.dot_dimension_numbers<[1], [0], [0], [1], [0, 0, 1, 1], [], []>} : vector<8x32xbf16>, vector<32x256xbf16>, vector<8x256xf32> -> vector<8x256xf32>
    %102 = arith.addf %97, %101 : vector<8x256xf32>
    %103 = vector.extract_strided_slice %26 {offsets = [128, 0], sizes = [8, 32], strides = [1, 1]} : vector<712x32xf32> to vector<8x32xf32>
    %104 = arith.truncf %103 : vector<8x32xf32> to vector<8x32xbf16>
    %c480 = arith.constant 480 : index
    %c0_45 = arith.constant 0 : index
    %105 = vector.load %arg6[%c480, %c0_45] : memref<2592x256xbf16, #tpu.memory_space<vmem>>, vector<32x256xbf16>
    %cst_46 = arith.constant dense<0.000000e+00> : vector<8x256xf32>
    %106 = tpu.matmul %104, %105, %cst_46 {dimension_numbers = #tpu.dot_dimension_numbers<[1], [0], [0], [1], [0, 0, 1, 1], [], []>} : vector<8x32xbf16>, vector<32x256xbf16>, vector<8x256xf32> -> vector<8x256xf32>
    %107 = arith.addf %102, %106 : vector<8x256xf32>
    %108 = vector.extract_strided_slice %26 {offsets = [136, 0], sizes = [8, 32], strides = [1, 1]} : vector<712x32xf32> to vector<8x32xf32>
    %109 = arith.truncf %108 : vector<8x32xf32> to vector<8x32xbf16>
    %c512 = arith.constant 512 : index
    %c0_47 = arith.constant 0 : index
    %110 = vector.load %arg6[%c512, %c0_47] : memref<2592x256xbf16, #tpu.memory_space<vmem>>, vector<32x256xbf16>
    %cst_48 = arith.constant dense<0.000000e+00> : vector<8x256xf32>
    %111 = tpu.matmul %109, %110, %cst_48 {dimension_numbers = #tpu.dot_dimension_numbers<[1], [0], [0], [1], [0, 0, 1, 1], [], []>} : vector<8x32xbf16>, vector<32x256xbf16>, vector<8x256xf32> -> vector<8x256xf32>
    %112 = arith.addf %107, %111 : vector<8x256xf32>
    %113 = vector.extract_strided_slice %26 {offsets = [144, 0], sizes = [8, 32], strides = [1, 1]} : vector<712x32xf32> to vector<8x32xf32>
    %114 = arith.truncf %113 : vector<8x32xf32> to vector<8x32xbf16>
    %c544 = arith.constant 544 : index
    %c0_49 = arith.constant 0 : index
    %115 = vector.load %arg6[%c544, %c0_49] : memref<2592x256xbf16, #tpu.memory_space<vmem>>, vector<32x256xbf16>
    %cst_50 = arith.constant dense<0.000000e+00> : vector<8x256xf32>
    %116 = tpu.matmul %114, %115, %cst_50 {dimension_numbers = #tpu.dot_dimension_numbers<[1], [0], [0], [1], [0, 0, 1, 1], [], []>} : vector<8x32xbf16>, vector<32x256xbf16>, vector<8x256xf32> -> vector<8x256xf32>
    %117 = arith.addf %112, %116 : vector<8x256xf32>
    %118 = vector.extract_strided_slice %26 {offsets = [160, 0], sizes = [8, 32], strides = [1, 1]} : vector<712x32xf32> to vector<8x32xf32>
    %119 = arith.truncf %118 : vector<8x32xf32> to vector<8x32xbf16>
    %c576 = arith.constant 576 : index
    %c0_51 = arith.constant 0 : index
    %120 = vector.load %arg6[%c576, %c0_51] : memref<2592x256xbf16, #tpu.memory_space<vmem>>, vector<32x256xbf16>
    %cst_52 = arith.constant dense<0.000000e+00> : vector<8x256xf32>
    %121 = tpu.matmul %119, %120, %cst_52 {dimension_numbers = #tpu.dot_dimension_numbers<[1], [0], [0], [1], [0, 0, 1, 1], [], []>} : vector<8x32xbf16>, vector<32x256xbf16>, vector<8x256xf32> -> vector<8x256xf32>
    %122 = arith.addf %117, %121 : vector<8x256xf32>
    %123 = vector.extract_strided_slice %26 {offsets = [168, 0], sizes = [8, 32], strides = [1, 1]} : vector<712x32xf32> to vector<8x32xf32>
    %124 = arith.truncf %123 : vector<8x32xf32> to vector<8x32xbf16>
    %c608 = arith.constant 608 : index
    %c0_53 = arith.constant 0 : index
    %125 = vector.load %arg6[%c608, %c0_53] : memref<2592x256xbf16, #tpu.memory_space<vmem>>, vector<32x256xbf16>
    %cst_54 = arith.constant dense<0.000000e+00> : vector<8x256xf32>
    %126 = tpu.matmul %124, %125, %cst_54 {dimension_numbers = #tpu.dot_dimension_numbers<[1], [0], [0], [1], [0, 0, 1, 1], [], []>} : vector<8x32xbf16>, vector<32x256xbf16>, vector<8x256xf32> -> vector<8x256xf32>
    %127 = arith.addf %122, %126 : vector<8x256xf32>
    %128 = vector.extract_strided_slice %26 {offsets = [176, 0], sizes = [8, 32], strides = [1, 1]} : vector<712x32xf32> to vector<8x32xf32>
    %129 = arith.truncf %128 : vector<8x32xf32> to vector<8x32xbf16>
    %c640 = arith.constant 640 : index
    %c0_55 = arith.constant 0 : index
    %130 = vector.load %arg6[%c640, %c0_55] : memref<2592x256xbf16, #tpu.memory_space<vmem>>, vector<32x256xbf16>
    %cst_56 = arith.constant dense<0.000000e+00> : vector<8x256xf32>
    %131 = tpu.matmul %129, %130, %cst_56 {dimension_numbers = #tpu.dot_dimension_numbers<[1], [0], [0], [1], [0, 0, 1, 1], [], []>} : vector<8x32xbf16>, vector<32x256xbf16>, vector<8x256xf32> -> vector<8x256xf32>
    %132 = arith.addf %127, %131 : vector<8x256xf32>
    %133 = vector.extract_strided_slice %26 {offsets = [184, 0], sizes = [8, 32], strides = [1, 1]} : vector<712x32xf32> to vector<8x32xf32>
    %134 = arith.truncf %133 : vector<8x32xf32> to vector<8x32xbf16>
    %c672 = arith.constant 672 : index
    %c0_57 = arith.constant 0 : index
    %135 = vector.load %arg6[%c672, %c0_57] : memref<2592x256xbf16, #tpu.memory_space<vmem>>, vector<32x256xbf16>
    %cst_58 = arith.constant dense<0.000000e+00> : vector<8x256xf32>
    %136 = tpu.matmul %134, %135, %cst_58 {dimension_numbers = #tpu.dot_dimension_numbers<[1], [0], [0], [1], [0, 0, 1, 1], [], []>} : vector<8x32xbf16>, vector<32x256xbf16>, vector<8x256xf32> -> vector<8x256xf32>
    %137 = arith.addf %132, %136 : vector<8x256xf32>
    %138 = vector.extract_strided_slice %26 {offsets = [192, 0], sizes = [8, 32], strides = [1, 1]} : vector<712x32xf32> to vector<8x32xf32>
    %139 = arith.truncf %138 : vector<8x32xf32> to vector<8x32xbf16>
    %c704 = arith.constant 704 : index
    %c0_59 = arith.constant 0 : index
    %140 = vector.load %arg6[%c704, %c0_59] : memref<2592x256xbf16, #tpu.memory_space<vmem>>, vector<32x256xbf16>
    %cst_60 = arith.constant dense<0.000000e+00> : vector<8x256xf32>
    %141 = tpu.matmul %139, %140, %cst_60 {dimension_numbers = #tpu.dot_dimension_numbers<[1], [0], [0], [1], [0, 0, 1, 1], [], []>} : vector<8x32xbf16>, vector<32x256xbf16>, vector<8x256xf32> -> vector<8x256xf32>
    %142 = arith.addf %137, %141 : vector<8x256xf32>
    %143 = vector.extract_strided_slice %26 {offsets = [200, 0], sizes = [8, 32], strides = [1, 1]} : vector<712x32xf32> to vector<8x32xf32>
    %144 = arith.truncf %143 : vector<8x32xf32> to vector<8x32xbf16>
    %c736 = arith.constant 736 : index
    %c0_61 = arith.constant 0 : index
    %145 = vector.load %arg6[%c736, %c0_61] : memref<2592x256xbf16, #tpu.memory_space<vmem>>, vector<32x256xbf16>
    %cst_62 = arith.constant dense<0.000000e+00> : vector<8x256xf32>
    %146 = tpu.matmul %144, %145, %cst_62 {dimension_numbers = #tpu.dot_dimension_numbers<[1], [0], [0], [1], [0, 0, 1, 1], [], []>} : vector<8x32xbf16>, vector<32x256xbf16>, vector<8x256xf32> -> vector<8x256xf32>
    %147 = arith.addf %142, %146 : vector<8x256xf32>
    %148 = vector.extract_strided_slice %26 {offsets = [208, 0], sizes = [8, 32], strides = [1, 1]} : vector<712x32xf32> to vector<8x32xf32>
    %149 = arith.truncf %148 : vector<8x32xf32> to vector<8x32xbf16>
    %c768 = arith.constant 768 : index
    %c0_63 = arith.constant 0 : index
    %150 = vector.load %arg6[%c768, %c0_63] : memref<2592x256xbf16, #tpu.memory_space<vmem>>, vector<32x256xbf16>
    %cst_64 = arith.constant dense<0.000000e+00> : vector<8x256xf32>
    %151 = tpu.matmul %149, %150, %cst_64 {dimension_numbers = #tpu.dot_dimension_numbers<[1], [0], [0], [1], [0, 0, 1, 1], [], []>} : vector<8x32xbf16>, vector<32x256xbf16>, vector<8x256xf32> -> vector<8x256xf32>
    %152 = arith.addf %147, %151 : vector<8x256xf32>
    %153 = vector.extract_strided_slice %26 {offsets = [216, 0], sizes = [8, 32], strides = [1, 1]} : vector<712x32xf32> to vector<8x32xf32>
    %154 = arith.truncf %153 : vector<8x32xf32> to vector<8x32xbf16>
    %c800 = arith.constant 800 : index
    %c0_65 = arith.constant 0 : index
    %155 = vector.load %arg6[%c800, %c0_65] : memref<2592x256xbf16, #tpu.memory_space<vmem>>, vector<32x256xbf16>
    %cst_66 = arith.constant dense<0.000000e+00> : vector<8x256xf32>
    %156 = tpu.matmul %154, %155, %cst_66 {dimension_numbers = #tpu.dot_dimension_numbers<[1], [0], [0], [1], [0, 0, 1, 1], [], []>} : vector<8x32xbf16>, vector<32x256xbf16>, vector<8x256xf32> -> vector<8x256xf32>
    %157 = arith.addf %152, %156 : vector<8x256xf32>
    %158 = vector.extract_strided_slice %26 {offsets = [224, 0], sizes = [8, 32], strides = [1, 1]} : vector<712x32xf32> to vector<8x32xf32>
    %159 = arith.truncf %158 : vector<8x32xf32> to vector<8x32xbf16>
    %c832 = arith.constant 832 : index
    %c0_67 = arith.constant 0 : index
    %160 = vector.load %arg6[%c832, %c0_67] : memref<2592x256xbf16, #tpu.memory_space<vmem>>, vector<32x256xbf16>
    %cst_68 = arith.constant dense<0.000000e+00> : vector<8x256xf32>
    %161 = tpu.matmul %159, %160, %cst_68 {dimension_numbers = #tpu.dot_dimension_numbers<[1], [0], [0], [1], [0, 0, 1, 1], [], []>} : vector<8x32xbf16>, vector<32x256xbf16>, vector<8x256xf32> -> vector<8x256xf32>
    %162 = arith.addf %157, %161 : vector<8x256xf32>
    %163 = vector.extract_strided_slice %26 {offsets = [240, 0], sizes = [8, 32], strides = [1, 1]} : vector<712x32xf32> to vector<8x32xf32>
    %164 = arith.truncf %163 : vector<8x32xf32> to vector<8x32xbf16>
    %c864 = arith.constant 864 : index
    %c0_69 = arith.constant 0 : index
    %165 = vector.load %arg6[%c864, %c0_69] : memref<2592x256xbf16, #tpu.memory_space<vmem>>, vector<32x256xbf16>
    %cst_70 = arith.constant dense<0.000000e+00> : vector<8x256xf32>
    %166 = tpu.matmul %164, %165, %cst_70 {dimension_numbers = #tpu.dot_dimension_numbers<[1], [0], [0], [1], [0, 0, 1, 1], [], []>} : vector<8x32xbf16>, vector<32x256xbf16>, vector<8x256xf32> -> vector<8x256xf32>
    %167 = arith.addf %162, %166 : vector<8x256xf32>
    %168 = vector.extract_strided_slice %26 {offsets = [248, 0], sizes = [8, 32], strides = [1, 1]} : vector<712x32xf32> to vector<8x32xf32>
    %169 = arith.truncf %168 : vector<8x32xf32> to vector<8x32xbf16>
    %c896 = arith.constant 896 : index
    %c0_71 = arith.constant 0 : index
    %170 = vector.load %arg6[%c896, %c0_71] : memref<2592x256xbf16, #tpu.memory_space<vmem>>, vector<32x256xbf16>
    %cst_72 = arith.constant dense<0.000000e+00> : vector<8x256xf32>
    %171 = tpu.matmul %169, %170, %cst_72 {dimension_numbers = #tpu.dot_dimension_numbers<[1], [0], [0], [1], [0, 0, 1, 1], [], []>} : vector<8x32xbf16>, vector<32x256xbf16>, vector<8x256xf32> -> vector<8x256xf32>
    %172 = arith.addf %167, %171 : vector<8x256xf32>
    %173 = vector.extract_strided_slice %26 {offsets = [256, 0], sizes = [8, 32], strides = [1, 1]} : vector<712x32xf32> to vector<8x32xf32>
    %174 = arith.truncf %173 : vector<8x32xf32> to vector<8x32xbf16>
    %c928 = arith.constant 928 : index
    %c0_73 = arith.constant 0 : index
    %175 = vector.load %arg6[%c928, %c0_73] : memref<2592x256xbf16, #tpu.memory_space<vmem>>, vector<32x256xbf16>
    %cst_74 = arith.constant dense<0.000000e+00> : vector<8x256xf32>
    %176 = tpu.matmul %174, %175, %cst_74 {dimension_numbers = #tpu.dot_dimension_numbers<[1], [0], [0], [1], [0, 0, 1, 1], [], []>} : vector<8x32xbf16>, vector<32x256xbf16>, vector<8x256xf32> -> vector<8x256xf32>
    %177 = arith.addf %172, %176 : vector<8x256xf32>
    %178 = vector.extract_strided_slice %26 {offsets = [264, 0], sizes = [8, 32], strides = [1, 1]} : vector<712x32xf32> to vector<8x32xf32>
    %179 = arith.truncf %178 : vector<8x32xf32> to vector<8x32xbf16>
    %c960 = arith.constant 960 : index
    %c0_75 = arith.constant 0 : index
    %180 = vector.load %arg6[%c960, %c0_75] : memref<2592x256xbf16, #tpu.memory_space<vmem>>, vector<32x256xbf16>
    %cst_76 = arith.constant dense<0.000000e+00> : vector<8x256xf32>
    %181 = tpu.matmul %179, %180, %cst_76 {dimension_numbers = #tpu.dot_dimension_numbers<[1], [0], [0], [1], [0, 0, 1, 1], [], []>} : vector<8x32xbf16>, vector<32x256xbf16>, vector<8x256xf32> -> vector<8x256xf32>
    %182 = arith.addf %177, %181 : vector<8x256xf32>
    %183 = vector.extract_strided_slice %26 {offsets = [272, 0], sizes = [8, 32], strides = [1, 1]} : vector<712x32xf32> to vector<8x32xf32>
    %184 = arith.truncf %183 : vector<8x32xf32> to vector<8x32xbf16>
    %c992 = arith.constant 992 : index
    %c0_77 = arith.constant 0 : index
    %185 = vector.load %arg6[%c992, %c0_77] : memref<2592x256xbf16, #tpu.memory_space<vmem>>, vector<32x256xbf16>
    %cst_78 = arith.constant dense<0.000000e+00> : vector<8x256xf32>
    %186 = tpu.matmul %184, %185, %cst_78 {dimension_numbers = #tpu.dot_dimension_numbers<[1], [0], [0], [1], [0, 0, 1, 1], [], []>} : vector<8x32xbf16>, vector<32x256xbf16>, vector<8x256xf32> -> vector<8x256xf32>
    %187 = arith.addf %182, %186 : vector<8x256xf32>
    %188 = vector.extract_strided_slice %26 {offsets = [280, 0], sizes = [8, 32], strides = [1, 1]} : vector<712x32xf32> to vector<8x32xf32>
    %189 = arith.truncf %188 : vector<8x32xf32> to vector<8x32xbf16>
    %c1024 = arith.constant 1024 : index
    %c0_79 = arith.constant 0 : index
    %190 = vector.load %arg6[%c1024, %c0_79] : memref<2592x256xbf16, #tpu.memory_space<vmem>>, vector<32x256xbf16>
    %cst_80 = arith.constant dense<0.000000e+00> : vector<8x256xf32>
    %191 = tpu.matmul %189, %190, %cst_80 {dimension_numbers = #tpu.dot_dimension_numbers<[1], [0], [0], [1], [0, 0, 1, 1], [], []>} : vector<8x32xbf16>, vector<32x256xbf16>, vector<8x256xf32> -> vector<8x256xf32>
    %192 = arith.addf %187, %191 : vector<8x256xf32>
    %193 = vector.extract_strided_slice %26 {offsets = [288, 0], sizes = [8, 32], strides = [1, 1]} : vector<712x32xf32> to vector<8x32xf32>
    %194 = arith.truncf %193 : vector<8x32xf32> to vector<8x32xbf16>
    %c1056 = arith.constant 1056 : index
    %c0_81 = arith.constant 0 : index
    %195 = vector.load %arg6[%c1056, %c0_81] : memref<2592x256xbf16, #tpu.memory_space<vmem>>, vector<32x256xbf16>
    %cst_82 = arith.constant dense<0.000000e+00> : vector<8x256xf32>
    %196 = tpu.matmul %194, %195, %cst_82 {dimension_numbers = #tpu.dot_dimension_numbers<[1], [0], [0], [1], [0, 0, 1, 1], [], []>} : vector<8x32xbf16>, vector<32x256xbf16>, vector<8x256xf32> -> vector<8x256xf32>
    %197 = arith.addf %192, %196 : vector<8x256xf32>
    %198 = vector.extract_strided_slice %26 {offsets = [296, 0], sizes = [8, 32], strides = [1, 1]} : vector<712x32xf32> to vector<8x32xf32>
    %199 = arith.truncf %198 : vector<8x32xf32> to vector<8x32xbf16>
    %c1088 = arith.constant 1088 : index
    %c0_83 = arith.constant 0 : index
    %200 = vector.load %arg6[%c1088, %c0_83] : memref<2592x256xbf16, #tpu.memory_space<vmem>>, vector<32x256xbf16>
    %cst_84 = arith.constant dense<0.000000e+00> : vector<8x256xf32>
    %201 = tpu.matmul %199, %200, %cst_84 {dimension_numbers = #tpu.dot_dimension_numbers<[1], [0], [0], [1], [0, 0, 1, 1], [], []>} : vector<8x32xbf16>, vector<32x256xbf16>, vector<8x256xf32> -> vector<8x256xf32>
    %202 = arith.addf %197, %201 : vector<8x256xf32>
    %203 = vector.extract_strided_slice %26 {offsets = [304, 0], sizes = [8, 32], strides = [1, 1]} : vector<712x32xf32> to vector<8x32xf32>
    %204 = arith.truncf %203 : vector<8x32xf32> to vector<8x32xbf16>
    %c1120 = arith.constant 1120 : index
    %c0_85 = arith.constant 0 : index
    %205 = vector.load %arg6[%c1120, %c0_85] : memref<2592x256xbf16, #tpu.memory_space<vmem>>, vector<32x256xbf16>
    %cst_86 = arith.constant dense<0.000000e+00> : vector<8x256xf32>
    %206 = tpu.matmul %204, %205, %cst_86 {dimension_numbers = #tpu.dot_dimension_numbers<[1], [0], [0], [1], [0, 0, 1, 1], [], []>} : vector<8x32xbf16>, vector<32x256xbf16>, vector<8x256xf32> -> vector<8x256xf32>
    %207 = arith.addf %202, %206 : vector<8x256xf32>
    %208 = vector.extract_strided_slice %26 {offsets = [320, 0], sizes = [8, 32], strides = [1, 1]} : vector<712x32xf32> to vector<8x32xf32>
    %209 = arith.truncf %208 : vector<8x32xf32> to vector<8x32xbf16>
    %c1152 = arith.constant 1152 : index
    %c0_87 = arith.constant 0 : index
    %210 = vector.load %arg6[%c1152, %c0_87] : memref<2592x256xbf16, #tpu.memory_space<vmem>>, vector<32x256xbf16>
    %cst_88 = arith.constant dense<0.000000e+00> : vector<8x256xf32>
    %211 = tpu.matmul %209, %210, %cst_88 {dimension_numbers = #tpu.dot_dimension_numbers<[1], [0], [0], [1], [0, 0, 1, 1], [], []>} : vector<8x32xbf16>, vector<32x256xbf16>, vector<8x256xf32> -> vector<8x256xf32>
    %212 = arith.addf %207, %211 : vector<8x256xf32>
    %213 = vector.extract_strided_slice %26 {offsets = [328, 0], sizes = [8, 32], strides = [1, 1]} : vector<712x32xf32> to vector<8x32xf32>
    %214 = arith.truncf %213 : vector<8x32xf32> to vector<8x32xbf16>
    %c1184 = arith.constant 1184 : index
    %c0_89 = arith.constant 0 : index
    %215 = vector.load %arg6[%c1184, %c0_89] : memref<2592x256xbf16, #tpu.memory_space<vmem>>, vector<32x256xbf16>
    %cst_90 = arith.constant dense<0.000000e+00> : vector<8x256xf32>
    %216 = tpu.matmul %214, %215, %cst_90 {dimension_numbers = #tpu.dot_dimension_numbers<[1], [0], [0], [1], [0, 0, 1, 1], [], []>} : vector<8x32xbf16>, vector<32x256xbf16>, vector<8x256xf32> -> vector<8x256xf32>
    %217 = arith.addf %212, %216 : vector<8x256xf32>
    %218 = vector.extract_strided_slice %26 {offsets = [336, 0], sizes = [8, 32], strides = [1, 1]} : vector<712x32xf32> to vector<8x32xf32>
    %219 = arith.truncf %218 : vector<8x32xf32> to vector<8x32xbf16>
    %c1216 = arith.constant 1216 : index
    %c0_91 = arith.constant 0 : index
    %220 = vector.load %arg6[%c1216, %c0_91] : memref<2592x256xbf16, #tpu.memory_space<vmem>>, vector<32x256xbf16>
    %cst_92 = arith.constant dense<0.000000e+00> : vector<8x256xf32>
    %221 = tpu.matmul %219, %220, %cst_92 {dimension_numbers = #tpu.dot_dimension_numbers<[1], [0], [0], [1], [0, 0, 1, 1], [], []>} : vector<8x32xbf16>, vector<32x256xbf16>, vector<8x256xf32> -> vector<8x256xf32>
    %222 = arith.addf %217, %221 : vector<8x256xf32>
    %223 = vector.extract_strided_slice %26 {offsets = [344, 0], sizes = [8, 32], strides = [1, 1]} : vector<712x32xf32> to vector<8x32xf32>
    %224 = arith.truncf %223 : vector<8x32xf32> to vector<8x32xbf16>
    %c1248 = arith.constant 1248 : index
    %c0_93 = arith.constant 0 : index
    %225 = vector.load %arg6[%c1248, %c0_93] : memref<2592x256xbf16, #tpu.memory_space<vmem>>, vector<32x256xbf16>
    %cst_94 = arith.constant dense<0.000000e+00> : vector<8x256xf32>
    %226 = tpu.matmul %224, %225, %cst_94 {dimension_numbers = #tpu.dot_dimension_numbers<[1], [0], [0], [1], [0, 0, 1, 1], [], []>} : vector<8x32xbf16>, vector<32x256xbf16>, vector<8x256xf32> -> vector<8x256xf32>
    %227 = arith.addf %222, %226 : vector<8x256xf32>
    %228 = vector.extract_strided_slice %26 {offsets = [352, 0], sizes = [8, 32], strides = [1, 1]} : vector<712x32xf32> to vector<8x32xf32>
    %229 = arith.truncf %228 : vector<8x32xf32> to vector<8x32xbf16>
    %c1280 = arith.constant 1280 : index
    %c0_95 = arith.constant 0 : index
    %230 = vector.load %arg6[%c1280, %c0_95] : memref<2592x256xbf16, #tpu.memory_space<vmem>>, vector<32x256xbf16>
    %cst_96 = arith.constant dense<0.000000e+00> : vector<8x256xf32>
    %231 = tpu.matmul %229, %230, %cst_96 {dimension_numbers = #tpu.dot_dimension_numbers<[1], [0], [0], [1], [0, 0, 1, 1], [], []>} : vector<8x32xbf16>, vector<32x256xbf16>, vector<8x256xf32> -> vector<8x256xf32>
    %232 = arith.addf %227, %231 : vector<8x256xf32>
    %233 = vector.extract_strided_slice %26 {offsets = [360, 0], sizes = [8, 32], strides = [1, 1]} : vector<712x32xf32> to vector<8x32xf32>
    %234 = arith.truncf %233 : vector<8x32xf32> to vector<8x32xbf16>
    %c1312 = arith.constant 1312 : index
    %c0_97 = arith.constant 0 : index
    %235 = vector.load %arg6[%c1312, %c0_97] : memref<2592x256xbf16, #tpu.memory_space<vmem>>, vector<32x256xbf16>
    %cst_98 = arith.constant dense<0.000000e+00> : vector<8x256xf32>
    %236 = tpu.matmul %234, %235, %cst_98 {dimension_numbers = #tpu.dot_dimension_numbers<[1], [0], [0], [1], [0, 0, 1, 1], [], []>} : vector<8x32xbf16>, vector<32x256xbf16>, vector<8x256xf32> -> vector<8x256xf32>
    %237 = arith.addf %232, %236 : vector<8x256xf32>
    %238 = vector.extract_strided_slice %26 {offsets = [368, 0], sizes = [8, 32], strides = [1, 1]} : vector<712x32xf32> to vector<8x32xf32>
    %239 = arith.truncf %238 : vector<8x32xf32> to vector<8x32xbf16>
    %c1344 = arith.constant 1344 : index
    %c0_99 = arith.constant 0 : index
    %240 = vector.load %arg6[%c1344, %c0_99] : memref<2592x256xbf16, #tpu.memory_space<vmem>>, vector<32x256xbf16>
    %cst_100 = arith.constant dense<0.000000e+00> : vector<8x256xf32>
    %241 = tpu.matmul %239, %240, %cst_100 {dimension_numbers = #tpu.dot_dimension_numbers<[1], [0], [0], [1], [0, 0, 1, 1], [], []>} : vector<8x32xbf16>, vector<32x256xbf16>, vector<8x256xf32> -> vector<8x256xf32>
    %242 = arith.addf %237, %241 : vector<8x256xf32>
    %243 = vector.extract_strided_slice %26 {offsets = [376, 0], sizes = [8, 32], strides = [1, 1]} : vector<712x32xf32> to vector<8x32xf32>
    %244 = arith.truncf %243 : vector<8x32xf32> to vector<8x32xbf16>
    %c1376 = arith.constant 1376 : index
    %c0_101 = arith.constant 0 : index
    %245 = vector.load %arg6[%c1376, %c0_101] : memref<2592x256xbf16, #tpu.memory_space<vmem>>, vector<32x256xbf16>
    %cst_102 = arith.constant dense<0.000000e+00> : vector<8x256xf32>
    %246 = tpu.matmul %244, %245, %cst_102 {dimension_numbers = #tpu.dot_dimension_numbers<[1], [0], [0], [1], [0, 0, 1, 1], [], []>} : vector<8x32xbf16>, vector<32x256xbf16>, vector<8x256xf32> -> vector<8x256xf32>
    %247 = arith.addf %242, %246 : vector<8x256xf32>
    %248 = vector.extract_strided_slice %26 {offsets = [384, 0], sizes = [8, 32], strides = [1, 1]} : vector<712x32xf32> to vector<8x32xf32>
    %249 = arith.truncf %248 : vector<8x32xf32> to vector<8x32xbf16>
    %c1408 = arith.constant 1408 : index
    %c0_103 = arith.constant 0 : index
    %250 = vector.load %arg6[%c1408, %c0_103] : memref<2592x256xbf16, #tpu.memory_space<vmem>>, vector<32x256xbf16>
    %cst_104 = arith.constant dense<0.000000e+00> : vector<8x256xf32>
    %251 = tpu.matmul %249, %250, %cst_104 {dimension_numbers = #tpu.dot_dimension_numbers<[1], [0], [0], [1], [0, 0, 1, 1], [], []>} : vector<8x32xbf16>, vector<32x256xbf16>, vector<8x256xf32> -> vector<8x256xf32>
    %252 = arith.addf %247, %251 : vector<8x256xf32>
    %253 = vector.extract_strided_slice %26 {offsets = [400, 0], sizes = [8, 32], strides = [1, 1]} : vector<712x32xf32> to vector<8x32xf32>
    %254 = arith.truncf %253 : vector<8x32xf32> to vector<8x32xbf16>
    %c1440 = arith.constant 1440 : index
    %c0_105 = arith.constant 0 : index
    %255 = vector.load %arg6[%c1440, %c0_105] : memref<2592x256xbf16, #tpu.memory_space<vmem>>, vector<32x256xbf16>
    %cst_106 = arith.constant dense<0.000000e+00> : vector<8x256xf32>
    %256 = tpu.matmul %254, %255, %cst_106 {dimension_numbers = #tpu.dot_dimension_numbers<[1], [0], [0], [1], [0, 0, 1, 1], [], []>} : vector<8x32xbf16>, vector<32x256xbf16>, vector<8x256xf32> -> vector<8x256xf32>
    %257 = arith.addf %252, %256 : vector<8x256xf32>
    %258 = vector.extract_strided_slice %26 {offsets = [408, 0], sizes = [8, 32], strides = [1, 1]} : vector<712x32xf32> to vector<8x32xf32>
    %259 = arith.truncf %258 : vector<8x32xf32> to vector<8x32xbf16>
    %c1472 = arith.constant 1472 : index
    %c0_107 = arith.constant 0 : index
    %260 = vector.load %arg6[%c1472, %c0_107] : memref<2592x256xbf16, #tpu.memory_space<vmem>>, vector<32x256xbf16>
    %cst_108 = arith.constant dense<0.000000e+00> : vector<8x256xf32>
    %261 = tpu.matmul %259, %260, %cst_108 {dimension_numbers = #tpu.dot_dimension_numbers<[1], [0], [0], [1], [0, 0, 1, 1], [], []>} : vector<8x32xbf16>, vector<32x256xbf16>, vector<8x256xf32> -> vector<8x256xf32>
    %262 = arith.addf %257, %261 : vector<8x256xf32>
    %263 = vector.extract_strided_slice %26 {offsets = [416, 0], sizes = [8, 32], strides = [1, 1]} : vector<712x32xf32> to vector<8x32xf32>
    %264 = arith.truncf %263 : vector<8x32xf32> to vector<8x32xbf16>
    %c1504 = arith.constant 1504 : index
    %c0_109 = arith.constant 0 : index
    %265 = vector.load %arg6[%c1504, %c0_109] : memref<2592x256xbf16, #tpu.memory_space<vmem>>, vector<32x256xbf16>
    %cst_110 = arith.constant dense<0.000000e+00> : vector<8x256xf32>
    %266 = tpu.matmul %264, %265, %cst_110 {dimension_numbers = #tpu.dot_dimension_numbers<[1], [0], [0], [1], [0, 0, 1, 1], [], []>} : vector<8x32xbf16>, vector<32x256xbf16>, vector<8x256xf32> -> vector<8x256xf32>
    %267 = arith.addf %262, %266 : vector<8x256xf32>
    %268 = vector.extract_strided_slice %26 {offsets = [424, 0], sizes = [8, 32], strides = [1, 1]} : vector<712x32xf32> to vector<8x32xf32>
    %269 = arith.truncf %268 : vector<8x32xf32> to vector<8x32xbf16>
    %c1536 = arith.constant 1536 : index
    %c0_111 = arith.constant 0 : index
    %270 = vector.load %arg6[%c1536, %c0_111] : memref<2592x256xbf16, #tpu.memory_space<vmem>>, vector<32x256xbf16>
    %cst_112 = arith.constant dense<0.000000e+00> : vector<8x256xf32>
    %271 = tpu.matmul %269, %270, %cst_112 {dimension_numbers = #tpu.dot_dimension_numbers<[1], [0], [0], [1], [0, 0, 1, 1], [], []>} : vector<8x32xbf16>, vector<32x256xbf16>, vector<8x256xf32> -> vector<8x256xf32>
    %272 = arith.addf %267, %271 : vector<8x256xf32>
    %273 = vector.extract_strided_slice %26 {offsets = [432, 0], sizes = [8, 32], strides = [1, 1]} : vector<712x32xf32> to vector<8x32xf32>
    %274 = arith.truncf %273 : vector<8x32xf32> to vector<8x32xbf16>
    %c1568 = arith.constant 1568 : index
    %c0_113 = arith.constant 0 : index
    %275 = vector.load %arg6[%c1568, %c0_113] : memref<2592x256xbf16, #tpu.memory_space<vmem>>, vector<32x256xbf16>
    %cst_114 = arith.constant dense<0.000000e+00> : vector<8x256xf32>
    %276 = tpu.matmul %274, %275, %cst_114 {dimension_numbers = #tpu.dot_dimension_numbers<[1], [0], [0], [1], [0, 0, 1, 1], [], []>} : vector<8x32xbf16>, vector<32x256xbf16>, vector<8x256xf32> -> vector<8x256xf32>
    %277 = arith.addf %272, %276 : vector<8x256xf32>
    %278 = vector.extract_strided_slice %26 {offsets = [440, 0], sizes = [8, 32], strides = [1, 1]} : vector<712x32xf32> to vector<8x32xf32>
    %279 = arith.truncf %278 : vector<8x32xf32> to vector<8x32xbf16>
    %c1600 = arith.constant 1600 : index
    %c0_115 = arith.constant 0 : index
    %280 = vector.load %arg6[%c1600, %c0_115] : memref<2592x256xbf16, #tpu.memory_space<vmem>>, vector<32x256xbf16>
    %cst_116 = arith.constant dense<0.000000e+00> : vector<8x256xf32>
    %281 = tpu.matmul %279, %280, %cst_116 {dimension_numbers = #tpu.dot_dimension_numbers<[1], [0], [0], [1], [0, 0, 1, 1], [], []>} : vector<8x32xbf16>, vector<32x256xbf16>, vector<8x256xf32> -> vector<8x256xf32>
    %282 = arith.addf %277, %281 : vector<8x256xf32>
    %283 = vector.extract_strided_slice %26 {offsets = [448, 0], sizes = [8, 32], strides = [1, 1]} : vector<712x32xf32> to vector<8x32xf32>
    %284 = arith.truncf %283 : vector<8x32xf32> to vector<8x32xbf16>
    %c1632 = arith.constant 1632 : index
    %c0_117 = arith.constant 0 : index
    %285 = vector.load %arg6[%c1632, %c0_117] : memref<2592x256xbf16, #tpu.memory_space<vmem>>, vector<32x256xbf16>
    %cst_118 = arith.constant dense<0.000000e+00> : vector<8x256xf32>
    %286 = tpu.matmul %284, %285, %cst_118 {dimension_numbers = #tpu.dot_dimension_numbers<[1], [0], [0], [1], [0, 0, 1, 1], [], []>} : vector<8x32xbf16>, vector<32x256xbf16>, vector<8x256xf32> -> vector<8x256xf32>
    %287 = arith.addf %282, %286 : vector<8x256xf32>
    %288 = vector.extract_strided_slice %26 {offsets = [456, 0], sizes = [8, 32], strides = [1, 1]} : vector<712x32xf32> to vector<8x32xf32>
    %289 = arith.truncf %288 : vector<8x32xf32> to vector<8x32xbf16>
    %c1664 = arith.constant 1664 : index
    %c0_119 = arith.constant 0 : index
    %290 = vector.load %arg6[%c1664, %c0_119] : memref<2592x256xbf16, #tpu.memory_space<vmem>>, vector<32x256xbf16>
    %cst_120 = arith.constant dense<0.000000e+00> : vector<8x256xf32>
    %291 = tpu.matmul %289, %290, %cst_120 {dimension_numbers = #tpu.dot_dimension_numbers<[1], [0], [0], [1], [0, 0, 1, 1], [], []>} : vector<8x32xbf16>, vector<32x256xbf16>, vector<8x256xf32> -> vector<8x256xf32>
    %292 = arith.addf %287, %291 : vector<8x256xf32>
    %293 = vector.extract_strided_slice %26 {offsets = [464, 0], sizes = [8, 32], strides = [1, 1]} : vector<712x32xf32> to vector<8x32xf32>
    %294 = arith.truncf %293 : vector<8x32xf32> to vector<8x32xbf16>
    %c1696 = arith.constant 1696 : index
    %c0_121 = arith.constant 0 : index
    %295 = vector.load %arg6[%c1696, %c0_121] : memref<2592x256xbf16, #tpu.memory_space<vmem>>, vector<32x256xbf16>
    %cst_122 = arith.constant dense<0.000000e+00> : vector<8x256xf32>
    %296 = tpu.matmul %294, %295, %cst_122 {dimension_numbers = #tpu.dot_dimension_numbers<[1], [0], [0], [1], [0, 0, 1, 1], [], []>} : vector<8x32xbf16>, vector<32x256xbf16>, vector<8x256xf32> -> vector<8x256xf32>
    %297 = arith.addf %292, %296 : vector<8x256xf32>
    %298 = vector.extract_strided_slice %26 {offsets = [480, 0], sizes = [8, 32], strides = [1, 1]} : vector<712x32xf32> to vector<8x32xf32>
    %299 = arith.truncf %298 : vector<8x32xf32> to vector<8x32xbf16>
    %c1728 = arith.constant 1728 : index
    %c0_123 = arith.constant 0 : index
    %300 = vector.load %arg6[%c1728, %c0_123] : memref<2592x256xbf16, #tpu.memory_space<vmem>>, vector<32x256xbf16>
    %cst_124 = arith.constant dense<0.000000e+00> : vector<8x256xf32>
    %301 = tpu.matmul %299, %300, %cst_124 {dimension_numbers = #tpu.dot_dimension_numbers<[1], [0], [0], [1], [0, 0, 1, 1], [], []>} : vector<8x32xbf16>, vector<32x256xbf16>, vector<8x256xf32> -> vector<8x256xf32>
    %302 = arith.addf %297, %301 : vector<8x256xf32>
    %303 = vector.extract_strided_slice %26 {offsets = [488, 0], sizes = [8, 32], strides = [1, 1]} : vector<712x32xf32> to vector<8x32xf32>
    %304 = arith.truncf %303 : vector<8x32xf32> to vector<8x32xbf16>
    %c1760 = arith.constant 1760 : index
    %c0_125 = arith.constant 0 : index
    %305 = vector.load %arg6[%c1760, %c0_125] : memref<2592x256xbf16, #tpu.memory_space<vmem>>, vector<32x256xbf16>
    %cst_126 = arith.constant dense<0.000000e+00> : vector<8x256xf32>
    %306 = tpu.matmul %304, %305, %cst_126 {dimension_numbers = #tpu.dot_dimension_numbers<[1], [0], [0], [1], [0, 0, 1, 1], [], []>} : vector<8x32xbf16>, vector<32x256xbf16>, vector<8x256xf32> -> vector<8x256xf32>
    %307 = arith.addf %302, %306 : vector<8x256xf32>
    %308 = vector.extract_strided_slice %26 {offsets = [496, 0], sizes = [8, 32], strides = [1, 1]} : vector<712x32xf32> to vector<8x32xf32>
    %309 = arith.truncf %308 : vector<8x32xf32> to vector<8x32xbf16>
    %c1792 = arith.constant 1792 : index
    %c0_127 = arith.constant 0 : index
    %310 = vector.load %arg6[%c1792, %c0_127] : memref<2592x256xbf16, #tpu.memory_space<vmem>>, vector<32x256xbf16>
    %cst_128 = arith.constant dense<0.000000e+00> : vector<8x256xf32>
    %311 = tpu.matmul %309, %310, %cst_128 {dimension_numbers = #tpu.dot_dimension_numbers<[1], [0], [0], [1], [0, 0, 1, 1], [], []>} : vector<8x32xbf16>, vector<32x256xbf16>, vector<8x256xf32> -> vector<8x256xf32>
    %312 = arith.addf %307, %311 : vector<8x256xf32>
    %313 = vector.extract_strided_slice %26 {offsets = [504, 0], sizes = [8, 32], strides = [1, 1]} : vector<712x32xf32> to vector<8x32xf32>
    %314 = arith.truncf %313 : vector<8x32xf32> to vector<8x32xbf16>
    %c1824 = arith.constant 1824 : index
    %c0_129 = arith.constant 0 : index
    %315 = vector.load %arg6[%c1824, %c0_129] : memref<2592x256xbf16, #tpu.memory_space<vmem>>, vector<32x256xbf16>
    %cst_130 = arith.constant dense<0.000000e+00> : vector<8x256xf32>
    %316 = tpu.matmul %314, %315, %cst_130 {dimension_numbers = #tpu.dot_dimension_numbers<[1], [0], [0], [1], [0, 0, 1, 1], [], []>} : vector<8x32xbf16>, vector<32x256xbf16>, vector<8x256xf32> -> vector<8x256xf32>
    %317 = arith.addf %312, %316 : vector<8x256xf32>
    %318 = vector.extract_strided_slice %26 {offsets = [512, 0], sizes = [8, 32], strides = [1, 1]} : vector<712x32xf32> to vector<8x32xf32>
    %319 = arith.truncf %318 : vector<8x32xf32> to vector<8x32xbf16>
    %c1856 = arith.constant 1856 : index
    %c0_131 = arith.constant 0 : index
    %320 = vector.load %arg6[%c1856, %c0_131] : memref<2592x256xbf16, #tpu.memory_space<vmem>>, vector<32x256xbf16>
    %cst_132 = arith.constant dense<0.000000e+00> : vector<8x256xf32>
    %321 = tpu.matmul %319, %320, %cst_132 {dimension_numbers = #tpu.dot_dimension_numbers<[1], [0], [0], [1], [0, 0, 1, 1], [], []>} : vector<8x32xbf16>, vector<32x256xbf16>, vector<8x256xf32> -> vector<8x256xf32>
    %322 = arith.addf %317, %321 : vector<8x256xf32>
    %323 = vector.extract_strided_slice %26 {offsets = [520, 0], sizes = [8, 32], strides = [1, 1]} : vector<712x32xf32> to vector<8x32xf32>
    %324 = arith.truncf %323 : vector<8x32xf32> to vector<8x32xbf16>
    %c1888 = arith.constant 1888 : index
    %c0_133 = arith.constant 0 : index
    %325 = vector.load %arg6[%c1888, %c0_133] : memref<2592x256xbf16, #tpu.memory_space<vmem>>, vector<32x256xbf16>
    %cst_134 = arith.constant dense<0.000000e+00> : vector<8x256xf32>
    %326 = tpu.matmul %324, %325, %cst_134 {dimension_numbers = #tpu.dot_dimension_numbers<[1], [0], [0], [1], [0, 0, 1, 1], [], []>} : vector<8x32xbf16>, vector<32x256xbf16>, vector<8x256xf32> -> vector<8x256xf32>
    %327 = arith.addf %322, %326 : vector<8x256xf32>
    %328 = vector.extract_strided_slice %26 {offsets = [528, 0], sizes = [8, 32], strides = [1, 1]} : vector<712x32xf32> to vector<8x32xf32>
    %329 = arith.truncf %328 : vector<8x32xf32> to vector<8x32xbf16>
    %c1920 = arith.constant 1920 : index
    %c0_135 = arith.constant 0 : index
    %330 = vector.load %arg6[%c1920, %c0_135] : memref<2592x256xbf16, #tpu.memory_space<vmem>>, vector<32x256xbf16>
    %cst_136 = arith.constant dense<0.000000e+00> : vector<8x256xf32>
    %331 = tpu.matmul %329, %330, %cst_136 {dimension_numbers = #tpu.dot_dimension_numbers<[1], [0], [0], [1], [0, 0, 1, 1], [], []>} : vector<8x32xbf16>, vector<32x256xbf16>, vector<8x256xf32> -> vector<8x256xf32>
    %332 = arith.addf %327, %331 : vector<8x256xf32>
    %333 = vector.extract_strided_slice %26 {offsets = [536, 0], sizes = [8, 32], strides = [1, 1]} : vector<712x32xf32> to vector<8x32xf32>
    %334 = arith.truncf %333 : vector<8x32xf32> to vector<8x32xbf16>
    %c1952 = arith.constant 1952 : index
    %c0_137 = arith.constant 0 : index
    %335 = vector.load %arg6[%c1952, %c0_137] : memref<2592x256xbf16, #tpu.memory_space<vmem>>, vector<32x256xbf16>
    %cst_138 = arith.constant dense<0.000000e+00> : vector<8x256xf32>
    %336 = tpu.matmul %334, %335, %cst_138 {dimension_numbers = #tpu.dot_dimension_numbers<[1], [0], [0], [1], [0, 0, 1, 1], [], []>} : vector<8x32xbf16>, vector<32x256xbf16>, vector<8x256xf32> -> vector<8x256xf32>
    %337 = arith.addf %332, %336 : vector<8x256xf32>
    %338 = vector.extract_strided_slice %26 {offsets = [544, 0], sizes = [8, 32], strides = [1, 1]} : vector<712x32xf32> to vector<8x32xf32>
    %339 = arith.truncf %338 : vector<8x32xf32> to vector<8x32xbf16>
    %c1984 = arith.constant 1984 : index
    %c0_139 = arith.constant 0 : index
    %340 = vector.load %arg6[%c1984, %c0_139] : memref<2592x256xbf16, #tpu.memory_space<vmem>>, vector<32x256xbf16>
    %cst_140 = arith.constant dense<0.000000e+00> : vector<8x256xf32>
    %341 = tpu.matmul %339, %340, %cst_140 {dimension_numbers = #tpu.dot_dimension_numbers<[1], [0], [0], [1], [0, 0, 1, 1], [], []>} : vector<8x32xbf16>, vector<32x256xbf16>, vector<8x256xf32> -> vector<8x256xf32>
    %342 = arith.addf %337, %341 : vector<8x256xf32>
    %343 = vector.extract_strided_slice %26 {offsets = [560, 0], sizes = [8, 32], strides = [1, 1]} : vector<712x32xf32> to vector<8x32xf32>
    %344 = arith.truncf %343 : vector<8x32xf32> to vector<8x32xbf16>
    %c2016 = arith.constant 2016 : index
    %c0_141 = arith.constant 0 : index
    %345 = vector.load %arg6[%c2016, %c0_141] : memref<2592x256xbf16, #tpu.memory_space<vmem>>, vector<32x256xbf16>
    %cst_142 = arith.constant dense<0.000000e+00> : vector<8x256xf32>
    %346 = tpu.matmul %344, %345, %cst_142 {dimension_numbers = #tpu.dot_dimension_numbers<[1], [0], [0], [1], [0, 0, 1, 1], [], []>} : vector<8x32xbf16>, vector<32x256xbf16>, vector<8x256xf32> -> vector<8x256xf32>
    %347 = arith.addf %342, %346 : vector<8x256xf32>
    %348 = vector.extract_strided_slice %26 {offsets = [568, 0], sizes = [8, 32], strides = [1, 1]} : vector<712x32xf32> to vector<8x32xf32>
    %349 = arith.truncf %348 : vector<8x32xf32> to vector<8x32xbf16>
    %c2048 = arith.constant 2048 : index
    %c0_143 = arith.constant 0 : index
    %350 = vector.load %arg6[%c2048, %c0_143] : memref<2592x256xbf16, #tpu.memory_space<vmem>>, vector<32x256xbf16>
    %cst_144 = arith.constant dense<0.000000e+00> : vector<8x256xf32>
    %351 = tpu.matmul %349, %350, %cst_144 {dimension_numbers = #tpu.dot_dimension_numbers<[1], [0], [0], [1], [0, 0, 1, 1], [], []>} : vector<8x32xbf16>, vector<32x256xbf16>, vector<8x256xf32> -> vector<8x256xf32>
    %352 = arith.addf %347, %351 : vector<8x256xf32>
    %353 = vector.extract_strided_slice %26 {offsets = [576, 0], sizes = [8, 32], strides = [1, 1]} : vector<712x32xf32> to vector<8x32xf32>
    %354 = arith.truncf %353 : vector<8x32xf32> to vector<8x32xbf16>
    %c2080 = arith.constant 2080 : index
    %c0_145 = arith.constant 0 : index
    %355 = vector.load %arg6[%c2080, %c0_145] : memref<2592x256xbf16, #tpu.memory_space<vmem>>, vector<32x256xbf16>
    %cst_146 = arith.constant dense<0.000000e+00> : vector<8x256xf32>
    %356 = tpu.matmul %354, %355, %cst_146 {dimension_numbers = #tpu.dot_dimension_numbers<[1], [0], [0], [1], [0, 0, 1, 1], [], []>} : vector<8x32xbf16>, vector<32x256xbf16>, vector<8x256xf32> -> vector<8x256xf32>
    %357 = arith.addf %352, %356 : vector<8x256xf32>
    %358 = vector.extract_strided_slice %26 {offsets = [584, 0], sizes = [8, 32], strides = [1, 1]} : vector<712x32xf32> to vector<8x32xf32>
    %359 = arith.truncf %358 : vector<8x32xf32> to vector<8x32xbf16>
    %c2112 = arith.constant 2112 : index
    %c0_147 = arith.constant 0 : index
    %360 = vector.load %arg6[%c2112, %c0_147] : memref<2592x256xbf16, #tpu.memory_space<vmem>>, vector<32x256xbf16>
    %cst_148 = arith.constant dense<0.000000e+00> : vector<8x256xf32>
    %361 = tpu.matmul %359, %360, %cst_148 {dimension_numbers = #tpu.dot_dimension_numbers<[1], [0], [0], [1], [0, 0, 1, 1], [], []>} : vector<8x32xbf16>, vector<32x256xbf16>, vector<8x256xf32> -> vector<8x256xf32>
    %362 = arith.addf %357, %361 : vector<8x256xf32>
    %363 = vector.extract_strided_slice %26 {offsets = [592, 0], sizes = [8, 32], strides = [1, 1]} : vector<712x32xf32> to vector<8x32xf32>
    %364 = arith.truncf %363 : vector<8x32xf32> to vector<8x32xbf16>
    %c2144 = arith.constant 2144 : index
    %c0_149 = arith.constant 0 : index
    %365 = vector.load %arg6[%c2144, %c0_149] : memref<2592x256xbf16, #tpu.memory_space<vmem>>, vector<32x256xbf16>
    %cst_150 = arith.constant dense<0.000000e+00> : vector<8x256xf32>
    %366 = tpu.matmul %364, %365, %cst_150 {dimension_numbers = #tpu.dot_dimension_numbers<[1], [0], [0], [1], [0, 0, 1, 1], [], []>} : vector<8x32xbf16>, vector<32x256xbf16>, vector<8x256xf32> -> vector<8x256xf32>
    %367 = arith.addf %362, %366 : vector<8x256xf32>
    %368 = vector.extract_strided_slice %26 {offsets = [600, 0], sizes = [8, 32], strides = [1, 1]} : vector<712x32xf32> to vector<8x32xf32>
    %369 = arith.truncf %368 : vector<8x32xf32> to vector<8x32xbf16>
    %c2176 = arith.constant 2176 : index
    %c0_151 = arith.constant 0 : index
    %370 = vector.load %arg6[%c2176, %c0_151] : memref<2592x256xbf16, #tpu.memory_space<vmem>>, vector<32x256xbf16>
    %cst_152 = arith.constant dense<0.000000e+00> : vector<8x256xf32>
    %371 = tpu.matmul %369, %370, %cst_152 {dimension_numbers = #tpu.dot_dimension_numbers<[1], [0], [0], [1], [0, 0, 1, 1], [], []>} : vector<8x32xbf16>, vector<32x256xbf16>, vector<8x256xf32> -> vector<8x256xf32>
    %372 = arith.addf %367, %371 : vector<8x256xf32>
    %373 = vector.extract_strided_slice %26 {offsets = [608, 0], sizes = [8, 32], strides = [1, 1]} : vector<712x32xf32> to vector<8x32xf32>
    %374 = arith.truncf %373 : vector<8x32xf32> to vector<8x32xbf16>
    %c2208 = arith.constant 2208 : index
    %c0_153 = arith.constant 0 : index
    %375 = vector.load %arg6[%c2208, %c0_153] : memref<2592x256xbf16, #tpu.memory_space<vmem>>, vector<32x256xbf16>
    %cst_154 = arith.constant dense<0.000000e+00> : vector<8x256xf32>
    %376 = tpu.matmul %374, %375, %cst_154 {dimension_numbers = #tpu.dot_dimension_numbers<[1], [0], [0], [1], [0, 0, 1, 1], [], []>} : vector<8x32xbf16>, vector<32x256xbf16>, vector<8x256xf32> -> vector<8x256xf32>
    %377 = arith.addf %372, %376 : vector<8x256xf32>
    %378 = vector.extract_strided_slice %26 {offsets = [616, 0], sizes = [8, 32], strides = [1, 1]} : vector<712x32xf32> to vector<8x32xf32>
    %379 = arith.truncf %378 : vector<8x32xf32> to vector<8x32xbf16>
    %c2240 = arith.constant 2240 : index
    %c0_155 = arith.constant 0 : index
    %380 = vector.load %arg6[%c2240, %c0_155] : memref<2592x256xbf16, #tpu.memory_space<vmem>>, vector<32x256xbf16>
    %cst_156 = arith.constant dense<0.000000e+00> : vector<8x256xf32>
    %381 = tpu.matmul %379, %380, %cst_156 {dimension_numbers = #tpu.dot_dimension_numbers<[1], [0], [0], [1], [0, 0, 1, 1], [], []>} : vector<8x32xbf16>, vector<32x256xbf16>, vector<8x256xf32> -> vector<8x256xf32>
    %382 = arith.addf %377, %381 : vector<8x256xf32>
    %383 = vector.extract_strided_slice %26 {offsets = [624, 0], sizes = [8, 32], strides = [1, 1]} : vector<712x32xf32> to vector<8x32xf32>
    %384 = arith.truncf %383 : vector<8x32xf32> to vector<8x32xbf16>
    %c2272 = arith.constant 2272 : index
    %c0_157 = arith.constant 0 : index
    %385 = vector.load %arg6[%c2272, %c0_157] : memref<2592x256xbf16, #tpu.memory_space<vmem>>, vector<32x256xbf16>
    %cst_158 = arith.constant dense<0.000000e+00> : vector<8x256xf32>
    %386 = tpu.matmul %384, %385, %cst_158 {dimension_numbers = #tpu.dot_dimension_numbers<[1], [0], [0], [1], [0, 0, 1, 1], [], []>} : vector<8x32xbf16>, vector<32x256xbf16>, vector<8x256xf32> -> vector<8x256xf32>
    %387 = arith.addf %382, %386 : vector<8x256xf32>
    %388 = vector.extract_strided_slice %26 {offsets = [640, 0], sizes = [8, 32], strides = [1, 1]} : vector<712x32xf32> to vector<8x32xf32>
    %389 = arith.truncf %388 : vector<8x32xf32> to vector<8x32xbf16>
    %c2304 = arith.constant 2304 : index
    %c0_159 = arith.constant 0 : index
    %390 = vector.load %arg6[%c2304, %c0_159] : memref<2592x256xbf16, #tpu.memory_space<vmem>>, vector<32x256xbf16>
    %cst_160 = arith.constant dense<0.000000e+00> : vector<8x256xf32>
    %391 = tpu.matmul %389, %390, %cst_160 {dimension_numbers = #tpu.dot_dimension_numbers<[1], [0], [0], [1], [0, 0, 1, 1], [], []>} : vector<8x32xbf16>, vector<32x256xbf16>, vector<8x256xf32> -> vector<8x256xf32>
    %392 = arith.addf %387, %391 : vector<8x256xf32>
    %393 = vector.extract_strided_slice %26 {offsets = [648, 0], sizes = [8, 32], strides = [1, 1]} : vector<712x32xf32> to vector<8x32xf32>
    %394 = arith.truncf %393 : vector<8x32xf32> to vector<8x32xbf16>
    %c2336 = arith.constant 2336 : index
    %c0_161 = arith.constant 0 : index
    %395 = vector.load %arg6[%c2336, %c0_161] : memref<2592x256xbf16, #tpu.memory_space<vmem>>, vector<32x256xbf16>
    %cst_162 = arith.constant dense<0.000000e+00> : vector<8x256xf32>
    %396 = tpu.matmul %394, %395, %cst_162 {dimension_numbers = #tpu.dot_dimension_numbers<[1], [0], [0], [1], [0, 0, 1, 1], [], []>} : vector<8x32xbf16>, vector<32x256xbf16>, vector<8x256xf32> -> vector<8x256xf32>
    %397 = arith.addf %392, %396 : vector<8x256xf32>
    %398 = vector.extract_strided_slice %26 {offsets = [656, 0], sizes = [8, 32], strides = [1, 1]} : vector<712x32xf32> to vector<8x32xf32>
    %399 = arith.truncf %398 : vector<8x32xf32> to vector<8x32xbf16>
    %c2368 = arith.constant 2368 : index
    %c0_163 = arith.constant 0 : index
    %400 = vector.load %arg6[%c2368, %c0_163] : memref<2592x256xbf16, #tpu.memory_space<vmem>>, vector<32x256xbf16>
    %cst_164 = arith.constant dense<0.000000e+00> : vector<8x256xf32>
    %401 = tpu.matmul %399, %400, %cst_164 {dimension_numbers = #tpu.dot_dimension_numbers<[1], [0], [0], [1], [0, 0, 1, 1], [], []>} : vector<8x32xbf16>, vector<32x256xbf16>, vector<8x256xf32> -> vector<8x256xf32>
    %402 = arith.addf %397, %401 : vector<8x256xf32>
    %403 = vector.extract_strided_slice %26 {offsets = [664, 0], sizes = [8, 32], strides = [1, 1]} : vector<712x32xf32> to vector<8x32xf32>
    %404 = arith.truncf %403 : vector<8x32xf32> to vector<8x32xbf16>
    %c2400 = arith.constant 2400 : index
    %c0_165 = arith.constant 0 : index
    %405 = vector.load %arg6[%c2400, %c0_165] : memref<2592x256xbf16, #tpu.memory_space<vmem>>, vector<32x256xbf16>
    %cst_166 = arith.constant dense<0.000000e+00> : vector<8x256xf32>
    %406 = tpu.matmul %404, %405, %cst_166 {dimension_numbers = #tpu.dot_dimension_numbers<[1], [0], [0], [1], [0, 0, 1, 1], [], []>} : vector<8x32xbf16>, vector<32x256xbf16>, vector<8x256xf32> -> vector<8x256xf32>
    %407 = arith.addf %402, %406 : vector<8x256xf32>
    %408 = vector.extract_strided_slice %26 {offsets = [672, 0], sizes = [8, 32], strides = [1, 1]} : vector<712x32xf32> to vector<8x32xf32>
    %409 = arith.truncf %408 : vector<8x32xf32> to vector<8x32xbf16>
    %c2432 = arith.constant 2432 : index
    %c0_167 = arith.constant 0 : index
    %410 = vector.load %arg6[%c2432, %c0_167] : memref<2592x256xbf16, #tpu.memory_space<vmem>>, vector<32x256xbf16>
    %cst_168 = arith.constant dense<0.000000e+00> : vector<8x256xf32>
    %411 = tpu.matmul %409, %410, %cst_168 {dimension_numbers = #tpu.dot_dimension_numbers<[1], [0], [0], [1], [0, 0, 1, 1], [], []>} : vector<8x32xbf16>, vector<32x256xbf16>, vector<8x256xf32> -> vector<8x256xf32>
    %412 = arith.addf %407, %411 : vector<8x256xf32>
    %413 = vector.extract_strided_slice %26 {offsets = [680, 0], sizes = [8, 32], strides = [1, 1]} : vector<712x32xf32> to vector<8x32xf32>
    %414 = arith.truncf %413 : vector<8x32xf32> to vector<8x32xbf16>
    %c2464 = arith.constant 2464 : index
    %c0_169 = arith.constant 0 : index
    %415 = vector.load %arg6[%c2464, %c0_169] : memref<2592x256xbf16, #tpu.memory_space<vmem>>, vector<32x256xbf16>
    %cst_170 = arith.constant dense<0.000000e+00> : vector<8x256xf32>
    %416 = tpu.matmul %414, %415, %cst_170 {dimension_numbers = #tpu.dot_dimension_numbers<[1], [0], [0], [1], [0, 0, 1, 1], [], []>} : vector<8x32xbf16>, vector<32x256xbf16>, vector<8x256xf32> -> vector<8x256xf32>
    %417 = arith.addf %412, %416 : vector<8x256xf32>
    %418 = vector.extract_strided_slice %26 {offsets = [688, 0], sizes = [8, 32], strides = [1, 1]} : vector<712x32xf32> to vector<8x32xf32>
    %419 = arith.truncf %418 : vector<8x32xf32> to vector<8x32xbf16>
    %c2496 = arith.constant 2496 : index
    %c0_171 = arith.constant 0 : index
    %420 = vector.load %arg6[%c2496, %c0_171] : memref<2592x256xbf16, #tpu.memory_space<vmem>>, vector<32x256xbf16>
    %cst_172 = arith.constant dense<0.000000e+00> : vector<8x256xf32>
    %421 = tpu.matmul %419, %420, %cst_172 {dimension_numbers = #tpu.dot_dimension_numbers<[1], [0], [0], [1], [0, 0, 1, 1], [], []>} : vector<8x32xbf16>, vector<32x256xbf16>, vector<8x256xf32> -> vector<8x256xf32>
    %422 = arith.addf %417, %421 : vector<8x256xf32>
    %423 = vector.extract_strided_slice %26 {offsets = [696, 0], sizes = [8, 32], strides = [1, 1]} : vector<712x32xf32> to vector<8x32xf32>
    %424 = arith.truncf %423 : vector<8x32xf32> to vector<8x32xbf16>
    %c2528 = arith.constant 2528 : index
    %c0_173 = arith.constant 0 : index
    %425 = vector.load %arg6[%c2528, %c0_173] : memref<2592x256xbf16, #tpu.memory_space<vmem>>, vector<32x256xbf16>
    %cst_174 = arith.constant dense<0.000000e+00> : vector<8x256xf32>
    %426 = tpu.matmul %424, %425, %cst_174 {dimension_numbers = #tpu.dot_dimension_numbers<[1], [0], [0], [1], [0, 0, 1, 1], [], []>} : vector<8x32xbf16>, vector<32x256xbf16>, vector<8x256xf32> -> vector<8x256xf32>
    %427 = arith.addf %422, %426 : vector<8x256xf32>
    %428 = vector.extract_strided_slice %26 {offsets = [704, 0], sizes = [8, 32], strides = [1, 1]} : vector<712x32xf32> to vector<8x32xf32>
    %429 = arith.truncf %428 : vector<8x32xf32> to vector<8x32xbf16>
    %c2560 = arith.constant 2560 : index
    %c0_175 = arith.constant 0 : index
    %430 = vector.load %arg6[%c2560, %c0_175] : memref<2592x256xbf16, #tpu.memory_space<vmem>>, vector<32x256xbf16>
    %cst_176 = arith.constant dense<0.000000e+00> : vector<8x256xf32>
    %431 = tpu.matmul %429, %430, %cst_176 {dimension_numbers = #tpu.dot_dimension_numbers<[1], [0], [0], [1], [0, 0, 1, 1], [], []>} : vector<8x32xbf16>, vector<32x256xbf16>, vector<8x256xf32> -> vector<8x256xf32>
    %432 = arith.addf %427, %431 : vector<8x256xf32>
    %c0_177 = arith.constant 0 : index
    %c0_178 = arith.constant 0 : index
    %433 = vector.load %arg7[%c0_177, %c0_178] : memref<1x256xf32, #tpu.memory_space<vmem>>, vector<1x256xf32>
    %434 = vector.broadcast %433 : vector<1x256xf32> to vector<8x256xf32>
    %435 = arith.addf %432, %434 : vector<8x256xf32>
    %cst_179 = arith.constant 0.000000e+00 : f32
    %436 = vector.broadcast %cst_179 : f32 to vector<8x256xf32>
    %437 = arith.maximumf %435, %436 : vector<8x256xf32>
    %c0_180 = arith.constant 0 : index
    %c0_181 = arith.constant 0 : index
    %c0_182 = arith.constant 0 : index
    %438 = vector.load %arg8[%c0_180, %c0_181, %c0_182] : memref<1x8x256xf32, #tpu.memory_space<vmem>>, vector<1x8x256xf32>
    %439 = vector.shape_cast %438 : vector<1x8x256xf32> to vector<8x256xf32>
    %440 = vector.shape_cast %437 : vector<8x256xf32> to vector<1x8x256xf32>
    tpu.vector_store %arg8[%c0_180, %c0_181, %c0_182], %440 {strides = array<i32>} : memref<1x8x256xf32, #tpu.memory_space<vmem>>, vector<1x8x256xf32>,
    return
  }
  func.func @transform_0(%arg0: i32) -> (i32, i32, i32) {
    %c0_i32 = arith.constant 0 : i32
    %c0_i32_0 = arith.constant 0 : i32
    %c0_i32_1 = arith.constant 0 : i32
    return %arg0, %c0_i32, %c0_i32_0 : i32, i32, i32
  }
  func.func @transform_1(%arg0: i32) -> (i32, i32) {
    %c0_i32 = arith.constant 0 : i32
    %c0_i32_0 = arith.constant 0 : i32
    %c0_i32_1 = arith.constant 0 : i32
    return %c0_i32, %c0_i32_0 : i32, i32
  }
  func.func @transform_2(%arg0: i32) -> (i32, i32) {
    %c0_i32 = arith.constant 0 : i32
    %c0_i32_0 = arith.constant 0 : i32
    %c0_i32_1 = arith.constant 0 : i32
    return %c0_i32, %c0_i32_0 : i32, i32
  }
  func.func @transform_3(%arg0: i32) -> (i32, i32) {
    %c0_i32 = arith.constant 0 : i32
    %c0_i32_0 = arith.constant 0 : i32
    %c0_i32_1 = arith.constant 0 : i32
    return %c0_i32, %c0_i32_0 : i32, i32
  }
  func.func @transform_4(%arg0: i32) -> (i32, i32) {
    %c0_i32 = arith.constant 0 : i32
    %c0_i32_0 = arith.constant 0 : i32
    %c0_i32_1 = arith.constant 0 : i32
    return %c0_i32, %c0_i32_0 : i32, i32
  }
  func.func @transform_5(%arg0: i32) -> (i32, i32) {
    %c0_i32 = arith.constant 0 : i32
    %c0_i32_0 = arith.constant 0 : i32
    %c0_i32_1 = arith.constant 0 : i32
    return %c0_i32, %c0_i32_0 : i32, i32
  }
  func.func @transform_6(%arg0: i32) -> (i32, i32) {
    %c0_i32 = arith.constant 0 : i32
    %c0_i32_0 = arith.constant 0 : i32
    %c0_i32_1 = arith.constant 0 : i32
    return %c0_i32, %c0_i32_0 : i32, i32
  }
  func.func @transform_7(%arg0: i32) -> (i32, i32, i32) {
    %c0_i32 = arith.constant 0 : i32
    %c0_i32_0 = arith.constant 0 : i32
    %c0_i32_1 = arith.constant 0 : i32
    return %arg0, %c0_i32, %c0_i32_0 : i32, i32, i32
  }
}

</mosaic_0001>

<bundles_post_ra>
// kernel: cnn_forward.1
= control target key start
LH: loop header
LB: loop body
LE: loop exit
PB: predicated region body
PF: predicated region fallthrough
CT: control target
= control target key end

     0   :  { %v21588_v0 = vmov 0   ;;  %s15998_s17 = smov 16   ;;  %s15999_s13 = smov 32   ;;  %vm5795_vm0 = vcmask 130048   ;;  %vm5896_vm1 = vcmask 261120   ;;  %vm5997_vm2 = vcmask 392192   ;;  %s21580_s1 = inlined_call_operand.vmem [shape: bf16[256,16], index: 1, kind: input, shape index: {}]   ;;  %s21581_s0 = inlined_call_operand.vmem [shape: bf16[1,3200,256], index: 0, kind: input, shape index: {}]   ;;  %s21582_s2 = inlined_call_operand.vmem [shape: f32[1,16], index: 2, kind: input, shape index: {}]   ;;  %s21583_s3 = inlined_call_operand.vmem [shape: bf16[256,32], index: 3, kind: input, shape index: {}]   ;;  %s21584_s5 = inlined_call_operand.vmem [shape: bf16[2592,256], index: 5, kind: input, shape index: {}]   ;;  %s21585_s4 = inlined_call_operand.vmem [shape: f32[1,32], index: 4, kind: input, shape index: {}]   ;;  %s21586_s6 = inlined_call_operand.vmem [shape: f32[1,256], index: 6, kind: input, shape index: {}]   ;;  %s21587_s7 = inlined_call_operand.vmem [shape: f32[1,8,256], index: 7, kind: output, shape index: {}]  }
   0x1   :  { %2562 = vmatprep.subr.bf16.mxu0 %v21588_v0  ;;  %v14870_v1 = vld [vmem:[%s21580_s1] sm:$0xff]   ;;  %13853 = vmatprep.subr.bf16.mxu1 %v21588_v0  ;;  %v14871_v2 = vld [vmem:[%s21580_s1 + $0x8] sm:$0xff]   ;;  %v14872_v3 = vld [vmem:[%s21580_s1 + $0x10] sm:$0xff]   ;;  %s16000_s26 = smov 48   ;;  %s16001_s10 = smov 64   ;;  %vm6494_vm3 = vcmask 523264  }
   0x2   :  { %2563 = vmatpush1.bf16.msra.mxu0 %v14870_v1  ;;  %13869 = vmatpush1.bf16.msra.mxu1 %v14870_v1  ;;  %v14873_v4 = vld [vmem:[%s21580_s1 + $0x18] sm:$0xff]   ;;  %v14874_v5 = vld [vmem:[%s21580_s1 + $0x20] sm:$0xff]   ;;  %v14875_v7 = vld [vmem:[%s21580_s1 + $0x28] sm:$0xff]  }
   0x3   :  { %2564 = vmatprep.subr.bf16.mxu0 %v21588_v0  ;;  %13854 = vmatprep.subr.bf16.mxu1 %v21588_v0  ;;  %v14888_v6 = vld [vmem:[%s21581_s0 + $0x4] ss:$8 sps:$4 sm:$0xff]   ;;  %v14876_v8 = vld [vmem:[%s21580_s1 + $0x30] sm:$0xff]   ;;  %v14877_v9 = vld [vmem:[%s21580_s1 + $0x38] sm:$0xff]  }
   0x4   :  { %2594 = vmatprep.mubr.bf16.mxu0 %v14888_v6  ;;  %v14878_v10 = vld [vmem:[%s21580_s1 + $0x40] sm:$0xff]   ;;  %v14879_v11 = vld [vmem:[%s21580_s1 + $0x48] sm:$0xff]   ;;  %v14880_v12 = vld [vmem:[%s21580_s1 + $0x50] sm:$0xff]  }
   0x5   :  { %v14881_v13 = vld [vmem:[%s21580_s1 + $0x58] sm:$0xff]   ;;  %v14882_v14 = vld [vmem:[%s21580_s1 + $0x60] sm:$0xff]   ;;  %v14883_v15 = vld [vmem:[%s21580_s1 + $0x68] sm:$0xff]  }
   0x6   :  { %2565 = vmatpush1.bf16.msra.mxu0 %v14871_v2  ;;  %13870 = vmatpush1.bf16.msra.mxu1 %v14871_v2  ;;  %v14884_v16 = vld [vmem:[%s21580_s1 + $0x70] sm:$0xff]   ;;  %v14885_v17 = vld [vmem:[%s21580_s1 + $0x78] sm:$0xff]   ;;  %v14886_v18 = vld [vmem:[%s21581_s0] ss:$8 sps:$4 sm:$0xff]  }
   0x7   :  { %2566 = vmatprep.subr.bf16.mxu0 %v21588_v0  ;;  %13855 = vmatprep.subr.bf16.mxu1 %v21588_v0  ;;  %v14889_v19 = vld [vmem:[%s21581_s0 + $0x14] ss:$8 sps:$4 sm:$0xff]   ;;  %v14891_v20 = vld [vmem:[%s21581_s0 + $0x10] ss:$8 sps:$4 sm:$0xff]   ;;  %v14892_v21 = vld [vmem:[%s21581_s0 + $0x24] ss:$8 sps:$4 sm:$0xff]  }
   0x8   :  { %v14894_v22 = vld [vmem:[%s21581_s0 + $0x20] ss:$8 sps:$4 sm:$0xff]   ;;  %v14895_v23 = vld [vmem:[%s21581_s0 + $0x34] ss:$8 sps:$4 sm:$0xff]   ;;  %v14897_v24 = vld [vmem:[%s21581_s0 + $0x30] ss:$8 sps:$4 sm:$0xff]  }
   0x9   :  { %v14898_v25 = vld [vmem:[%s21581_s0 + $0x44] ss:$8 sps:$4 sm:$0xff]   ;;  %v14900_v26 = vld [vmem:[%s21581_s0 + $0x40] ss:$8 sps:$4 sm:$0xff]   ;;  %v14901_v27 = vld [vmem:[%s21581_s0 + $0x54] ss:$8 sps:$4 sm:$0xff]  }
   0xa   :  { %2567 = vmatpush1.bf16.msra.mxu0 %v14872_v3  ;;  %13871 = vmatpush1.bf16.msra.mxu1 %v14872_v3  ;;  %v14903_v28 = vld [vmem:[%s21581_s0 + $0x50] ss:$8 sps:$4 sm:$0xff]   ;;  %v14904_v29 = vld [vmem:[%s21581_s0 + $0x64] ss:$8 sps:$4 sm:$0xff]   ;;  %v14906_v30 = vld [vmem:[%s21581_s0 + $0x60] ss:$8 sps:$4 sm:$0xff]  }
   0xb   :  { %2568 = vmatprep.subr.bf16.mxu0 %v21588_v0  ;;  %13856 = vmatprep.subr.bf16.mxu1 %v21588_v0  ;;  %v14907_v31 = vld [vmem:[%s21581_s0 + $0x74] ss:$8 sps:$4 sm:$0xff]   ;;  %v14909_v32 = vld [vmem:[%s21581_s0 + $0x70] ss:$8 sps:$4 sm:$0xff]   ;;  %v14910_v33 = vld [vmem:[%s21581_s0 + $0x84] ss:$8 sps:$4 sm:$0xff]  }
   0xc   :  { %v14912_v34 = vld [vmem:[%s21581_s0 + $0x80] ss:$8 sps:$4 sm:$0xff]   ;;  %v14913_v35 = vld [vmem:[%s21581_s0 + $0x94] ss:$8 sps:$4 sm:$0xff]   ;;  %v14915_v36 = vld [vmem:[%s21581_s0 + $0x90] ss:$8 sps:$4 sm:$0xff]  }
   0xd   :  { %v14916_v37 = vld [vmem:[%s21581_s0 + $0xa4] ss:$8 sps:$4 sm:$0xff]   ;;  %v14918_v38 = vld [vmem:[%s21581_s0 + $0xa0] ss:$8 sps:$4 sm:$0xff]   ;;  %v14919_v39 = vld [vmem:[%s21581_s0 + $0xb4] ss:$8 sps:$4 sm:$0xff]  }
   0xe   :  { %2569 = vmatpush1.bf16.msra.mxu0 %v14873_v4  ;;  %13872 = vmatpush1.bf16.msra.mxu1 %v14873_v4  ;;  %v14921_v40 = vld [vmem:[%s21581_s0 + $0xb0] ss:$8 sps:$4 sm:$0xff]   ;;  %v14922_v41 = vld [vmem:[%s21581_s0 + $0xc4] ss:$8 sps:$4 sm:$0xff]   ;;  %v14924_v42 = vld [vmem:[%s21581_s0 + $0xc0] ss:$8 sps:$4 sm:$0xff]  }
   0xf   :  { %2570 = vmatprep.subr.bf16.mxu0 %v21588_v0  ;;  %13857 = vmatprep.subr.bf16.mxu1 %v21588_v0  ;;  %v14925_v43 = vld [vmem:[%s21581_s0 + $0xd4] ss:$8 sps:$4 sm:$0xff]   ;;  %v14927_v44 = vld [vmem:[%s21581_s0 + $0xd0] ss:$8 sps:$4 sm:$0xff]   ;;  %v14928_v45 = vld [vmem:[%s21581_s0 + $0xe4] ss:$8 sps:$4 sm:$0xff]  }
  0x10   :  { %v14930_v46 = vld [vmem:[%s21581_s0 + $0xe0] ss:$8 sps:$4 sm:$0xff]   ;;  %v14931_v47 = vld [vmem:[%s21581_s0 + $0xf4] ss:$8 sps:$4 sm:$0xff]   ;;  %v14933_v48 = vld [vmem:[%s21581_s0 + $0xf0] ss:$8 sps:$4 sm:$0xff]  }
  0x11   :  { %v14934_v49 = vld [vmem:[%s21581_s0 + $0x104] ss:$8 sps:$4 sm:$0xff]   ;;  %v14936_v50 = vld [vmem:[%s21581_s0 + $0x100] ss:$8 sps:$4 sm:$0xff]   ;;  %v14937_v51 = vld [vmem:[%s21581_s0 + $0x114] ss:$8 sps:$4 sm:$0xff]  }
  0x12   :  { %2571 = vmatpush1.bf16.msra.mxu0 %v14874_v5  ;;  %13873 = vmatpush1.bf16.msra.mxu1 %v14874_v5  ;;  %v14939_v52 = vld [vmem:[%s21581_s0 + $0x110] ss:$8 sps:$4 sm:$0xff]   ;;  %v14940_v53 = vld [vmem:[%s21581_s0 + $0x124] ss:$8 sps:$4 sm:$0xff]   ;;  %v14942_v54 = vld [vmem:[%s21581_s0 + $0x120] ss:$8 sps:$4 sm:$0xff]  }
  0x13   :  { %2572 = vmatprep.subr.bf16.mxu0 %v21588_v0  ;;  %13858 = vmatprep.subr.bf16.mxu1 %v21588_v0  ;;  %v14943_v55 = vld [vmem:[%s21581_s0 + $0x134] ss:$8 sps:$4 sm:$0xff]   ;;  %v14945_v56 = vld [vmem:[%s21581_s0 + $0x130] ss:$8 sps:$4 sm:$0xff]   ;;  %v14946_v57 = vld [vmem:[%s21581_s0 + $0x144] ss:$8 sps:$4 sm:$0xff]  }
  0x14   :  { %v14948_v58 = vld [vmem:[%s21581_s0 + $0x140] ss:$8 sps:$4 sm:$0xff]   ;;  %v14949_v59 = vld [vmem:[%s21581_s0 + $0x154] ss:$8 sps:$4 sm:$0xff]   ;;  %v14951_v60 = vld [vmem:[%s21581_s0 + $0x150] ss:$8 sps:$4 sm:$0xff]  }
  0x15   :  { %v14952_v61 = vld [vmem:[%s21581_s0 + $0x164] ss:$8 sps:$4 sm:$0xff]   ;;  %v14954_v62 = vld [vmem:[%s21581_s0 + $0x160] ss:$8 sps:$4 sm:$0xff]   ;;  %v14955_v63 = vld [vmem:[%s21581_s0 + $0x174] ss:$8 sps:$4 sm:$0xff]  }
  0x16   :  { %2573 = vmatpush1.bf16.msra.mxu0 %v14875_v7  ;;  %13874 = vmatpush1.bf16.msra.mxu1 %v14875_v7  ;;  %v14957_v1 = vld [vmem:[%s21581_s0 + $0x170] ss:$8 sps:$4 sm:$0xff]   ;;  %v14958_v2 = vld [vmem:[%s21581_s0 + $0x184] ss:$8 sps:$4 sm:$0xff]   ;;  %v14960_v3 = vld [vmem:[%s21581_s0 + $0x180] ss:$8 sps:$4 sm:$0xff]  }
  0x17   :  { %2574 = vmatprep.subr.bf16.mxu0 %v21588_v0  ;;  %13859 = vmatprep.subr.bf16.mxu1 %v21588_v0  ;;  %v14961_v4 = vld [vmem:[%s21581_s0 + $0x194] ss:$8 sps:$4 sm:$0xff]   ;;  %v14963_v5 = vld [vmem:[%s21581_s0 + $0x190] ss:$8 sps:$4 sm:$0xff]   ;;  %v14964_v6 = vld [vmem:[%s21581_s0 + $0x1a4] ss:$8 sps:$4 sm:$0xff]  }
  0x18   :  { %v14966_v7 = vld [vmem:[%s21581_s0 + $0x1a0] ss:$8 sps:$4 sm:$0xff]  }
  0x1a   :  { %2575 = vmatpush1.bf16.msra.mxu0 %v14876_v8  ;;  %13875 = vmatpush1.bf16.msra.mxu1 %v14876_v8  ;;  %v14967_v8 = vld [vmem:[%s21581_s0 + $0x1b4] ss:$8 sps:$4 sm:$0xff]  }
  0x1b   :  { %2576 = vmatprep.subr.bf16.mxu0 %v21588_v0  ;;  %13860 = vmatprep.subr.bf16.mxu1 %v21588_v0 }
  0x1e   :  { %2577 = vmatpush1.bf16.msra.mxu0 %v14877_v9  ;;  %13876 = vmatpush1.bf16.msra.mxu1 %v14877_v9 }
  0x1f   :  { %2578 = vmatprep.subr.bf16.mxu0 %v21588_v0  ;;  %13861 = vmatprep.subr.bf16.mxu1 %v21588_v0 }
  0x22   :  { %2579 = vmatpush1.bf16.msra.mxu0 %v14878_v10  ;;  %13877 = vmatpush1.bf16.msra.mxu1 %v14878_v10 }
  0x23   :  { %2580 = vmatprep.subr.bf16.mxu0 %v21588_v0  ;;  %13862 = vmatprep.subr.bf16.mxu1 %v21588_v0 }
  0x26   :  { %2581 = vmatpush1.bf16.msra.mxu0 %v14879_v11  ;;  %13878 = vmatpush1.bf16.msra.mxu1 %v14879_v11  ;;  %v14969_v11 = vld [vmem:[%s21581_s0 + $0x1b0] ss:$8 sps:$4 sm:$0xff]  }
  0x27   :  { %2582 = vmatprep.subr.bf16.mxu0 %v21588_v0  ;;  %13863 = vmatprep.subr.bf16.mxu1 %v21588_v0 }
  0x2a   :  { %2583 = vmatpush1.bf16.msra.mxu0 %v14880_v12  ;;  %13879 = vmatpush1.bf16.msra.mxu1 %v14880_v12 }
  0x2b   :  { %2584 = vmatprep.subr.bf16.mxu0 %v21588_v0  ;;  %13864 = vmatprep.subr.bf16.mxu1 %v21588_v0 }
  0x2e   :  { %2585 = vmatpush1.bf16.msra.mxu0 %v14881_v13  ;;  %13880 = vmatpush1.bf16.msra.mxu1 %v14881_v13  ;;  %v14970_v13 = vld [vmem:[%s21581_s0 + $0x1c4] ss:$8 sps:$4 sm:$0xff]  }
  0x2f   :  { %2586 = vmatprep.subr.bf16.mxu0 %v21588_v0  ;;  %13865 = vmatprep.subr.bf16.mxu1 %v21588_v0 }
  0x32   :  { %2587 = vmatpush1.bf16.msra.mxu0 %v14882_v14  ;;  %13881 = vmatpush1.bf16.msra.mxu1 %v14882_v14 }
  0x33   :  { %2588 = vmatprep.subr.bf16.mxu0 %v21588_v0  ;;  %13866 = vmatprep.subr.bf16.mxu1 %v21588_v0 }
  0x36   :  { %2589 = vmatpush1.bf16.msra.mxu0 %v14883_v15  ;;  %13882 = vmatpush1.bf16.msra.mxu1 %v14883_v15 }
  0x37   :  { %2590 = vmatprep.subr.bf16.mxu0 %v21588_v0  ;;  %13867 = vmatprep.subr.bf16.mxu1 %v21588_v0 }
  0x3a   :  { %2591 = vmatpush1.bf16.msra.mxu0 %v14884_v16  ;;  %13883 = vmatpush1.bf16.msra.mxu1 %v14884_v16 }
  0x3b   :  { %2592 = vmatprep.subr.bf16.mxu0 %v21588_v0  ;;  %13868 = vmatprep.subr.bf16.mxu1 %v21588_v0 }
  0x3e   :  { %2593 = vmatpush1.bf16.msra.mxu0 %v14885_v17  ;;  %13884 = vmatpush1.bf16.msra.mxu1 %v14885_v17  ;;  %v14972_v17 = vld [vmem:[%s21581_s0 + $0x1c0] ss:$8 sps:$4 sm:$0xff]  }
  0x3f   :  { %6780 = vmatprep.subr.bf16.mxu1 %v21588_v0 }
  0x41   :  { %2595 = vmatmul.mubr.bf16.vlgmr.msra.gmra.mrb[0].mxu0 %v14886_v18 }
  0x42   :  { %2602 = vmatprep.mubr.bf16.mxu0 %v14889_v19  ;;  %v14973_v19 = vld [vmem:[%s21581_s0 + $0x1d4] ss:$8 sps:$4 sm:$0xff]  }
  0x49   :  { %2603 = vmatmul.mubr.bf16.gmra.mrb[4].mxu0 %v14891_v20 }
  0x4a   :  { %2610 = vmatprep.mubr.bf16.mxu0 %v14892_v21 }
  0x51   :  { %2611 = vmatmul.mubr.bf16.gmra.mrb[8].mxu0 %v14894_v22 }
  0x52   :  { %2618 = vmatprep.mubr.bf16.mxu0 %v14895_v23  ;;  %v14975_v23 = vld [vmem:[%s21581_s0 + $0x1d0] ss:$8 sps:$4 sm:$0xff]  }
  0x59   :  { %2619 = vmatmul.mubr.bf16.gmra.mrb[12].mxu0 %v14897_v24 }
  0x5a   :  { %2626 = vmatprep.mubr.bf16.mxu0 %v14898_v25  ;;  %v14976_v25 = vld [vmem:[%s21581_s0 + $0x1e4] ss:$8 sps:$4 sm:$0xff]  }
  0x61   :  { %2627 = vmatmul.mubr.bf16.gmra.mrb[16].mxu0 %v14900_v26 }
  0x62   :  { %2634 = vmatprep.mubr.bf16.mxu0 %v14901_v27 }
  0x69   :  { %2635 = vmatmul.mubr.bf16.gmra.mrb[20].mxu0 %v14903_v28 }
  0x6a   :  { %2642 = vmatprep.mubr.bf16.mxu0 %v14904_v29  ;;  %v14978_v29 = vld [vmem:[%s21581_s0 + $0x1e0] ss:$8 sps:$4 sm:$0xff]  }
  0x71   :  { %2643 = vmatmul.mubr.bf16.gmra.mrb[24].mxu0 %v14906_v30 }
  0x72   :  { %2650 = vmatprep.mubr.bf16.mxu0 %v14907_v31  ;;  %v14979_v31 = vld [vmem:[%s21581_s0 + $0x1f4] ss:$8 sps:$4 sm:$0xff]  }
  0x79   :  { %2651 = vmatmul.mubr.bf16.gmra.mrb[28].mxu0 %v14909_v32 }
  0x7a   :  { %2658 = vmatprep.mubr.bf16.mxu0 %v14910_v33 }
  0x81   :  { %2659 = vmatmul.mubr.bf16.gmra.mrb[32].mxu0 %v14912_v34 }
  0x82   :  { %2666 = vmatprep.mubr.bf16.mxu0 %v14913_v35  ;;  %v14981_v35 = vld [vmem:[%s21581_s0 + $0x1f0] ss:$8 sps:$4 sm:$0xff]  }
  0x89   :  { %2667 = vmatmul.mubr.bf16.gmra.mrb[36].mxu0 %v14915_v36 }
  0x8a   :  { %2674 = vmatprep.mubr.bf16.mxu0 %v14916_v37  ;;  %v14982_v37 = vld [vmem:[%s21581_s0 + $0x204] ss:$8 sps:$4 sm:$0xff]  }
  0x91   :  { %2675 = vmatmul.mubr.bf16.gmra.mrb[40].mxu0 %v14918_v38 }
  0x92   :  { %2682 = vmatprep.mubr.bf16.mxu0 %v14919_v39 }
  0x99   :  { %2683 = vmatmul.mubr.bf16.gmra.mrb[44].mxu0 %v14921_v40 }
  0x9a   :  { %2690 = vmatprep.mubr.bf16.mxu0 %v14922_v41  ;;  %v14984_v41 = vld [vmem:[%s21581_s0 + $0x200] ss:$8 sps:$4 sm:$0xff]  }
  0xa1   :  { %2691 = vmatmul.mubr.bf16.gmra.mrb[48].mxu0 %v14924_v42 }
  0xa2   :  { %2698 = vmatprep.mubr.bf16.mxu0 %v14925_v43  ;;  %v14985_v43 = vld [vmem:[%s21581_s0 + $0x214] ss:$8 sps:$4 sm:$0xff]  }
  0xa9   :  { %2699 = vmatmul.mubr.bf16.gmra.mrb[52].mxu0 %v14927_v44 }
  0xaa   :  { %2706 = vmatprep.mubr.bf16.mxu0 %v14928_v45 }
  0xb1   :  { %2707 = vmatmul.mubr.bf16.gmra.mrb[56].mxu0 %v14930_v46 }
  0xb2   :  { %2714 = vmatprep.mubr.bf16.mxu0 %v14931_v47  ;;  %v14987_v47 = vld [vmem:[%s21581_s0 + $0x210] ss:$8 sps:$4 sm:$0xff]  }
  0xb9   :  { %2715 = vmatmul.mubr.bf16.gmra.mrb[60].mxu0 %v14933_v48 }
  0xba   :  { %2722 = vmatprep.mubr.bf16.mxu0 %v14934_v49  ;;  %v14988_v49 = vld [vmem:[%s21581_s0 + $0x224] ss:$8 sps:$4 sm:$0xff]  }
  0xc1   :  { %2723 = vmatmul.mubr.bf16.gmra.mrb[64].mxu0 %v14936_v50 }
  0xc2   :  { %2730 = vmatprep.mubr.bf16.mxu0 %v14937_v51 }
  0xc9   :  { %2731 = vmatmul.mubr.bf16.gmra.mrb[68].mxu0 %v14939_v52 }
  0xca   :  { %2738 = vmatprep.mubr.bf16.mxu0 %v14940_v53  ;;  %v14990_v53 = vld [vmem:[%s21581_s0 + $0x220] ss:$8 sps:$4 sm:$0xff]  }
  0xd1   :  { %2739 = vmatmul.mubr.bf16.gmra.mrb[72].mxu0 %v14942_v54 }
  0xd2   :  { %2746 = vmatprep.mubr.bf16.mxu0 %v14943_v55  ;;  %v14991_v55 = vld [vmem:[%s21581_s0 + $0x234] ss:$8 sps:$4 sm:$0xff]  }
  0xd9   :  { %2747 = vmatmul.mubr.bf16.gmra.mrb[76].mxu0 %v14945_v56 }
  0xda   :  { %2754 = vmatprep.mubr.bf16.mxu0 %v14946_v57 }
  0xe1   :  { %2755 = vmatmul.mubr.bf16.gmra.mrb[80].mxu0 %v14948_v58 }
  0xe2   :  { %2762 = vmatprep.mubr.bf16.mxu0 %v14949_v59  ;;  %v14993_v59 = vld [vmem:[%s21581_s0 + $0x230] ss:$8 sps:$4 sm:$0xff]  }
  0xe9   :  { %2763 = vmatmul.mubr.bf16.gmra.mrb[84].mxu0 %v14951_v60 }
  0xea   :  { %2770 = vmatprep.mubr.bf16.mxu0 %v14952_v61  ;;  %v14994_v61 = vld [vmem:[%s21581_s0 + $0x244] ss:$8 sps:$4 sm:$0xff]  }
  0xf1   :  { %2771 = vmatmul.mubr.bf16.gmra.mrb[88].mxu0 %v14954_v62 }
  0xf2   :  { %2778 = vmatprep.mubr.bf16.mxu0 %v14955_v63 }
  0xf9   :  { %2779 = vmatmul.mubr.bf16.gmra.mrb[92].mxu0 %v14957_v1 }
  0xfa   :  { %2786 = vmatprep.mubr.bf16.mxu0 %v14958_v2  ;;  %v14996_v2 = vld [vmem:[%s21581_s0 + $0x240] ss:$8 sps:$4 sm:$0xff]  }
 0x101   :  { %2787 = vmatmul.mubr.bf16.gmra.mrb[96].mxu0 %v14960_v3 }
 0x102   :  { %2794 = vmatprep.mubr.bf16.mxu0 %v14961_v4  ;;  %v14997_v4 = vld [vmem:[%s21581_s0 + $0x254] ss:$8 sps:$4 sm:$0xff]  }
 0x109   :  { %2795 = vmatmul.mubr.bf16.gmra.mrb[100].mxu0 %v14963_v5 }
 0x10a   :  { %2802 = vmatprep.mubr.bf16.mxu0 %v14964_v6 }
 0x111   :  { %2803 = vmatmul.mubr.bf16.gmra.mrb[104].mxu0 %v14966_v7 }
 0x112   :  { %2810 = vmatprep.mubr.bf16.mxu0 %v14967_v8  ;;  %v14999_v8 = vld [vmem:[%s21581_s0 + $0x250] ss:$8 sps:$4 sm:$0xff]  }
 0x114   :  { %v16288_v9 = vpop.f32.mrb[0].mxu0 }
 0x115   :  { %21604 = vst [vmem:[#allocation2_spill] sm:$0xff] %v16288_v9  ;;  %v2598_v10 = vpop.f32.mrb[1].mxu0 }
 0x116   :  { %v16293_v12 = vpop.f32.mrb[2].mxu0 }
 0x117   :  { %v2601_v14 = vpop.f32.mrb[3].mxu0 }
 0x119   :  { %2811 = vmatmul.mubr.bf16.gmra.mrb[108].mxu0 %v14969_v11  ;;  %v15000_v11 = vld [vmem:[%s21581_s0 + $0x264] ss:$8 sps:$4 sm:$0xff]  }
 0x11a   :  { %2818 = vmatprep.mubr.bf16.mxu0 %v14970_v13 }
 0x11c   :  { %v16298_v15 = vpop.f32.mrb[4].mxu0 }
 0x11d   :  { %v2606_v16 = vpop.f32.mrb[5].mxu0 }
 0x11e   :  { %v16303_v18 = vpop.f32.mrb[6].mxu0 }
 0x11f   :  { %v2609_v20 = vpop.f32.mrb[7].mxu0 }
 0x120   :  { %v15003_v20 = vld [vmem:[%s21581_s0 + $0x274] ss:$8 sps:$4 sm:$0xff]  }
 0x121   :  { %2819 = vmatmul.mubr.bf16.gmra.mrb[112].mxu0 %v14972_v17  ;;  %v15002_v17 = vld [vmem:[%s21581_s0 + $0x260] ss:$8 sps:$4 sm:$0xff]  }
 0x122   :  { %2826 = vmatprep.mubr.bf16.mxu0 %v14973_v19 }
 0x124   :  { %v16308_v21 = vpop.f32.mrb[8].mxu0 }
 0x125   :  { %v2614_v22 = vpop.f32.mrb[9].mxu0 }
 0x126   :  { %v16313_v24 = vpop.f32.mrb[10].mxu0 }
 0x127   :  { %v2617_v26 = vpop.f32.mrb[11].mxu0 }
 0x128   :  { %v15005_v26 = vld [vmem:[%s21581_s0 + $0x270] ss:$8 sps:$4 sm:$0xff]  }
 0x129   :  { %2827 = vmatmul.mubr.bf16.gmra.mrb[116].mxu0 %v14975_v23 }
 0x12a   :  { %2834 = vmatprep.mubr.bf16.mxu0 %v14976_v25 }
 0x12c   :  { %v16318_v27 = vpop.f32.mrb[12].mxu0 }
 0x12d   :  { %v2622_v28 = vpop.f32.mrb[13].mxu0 }
 0x12e   :  { %v16323_v30 = vpop.f32.mrb[14].mxu0 }
 0x12f   :  { %v2625_v32 = vpop.f32.mrb[15].mxu0 }
 0x131   :  { %2835 = vmatmul.mubr.bf16.gmra.mrb[120].mxu0 %v14978_v29  ;;  %v15006_v29 = vld [vmem:[%s21581_s0 + $0x284] ss:$8 sps:$4 sm:$0xff]  }
 0x132   :  { %2842 = vmatprep.mubr.bf16.mxu0 %v14979_v31 }
 0x134   :  { %v16328_v33 = vpop.f32.mrb[16].mxu0 }
 0x135   :  { %v2630_v34 = vpop.f32.mrb[17].mxu0 }
 0x136   :  { %v16333_v36 = vpop.f32.mrb[18].mxu0 }
 0x137   :  { %v2633_v38 = vpop.f32.mrb[19].mxu0 }
 0x138   :  { %v15009_v38 = vld [vmem:[%s21581_s0 + $0x294] ss:$8 sps:$4 sm:$0xff]  }
 0x139   :  { %2843 = vmatmul.mubr.bf16.gmra.mrb[124].mxu0 %v14981_v35  ;;  %v15008_v35 = vld [vmem:[%s21581_s0 + $0x280] ss:$8 sps:$4 sm:$0xff]  }
 0x13a   :  { %2850 = vmatprep.mubr.bf16.mxu0 %v14982_v37 }
 0x13c   :  { %v16338_v39 = vpop.f32.mrb[20].mxu0 }
 0x13d   :  { %v2638_v40 = vpop.f32.mrb[21].mxu0 }
 0x13e   :  { %v16343_v42 = vpop.f32.mrb[22].mxu0 }
 0x13f   :  { %v2641_v44 = vpop.f32.mrb[23].mxu0 }
 0x140   :  { %v15011_v44 = vld [vmem:[%s21581_s0 + $0x290] ss:$8 sps:$4 sm:$0xff]  }
 0x141   :  { %2851 = vmatmul.mubr.bf16.gmra.mrb[128].mxu0 %v14984_v41 }
 0x142   :  { %2858 = vmatprep.mubr.bf16.mxu0 %v14985_v43 }
 0x144   :  { %v16348_v45 = vpop.f32.mrb[24].mxu0 }
 0x145   :  { %v2646_v46 = vpop.f32.mrb[25].mxu0 }
 0x146   :  { %v16353_v48 = vpop.f32.mrb[26].mxu0 }
 0x147   :  { %v2649_v50 = vpop.f32.mrb[27].mxu0 }
 0x149   :  { %2859 = vmatmul.mubr.bf16.gmra.mrb[132].mxu0 %v14987_v47  ;;  %v15012_v47 = vld [vmem:[%s21581_s0 + $0x2a4] ss:$8 sps:$4 sm:$0xff]  }
 0x14a   :  { %2866 = vmatprep.mubr.bf16.mxu0 %v14988_v49 }
 0x14c   :  { %v16358_v51 = vpop.f32.mrb[28].mxu0 }
 0x14d   :  { %v2654_v52 = vpop.f32.mrb[29].mxu0 }
 0x14e   :  { %v16363_v54 = vpop.f32.mrb[30].mxu0 }
 0x14f   :  { %v2657_v56 = vpop.f32.mrb[31].mxu0 }
 0x150   :  { %v15015_v56 = vld [vmem:[%s21581_s0 + $0x2b4] ss:$8 sps:$4 sm:$0xff]  }
 0x151   :  { %2867 = vmatmul.mubr.bf16.gmra.mrb[136].mxu0 %v14990_v53  ;;  %v15014_v53 = vld [vmem:[%s21581_s0 + $0x2a0] ss:$8 sps:$4 sm:$0xff]  }
 0x152   :  { %2874 = vmatprep.mubr.bf16.mxu0 %v14991_v55 }
 0x154   :  { %v16368_v57 = vpop.f32.mrb[32].mxu0 }
 0x155   :  { %v2662_v58 = vpop.f32.mrb[33].mxu0 }
 0x156   :  { %v16373_v60 = vpop.f32.mrb[34].mxu0 }
 0x157   :  { %v2665_v62 = vpop.f32.mrb[35].mxu0 }
 0x158   :  { %v15017_v62 = vld [vmem:[%s21581_s0 + $0x2b0] ss:$8 sps:$4 sm:$0xff]  }
 0x159   :  { %2875 = vmatmul.mubr.bf16.gmra.mrb[140].mxu0 %v14993_v59 }
 0x15a   :  { %2882 = vmatprep.mubr.bf16.mxu0 %v14994_v61 }
 0x15c   :  { %v16378_v63 = vpop.f32.mrb[36].mxu0 }
 0x15d   :  { %v2670_v1 = vpop.f32.mrb[37].mxu0 }
 0x15e   :  { %v16383_v3 = vpop.f32.mrb[38].mxu0 }
 0x15f   :  { %v2673_v5 = vpop.f32.mrb[39].mxu0 }
 0x161   :  { %2883 = vmatmul.mubr.bf16.gmra.mrb[144].mxu0 %v14996_v2  ;;  %v15018_v2 = vld [vmem:[%s21581_s0 + $0x2c4] ss:$8 sps:$4 sm:$0xff]  }
 0x162   :  { %2890 = vmatprep.mubr.bf16.mxu0 %v14997_v4 }
 0x164   :  { %v16388_v6 = vpop.f32.mrb[40].mxu0 }
 0x165   :  { %v2678_v7 = vpop.f32.mrb[41].mxu0 }
 0x166   :  { %v16393_v10 = vpop.f32.mrb[42].mxu0 }
 0x167   :  { %v2681_v13 = vpop.f32.mrb[43].mxu0 }
 0x168   :  { %v15021_v13 = vld [vmem:[%s21581_s0 + $0x2d4] ss:$8 sps:$4 sm:$0xff]  }
 0x169   :  { %2891 = vmatmul.mubr.bf16.gmra.mrb[148].mxu0 %v14999_v8  ;;  %v15020_v8 = vld [vmem:[%s21581_s0 + $0x2c0] ss:$8 sps:$4 sm:$0xff]  }
 0x16a   :  { %2898 = vmatprep.mubr.bf16.mxu0 %v15000_v11 }
 0x16c   :  { %v16398_v14 = vpop.f32.mrb[44].mxu0 }
 0x16d   :  { %v2686_v16 = vpop.f32.mrb[45].mxu0 }
 0x16e   :  { %v16403_v19 = vpop.f32.mrb[46].mxu0 }
 0x16f   :  { %21605 = vst [vmem:[#allocation3_spill] sm:$0xff] %v16403_v19  ;;  %v2689_v22 = vpop.f32.mrb[47].mxu0 }
 0x170   :  { %v15023_v22 = vld [vmem:[%s21581_s0 + $0x2d0] ss:$8 sps:$4 sm:$0xff]  }
 0x171   :  { %2899 = vmatmul.mubr.bf16.gmra.mrb[152].mxu0 %v15002_v17 }
 0x172   :  { %2906 = vmatprep.mubr.bf16.mxu0 %v15003_v20 }
 0x174   :  { %v16408_v23 = vpop.f32.mrb[48].mxu0 }
 0x175   :  { %21606 = vst [vmem:[#allocation4_spill] sm:$0xff] %v16408_v23  ;;  %v2694_v25 = vpop.f32.mrb[49].mxu0 }
 0x176   :  { %v16413_v28 = vpop.f32.mrb[50].mxu0 }
 0x177   :  { %21607 = vst [vmem:[#allocation5_spill] sm:$0xff] %v16413_v28  ;;  %v2697_v31 = vpop.f32.mrb[51].mxu0 }
 0x179   :  { %2907 = vmatmul.mubr.bf16.gmra.mrb[156].mxu0 %v15005_v26  ;;  %v15024_v26 = vld [vmem:[%s21581_s0 + $0x2e4] ss:$8 sps:$4 sm:$0xff]  }
 0x17a   :  { %2914 = vmatprep.mubr.bf16.mxu0 %v15006_v29 }
 0x17c   :  { %v16418_v32 = vpop.f32.mrb[52].mxu0 }
 0x17d   :  { %21608 = vst [vmem:[#allocation6_spill] sm:$0xff] %v16418_v32  ;;  %v2702_v34 = vpop.f32.mrb[53].mxu0 }
 0x17e   :  { %v16423_v37 = vpop.f32.mrb[54].mxu0 }
 0x17f   :  { %21609 = vst [vmem:[#allocation7_spill] sm:$0xff] %v16423_v37  ;;  %v2705_v40 = vpop.f32.mrb[55].mxu0 }
 0x180   :  { %v15027_v40 = vld [vmem:[%s21581_s0 + $0x2f4] ss:$8 sps:$4 sm:$0xff]  }
 0x181   :  { %2915 = vmatmul.mubr.bf16.gmra.mrb[160].mxu0 %v15008_v35  ;;  %v15026_v35 = vld [vmem:[%s21581_s0 + $0x2e0] ss:$8 sps:$4 sm:$0xff]  }
 0x182   :  { %2922 = vmatprep.mubr.bf16.mxu0 %v15009_v38 }
 0x184   :  { %v16428_v41 = vpop.f32.mrb[56].mxu0 }
 0x185   :  { %21610 = vst [vmem:[#allocation8_spill] sm:$0xff] %v16428_v41  ;;  %v2710_v43 = vpop.f32.mrb[57].mxu0  ;;  %v15327_v41 = vld [vmem:[%s21581_s0 + $0x930] ss:$8 sps:$4 sm:$0xff]  }
 0x186   :  { %v16433_v46 = vpop.f32.mrb[58].mxu0 }
 0x187   :  { %21611 = vst [vmem:[#allocation9_spill] sm:$0xff] %v16433_v46  ;;  %v2713_v49 = vpop.f32.mrb[59].mxu0  ;;  %v15273_v46 = vld [vmem:[%s21581_s0 + $0x810] ss:$8 sps:$4 sm:$0xff]  }
 0x188   :  { %v15029_v49 = vld [vmem:[%s21581_s0 + $0x2f0] ss:$8 sps:$4 sm:$0xff]  }
 0x189   :  { %2923 = vmatmul.mubr.bf16.gmra.mrb[164].mxu0 %v15011_v44 }
 0x18a   :  { %2930 = vmatprep.mubr.bf16.mxu0 %v15012_v47 }
 0x18c   :  { %v16438_v50 = vpop.f32.mrb[60].mxu0 }
 0x18d   :  { %21612 = vst [vmem:[#allocation10_spill] sm:$0xff] %v16438_v50  ;;  %v2718_v52 = vpop.f32.mrb[61].mxu0 }
 0x18e   :  { %v16443_v55 = vpop.f32.mrb[62].mxu0 }
 0x18f   :  { %21613 = vst [vmem:[#allocation11_spill] sm:$0xff] %v16443_v55  ;;  %v2721_v58 = vpop.f32.mrb[63].mxu0 }
 0x191   :  { %2931 = vmatmul.mubr.bf16.gmra.mrb[168].mxu0 %v15014_v53  ;;  %v15030_v53 = vld [vmem:[%s21581_s0 + $0x304] ss:$8 sps:$4 sm:$0xff]  }
 0x192   :  { %2938 = vmatprep.mubr.bf16.mxu0 %v15015_v56 }
 0x194   :  { %v16448_v59 = vpop.f32.mrb[64].mxu0 }
 0x195   :  { %21614 = vst [vmem:[#allocation12_spill] sm:$0xff] %v16448_v59  ;;  %v2726_v61 = vpop.f32.mrb[65].mxu0 }
 0x196   :  { %v16453_v1 = vpop.f32.mrb[66].mxu0 }
 0x197   :  { %21615 = vst [vmem:[#allocation13_spill] sm:$0xff] %v16453_v1  ;;  %v2729_v4 = vpop.f32.mrb[67].mxu0 }
 0x198   :  { %v15033_v4 = vld [vmem:[%s21581_s0 + $0x314] ss:$8 sps:$4 sm:$0xff]  }
 0x199   :  { %2939 = vmatmul.mubr.bf16.gmra.mrb[172].mxu0 %v15017_v62  ;;  %v15032_v62 = vld [vmem:[%s21581_s0 + $0x300] ss:$8 sps:$4 sm:$0xff]  }
 0x19a   :  { %2946 = vmatprep.mubr.bf16.mxu0 %v15018_v2 }
 0x19c   :  { %v16458_v5 = vpop.f32.mrb[68].mxu0 }
 0x19d   :  { %21616 = vst [vmem:[#allocation14_spill] sm:$0xff] %v16458_v5  ;;  %v2734_v7 = vpop.f32.mrb[69].mxu0 }
 0x19e   :  { %v16463_v11 = vpop.f32.mrb[70].mxu0 }
 0x19f   :  { %21617 = vst [vmem:[#allocation15_spill] sm:$0xff] %v16463_v11  ;;  %v2737_v16 = vpop.f32.mrb[71].mxu0 }
 0x1a0   :  { %v15035_v16 = vld [vmem:[%s21581_s0 + $0x310] ss:$8 sps:$4 sm:$0xff]  }
 0x1a1   :  { %2947 = vmatmul.mubr.bf16.gmra.mrb[176].mxu0 %v15020_v8 }
 0x1a2   :  { %2954 = vmatprep.mubr.bf16.mxu0 %v15021_v13 }
 0x1a4   :  { %v16468_v17 = vpop.f32.mrb[72].mxu0 }
 0x1a5   :  { %21618 = vst [vmem:[#allocation16_spill] sm:$0xff] %v16468_v17  ;;  %v2742_v20 = vpop.f32.mrb[73].mxu0 }
 0x1a6   :  { %v16473_v25 = vpop.f32.mrb[74].mxu0 }
 0x1a7   :  { %21619 = vst [vmem:[#allocation17_spill] sm:$0xff] %v16473_v25  ;;  %v2745_v29 = vpop.f32.mrb[75].mxu0 }
 0x1a9   :  { %2955 = vmatmul.mubr.bf16.gmra.mrb[180].mxu0 %v15023_v22  ;;  %v15036_v22 = vld [vmem:[%s21581_s0 + $0x324] ss:$8 sps:$4 sm:$0xff]  }
 0x1aa   :  { %2962 = vmatprep.mubr.bf16.mxu0 %v15024_v26 }
 0x1ac   :  { %v16478_v31 = vpop.f32.mrb[76].mxu0 }
 0x1ad   :  { %21620 = vst [vmem:[#allocation18_spill] sm:$0xff] %v16478_v31  ;;  %v2750_v34 = vpop.f32.mrb[77].mxu0 }
 0x1ae   :  { %v16483_v38 = vpop.f32.mrb[78].mxu0 }
 0x1af   :  { %21621 = vst [vmem:[#allocation19_spill] sm:$0xff] %v16483_v38  ;;  %v2753_v43 = vpop.f32.mrb[79].mxu0 }
 0x1b0   :  { %v15039_v43 = vld [vmem:[%s21581_s0 + $0x334] ss:$8 sps:$4 sm:$0xff]  }
 0x1b1   :  { %2963 = vmatmul.mubr.bf16.gmra.mrb[184].mxu0 %v15026_v35  ;;  %v15038_v35 = vld [vmem:[%s21581_s0 + $0x320] ss:$8 sps:$4 sm:$0xff]  }
 0x1b2   :  { %2970 = vmatprep.mubr.bf16.mxu0 %v15027_v40 }
 0x1b4   :  { %v16488_v44 = vpop.f32.mrb[80].mxu0 }
 0x1b5   :  { %21622 = vst [vmem:[#allocation20_spill] sm:$0xff] %v16488_v44  ;;  %v2758_v47 = vpop.f32.mrb[81].mxu0 }
 0x1b6   :  { %v16493_v52 = vpop.f32.mrb[82].mxu0 }
 0x1b7   :  { %21623 = vst [vmem:[#allocation21_spill] sm:$0xff] %v16493_v52  ;;  %v2761_v56 = vpop.f32.mrb[83].mxu0 }
 0x1b8   :  { %v15041_v56 = vld [vmem:[%s21581_s0 + $0x330] ss:$8 sps:$4 sm:$0xff]  }
 0x1b9   :  { %2971 = vmatmul.mubr.bf16.gmra.mrb[188].mxu0 %v15029_v49 }
 0x1ba   :  { %2978 = vmatprep.mubr.bf16.mxu0 %v15030_v53 }
 0x1bc   :  { %v16498_v58 = vpop.f32.mrb[84].mxu0 }
 0x1bd   :  { %21624 = vst [vmem:[#allocation22_spill] sm:$0xff] %v16498_v58  ;;  %v2766_v61 = vpop.f32.mrb[85].mxu0 }
 0x1be   :  { %v16503_v2 = vpop.f32.mrb[86].mxu0 }
 0x1bf   :  { %21625 = vst [vmem:[#allocation23_spill] sm:$0xff] %v16503_v2  ;;  %v2769_v7 = vpop.f32.mrb[87].mxu0 }
 0x1c1   :  { %2979 = vmatmul.mubr.bf16.gmra.mrb[192].mxu0 %v15032_v62  ;;  %v15042_v62 = vld [vmem:[%s21581_s0 + $0x344] ss:$8 sps:$4 sm:$0xff]  }
 0x1c2   :  { %2986 = vmatprep.mubr.bf16.mxu0 %v15033_v4 }
 0x1c4   :  { %v16508_v8 = vpop.f32.mrb[88].mxu0 }
 0x1c5   :  { %21626 = vst [vmem:[#allocation24_spill] sm:$0xff] %v16508_v8  ;;  %v2774_v13 = vpop.f32.mrb[89].mxu0 }
 0x1c6   :  { %v16513_v20 = vpop.f32.mrb[90].mxu0 }
 0x1c7   :  { %21627 = vst [vmem:[#allocation25_spill] sm:$0xff] %v16513_v20  ;;  %v2777_v26 = vpop.f32.mrb[91].mxu0  ;;  %v15156_v20 = vld [vmem:[%s21581_s0 + $0x5a0] ss:$8 sps:$4 sm:$0xff]  }
 0x1c8   :  { %v15045_v26 = vld [vmem:[%s21581_s0 + $0x354] ss:$8 sps:$4 sm:$0xff]  }
 0x1c9   :  { %2987 = vmatmul.mubr.bf16.gmra.mrb[196].mxu0 %v15035_v16  ;;  %v15044_v16 = vld [vmem:[%s21581_s0 + $0x340] ss:$8 sps:$4 sm:$0xff]  }
 0x1ca   :  { %2994 = vmatprep.mubr.bf16.mxu0 %v15036_v22 }
 0x1cc   :  { %v16518_v29 = vpop.f32.mrb[92].mxu0 }
 0x1cd   :  { %21628 = vst [vmem:[#allocation26_spill] sm:$0xff] %v16518_v29  ;;  %v2782_v34 = vpop.f32.mrb[93].mxu0 }
 0x1ce   :  { %v16523_v40 = vpop.f32.mrb[94].mxu0 }
 0x1cf   :  { %21629 = vst [vmem:[#allocation27_spill] sm:$0xff] %v16523_v40  ;;  %v2785_v47 = vpop.f32.mrb[95].mxu0  ;;  %v15123_v40 = vld [vmem:[%s21581_s0 + $0x4f0] ss:$8 sps:$4 sm:$0xff]  }
 0x1d0   :  { %v15047_v47 = vld [vmem:[%s21581_s0 + $0x350] ss:$8 sps:$4 sm:$0xff]  }
 0x1d1   :  { %2995 = vmatmul.mubr.bf16.gmra.mrb[200].mxu0 %v15038_v35 }
 0x1d2   :  { %3002 = vmatprep.mubr.bf16.mxu0 %v15039_v43 }
 0x1d4   :  { %v16528_v49 = vpop.f32.mrb[96].mxu0 }
 0x1d5   :  { %21630 = vst [vmem:[#allocation28_spill] sm:$0xff] %v16528_v49  ;;  %v2790_v53 = vpop.f32.mrb[97].mxu0 }
 0x1d6   :  { %v16533_v61 = vpop.f32.mrb[98].mxu0 }
 0x1d7   :  { %21631 = vst [vmem:[#allocation29_spill] sm:$0xff] %v16533_v61  ;;  %v2793_v4 = vpop.f32.mrb[99].mxu0 }
 0x1d9   :  { %3003 = vmatmul.mubr.bf16.gmra.mrb[204].mxu0 %v15041_v56  ;;  %v15048_v56 = vld [vmem:[%s21581_s0 + $0x364] ss:$8 sps:$4 sm:$0xff]  }
 0x1da   :  { %3010 = vmatprep.mubr.bf16.mxu0 %v15042_v62 }
 0x1dc   :  { %v16538_v7 = vpop.f32.mrb[100].mxu0 }
 0x1dd   :  { %21632 = vst [vmem:[#allocation30_spill] sm:$0xff] %v16538_v7  ;;  %v2798_v13 = vpop.f32.mrb[101].mxu0 }
 0x1de   :  { %v16543_v22 = vpop.f32.mrb[102].mxu0 }
 0x1df   :  { %21633 = vst [vmem:[#allocation31_spill] sm:$0xff] %v16543_v22  ;;  %v2801_v34 = vpop.f32.mrb[103].mxu0 }
 0x1e0   :  { %v15051_v34 = vld [vmem:[%s21581_s0 + $0x374] ss:$8 sps:$4 sm:$0xff]  }
 0x1e1   :  { %3011 = vmatmul.mubr.bf16.gmra.mrb[208].mxu0 %v15044_v16  ;;  %v15050_v16 = vld [vmem:[%s21581_s0 + $0x360] ss:$8 sps:$4 sm:$0xff]  }
 0x1e2   :  { %3018 = vmatprep.mubr.bf16.mxu0 %v15045_v26 }
 0x1e4   :  { %v16548_v35 = vpop.f32.mrb[104].mxu0 }
 0x1e5   :  { %21634 = vst [vmem:[#allocation32_spill] sm:$0xff] %v16548_v35  ;;  %v2806_v43 = vpop.f32.mrb[105].mxu0  ;;  %v15120_v35 = vld [vmem:[%s21581_s0 + $0x4e0] ss:$8 sps:$4 sm:$0xff]  }
 0x1e6   :  { %v16553_v53 = vpop.f32.mrb[106].mxu0 }
 0x1e7   :  { %21635 = vst [vmem:[#allocation33_spill] sm:$0xff] %v16553_v53  ;;  %v2809_v62 = vpop.f32.mrb[107].mxu0 }
 0x1e9   :  { %3019 = vmatmul.mubr.bf16.gmra.mrb[212].mxu0 %v15047_v47 }
 0x1ea   :  { %3026 = vmatprep.mubr.bf16.mxu0 %v15048_v56  ;;  %v15053_v56 = vld [vmem:[%s21581_s0 + $0x370] ss:$8 sps:$4 sm:$0xff]  }
 0x1ec   :  { %v16558_v4 = vpop.f32.mrb[108].mxu0 }
 0x1ed   :  { %21636 = vst [vmem:[#allocation34_spill] sm:$0xff] %v16558_v4  ;;  %v2814_v13 = vpop.f32.mrb[109].mxu0 }
 0x1ee   :  { %v16563_v26 = vpop.f32.mrb[110].mxu0  ;;  %v15054_v13 = vld [vmem:[%s21581_s0 + $0x384] ss:$8 sps:$4 sm:$0xff]  }
 0x1ef   :  { %21637 = vst [vmem:[#allocation35_spill] sm:$0xff] %v16563_v26  ;;  %v2817_v43 = vpop.f32.mrb[111].mxu0 }
 0x1f1   :  { %3027 = vmatmul.mubr.bf16.gmra.mrb[216].mxu0 %v15050_v16 }
 0x1f2   :  { %3034 = vmatprep.mubr.bf16.mxu0 %v15051_v34  ;;  %v15056_v34 = vld [vmem:[%s21581_s0 + $0x380] ss:$8 sps:$4 sm:$0xff]  }
 0x1f4   :  { %v16568_v0 = vpop.f32.mrb[112].mxu0 }
 0x1f5   :  { %21638 = vst [vmem:[#allocation36_spill] sm:$0xff] %v16568_v0  ;;  %v2822_v47 = vpop.f32.mrb[113].mxu0 }
 0x1f6   :  { %v16573_v62 = vpop.f32.mrb[114].mxu0  ;;  %v15057_v47 = vld [vmem:[%s21581_s0 + $0x394] ss:$8 sps:$4 sm:$0xff]  }
 0x1f7   :  { %21639 = vst [vmem:[#allocation37_spill] sm:$0xff] %v16573_v62  ;;  %v2825_v26 = vpop.f32.mrb[115].mxu0 }
 0x1f9   :  { %3035 = vmatmul.mubr.bf16.gmra.mrb[220].mxu0 %v15053_v56  ;;  %v15059_v56 = vld [vmem:[%s21581_s0 + $0x390] ss:$8 sps:$4 sm:$0xff]  }
 0x1fa   :  { %3042 = vmatprep.mubr.bf16.mxu0 %v15054_v13 }
 0x1fc   :  { %v16578_v4 = vpop.f32.mrb[116].mxu0 }
 0x1fd   :  { %21640 = vst [vmem:[#allocation38_spill] sm:$0xff] %v16578_v4  ;;  %v2830_v16 = vpop.f32.mrb[117].mxu0 }
 0x1fe   :  { %v16583_v43 = vpop.f32.mrb[118].mxu0  ;;  %v15060_v16 = vld [vmem:[%s21581_s0 + $0x3a4] ss:$8 sps:$4 sm:$0xff]  }
 0x1ff   :  { %21641 = vst [vmem:[#allocation39_spill] sm:$0xff] %v16583_v43  ;;  %v2833_v62 = vpop.f32.mrb[119].mxu0 }
 0x201   :  { %3043 = vmatmul.mubr.bf16.gmra.mrb[224].mxu0 %v15056_v34  ;;  %v15062_v34 = vld [vmem:[%s21581_s0 + $0x3a0] ss:$8 sps:$4 sm:$0xff]  }
 0x202   :  { %3050 = vmatprep.mubr.bf16.mxu0 %v15057_v47 }
 0x204   :  { %v16588_v0 = vpop.f32.mrb[120].mxu0 }
 0x205   :  { %21642 = vst [vmem:[#allocation40_spill] sm:$0xff] %v16588_v0  ;;  %v2838_v26 = vpop.f32.mrb[121].mxu0 }
 0x206   :  { %v16593_v13 = vpop.f32.mrb[122].mxu0  ;;  %v15063_v26 = vld [vmem:[%s21581_s0 + $0x3b4] ss:$8 sps:$4 sm:$0xff]  }
 0x207   :  { %21643 = vst [vmem:[#allocation41_spill] sm:$0xff] %v16593_v13  ;;  %v2841_v43 = vpop.f32.mrb[123].mxu0 }
 0x209   :  { %3051 = vmatmul.mubr.bf16.gmra.mrb[228].mxu0 %v15059_v56  ;;  %v15065_v56 = vld [vmem:[%s21581_s0 + $0x3b0] ss:$8 sps:$4 sm:$0xff]  }
 0x20a   :  { %3058 = vmatprep.mubr.bf16.mxu0 %v15060_v16 }
 0x20c   :  { %v16598_v4 = vpop.f32.mrb[124].mxu0 }
 0x20d   :  { %21644 = vst [vmem:[#allocation42_spill] sm:$0xff] %v16598_v4  ;;  %v2846_v62 = vpop.f32.mrb[125].mxu0 }
 0x20e   :  { %v16603_v47 = vpop.f32.mrb[126].mxu0  ;;  %v15066_v62 = vld [vmem:[%s21581_s0 + $0x3c4] ss:$8 sps:$4 sm:$0xff]  }
 0x20f   :  { %21645 = vst [vmem:[#allocation43_spill] sm:$0xff] %v16603_v47  ;;  %v2849_v0 = vpop.f32.mrb[127].mxu0 }
 0x211   :  { %3059 = vmatmul.mubr.bf16.gmra.mrb[232].mxu0 %v15062_v34  ;;  %v15068_v34 = vld [vmem:[%s21581_s0 + $0x3c0] ss:$8 sps:$4 sm:$0xff]  }
 0x212   :  { %3066 = vmatprep.mubr.bf16.mxu0 %v15063_v26 }
 0x214   :  { %v16608_v53 = vpop.f32.mrb[128].mxu0 }
 0x215   :  { %21646 = vst [vmem:[#allocation44_spill] sm:$0xff] %v16608_v53  ;;  %v2854_v43 = vpop.f32.mrb[129].mxu0 }
 0x216   :  { %v16613_v16 = vpop.f32.mrb[130].mxu0  ;;  %v15069_v43 = vld [vmem:[%s21581_s0 + $0x3d4] ss:$8 sps:$4 sm:$0xff]  }
 0x217   :  { %21647 = vst [vmem:[#allocation45_spill] sm:$0xff] %v16613_v16  ;;  %v2857_v47 = vpop.f32.mrb[131].mxu0 }
 0x219   :  { %3067 = vmatmul.mubr.bf16.gmra.mrb[236].mxu0 %v15065_v56  ;;  %v15071_v56 = vld [vmem:[%s21581_s0 + $0x3d0] ss:$8 sps:$4 sm:$0xff]  }
 0x21a   :  { %3074 = vmatprep.mubr.bf16.mxu0 %v15066_v62 }
 0x21c   :  { %v16618_v4 = vpop.f32.mrb[132].mxu0 }
 0x21d   :  { %21648 = vst [vmem:[#allocation46_spill] sm:$0xff] %v16618_v4  ;;  %v2862_v0 = vpop.f32.mrb[133].mxu0 }
 0x21e   :  { %v16623_v26 = vpop.f32.mrb[134].mxu0  ;;  %v15072_v0 = vld [vmem:[%s21581_s0 + $0x3e4] ss:$8 sps:$4 sm:$0xff]  }
 0x21f   :  { %21649 = vst [vmem:[#allocation47_spill] sm:$0xff] %v16623_v26  ;;  %v2865_v16 = vpop.f32.mrb[135].mxu0 }
 0x221   :  { %3075 = vmatmul.mubr.bf16.gmra.mrb[240].mxu0 %v15068_v34  ;;  %v15074_v34 = vld [vmem:[%s21581_s0 + $0x3e0] ss:$8 sps:$4 sm:$0xff]  }
 0x222   :  { %3082 = vmatprep.mubr.bf16.mxu0 %v15069_v43 }
 0x224   :  { %v16628_v53 = vpop.f32.mrb[136].mxu0 }
 0x225   :  { %21650 = vst [vmem:[#allocation48_spill] sm:$0xff] %v16628_v53  ;;  %v2870_v47 = vpop.f32.mrb[137].mxu0 }
 0x226   :  { %v16633_v62 = vpop.f32.mrb[138].mxu0  ;;  %v15075_v47 = vld [vmem:[%s21581_s0 + $0x3f4] ss:$8 sps:$4 sm:$0xff]  }
 0x227   :  { %21651 = vst [vmem:[#allocation49_spill] sm:$0xff] %v16633_v62  ;;  %v2873_v26 = vpop.f32.mrb[139].mxu0 }
 0x229   :  { %3083 = vmatmul.mubr.bf16.gmra.mrb[244].mxu0 %v15071_v56  ;;  %v15077_v56 = vld [vmem:[%s21581_s0 + $0x3f0] ss:$8 sps:$4 sm:$0xff]  }
 0x22a   :  { %3090 = vmatprep.mubr.bf16.mxu0 %v15072_v0 }
 0x22c   :  { %v16638_v4 = vpop.f32.mrb[140].mxu0 }
 0x22d   :  { %21652 = vst [vmem:[#allocation50_spill] sm:$0xff] %v16638_v4  ;;  %v2878_v16 = vpop.f32.mrb[141].mxu0 }
 0x22e   :  { %v16643_v43 = vpop.f32.mrb[142].mxu0  ;;  %v15080_v16 = vld [vmem:[%s21581_s0 + $0x404] ss:$8 sps:$4 sm:$0xff]  }
 0x22f   :  { %21653 = vst [vmem:[#allocation51_spill] sm:$0xff] %v16643_v43  ;;  %v2881_v62 = vpop.f32.mrb[143].mxu0 }
 0x231   :  { %3091 = vmatmul.mubr.bf16.gmra.mrb[248].mxu0 %v15074_v34  ;;  %v15078_v34 = vld [vmem:[%s21581_s0 + $0x400] ss:$8 sps:$4 sm:$0xff]  }
 0x232   :  { %3098 = vmatprep.mubr.bf16.mxu0 %v15075_v47 }
 0x234   :  { %v16648_v53 = vpop.f32.mrb[144].mxu0 }
 0x235   :  { %21654 = vst [vmem:[#allocation52_spill] sm:$0xff] %v16648_v53  ;;  %v2886_v26 = vpop.f32.mrb[145].mxu0 }
 0x236   :  { %v16653_v0 = vpop.f32.mrb[146].mxu0  ;;  %v15083_v26 = vld [vmem:[%s21581_s0 + $0x414] ss:$8 sps:$4 sm:$0xff]  }
 0x237   :  { %21655 = vst [vmem:[#allocation53_spill] sm:$0xff] %v16653_v0  ;;  %v2889_v43 = vpop.f32.mrb[147].mxu0 }
 0x239   :  { %3099 = vmatmul.mubr.bf16.gmra.mrb[252].mxu0 %v15077_v56  ;;  %v15081_v56 = vld [vmem:[%s21581_s0 + $0x410] ss:$8 sps:$4 sm:$0xff]  }
 0x23a   :  { %3106 = vmatprep.mubr.bf16.mxu0 %v15080_v16 }
 0x23c   :  { %v16658_v4 = vpop.f32.mrb[148].mxu0 }
 0x23d   :  { %21656 = vst [vmem:[#allocation54_spill] sm:$0xff] %v16658_v4  ;;  %v2894_v62 = vpop.f32.mrb[149].mxu0 }
 0x23e   :  { %v16663_v47 = vpop.f32.mrb[150].mxu0  ;;  %v15086_v62 = vld [vmem:[%s21581_s0 + $0x424] ss:$8 sps:$4 sm:$0xff]  }
 0x23f   :  { %21657 = vst [vmem:[#allocation55_spill] sm:$0xff] %v16663_v47  ;;  %v2897_v0 = vpop.f32.mrb[151].mxu0 }
 0x241   :  { %3107 = vmatmul.mubr.bf16.gmra.mrb[0].mxu0 %v15078_v34  ;;  %v15084_v34 = vld [vmem:[%s21581_s0 + $0x420] ss:$8 sps:$4 sm:$0xff]  }
 0x242   :  { %3114 = vmatprep.mubr.bf16.mxu0 %v15083_v26 }
 0x244   :  { %v16668_v53 = vpop.f32.mrb[152].mxu0 }
 0x245   :  { %21658 = vst [vmem:[#allocation56_spill] sm:$0xff] %v16668_v53  ;;  %v2902_v43 = vpop.f32.mrb[153].mxu0 }
 0x246   :  { %v16673_v16 = vpop.f32.mrb[154].mxu0  ;;  %v15089_v43 = vld [vmem:[%s21581_s0 + $0x434] ss:$8 sps:$4 sm:$0xff]  }
 0x247   :  { %21659 = vst [vmem:[#allocation57_spill] sm:$0xff] %v16673_v16  ;;  %v2905_v47 = vpop.f32.mrb[155].mxu0 }
 0x249   :  { %3115 = vmatmul.mubr.bf16.gmra.mrb[4].mxu0 %v15081_v56  ;;  %v15087_v56 = vld [vmem:[%s21581_s0 + $0x430] ss:$8 sps:$4 sm:$0xff]  }
 0x24a   :  { %3122 = vmatprep.mubr.bf16.mxu0 %v15086_v62 }
 0x24c   :  { %v16678_v4 = vpop.f32.mrb[156].mxu0 }
 0x24d   :  { %21660 = vst [vmem:[#allocation58_spill] sm:$0xff] %v16678_v4  ;;  %v2910_v0 = vpop.f32.mrb[157].mxu0 }
 0x24e   :  { %v16683_v26 = vpop.f32.mrb[158].mxu0  ;;  %v15092_v0 = vld [vmem:[%s21581_s0 + $0x444] ss:$8 sps:$4 sm:$0xff]  }
 0x24f   :  { %21661 = vst [vmem:[#allocation59_spill] sm:$0xff] %v16683_v26  ;;  %v2913_v53 = vpop.f32.mrb[159].mxu0 }
 0x251   :  { %3123 = vmatmul.mubr.bf16.gmra.mrb[8].mxu0 %v15084_v34  ;;  %v15090_v34 = vld [vmem:[%s21581_s0 + $0x440] ss:$8 sps:$4 sm:$0xff]  }
 0x252   :  { %3130 = vmatprep.mubr.bf16.mxu0 %v15089_v43 }
 0x254   :  { %v16688_v16 = vpop.f32.mrb[160].mxu0 }
 0x255   :  { %21662 = vst [vmem:[#allocation60_spill] sm:$0xff] %v16688_v16  ;;  %v2918_v47 = vpop.f32.mrb[161].mxu0 }
 0x256   :  { %v16693_v62 = vpop.f32.mrb[162].mxu0  ;;  %v15095_v47 = vld [vmem:[%s21581_s0 + $0x454] ss:$8 sps:$4 sm:$0xff]  }
 0x257   :  { %21663 = vst [vmem:[#allocation61_spill] sm:$0xff] %v16693_v62  ;;  %v2921_v26 = vpop.f32.mrb[163].mxu0 }
 0x259   :  { %3131 = vmatmul.mubr.bf16.gmra.mrb[12].mxu0 %v15087_v56  ;;  %v15093_v56 = vld [vmem:[%s21581_s0 + $0x450] ss:$8 sps:$4 sm:$0xff]  }
 0x25a   :  { %3138 = vmatprep.mubr.bf16.mxu0 %v15092_v0 }
 0x25c   :  { %v16698_v4 = vpop.f32.mrb[164].mxu0 }
 0x25d   :  { %21664 = vst [vmem:[#allocation62_spill] sm:$0xff] %v16698_v4  ;;  %v2926_v53 = vpop.f32.mrb[165].mxu0 }
 0x25e   :  { %v16703_v43 = vpop.f32.mrb[166].mxu0  ;;  %v15098_v53 = vld [vmem:[%s21581_s0 + $0x464] ss:$8 sps:$4 sm:$0xff]  }
 0x25f   :  { %21665 = vst [vmem:[#allocation63_spill] sm:$0xff] %v16703_v43  ;;  %v2929_v62 = vpop.f32.mrb[167].mxu0 }
 0x261   :  { %3139 = vmatmul.mubr.bf16.gmra.mrb[16].mxu0 %v15090_v34  ;;  %v15096_v34 = vld [vmem:[%s21581_s0 + $0x460] ss:$8 sps:$4 sm:$0xff]  }
 0x262   :  { %3146 = vmatprep.mubr.bf16.mxu0 %v15095_v47 }
 0x264   :  { %v16708_v16 = vpop.f32.mrb[168].mxu0 }
 0x265   :  { %21666 = vst [vmem:[#allocation64_spill] sm:$0xff] %v16708_v16  ;;  %v2934_v26 = vpop.f32.mrb[169].mxu0 }
 0x266   :  { %v16713_v0 = vpop.f32.mrb[170].mxu0  ;;  %v15101_v26 = vld [vmem:[%s21581_s0 + $0x474] ss:$8 sps:$4 sm:$0xff]  }
 0x267   :  { %21667 = vst [vmem:[#allocation65_spill] sm:$0xff] %v16713_v0  ;;  %v2937_v43 = vpop.f32.mrb[171].mxu0 }
 0x269   :  { %3147 = vmatmul.mubr.bf16.gmra.mrb[20].mxu0 %v15093_v56  ;;  %v15099_v56 = vld [vmem:[%s21581_s0 + $0x470] ss:$8 sps:$4 sm:$0xff]  }
 0x26a   :  { %3154 = vmatprep.mubr.bf16.mxu0 %v15098_v53 }
 0x26c   :  { %v16718_v4 = vpop.f32.mrb[172].mxu0 }
 0x26d   :  { %21668 = vst [vmem:[#allocation66_spill] sm:$0xff] %v16718_v4  ;;  %v2942_v62 = vpop.f32.mrb[173].mxu0 }
 0x26e   :  { %v16723_v47 = vpop.f32.mrb[174].mxu0  ;;  %v15104_v62 = vld [vmem:[%s21581_s0 + $0x484] ss:$8 sps:$4 sm:$0xff]  }
 0x26f   :  { %21669 = vst [vmem:[#allocation67_spill] sm:$0xff] %v16723_v47  ;;  %v2945_v0 = vpop.f32.mrb[175].mxu0 }
 0x271   :  { %3155 = vmatmul.mubr.bf16.gmra.mrb[24].mxu0 %v15096_v34  ;;  %v15102_v34 = vld [vmem:[%s21581_s0 + $0x480] ss:$8 sps:$4 sm:$0xff]  }
 0x272   :  { %3162 = vmatprep.mubr.bf16.mxu0 %v15101_v26 }
 0x274   :  { %v16728_v16 = vpop.f32.mrb[176].mxu0 }
 0x275   :  { %21670 = vst [vmem:[#allocation68_spill] sm:$0xff] %v16728_v16  ;;  %v2950_v43 = vpop.f32.mrb[177].mxu0 }
 0x276   :  { %v16733_v53 = vpop.f32.mrb[178].mxu0  ;;  %v15107_v43 = vld [vmem:[%s21581_s0 + $0x494] ss:$8 sps:$4 sm:$0xff]  }
 0x277   :  { %21671 = vst [vmem:[#allocation69_spill] sm:$0xff] %v16733_v53  ;;  %v2953_v47 = vpop.f32.mrb[179].mxu0 }
 0x279   :  { %3163 = vmatmul.mubr.bf16.gmra.mrb[28].mxu0 %v15099_v56  ;;  %v15105_v56 = vld [vmem:[%s21581_s0 + $0x490] ss:$8 sps:$4 sm:$0xff]  }
 0x27a   :  { %3170 = vmatprep.mubr.bf16.mxu0 %v15104_v62 }
 0x27c   :  { %v16738_v4 = vpop.f32.mrb[180].mxu0 }
 0x27d   :  { %21672 = vst [vmem:[#allocation70_spill] sm:$0xff] %v16738_v4  ;;  %v2958_v0 = vpop.f32.mrb[181].mxu0 }
 0x27e   :  { %v16743_v26 = vpop.f32.mrb[182].mxu0  ;;  %v15110_v0 = vld [vmem:[%s21581_s0 + $0x4a4] ss:$8 sps:$4 sm:$0xff]  }
 0x27f   :  { %21673 = vst [vmem:[#allocation71_spill] sm:$0xff] %v16743_v26  ;;  %v2961_v53 = vpop.f32.mrb[183].mxu0 }
 0x281   :  { %3171 = vmatmul.mubr.bf16.gmra.mrb[32].mxu0 %v15102_v34  ;;  %v15108_v34 = vld [vmem:[%s21581_s0 + $0x4a0] ss:$8 sps:$4 sm:$0xff]  }
 0x282   :  { %3178 = vmatprep.mubr.bf16.mxu0 %v15107_v43 }
 0x284   :  { %v16748_v16 = vpop.f32.mrb[184].mxu0 }
 0x285   :  { %21674 = vst [vmem:[#allocation72_spill] sm:$0xff] %v16748_v16  ;;  %v2966_v47 = vpop.f32.mrb[185].mxu0 }
 0x286   :  { %v16753_v62 = vpop.f32.mrb[186].mxu0  ;;  %v15113_v47 = vld [vmem:[%s21581_s0 + $0x4b4] ss:$8 sps:$4 sm:$0xff]  }
 0x287   :  { %21675 = vst [vmem:[#allocation73_spill] sm:$0xff] %v16753_v62  ;;  %v2969_v26 = vpop.f32.mrb[187].mxu0 }
 0x289   :  { %3179 = vmatmul.mubr.bf16.gmra.mrb[36].mxu0 %v15105_v56  ;;  %v15111_v56 = vld [vmem:[%s21581_s0 + $0x4b0] ss:$8 sps:$4 sm:$0xff]  }
 0x28a   :  { %3186 = vmatprep.mubr.bf16.mxu0 %v15110_v0 }
 0x28c   :  { %v16758_v4 = vpop.f32.mrb[188].mxu0 }
 0x28d   :  { %21676 = vst [vmem:[#allocation74_spill] sm:$0xff] %v16758_v4  ;;  %v2974_v53 = vpop.f32.mrb[189].mxu0 }
 0x28e   :  { %v16763_v43 = vpop.f32.mrb[190].mxu0  ;;  %v15116_v53 = vld [vmem:[%s21581_s0 + $0x4c4] ss:$8 sps:$4 sm:$0xff]  }
 0x28f   :  { %21677 = vst [vmem:[#allocation75_spill] sm:$0xff] %v16763_v43  ;;  %v2977_v16 = vpop.f32.mrb[191].mxu0 }
 0x291   :  { %3187 = vmatmul.mubr.bf16.gmra.mrb[40].mxu0 %v15108_v34  ;;  %v15114_v34 = vld [vmem:[%s21581_s0 + $0x4c0] ss:$8 sps:$4 sm:$0xff]  }
 0x292   :  { %3194 = vmatprep.mubr.bf16.mxu0 %v15113_v47 }
 0x294   :  { %v16768_v62 = vpop.f32.mrb[192].mxu0 }
 0x295   :  { %21678 = vst [vmem:[#allocation76_spill] sm:$0xff] %v16768_v62  ;;  %v2982_v26 = vpop.f32.mrb[193].mxu0 }
 0x296   :  { %v16773_v0 = vpop.f32.mrb[194].mxu0  ;;  %v15119_v26 = vld [vmem:[%s21581_s0 + $0x4d4] ss:$8 sps:$4 sm:$0xff]  }
 0x297   :  { %21679 = vst [vmem:[#allocation77_spill] sm:$0xff] %v16773_v0  ;;  %v2985_v43 = vpop.f32.mrb[195].mxu0 }
 0x299   :  { %3195 = vmatmul.mubr.bf16.gmra.mrb[44].mxu0 %v15111_v56  ;;  %v15117_v56 = vld [vmem:[%s21581_s0 + $0x4d0] ss:$8 sps:$4 sm:$0xff]  }
 0x29a   :  { %3202 = vmatprep.mubr.bf16.mxu0 %v15116_v53 }
 0x29c   :  { %v16778_v4 = vpop.f32.mrb[196].mxu0 }
 0x29d   :  { %21680 = vst [vmem:[#allocation78_spill] sm:$0xff] %v16778_v4  ;;  %v2990_v16 = vpop.f32.mrb[197].mxu0 }
 0x29e   :  { %v16783_v47 = vpop.f32.mrb[198].mxu0  ;;  %v15122_v16 = vld [vmem:[%s21581_s0 + $0x4e4] ss:$8 sps:$4 sm:$0xff]  }
 0x29f   :  { %21681 = vst [vmem:[#allocation79_spill] sm:$0xff] %v16783_v47  ;;  %v2993_v0 = vpop.f32.mrb[199].mxu0 }
 0x2a0   :  { %v16799_v0 = vld [vmem:[%s21582_s2] ss:$0 sm:$0xff] }
 0x2a1   :  { %3203 = vmatmul.mubr.bf16.gmra.mrb[48].mxu0 %v15114_v34 }
 0x2a2   :  { %3210 = vmatprep.mubr.bf16.mxu0 %v15119_v26 }
 0x2a4   :  { %v16788_v62 = vpop.f32.mrb[200].mxu0 }
 0x2a5   :  { %v2998_v43 = vpop.f32.mrb[201].mxu0 }
 0x2a6   :  { %v2999_v53 = vpop.f32.mrb[202].mxu0 }
 0x2a7   :  { %v3001_v47 = vpop.f32.mrb[203].mxu0  ;;  %v3000_v34 = vadd.f32 %v16799_v0, %v2999_v53 }
 0x2a8   :  { %v15125_v47 = vld [vmem:[%s21581_s0 + $0x4f4] ss:$8 sps:$4 sm:$0xff]  }
 0x2a9   :  { %3211 = vmatmul.mubr.bf16.gmra.mrb[52].mxu0 %v15117_v56  ;;  %v4296_v7 = vmax.f32 %v3000_v34, 0.0 }
 0x2aa   :  { %3218 = vmatprep.mubr.bf16.mxu0 %v15122_v16 }
 0x2ac   :  { %v3004_v26 = vpop.f32.mrb[204].mxu0 }
 0x2ad   :  { %v3005_v43 = vadd.f32 %v16799_v0, %v3004_v26  ;;  %v3006_v4 = vpop.f32.mrb[205].mxu0 }
 0x2ae   :  { %v3007_v22 = vpop.f32.mrb[206].mxu0 }
 0x2af   :  { %v3009_v56 = vpop.f32.mrb[207].mxu0  ;;  %v4297_v61 = vmax.f32 %v3005_v43, 0.0  ;;  %v3008_v53 = vadd.f32 %v16799_v0, %v3007_v22 }
 0x2b1   :  { %3219 = vmatmul.mubr.bf16.gmra.mrb[56].mxu0 %v15120_v35  ;;  %v13890_v16 = vpack.i.bf16 %v4297_v61, %v4296_v7  ;;  %v15128_v35 = vld [vmem:[%s21581_s0 + $0x504] ss:$8 sps:$4 sm:$0xff]   ;;  %v4298_v7 = vmax.f32 %v3008_v53, 0.0  ;;  %v15131_v53 = vld [vmem:[%s21581_s0 + $0x514] ss:$8 sps:$4 sm:$0xff]  }
 0x2b2   :  { %3226 = vmatprep.mubr.bf16.mxu0 %v15125_v47 }
 0x2b3   :  { %13891 = vrot.lane.b32.xlu0 %v13890_v16, %s15998_s17  ;;  %v15126_v16 = vld [vmem:[%s21581_s0 + $0x500] ss:$8 sps:$4 sm:$0xff]  }
 0x2b4   :  { %v3012_v4 = vpop.f32.mrb[208].mxu0 }
 0x2b5   :  { %v3013_v26 = vadd.f32 %v16799_v0, %v3012_v4  ;;  %v3014_v49 = vpop.f32.mrb[209].mxu0 }
 0x2b6   :  { %v3015_v13 = vpop.f32.mrb[210].mxu0 }
 0x2b7   :  { %v3017_v61 = vpop.f32.mrb[211].mxu0  ;;  %v4299_v34 = vmax.f32 %v3013_v26, 0.0  ;;  %v3016_v43 = vadd.f32 %v16799_v0, %v3015_v13 }
 0x2b9   :  { %3227 = vmatmul.mubr.bf16.gmra.mrb[60].mxu0 %v15123_v40  ;;  %v13895_v22 = vpack.i.bf16 %v4299_v34, %v4298_v7  ;;  %v4300_v40 = vmax.f32 %v3016_v43, 0.0  ;;  %v15134_v43 = vld [vmem:[%s21581_s0 + $0x524] ss:$8 sps:$4 sm:$0xff]  }
 0x2ba   :  { %3234 = vmatprep.mubr.bf16.mxu0 %v15128_v35 }
 0x2bb   :  { %13896 = vrot.lane.b32.xlu1 %v13895_v22, %s15998_s17 }
 0x2bc   :  { %v3020_v49 = vpop.f32.mrb[212].mxu0 }
 0x2bd   :  { %v3021_v47 = vadd.f32 %v16799_v0, %v3020_v49  ;;  %v3022_v56 = vpop.f32.mrb[213].mxu0  ;;  %v15129_v49 = vld [vmem:[%s21581_s0 + $0x510] ss:$8 sps:$4 sm:$0xff]  }
 0x2be   :  { %v3023_v4 = vpop.f32.mrb[214].mxu0 }
 0x2bf   :  { %v4301_v26 = vmax.f32 %v3021_v47, 0.0  ;;  %v3025_v35 = vpop.f32.mrb[215].mxu0  ;;  %v3024_v61 = vadd.f32 %v16799_v0, %v3023_v4 }
 0x2c1   :  { %3235 = vmatmul.mubr.bf16.gmra.mrb[64].mxu0 %v15126_v16  ;;  %v13900_v13 = vpack.i.bf16 %v4301_v26, %v4300_v40  ;;  %v4302_v47 = vmax.f32 %v3024_v61, 0.0  ;;  %v15137_v61 = vld [vmem:[%s21581_s0 + $0x534] ss:$8 sps:$4 sm:$0xff]  }
 0x2c2   :  { %3242 = vmatprep.mubr.bf16.mxu0 %v15131_v53 }
 0x2c3   :  { %13901 = vrot.lane.b32.xlu1 %v13900_v13, %s15998_s17 }
 0x2c4   :  { %v3028_v7 = vpop.f32.mrb[216].mxu0 }
 0x2c5   :  { %v3029_v34 = vadd.f32 %v16799_v0, %v3028_v7  ;;  %v3030_v22 = vpop.f32.mrb[217].mxu0  ;;  %v15132_v7 = vld [vmem:[%s21581_s0 + $0x520] ss:$8 sps:$4 sm:$0xff]  }
 0x2c6   :  { %v3031_v56 = vpop.f32.mrb[218].mxu0 }
 0x2c7   :  { %v4303_v16 = vmax.f32 %v3029_v34, 0.0  ;;  %v3033_v53 = vpop.f32.mrb[219].mxu0  ;;  %v3032_v40 = vadd.f32 %v16799_v0, %v3031_v56 }
 0x2c9   :  { %3243 = vmatmul.mubr.bf16.gmra.mrb[68].mxu0 %v15129_v49  ;;  %v13905_v4 = vpack.i.bf16 %v4303_v16, %v4302_v47  ;;  %v4304_v34 = vmax.f32 %v3032_v40, 0.0  ;;  %v15140_v40 = vld [vmem:[%s21581_s0 + $0x544] ss:$8 sps:$4 sm:$0xff]  }
 0x2ca   :  { %3250 = vmatprep.mubr.bf16.mxu0 %v15134_v43 }
 0x2cb   :  { %13906 = vrot.lane.b32.xlu1 %v13905_v4, %s15998_s17 }
 0x2cc   :  { %v3036_v26 = vpop.f32.mrb[220].mxu0 }
 0x2cd   :  { %v3037_v35 = vadd.f32 %v16799_v0, %v3036_v26  ;;  %v3038_v13 = vpop.f32.mrb[221].mxu0  ;;  %v15135_v26 = vld [vmem:[%s21581_s0 + $0x530] ss:$8 sps:$4 sm:$0xff]  }
 0x2ce   :  { %v3039_v22 = vpop.f32.mrb[222].mxu0 }
 0x2cf   :  { %v4305_v49 = vmax.f32 %v3037_v35, 0.0  ;;  %v3041_v43 = vpop.f32.mrb[223].mxu0  ;;  %v3040_v47 = vadd.f32 %v16799_v0, %v3039_v22 }
 0x2d1   :  { %3251 = vmatmul.mubr.bf16.gmra.mrb[72].mxu0 %v15132_v7  ;;  %v16845_v56 = vpack.i.bf16 %v4305_v49, %v4304_v34  ;;  %v4306_v35 = vmax.f32 %v3040_v47, 0.0  ;;  %v15143_v47 = vld [vmem:[%s21581_s0 + $0x554] ss:$8 sps:$4 sm:$0xff]  }
 0x2d2   :  { %3258 = vmatprep.mubr.bf16.mxu0 %v15137_v61 }
 0x2d4   :  { %v3044_v16 = vpop.f32.mrb[224].mxu0 }
 0x2d5   :  { %v3045_v53 = vadd.f32 %v16799_v0, %v3044_v16  ;;  %v3046_v4 = vpop.f32.mrb[225].mxu0 }
 0x2d6   :  { %v3047_v13 = vpop.f32.mrb[226].mxu0  ;;  %v15138_v4 = vld [vmem:[%s21581_s0 + $0x540] ss:$8 sps:$4 sm:$0xff]  }
 0x2d7   :  { %v4307_v7 = vmax.f32 %v3045_v53, 0.0  ;;  %v3049_v34 = vpop.f32.mrb[227].mxu0  ;;  %v3048_v22 = vadd.f32 %v16799_v0, %v3047_v13 }
 0x2d9   :  { %3259 = vmatmul.mubr.bf16.gmra.mrb[76].mxu0 %v15135_v26  ;;  %v13910_v61 = vpack.i.bf16 %v4307_v7, %v4306_v35  ;;  %v4308_v53 = vmax.f32 %v3048_v22, 0.0  ;;  %v15146_v22 = vld [vmem:[%s21581_s0 + $0x564] ss:$8 sps:$4 sm:$0xff]  }
 0x2da   :  { %3266 = vmatprep.mubr.bf16.mxu0 %v15140_v40 }
 0x2db   :  { %13911 = vrot.lane.b32.xlu0 %v13910_v61, %s15998_s17 }
 0x2dc   :  { %v3052_v49 = vpop.f32.mrb[228].mxu0 }
 0x2dd   :  { %v3053_v43 = vadd.f32 %v16799_v0, %v3052_v49  ;;  %v3054_v16 = vpop.f32.mrb[229].mxu0  ;;  %v15141_v49 = vld [vmem:[%s21581_s0 + $0x550] ss:$8 sps:$4 sm:$0xff]  }
 0x2de   :  { %v3055_v29 = vpop.f32.mrb[230].mxu0 }
 0x2df   :  { %v4309_v26 = vmax.f32 %v3053_v43, 0.0  ;;  %v3057_v40 = vpop.f32.mrb[231].mxu0  ;;  %v3056_v35 = vadd.f32 %v16799_v0, %v3055_v29 }
 0x2e1   :  { %3267 = vmatmul.mubr.bf16.gmra.mrb[80].mxu0 %v15138_v4  ;;  %v13915_v13 = vpack.i.bf16 %v4309_v26, %v4308_v53  ;;  %v4310_v43 = vmax.f32 %v3056_v35, 0.0  ;;  %v15149_v35 = vld [vmem:[%s21581_s0 + $0x574] ss:$8 sps:$4 sm:$0xff]  }
 0x2e2   :  { %3274 = vmatprep.mubr.bf16.mxu0 %v15143_v47 }
 0x2e3   :  { %13916 = vrot.lane.b32.xlu0 %v13915_v13, %s15998_s17 }
 0x2e4   :  { %v3060_v7 = vpop.f32.mrb[232].mxu0 }
 0x2e5   :  { %v3061_v34 = vadd.f32 %v16799_v0, %v3060_v7  ;;  %v3062_v61 = vpop.f32.mrb[233].mxu0  ;;  %v15144_v7 = vld [vmem:[%s21581_s0 + $0x560] ss:$8 sps:$4 sm:$0xff]  }
 0x2e6   :  { %v3063_v16 = vpop.f32.mrb[234].mxu0 }
 0x2e7   :  { %v4311_v4 = vmax.f32 %v3061_v34, 0.0  ;;  %v3065_v47 = vpop.f32.mrb[235].mxu0  ;;  %v3064_v53 = vadd.f32 %v16799_v0, %v3063_v16 }
 0x2e9   :  { %3275 = vmatmul.mubr.bf16.gmra.mrb[84].mxu0 %v15141_v49  ;;  %v13920_v29 = vpack.i.bf16 %v4311_v4, %v4310_v43  ;;  %v4312_v34 = vmax.f32 %v3064_v53, 0.0  ;;  %v15152_v53 = vld [vmem:[%s21581_s0 + $0x584] ss:$8 sps:$4 sm:$0xff]  }
 0x2ea   :  { %3282 = vmatprep.mubr.bf16.mxu0 %v15146_v22 }
 0x2eb   :  { %13921 = vrot.lane.b32.xlu0 %v13920_v29, %s15998_s17 }
 0x2ec   :  { %v3068_v26 = vpop.f32.mrb[236].mxu0 }
 0x2ed   :  { %v3069_v40 = vadd.f32 %v16799_v0, %v3068_v26  ;;  %v3070_v13 = vpop.f32.mrb[237].mxu0  ;;  %v15147_v26 = vld [vmem:[%s21581_s0 + $0x570] ss:$8 sps:$4 sm:$0xff]  }
 0x2ee   :  { %v3071_v61 = vpop.f32.mrb[238].mxu0 }
 0x2ef   :  { %v4313_v49 = vmax.f32 %v3069_v40, 0.0  ;;  %v3073_v22 = vpop.f32.mrb[239].mxu0  ;;  %v3072_v43 = vadd.f32 %v16799_v0, %v3071_v61 }
 0x2f1   :  { %3283 = vmatmul.mubr.bf16.gmra.mrb[88].mxu0 %v15144_v7  ;;  %v13925_v16 = vpack.i.bf16 %v4313_v49, %v4312_v34  ;;  %v4314_v40 = vmax.f32 %v3072_v43, 0.0  ;;  %v15155_v43 = vld [vmem:[%s21581_s0 + $0x594] ss:$8 sps:$4 sm:$0xff]  }
 0x2f2   :  { %3290 = vmatprep.mubr.bf16.mxu0 %v15149_v35 }
 0x2f3   :  { %13926 = vrot.lane.b32.xlu0 %v13925_v16, %s15998_s17 }
 0x2f4   :  { %v3076_v4 = vpop.f32.mrb[240].mxu0 }
 0x2f5   :  { %v3077_v47 = vadd.f32 %v16799_v0, %v3076_v4  ;;  %v3078_v29 = vpop.f32.mrb[241].mxu0  ;;  %v15150_v4 = vld [vmem:[%s21581_s0 + $0x580] ss:$8 sps:$4 sm:$0xff]  }
 0x2f6   :  { %v3079_v13 = vpop.f32.mrb[242].mxu0 }
 0x2f7   :  { %v4315_v7 = vmax.f32 %v3077_v47, 0.0  ;;  %v3081_v35 = vpop.f32.mrb[243].mxu0  ;;  %v3080_v34 = vadd.f32 %v16799_v0, %v3079_v13 }
 0x2f9   :  { %3291 = vmatmul.mubr.bf16.gmra.mrb[92].mxu0 %v15147_v26  ;;  %v13930_v61 = vpack.i.bf16 %v4315_v7, %v4314_v40  ;;  %v4316_v47 = vmax.f32 %v3080_v34, 0.0  ;;  %v15158_v34 = vld [vmem:[%s21581_s0 + $0x5a4] ss:$8 sps:$4 sm:$0xff]  }
 0x2fa   :  { %3298 = vmatprep.mubr.bf16.mxu0 %v15152_v53 }
 0x2fb   :  { %13931 = vrot.lane.b32.xlu0 %v13930_v61, %s15998_s17 }
 0x2fc   :  { %v3084_v49 = vpop.f32.mrb[244].mxu0 }
 0x2fd   :  { %v3085_v22 = vadd.f32 %v16799_v0, %v3084_v49  ;;  %v3086_v16 = vpop.f32.mrb[245].mxu0  ;;  %v15153_v49 = vld [vmem:[%s21581_s0 + $0x590] ss:$8 sps:$4 sm:$0xff]  }
 0x2fe   :  { %v3087_v29 = vpop.f32.mrb[246].mxu0 }
 0x2ff   :  { %v4317_v26 = vmax.f32 %v3085_v22, 0.0  ;;  %v3089_v53 = vpop.f32.mrb[247].mxu0  ;;  %v3088_v40 = vadd.f32 %v16799_v0, %v3087_v29 }
 0x300   :  { %v2997_v53 = vadd.f32 %v16799_v0, %v16788_v62 }
 0x301   :  { %3299 = vmatmul.mubr.bf16.gmra.mrb[96].mxu0 %v15150_v4  ;;  %v16900_v13 = vpack.i.bf16 %v4317_v26, %v4316_v47  ;;  %v4318_v22 = vmax.f32 %v3088_v40, 0.0 }
 0x302   :  { %3306 = vmatprep.mubr.bf16.mxu0 %v15155_v43 }
 0x304   :  { %v3092_v7 = vpop.f32.mrb[248].mxu0 }
 0x305   :  { %v3093_v35 = vadd.f32 %v16799_v0, %v3092_v7  ;;  %v3094_v61 = vpop.f32.mrb[249].mxu0 }
 0x306   :  { %v3095_v16 = vpop.f32.mrb[250].mxu0 }
 0x307   :  { %v4319_v4 = vmax.f32 %v3093_v35, 0.0  ;;  %v3097_v47 = vpop.f32.mrb[251].mxu0  ;;  %v3096_v29 = vadd.f32 %v16799_v0, %v3095_v16  ;;  %v15161_v35 = vld [vmem:[%s21581_s0 + $0x5b4] ss:$8 sps:$4 sm:$0xff]  }
 0x309   :  { %3307 = vmatmul.mubr.bf16.gmra.mrb[100].mxu0 %v15153_v49  ;;  %v16910_v43 = vpack.i.bf16 %v4319_v4, %v4318_v22  ;;  %v4320_v49 = vmax.f32 %v3096_v29, 0.0  ;;  %v4295_v4 = vmax.f32 %v2997_v53, 0.0  ;;  %v15159_v29 = vld [vmem:[%s21581_s0 + $0x5b0] ss:$8 sps:$4 sm:$0xff]   ;;  %v15164_v53 = vld [vmem:[%s21581_s0 + $0x5c4] ss:$8 sps:$4 sm:$0xff]  }
 0x30a   :  { %3314 = vmatprep.mubr.bf16.mxu0 %v15158_v34 }
 0x30c   :  { %v3100_v26 = vpop.f32.mrb[252].mxu0 }
 0x30d   :  { %v3101_v7 = vadd.f32 %v16799_v0, %v3100_v26  ;;  %v3102_v61 = vpop.f32.mrb[253].mxu0 }
 0x30e   :  { %v3103_v40 = vpop.f32.mrb[254].mxu0 }
 0x30f   :  { %v4321_v34 = vmax.f32 %v3101_v7, 0.0  ;;  %v3104_v16 = vadd.f32 %v16799_v0, %v3103_v40  ;;  %v3105_v22 = vpop.f32.mrb[255].mxu0 }
 0x311   :  { %v4322_v47 = vmax.f32 %v3104_v16, 0.0  ;;  %3315 = vmatmul.mubr.bf16.gmra.mrb[104].mxu0 %v15156_v20  ;;  %v16923_v62 = vpack.i.bf16 %v4321_v34, %v4320_v49 }
 0x312   :  { %3322 = vmatprep.mubr.bf16.mxu0 %v15161_v35 }
 0x313   :  { %v16925_v26 = vpack.i.bf16 %v4322_v47, %v4295_v4  ;;  %v15162_v4 = vld [vmem:[%s21581_s0 + $0x5c0] ss:$8 sps:$4 sm:$0xff]  }
 0x314   :  { %v3108_v61 = vpop.f32.mrb[0].mxu0 }
 0x315   :  { %v3109_v8 = vadd.f32 %v16799_v0, %v3108_v61  ;;  %v3110_v2 = vpop.f32.mrb[1].mxu0  ;;  %v15167_v61 = vld [vmem:[%s21581_s0 + $0x5d4] ss:$8 sps:$4 sm:$0xff]  }
 0x316   :  { %v3111_v7 = vpop.f32.mrb[2].mxu0 }
 0x317   :  { %v3112_v20 = vadd.f32 %v16799_v0, %v3111_v7  ;;  %v3113_v40 = vpop.f32.mrb[3].mxu0  ;;  %v4323_v49 = vmax.f32 %v3109_v8, 0.0 }
 0x319   :  { %v4324_v35 = vmax.f32 %v3112_v20, 0.0  ;;  %3323 = vmatmul.mubr.bf16.gmra.mrb[108].mxu0 %v15159_v29 }
 0x31a   :  { %3330 = vmatprep.mubr.bf16.mxu0 %v15164_v53 }
 0x31b   :  { %v16935_v34 = vpack.i.bf16 %v4324_v35, %v4323_v49 }
 0x31c   :  { %v3116_v16 = vpop.f32.mrb[4].mxu0 }
 0x31d   :  { %v3117_v2 = vadd.f32 %v16799_v0, %v3116_v16  ;;  %v3118_v22 = vpop.f32.mrb[5].mxu0  ;;  %v15165_v16 = vld [vmem:[%s21581_s0 + $0x5d0] ss:$8 sps:$4 sm:$0xff]  }
 0x31e   :  { %v3119_v47 = vpop.f32.mrb[6].mxu0 }
 0x31f   :  { %v3120_v8 = vadd.f32 %v16799_v0, %v3119_v47  ;;  %v3121_v7 = vpop.f32.mrb[7].mxu0  ;;  %v4325_v29 = vmax.f32 %v3117_v2, 0.0  ;;  %v15170_v47 = vld [vmem:[%s21581_s0 + $0x5e4] ss:$8 sps:$4 sm:$0xff]  }
 0x321   :  { %v4326_v53 = vmax.f32 %v3120_v8, 0.0  ;;  %3331 = vmatmul.mubr.bf16.gmra.mrb[112].mxu0 %v15162_v4 }
 0x322   :  { %3338 = vmatprep.mubr.bf16.mxu0 %v15167_v61 }
 0x323   :  { %v16945_v20 = vpack.i.bf16 %v4326_v53, %v4325_v29 }
 0x324   :  { %v3124_v40 = vpop.f32.mrb[8].mxu0 }
 0x325   :  { %v3125_v49 = vadd.f32 %v16799_v0, %v3124_v40  ;;  %v3126_v35 = vpop.f32.mrb[9].mxu0 }
 0x326   :  { %v3127_v22 = vpop.f32.mrb[10].mxu0  ;;  %v15168_v35 = vld [vmem:[%s21581_s0 + $0x5e0] ss:$8 sps:$4 sm:$0xff]  }
 0x327   :  { %v3128_v2 = vadd.f32 %v16799_v0, %v3127_v22  ;;  %v3129_v8 = vpop.f32.mrb[11].mxu0  ;;  %v4327_v4 = vmax.f32 %v3125_v49, 0.0  ;;  %v15173_v22 = vld [vmem:[%s21581_s0 + $0x5f4] ss:$8 sps:$4 sm:$0xff]  }
 0x329   :  { %v4328_v61 = vmax.f32 %v3128_v2, 0.0  ;;  %3339 = vmatmul.mubr.bf16.gmra.mrb[116].mxu0 %v15165_v16 }
 0x32a   :  { %3346 = vmatprep.mubr.bf16.mxu0 %v15170_v47 }
 0x32b   :  { %v16955_v7 = vpack.i.bf16 %v4328_v61, %v4327_v4 }
 0x32c   :  { %v3132_v29 = vpop.f32.mrb[12].mxu0 }
 0x32d   :  { %v3133_v53 = vadd.f32 %v16799_v0, %v3132_v29  ;;  %v3134_v40 = vpop.f32.mrb[13].mxu0 }
 0x32e   :  { %v3135_v58 = vpop.f32.mrb[14].mxu0  ;;  %v15171_v40 = vld [vmem:[%s21581_s0 + $0x5f0] ss:$8 sps:$4 sm:$0xff]  }
 0x32f   :  { %v3136_v49 = vadd.f32 %v16799_v0, %v3135_v58  ;;  %v3137_v2 = vpop.f32.mrb[15].mxu0  ;;  %v4329_v16 = vmax.f32 %v3133_v53, 0.0  ;;  %v15176_v58 = vld [vmem:[%s21581_s0 + $0x604] ss:$8 sps:$4 sm:$0xff]  }
 0x331   :  { %v4330_v47 = vmax.f32 %v3136_v49, 0.0  ;;  %3347 = vmatmul.mubr.bf16.gmra.mrb[120].mxu0 %v15168_v35 }
 0x332   :  { %3354 = vmatprep.mubr.bf16.mxu0 %v15173_v22 }
 0x333   :  { %v16965_v8 = vpack.i.bf16 %v4330_v47, %v4329_v16 }
 0x334   :  { %v3140_v4 = vpop.f32.mrb[16].mxu0 }
 0x335   :  { %v3141_v61 = vadd.f32 %v16799_v0, %v3140_v4  ;;  %v3142_v29 = vpop.f32.mrb[17].mxu0 }
 0x336   :  { %v3143_v52 = vpop.f32.mrb[18].mxu0  ;;  %v15174_v29 = vld [vmem:[%s21581_s0 + $0x600] ss:$8 sps:$4 sm:$0xff]  }
 0x337   :  { %v3144_v53 = vadd.f32 %v16799_v0, %v3143_v52  ;;  %v3145_v49 = vpop.f32.mrb[19].mxu0  ;;  %v4331_v35 = vmax.f32 %v3141_v61, 0.0  ;;  %v15179_v52 = vld [vmem:[%s21581_s0 + $0x614] ss:$8 sps:$4 sm:$0xff]  }
 0x339   :  { %v4332_v22 = vmax.f32 %v3144_v53, 0.0  ;;  %3355 = vmatmul.mubr.bf16.gmra.mrb[124].mxu0 %v15171_v40 }
 0x33a   :  { %3362 = vmatprep.mubr.bf16.mxu0 %v15176_v58 }
 0x33b   :  { %v16975_v2 = vpack.i.bf16 %v4332_v22, %v4331_v35 }
 0x33c   :  { %v3148_v16 = vpop.f32.mrb[20].mxu0 }
 0x33d   :  { %21682 = vst [vmem:[#allocation80_spill] sm:$0xff] %v16975_v2  ;;  %v3149_v47 = vadd.f32 %v16799_v0, %v3148_v16  ;;  %v3150_v4 = vpop.f32.mrb[21].mxu0 }
 0x33e   :  { %v3151_v44 = vpop.f32.mrb[22].mxu0  ;;  %v15177_v4 = vld [vmem:[%s21581_s0 + $0x610] ss:$8 sps:$4 sm:$0xff]  }
 0x33f   :  { %v3152_v61 = vadd.f32 %v16799_v0, %v3151_v44  ;;  %v3153_v53 = vpop.f32.mrb[23].mxu0  ;;  %v4333_v40 = vmax.f32 %v3149_v47, 0.0  ;;  %v15182_v44 = vld [vmem:[%s21581_s0 + $0x624] ss:$8 sps:$4 sm:$0xff]  }
 0x341   :  { %v4334_v58 = vmax.f32 %v3152_v61, 0.0  ;;  %3363 = vmatmul.mubr.bf16.gmra.mrb[128].mxu0 %v15174_v29 }
 0x342   :  { %3370 = vmatprep.mubr.bf16.mxu0 %v15179_v52 }
 0x343   :  { %v16985_v49 = vpack.i.bf16 %v4334_v58, %v4333_v40 }
 0x344   :  { %v3156_v35 = vpop.f32.mrb[24].mxu0 }
 0x345   :  { %21683 = vst [vmem:[#allocation81_spill] sm:$0xff] %v16985_v49  ;;  %v3157_v22 = vadd.f32 %v16799_v0, %v3156_v35  ;;  %v3158_v16 = vpop.f32.mrb[25].mxu0 }
 0x346   :  { %v3159_v38 = vpop.f32.mrb[26].mxu0  ;;  %v15180_v16 = vld [vmem:[%s21581_s0 + $0x620] ss:$8 sps:$4 sm:$0xff]  }
 0x347   :  { %v3160_v47 = vadd.f32 %v16799_v0, %v3159_v38  ;;  %v3161_v61 = vpop.f32.mrb[27].mxu0  ;;  %v4335_v29 = vmax.f32 %v3157_v22, 0.0  ;;  %v15185_v38 = vld [vmem:[%s21581_s0 + $0x634] ss:$8 sps:$4 sm:$0xff]  }
 0x349   :  { %v4336_v52 = vmax.f32 %v3160_v47, 0.0  ;;  %3371 = vmatmul.mubr.bf16.gmra.mrb[132].mxu0 %v15177_v4 }
 0x34a   :  { %3378 = vmatprep.mubr.bf16.mxu0 %v15182_v44 }
 0x34b   :  { %v16995_v53 = vpack.i.bf16 %v4336_v52, %v4335_v29 }
 0x34c   :  { %v3164_v40 = vpop.f32.mrb[28].mxu0 }
 0x34d   :  { %21684 = vst [vmem:[#allocation82_spill] sm:$0xff] %v16995_v53  ;;  %v3165_v58 = vadd.f32 %v16799_v0, %v3164_v40  ;;  %v3166_v35 = vpop.f32.mrb[29].mxu0  ;;  %v15324_v53 = vld [vmem:[%s21581_s0 + $0x920] ss:$8 sps:$4 sm:$0xff]  }
 0x34e   :  { %v3167_v31 = vpop.f32.mrb[30].mxu0  ;;  %v15183_v35 = vld [vmem:[%s21581_s0 + $0x630] ss:$8 sps:$4 sm:$0xff]  }
 0x34f   :  { %v3168_v22 = vadd.f32 %v16799_v0, %v3167_v31  ;;  %v3169_v47 = vpop.f32.mrb[31].mxu0  ;;  %v4337_v4 = vmax.f32 %v3165_v58, 0.0  ;;  %v15188_v31 = vld [vmem:[%s21581_s0 + $0x644] ss:$8 sps:$4 sm:$0xff]  }
 0x351   :  { %v4338_v44 = vmax.f32 %v3168_v22, 0.0  ;;  %3379 = vmatmul.mubr.bf16.gmra.mrb[136].mxu0 %v15180_v16 }
 0x352   :  { %3386 = vmatprep.mubr.bf16.mxu0 %v15185_v38 }
 0x353   :  { %v17005_v61 = vpack.i.bf16 %v4338_v44, %v4337_v4 }
 0x354   :  { %v3172_v29 = vpop.f32.mrb[32].mxu0 }
 0x355   :  { %21685 = vst [vmem:[#allocation83_spill] sm:$0xff] %v17005_v61  ;;  %v3173_v52 = vadd.f32 %v16799_v0, %v3172_v29  ;;  %v3174_v40 = vpop.f32.mrb[33].mxu0 }
 0x356   :  { %v3175_v25 = vpop.f32.mrb[34].mxu0  ;;  %v15186_v40 = vld [vmem:[%s21581_s0 + $0x640] ss:$8 sps:$4 sm:$0xff]  }
 0x357   :  { %v3176_v58 = vadd.f32 %v16799_v0, %v3175_v25  ;;  %v3177_v22 = vpop.f32.mrb[35].mxu0  ;;  %v4339_v16 = vmax.f32 %v3173_v52, 0.0  ;;  %v15191_v25 = vld [vmem:[%s21581_s0 + $0x654] ss:$8 sps:$4 sm:$0xff]  }
 0x359   :  { %v4340_v38 = vmax.f32 %v3176_v58, 0.0  ;;  %3387 = vmatmul.mubr.bf16.gmra.mrb[140].mxu0 %v15183_v35 }
 0x35a   :  { %3394 = vmatprep.mubr.bf16.mxu0 %v15188_v31 }
 0x35b   :  { %v17015_v47 = vpack.i.bf16 %v4340_v38, %v4339_v16 }
 0x35c   :  { %v3180_v4 = vpop.f32.mrb[36].mxu0 }
 0x35d   :  { %21686 = vst [vmem:[#allocation84_spill] sm:$0xff] %v17015_v47  ;;  %v3181_v44 = vadd.f32 %v16799_v0, %v3180_v4  ;;  %v3182_v29 = vpop.f32.mrb[37].mxu0 }
 0x35e   :  { %v3183_v17 = vpop.f32.mrb[38].mxu0  ;;  %v15189_v29 = vld [vmem:[%s21581_s0 + $0x650] ss:$8 sps:$4 sm:$0xff]  }
 0x35f   :  { %v3184_v52 = vadd.f32 %v16799_v0, %v3183_v17  ;;  %v3185_v58 = vpop.f32.mrb[39].mxu0  ;;  %v4341_v35 = vmax.f32 %v3181_v44, 0.0  ;;  %v15194_v17 = vld [vmem:[%s21581_s0 + $0x664] ss:$8 sps:$4 sm:$0xff]  }
 0x361   :  { %v4342_v31 = vmax.f32 %v3184_v52, 0.0  ;;  %3395 = vmatmul.mubr.bf16.gmra.mrb[144].mxu0 %v15186_v40 }
 0x362   :  { %3402 = vmatprep.mubr.bf16.mxu0 %v15191_v25 }
 0x363   :  { %v17025_v22 = vpack.i.bf16 %v4342_v31, %v4341_v35 }
 0x364   :  { %v3188_v16 = vpop.f32.mrb[40].mxu0 }
 0x365   :  { %21687 = vst [vmem:[#allocation85_spill] sm:$0xff] %v17025_v22  ;;  %v3189_v38 = vadd.f32 %v16799_v0, %v3188_v16  ;;  %v3190_v4 = vpop.f32.mrb[41].mxu0 }
 0x366   :  { %v3191_v11 = vpop.f32.mrb[42].mxu0  ;;  %v15192_v4 = vld [vmem:[%s21581_s0 + $0x660] ss:$8 sps:$4 sm:$0xff]  }
 0x367   :  { %v3192_v44 = vadd.f32 %v16799_v0, %v3191_v11  ;;  %v3193_v52 = vpop.f32.mrb[43].mxu0  ;;  %v4343_v40 = vmax.f32 %v3189_v38, 0.0  ;;  %v15197_v11 = vld [vmem:[%s21581_s0 + $0x674] ss:$8 sps:$4 sm:$0xff]  }
 0x369   :  { %v4344_v25 = vmax.f32 %v3192_v44, 0.0  ;;  %3403 = vmatmul.mubr.bf16.gmra.mrb[148].mxu0 %v15189_v29 }
 0x36a   :  { %3410 = vmatprep.mubr.bf16.mxu0 %v15194_v17 }
 0x36b   :  { %v17035_v58 = vpack.i.bf16 %v4344_v25, %v4343_v40 }
 0x36c   :  { %v3196_v35 = vpop.f32.mrb[44].mxu0 }
 0x36d   :  { %21688 = vst [vmem:[#allocation86_spill] sm:$0xff] %v17035_v58  ;;  %v3197_v31 = vadd.f32 %v16799_v0, %v3196_v35  ;;  %v3198_v16 = vpop.f32.mrb[45].mxu0 }
 0x36e   :  { %v3199_v5 = vpop.f32.mrb[46].mxu0  ;;  %v15195_v16 = vld [vmem:[%s21581_s0 + $0x670] ss:$8 sps:$4 sm:$0xff]  }
 0x36f   :  { %v3200_v38 = vadd.f32 %v16799_v0, %v3199_v5  ;;  %v3201_v44 = vpop.f32.mrb[47].mxu0  ;;  %v4345_v29 = vmax.f32 %v3197_v31, 0.0  ;;  %v15200_v5 = vld [vmem:[%s21581_s0 + $0x684] ss:$8 sps:$4 sm:$0xff]  }
 0x371   :  { %v4346_v17 = vmax.f32 %v3200_v38, 0.0  ;;  %3411 = vmatmul.mubr.bf16.gmra.mrb[152].mxu0 %v15192_v4 }
 0x372   :  { %3418 = vmatprep.mubr.bf16.mxu0 %v15197_v11 }
 0x373   :  { %v17045_v52 = vpack.i.bf16 %v4346_v17, %v4345_v29 }
 0x374   :  { %v3204_v40 = vpop.f32.mrb[48].mxu0 }
 0x375   :  { %21689 = vst [vmem:[#allocation87_spill] sm:$0xff] %v17045_v52  ;;  %v3205_v25 = vadd.f32 %v16799_v0, %v3204_v40  ;;  %v3206_v35 = vpop.f32.mrb[49].mxu0  ;;  %v15306_v52 = vld [vmem:[%s21581_s0 + $0x8c0] ss:$8 sps:$4 sm:$0xff]  }
 0x376   :  { %v3207_v1 = vpop.f32.mrb[50].mxu0  ;;  %v15198_v35 = vld [vmem:[%s21581_s0 + $0x680] ss:$8 sps:$4 sm:$0xff]  }
 0x377   :  { %v3208_v31 = vadd.f32 %v16799_v0, %v3207_v1  ;;  %v3209_v38 = vpop.f32.mrb[51].mxu0  ;;  %v4347_v4 = vmax.f32 %v3205_v25, 0.0  ;;  %v15203_v1 = vld [vmem:[%s21581_s0 + $0x694] ss:$8 sps:$4 sm:$0xff]  }
 0x379   :  { %v4348_v11 = vmax.f32 %v3208_v31, 0.0  ;;  %3419 = vmatmul.mubr.bf16.gmra.mrb[156].mxu0 %v15195_v16 }
 0x37a   :  { %3426 = vmatprep.mubr.bf16.mxu0 %v15200_v5 }
 0x37b   :  { %v17055_v44 = vpack.i.bf16 %v4348_v11, %v4347_v4 }
 0x37c   :  { %v3212_v29 = vpop.f32.mrb[52].mxu0 }
 0x37d   :  { %21690 = vst [vmem:[#allocation88_spill] sm:$0xff] %v17055_v44  ;;  %v3213_v17 = vadd.f32 %v16799_v0, %v3212_v29  ;;  %v3214_v40 = vpop.f32.mrb[53].mxu0  ;;  %v15291_v44 = vld [vmem:[%s21581_s0 + $0x870] ss:$8 sps:$4 sm:$0xff]  }
 0x37e   :  { %v3215_v59 = vpop.f32.mrb[54].mxu0  ;;  %v15201_v40 = vld [vmem:[%s21581_s0 + $0x690] ss:$8 sps:$4 sm:$0xff]  }
 0x37f   :  { %v3216_v25 = vadd.f32 %v16799_v0, %v3215_v59  ;;  %v3217_v31 = vpop.f32.mrb[55].mxu0  ;;  %v4349_v16 = vmax.f32 %v3213_v17, 0.0  ;;  %v15206_v59 = vld [vmem:[%s21581_s0 + $0x6a4] ss:$8 sps:$4 sm:$0xff]  }
 0x381   :  { %v4350_v5 = vmax.f32 %v3216_v25, 0.0  ;;  %3427 = vmatmul.mubr.bf16.gmra.mrb[160].mxu0 %v15198_v35 }
 0x382   :  { %3434 = vmatprep.mubr.bf16.mxu0 %v15203_v1 }
 0x383   :  { %v17065_v38 = vpack.i.bf16 %v4350_v5, %v4349_v16 }
 0x384   :  { %v3220_v4 = vpop.f32.mrb[56].mxu0 }
 0x385   :  { %21691 = vst [vmem:[#allocation89_spill] sm:$0xff] %v17065_v38  ;;  %v3221_v11 = vadd.f32 %v16799_v0, %v3220_v4  ;;  %v3222_v29 = vpop.f32.mrb[57].mxu0 }
 0x386   :  { %v3223_v55 = vpop.f32.mrb[58].mxu0  ;;  %v15204_v29 = vld [vmem:[%s21581_s0 + $0x6a0] ss:$8 sps:$4 sm:$0xff]  }
 0x387   :  { %v3224_v17 = vadd.f32 %v16799_v0, %v3223_v55  ;;  %v3225_v25 = vpop.f32.mrb[59].mxu0  ;;  %v4351_v35 = vmax.f32 %v3221_v11, 0.0  ;;  %v15209_v55 = vld [vmem:[%s21581_s0 + $0x6b4] ss:$8 sps:$4 sm:$0xff]  }
 0x389   :  { %v4352_v1 = vmax.f32 %v3224_v17, 0.0  ;;  %3435 = vmatmul.mubr.bf16.gmra.mrb[164].mxu0 %v15201_v40 }
 0x38a   :  { %3442 = vmatprep.mubr.bf16.mxu0 %v15206_v59 }
 0x38b   :  { %v17075_v31 = vpack.i.bf16 %v4352_v1, %v4351_v35 }
 0x38c   :  { %v3228_v16 = vpop.f32.mrb[60].mxu0 }
 0x38d   :  { %21692 = vst [vmem:[#allocation90_spill] sm:$0xff] %v17075_v31  ;;  %v3229_v5 = vadd.f32 %v16799_v0, %v3228_v16  ;;  %v3230_v4 = vpop.f32.mrb[61].mxu0 }
 0x38e   :  { %v3231_v50 = vpop.f32.mrb[62].mxu0  ;;  %v15207_v4 = vld [vmem:[%s21581_s0 + $0x6b0] ss:$8 sps:$4 sm:$0xff]  }
 0x38f   :  { %v3232_v11 = vadd.f32 %v16799_v0, %v3231_v50  ;;  %v3233_v17 = vpop.f32.mrb[63].mxu0  ;;  %v4353_v40 = vmax.f32 %v3229_v5, 0.0  ;;  %v15212_v50 = vld [vmem:[%s21581_s0 + $0x6c4] ss:$8 sps:$4 sm:$0xff]  }
 0x391   :  { %v4354_v59 = vmax.f32 %v3232_v11, 0.0  ;;  %3443 = vmatmul.mubr.bf16.gmra.mrb[168].mxu0 %v15204_v29 }
 0x392   :  { %3450 = vmatprep.mubr.bf16.mxu0 %v15209_v55 }
 0x393   :  { %v17085_v25 = vpack.i.bf16 %v4354_v59, %v4353_v40 }
 0x394   :  { %v3236_v35 = vpop.f32.mrb[64].mxu0 }
 0x395   :  { %21693 = vst [vmem:[#allocation91_spill] sm:$0xff] %v17085_v25  ;;  %v3237_v1 = vadd.f32 %v16799_v0, %v3236_v35  ;;  %v3238_v16 = vpop.f32.mrb[65].mxu0 }
 0x396   :  { %v3239_v31 = vpop.f32.mrb[66].mxu0  ;;  %v15210_v16 = vld [vmem:[%s21581_s0 + $0x6c0] ss:$8 sps:$4 sm:$0xff]  }
 0x397   :  { %v3240_v5 = vadd.f32 %v16799_v0, %v3239_v31  ;;  %v3241_v11 = vpop.f32.mrb[67].mxu0  ;;  %v4355_v29 = vmax.f32 %v3237_v1, 0.0  ;;  %v15215_v31 = vld [vmem:[%s21581_s0 + $0x6d4] ss:$8 sps:$4 sm:$0xff]  }
 0x399   :  { %v4356_v55 = vmax.f32 %v3240_v5, 0.0  ;;  %3451 = vmatmul.mubr.bf16.gmra.mrb[172].mxu0 %v15207_v4 }
 0x39a   :  { %3458 = vmatprep.mubr.bf16.mxu0 %v15212_v50 }
 0x39b   :  { %v17095_v17 = vpack.i.bf16 %v4356_v55, %v4355_v29 }
 0x39c   :  { %v3244_v40 = vpop.f32.mrb[68].mxu0 }
 0x39d   :  { %21694 = vst [vmem:[#allocation92_spill] sm:$0xff] %v17095_v17  ;;  %v3245_v59 = vadd.f32 %v16799_v0, %v3244_v40  ;;  %v3246_v35 = vpop.f32.mrb[69].mxu0 }
 0x39e   :  { %v3247_v25 = vpop.f32.mrb[70].mxu0  ;;  %v15213_v35 = vld [vmem:[%s21581_s0 + $0x6d0] ss:$8 sps:$4 sm:$0xff]  }
 0x39f   :  { %v3248_v1 = vadd.f32 %v16799_v0, %v3247_v25  ;;  %v3249_v5 = vpop.f32.mrb[71].mxu0  ;;  %v4357_v4 = vmax.f32 %v3245_v59, 0.0  ;;  %v15218_v25 = vld [vmem:[%s21581_s0 + $0x6e4] ss:$8 sps:$4 sm:$0xff]  }
 0x3a1   :  { %v4358_v50 = vmax.f32 %v3248_v1, 0.0  ;;  %3459 = vmatmul.mubr.bf16.gmra.mrb[176].mxu0 %v15210_v16 }
 0x3a2   :  { %3466 = vmatprep.mubr.bf16.mxu0 %v15215_v31 }
 0x3a3   :  { %v17105_v11 = vpack.i.bf16 %v4358_v50, %v4357_v4 }
 0x3a4   :  { %v3252_v29 = vpop.f32.mrb[72].mxu0 }
 0x3a5   :  { %21695 = vst [vmem:[#allocation93_spill] sm:$0xff] %v17105_v11  ;;  %v3253_v55 = vadd.f32 %v16799_v0, %v3252_v29  ;;  %v3254_v40 = vpop.f32.mrb[73].mxu0 }
 0x3a6   :  { %v3255_v17 = vpop.f32.mrb[74].mxu0  ;;  %v15216_v40 = vld [vmem:[%s21581_s0 + $0x6e0] ss:$8 sps:$4 sm:$0xff]  }
 0x3a7   :  { %v3256_v59 = vadd.f32 %v16799_v0, %v3255_v17  ;;  %v3257_v1 = vpop.f32.mrb[75].mxu0  ;;  %v4359_v16 = vmax.f32 %v3253_v55, 0.0  ;;  %v15221_v17 = vld [vmem:[%s21581_s0 + $0x6f4] ss:$8 sps:$4 sm:$0xff]  }
 0x3a9   :  { %v4360_v31 = vmax.f32 %v3256_v59, 0.0  ;;  %3467 = vmatmul.mubr.bf16.gmra.mrb[180].mxu0 %v15213_v35 }
 0x3aa   :  { %3474 = vmatprep.mubr.bf16.mxu0 %v15218_v25 }
 0x3ab   :  { %v17115_v5 = vpack.i.bf16 %v4360_v31, %v4359_v16 }
 0x3ac   :  { %v3260_v4 = vpop.f32.mrb[76].mxu0 }
 0x3ad   :  { %21696 = vst [vmem:[#allocation94_spill] sm:$0xff] %v17115_v5  ;;  %v3261_v50 = vadd.f32 %v16799_v0, %v3260_v4  ;;  %v3262_v29 = vpop.f32.mrb[77].mxu0 }
 0x3ae   :  { %v3263_v11 = vpop.f32.mrb[78].mxu0  ;;  %v15219_v29 = vld [vmem:[%s21581_s0 + $0x6f0] ss:$8 sps:$4 sm:$0xff]  }
 0x3af   :  { %v3264_v55 = vadd.f32 %v16799_v0, %v3263_v11  ;;  %v3265_v59 = vpop.f32.mrb[79].mxu0  ;;  %v4361_v35 = vmax.f32 %v3261_v50, 0.0  ;;  %v15224_v11 = vld [vmem:[%s21581_s0 + $0x704] ss:$8 sps:$4 sm:$0xff]  }
 0x3b1   :  { %v4362_v25 = vmax.f32 %v3264_v55, 0.0  ;;  %3475 = vmatmul.mubr.bf16.gmra.mrb[184].mxu0 %v15216_v40 }
 0x3b2   :  { %3482 = vmatprep.mubr.bf16.mxu0 %v15221_v17 }
 0x3b3   :  { %v17125_v1 = vpack.i.bf16 %v4362_v25, %v4361_v35 }
 0x3b4   :  { %v3268_v16 = vpop.f32.mrb[80].mxu0 }
 0x3b5   :  { %21697 = vst [vmem:[#allocation95_spill] sm:$0xff] %v17125_v1  ;;  %v3269_v31 = vadd.f32 %v16799_v0, %v3268_v16  ;;  %v3270_v4 = vpop.f32.mrb[81].mxu0 }
 0x3b6   :  { %v3271_v5 = vpop.f32.mrb[82].mxu0  ;;  %v15222_v4 = vld [vmem:[%s21581_s0 + $0x700] ss:$8 sps:$4 sm:$0xff]  }
 0x3b7   :  { %v3272_v50 = vadd.f32 %v16799_v0, %v3271_v5  ;;  %v3273_v55 = vpop.f32.mrb[83].mxu0  ;;  %v4363_v40 = vmax.f32 %v3269_v31, 0.0  ;;  %v15227_v5 = vld [vmem:[%s21581_s0 + $0x714] ss:$8 sps:$4 sm:$0xff]  }
 0x3b9   :  { %v4364_v17 = vmax.f32 %v3272_v50, 0.0  ;;  %3483 = vmatmul.mubr.bf16.gmra.mrb[188].mxu0 %v15219_v29 }
 0x3ba   :  { %3490 = vmatprep.mubr.bf16.mxu0 %v15224_v11 }
 0x3bb   :  { %v17135_v59 = vpack.i.bf16 %v4364_v17, %v4363_v40 }
 0x3bc   :  { %v3276_v35 = vpop.f32.mrb[84].mxu0 }
 0x3bd   :  { %21698 = vst [vmem:[#allocation96_spill] sm:$0xff] %v17135_v59  ;;  %v3277_v25 = vadd.f32 %v16799_v0, %v3276_v35  ;;  %v3278_v16 = vpop.f32.mrb[85].mxu0 }
 0x3be   :  { %v3279_v1 = vpop.f32.mrb[86].mxu0  ;;  %v15225_v16 = vld [vmem:[%s21581_s0 + $0x710] ss:$8 sps:$4 sm:$0xff]  }
 0x3bf   :  { %v3280_v31 = vadd.f32 %v16799_v0, %v3279_v1  ;;  %v3281_v50 = vpop.f32.mrb[87].mxu0  ;;  %v4365_v29 = vmax.f32 %v3277_v25, 0.0  ;;  %v15230_v1 = vld [vmem:[%s21581_s0 + $0x724] ss:$8 sps:$4 sm:$0xff]  }
 0x3c1   :  { %v4366_v11 = vmax.f32 %v3280_v31, 0.0  ;;  %3491 = vmatmul.mubr.bf16.gmra.mrb[192].mxu0 %v15222_v4 }
 0x3c2   :  { %3498 = vmatprep.mubr.bf16.mxu0 %v15227_v5 }
 0x3c3   :  { %v17145_v55 = vpack.i.bf16 %v4366_v11, %v4365_v29 }
 0x3c4   :  { %v3284_v40 = vpop.f32.mrb[88].mxu0 }
 0x3c5   :  { %21699 = vst [vmem:[#allocation97_spill] sm:$0xff] %v17145_v55  ;;  %v3285_v17 = vadd.f32 %v16799_v0, %v3284_v40  ;;  %v3286_v35 = vpop.f32.mrb[89].mxu0 }
 0x3c6   :  { %v3287_v59 = vpop.f32.mrb[90].mxu0  ;;  %v15228_v35 = vld [vmem:[%s21581_s0 + $0x720] ss:$8 sps:$4 sm:$0xff]  }
 0x3c7   :  { %v3288_v25 = vadd.f32 %v16799_v0, %v3287_v59  ;;  %v3289_v31 = vpop.f32.mrb[91].mxu0  ;;  %v4367_v4 = vmax.f32 %v3285_v17, 0.0  ;;  %v15233_v59 = vld [vmem:[%s21581_s0 + $0x734] ss:$8 sps:$4 sm:$0xff]  }
 0x3c9   :  { %v4368_v5 = vmax.f32 %v3288_v25, 0.0  ;;  %3499 = vmatmul.mubr.bf16.gmra.mrb[196].mxu0 %v15225_v16 }
 0x3ca   :  { %3506 = vmatprep.mubr.bf16.mxu0 %v15230_v1 }
 0x3cb   :  { %v17155_v50 = vpack.i.bf16 %v4368_v5, %v4367_v4 }
 0x3cc   :  { %v3292_v29 = vpop.f32.mrb[92].mxu0 }
 0x3cd   :  { %21700 = vst [vmem:[#allocation98_spill] sm:$0xff] %v17155_v50  ;;  %v3293_v11 = vadd.f32 %v16799_v0, %v3292_v29  ;;  %v3294_v40 = vpop.f32.mrb[93].mxu0 }
 0x3ce   :  { %v3295_v55 = vpop.f32.mrb[94].mxu0  ;;  %v15231_v40 = vld [vmem:[%s21581_s0 + $0x730] ss:$8 sps:$4 sm:$0xff]  }
 0x3cf   :  { %v3296_v17 = vadd.f32 %v16799_v0, %v3295_v55  ;;  %v3297_v25 = vpop.f32.mrb[95].mxu0  ;;  %v4369_v16 = vmax.f32 %v3293_v11, 0.0  ;;  %v15236_v55 = vld [vmem:[%s21581_s0 + $0x744] ss:$8 sps:$4 sm:$0xff]  }
 0x3d1   :  { %v4370_v1 = vmax.f32 %v3296_v17, 0.0  ;;  %3507 = vmatmul.mubr.bf16.gmra.mrb[200].mxu0 %v15228_v35 }
 0x3d2   :  { %3514 = vmatprep.mubr.bf16.mxu0 %v15233_v59 }
 0x3d3   :  { %v17165_v31 = vpack.i.bf16 %v4370_v1, %v4369_v16  ;;  %v17180_v1 = vld [vmem:[%s21582_s2] ss:$0 sm:$0xff] }
 0x3d4   :  { %v3300_v4 = vpop.f32.mrb[96].mxu0 }
 0x3d5   :  { %21701 = vst [vmem:[#allocation99_spill] sm:$0xff] %v17165_v31  ;;  %v3301_v5 = vadd.f32 %v16799_v0, %v3300_v4  ;;  %v3302_v29 = vpop.f32.mrb[97].mxu0 }
 0x3d6   :  { %v3303_v50 = vpop.f32.mrb[98].mxu0 }
 0x3d7   :  { %v3304_v11 = vadd.f32 %v16799_v0, %v3303_v50  ;;  %v3305_v17 = vpop.f32.mrb[99].mxu0  ;;  %v4371_v35 = vmax.f32 %v3301_v5, 0.0  ;;  %v15234_v0 = vld [vmem:[%s21581_s0 + $0x740] ss:$8 sps:$4 sm:$0xff]   ;;  %v15239_v5 = vld [vmem:[%s21581_s0 + $0x754] ss:$8 sps:$4 sm:$0xff]  }
 0x3d9   :  { %v4372_v59 = vmax.f32 %v3304_v11, 0.0  ;;  %3515 = vmatmul.mubr.bf16.gmra.mrb[204].mxu0 %v15231_v40 }
 0x3da   :  { %3522 = vmatprep.mubr.bf16.mxu0 %v15236_v55 }
 0x3db   :  { %v17175_v25 = vpack.i.bf16 %v4372_v59, %v4371_v35 }
 0x3dc   :  { %v3308_v16 = vpop.f32.mrb[100].mxu0 }
 0x3dd   :  { %21702 = vst [vmem:[#allocation100_spill] sm:$0xff] %v17175_v25  ;;  %v3309_v4 = vadd.f32 %v17180_v1, %v3308_v16  ;;  %v3310_v29 = vpop.f32.mrb[101].mxu0  ;;  %v15237_v25 = vld [vmem:[%s21581_s0 + $0x750] ss:$8 sps:$4 sm:$0xff]  }
 0x3de   :  { %v3311_v50 = vpop.f32.mrb[102].mxu0 }
 0x3df   :  { %v3312_v40 = vadd.f32 %v17180_v1, %v3311_v50  ;;  %v3313_v55 = vpop.f32.mrb[103].mxu0  ;;  %v4373_v11 = vmax.f32 %v3309_v4, 0.0  ;;  %v15242_v50 = vld [vmem:[%s21581_s0 + $0x764] ss:$8 sps:$4 sm:$0xff]  }
 0x3e1   :  { %v4374_v17 = vmax.f32 %v3312_v40, 0.0  ;;  %3523 = vmatmul.mubr.bf16.gmra.mrb[208].mxu0 %v15234_v0 }
 0x3e2   :  { %3530 = vmatprep.mubr.bf16.mxu0 %v15239_v5 }
 0x3e3   :  { %v17190_v35 = vpack.i.bf16 %v4374_v17, %v4373_v11 }
 0x3e4   :  { %v3316_v59 = vpop.f32.mrb[104].mxu0 }
 0x3e5   :  { %21703 = vst [vmem:[#allocation101_spill] sm:$0xff] %v17190_v35  ;;  %v3317_v16 = vadd.f32 %v17180_v1, %v3316_v59  ;;  %v3318_v29 = vpop.f32.mrb[105].mxu0 }
 0x3e6   :  { %v3319_v31 = vpop.f32.mrb[106].mxu0  ;;  %v15240_v29 = vld [vmem:[%s21581_s0 + $0x760] ss:$8 sps:$4 sm:$0xff]  }
 0x3e7   :  { %v3320_v4 = vadd.f32 %v17180_v1, %v3319_v31  ;;  %v3321_v40 = vpop.f32.mrb[107].mxu0  ;;  %v4375_v0 = vmax.f32 %v3317_v16, 0.0  ;;  %v15245_v31 = vld [vmem:[%s21581_s0 + $0x774] ss:$8 sps:$4 sm:$0xff]  }
 0x3e9   :  { %v4376_v5 = vmax.f32 %v3320_v4, 0.0  ;;  %3531 = vmatmul.mubr.bf16.gmra.mrb[212].mxu0 %v15237_v25 }
 0x3ea   :  { %3538 = vmatprep.mubr.bf16.mxu0 %v15242_v50 }
 0x3eb   :  { %v17200_v55 = vpack.i.bf16 %v4376_v5, %v4375_v0 }
 0x3ec   :  { %v3324_v11 = vpop.f32.mrb[108].mxu0 }
 0x3ed   :  { %21704 = vst [vmem:[#allocation102_spill] sm:$0xff] %v17200_v55  ;;  %v3325_v17 = vadd.f32 %v17180_v1, %v3324_v11  ;;  %v3326_v59 = vpop.f32.mrb[109].mxu0 }
 0x3ee   :  { %v3327_v35 = vpop.f32.mrb[110].mxu0  ;;  %v15243_v59 = vld [vmem:[%s21581_s0 + $0x770] ss:$8 sps:$4 sm:$0xff]  }
 0x3ef   :  { %v3328_v16 = vadd.f32 %v17180_v1, %v3327_v35  ;;  %v3329_v4 = vpop.f32.mrb[111].mxu0  ;;  %v4377_v25 = vmax.f32 %v3325_v17, 0.0  ;;  %v15248_v35 = vld [vmem:[%s21581_s0 + $0x784] ss:$8 sps:$4 sm:$0xff]  }
 0x3f1   :  { %v4378_v50 = vmax.f32 %v3328_v16, 0.0  ;;  %3539 = vmatmul.mubr.bf16.gmra.mrb[216].mxu0 %v15240_v29 }
 0x3f2   :  { %3546 = vmatprep.mubr.bf16.mxu0 %v15245_v31 }
 0x3f3   :  { %v17210_v40 = vpack.i.bf16 %v4378_v50, %v4377_v25 }
 0x3f4   :  { %v3332_v0 = vpop.f32.mrb[112].mxu0 }
 0x3f5   :  { %21705 = vst [vmem:[#allocation103_spill] sm:$0xff] %v17210_v40  ;;  %v3333_v5 = vadd.f32 %v17180_v1, %v3332_v0  ;;  %v3334_v11 = vpop.f32.mrb[113].mxu0 }
 0x3f6   :  { %v3335_v55 = vpop.f32.mrb[114].mxu0  ;;  %v15246_v11 = vld [vmem:[%s21581_s0 + $0x780] ss:$8 sps:$4 sm:$0xff]  }
 0x3f7   :  { %v3336_v17 = vadd.f32 %v17180_v1, %v3335_v55  ;;  %v3337_v16 = vpop.f32.mrb[115].mxu0  ;;  %v4379_v29 = vmax.f32 %v3333_v5, 0.0  ;;  %v15251_v55 = vld [vmem:[%s21581_s0 + $0x794] ss:$8 sps:$4 sm:$0xff]  }
 0x3f9   :  { %v4380_v31 = vmax.f32 %v3336_v17, 0.0  ;;  %3547 = vmatmul.mubr.bf16.gmra.mrb[220].mxu0 %v15243_v59 }
 0x3fa   :  { %3554 = vmatprep.mubr.bf16.mxu0 %v15248_v35 }
 0x3fb   :  { %v17220_v4 = vpack.i.bf16 %v4380_v31, %v4379_v29 }
 0x3fc   :  { %v3340_v25 = vpop.f32.mrb[116].mxu0 }
 0x3fd   :  { %21706 = vst [vmem:[#allocation104_spill] sm:$0xff] %v17220_v4  ;;  %v3341_v50 = vadd.f32 %v17180_v1, %v3340_v25  ;;  %v3342_v0 = vpop.f32.mrb[117].mxu0 }
 0x3fe   :  { %v3343_v40 = vpop.f32.mrb[118].mxu0  ;;  %v15249_v0 = vld [vmem:[%s21581_s0 + $0x790] ss:$8 sps:$4 sm:$0xff]  }
 0x3ff   :  { %v3344_v5 = vadd.f32 %v17180_v1, %v3343_v40  ;;  %v3345_v17 = vpop.f32.mrb[119].mxu0  ;;  %v4381_v59 = vmax.f32 %v3341_v50, 0.0  ;;  %v15254_v40 = vld [vmem:[%s21581_s0 + $0x7a4] ss:$8 sps:$4 sm:$0xff]  }
 0x401   :  { %v4382_v35 = vmax.f32 %v3344_v5, 0.0  ;;  %3555 = vmatmul.mubr.bf16.gmra.mrb[224].mxu0 %v15246_v11 }
 0x402   :  { %3562 = vmatprep.mubr.bf16.mxu0 %v15251_v55 }
 0x403   :  { %v17230_v16 = vpack.i.bf16 %v4382_v35, %v4381_v59 }
 0x404   :  { %v3348_v29 = vpop.f32.mrb[120].mxu0 }
 0x405   :  { %21707 = vst [vmem:[#allocation105_spill] sm:$0xff] %v17230_v16  ;;  %v3349_v31 = vadd.f32 %v17180_v1, %v3348_v29  ;;  %v3350_v25 = vpop.f32.mrb[121].mxu0 }
 0x406   :  { %v3351_v4 = vpop.f32.mrb[122].mxu0  ;;  %v15252_v25 = vld [vmem:[%s21581_s0 + $0x7a0] ss:$8 sps:$4 sm:$0xff]  }
 0x407   :  { %v3352_v50 = vadd.f32 %v17180_v1, %v3351_v4  ;;  %v3353_v5 = vpop.f32.mrb[123].mxu0  ;;  %v4383_v11 = vmax.f32 %v3349_v31, 0.0  ;;  %v15257_v4 = vld [vmem:[%s21581_s0 + $0x7b4] ss:$8 sps:$4 sm:$0xff]  }
 0x409   :  { %v4384_v55 = vmax.f32 %v3352_v50, 0.0  ;;  %3563 = vmatmul.mubr.bf16.gmra.mrb[228].mxu0 %v15249_v0 }
 0x40a   :  { %3570 = vmatprep.mubr.bf16.mxu0 %v15254_v40 }
 0x40b   :  { %v17240_v17 = vpack.i.bf16 %v4384_v55, %v4383_v11 }
 0x40c   :  { %v3356_v59 = vpop.f32.mrb[124].mxu0 }
 0x40d   :  { %21708 = vst [vmem:[#allocation106_spill] sm:$0xff] %v17240_v17  ;;  %v3357_v35 = vadd.f32 %v17180_v1, %v3356_v59  ;;  %v3358_v29 = vpop.f32.mrb[125].mxu0 }
 0x40e   :  { %v3359_v16 = vpop.f32.mrb[126].mxu0  ;;  %v15255_v29 = vld [vmem:[%s21581_s0 + $0x7b0] ss:$8 sps:$4 sm:$0xff]  }
 0x40f   :  { %v3360_v31 = vadd.f32 %v17180_v1, %v3359_v16  ;;  %v3361_v50 = vpop.f32.mrb[127].mxu0  ;;  %v4385_v0 = vmax.f32 %v3357_v35, 0.0  ;;  %v15260_v16 = vld [vmem:[%s21581_s0 + $0x7c4] ss:$8 sps:$4 sm:$0xff]  }
 0x411   :  { %v4386_v40 = vmax.f32 %v3360_v31, 0.0  ;;  %3571 = vmatmul.mubr.bf16.gmra.mrb[232].mxu0 %v15252_v25 }
 0x412   :  { %3578 = vmatprep.mubr.bf16.mxu0 %v15257_v4 }
 0x413   :  { %v17250_v5 = vpack.i.bf16 %v4386_v40, %v4385_v0 }
 0x414   :  { %v3364_v11 = vpop.f32.mrb[128].mxu0 }
 0x415   :  { %21709 = vst [vmem:[#allocation107_spill] sm:$0xff] %v17250_v5  ;;  %v3365_v55 = vadd.f32 %v17180_v1, %v3364_v11  ;;  %v3366_v59 = vpop.f32.mrb[129].mxu0 }
 0x416   :  { %v3367_v17 = vpop.f32.mrb[130].mxu0  ;;  %v15258_v59 = vld [vmem:[%s21581_s0 + $0x7c0] ss:$8 sps:$4 sm:$0xff]  }
 0x417   :  { %v3368_v35 = vadd.f32 %v17180_v1, %v3367_v17  ;;  %v3369_v31 = vpop.f32.mrb[131].mxu0  ;;  %v4387_v25 = vmax.f32 %v3365_v55, 0.0  ;;  %v15263_v17 = vld [vmem:[%s21581_s0 + $0x7d4] ss:$8 sps:$4 sm:$0xff]  }
 0x419   :  { %v4388_v4 = vmax.f32 %v3368_v35, 0.0  ;;  %3579 = vmatmul.mubr.bf16.gmra.mrb[236].mxu0 %v15255_v29 }
 0x41a   :  { %3586 = vmatprep.mubr.bf16.mxu0 %v15260_v16 }
 0x41b   :  { %v17260_v50 = vpack.i.bf16 %v4388_v4, %v4387_v25 }
 0x41c   :  { %v3372_v0 = vpop.f32.mrb[132].mxu0 }
 0x41d   :  { %21710 = vst [vmem:[#allocation108_spill] sm:$0xff] %v17260_v50  ;;  %v3373_v40 = vadd.f32 %v17180_v1, %v3372_v0  ;;  %v3374_v11 = vpop.f32.mrb[133].mxu0 }
 0x41e   :  { %v3375_v5 = vpop.f32.mrb[134].mxu0  ;;  %v15261_v11 = vld [vmem:[%s21581_s0 + $0x7d0] ss:$8 sps:$4 sm:$0xff]  }
 0x41f   :  { %v3376_v55 = vadd.f32 %v17180_v1, %v3375_v5  ;;  %v3377_v35 = vpop.f32.mrb[135].mxu0  ;;  %v4389_v29 = vmax.f32 %v3373_v40, 0.0  ;;  %v15266_v5 = vld [vmem:[%s21581_s0 + $0x7e4] ss:$8 sps:$4 sm:$0xff]  }
 0x421   :  { %v4390_v16 = vmax.f32 %v3376_v55, 0.0  ;;  %3587 = vmatmul.mubr.bf16.gmra.mrb[240].mxu0 %v15258_v59 }
 0x422   :  { %3594 = vmatprep.mubr.bf16.mxu0 %v15263_v17 }
 0x423   :  { %v17270_v31 = vpack.i.bf16 %v4390_v16, %v4389_v29 }
 0x424   :  { %v3380_v25 = vpop.f32.mrb[136].mxu0 }
 0x425   :  { %21711 = vst [vmem:[#allocation109_spill] sm:$0xff] %v17270_v31  ;;  %v3381_v4 = vadd.f32 %v17180_v1, %v3380_v25  ;;  %v3382_v0 = vpop.f32.mrb[137].mxu0  ;;  %v15264_v25 = vld [vmem:[%s21581_s0 + $0x7e0] ss:$8 sps:$4 sm:$0xff]  }
 0x426   :  { %v3383_v50 = vpop.f32.mrb[138].mxu0 }
 0x427   :  { %v3384_v40 = vadd.f32 %v17180_v1, %v3383_v50  ;;  %v3385_v55 = vpop.f32.mrb[139].mxu0  ;;  %v4391_v59 = vmax.f32 %v3381_v4, 0.0  ;;  %v15269_v50 = vld [vmem:[%s21581_s0 + $0x7f4] ss:$8 sps:$4 sm:$0xff]  }
 0x429   :  { %v4392_v17 = vmax.f32 %v3384_v40, 0.0  ;;  %3595 = vmatmul.mubr.bf16.gmra.mrb[244].mxu0 %v15261_v11 }
 0x42a   :  { %3602 = vmatprep.mubr.bf16.mxu0 %v15266_v5  ;;  %v15267_v5 = vld [vmem:[%s21581_s0 + $0x7f0] ss:$8 sps:$4 sm:$0xff]  }
 0x42b   :  { %v17280_v35 = vpack.i.bf16 %v4392_v17, %v4391_v59  ;;  %v15272_v59 = vld [vmem:[%s21581_s0 + $0x804] ss:$8 sps:$4 sm:$0xff]  }
 0x42c   :  { %v17282_v29 = vpop.f32.mrb[140].mxu0 }
 0x42d   :  { %21712 = vst [vmem:[#allocation110_spill] sm:$0xff] %v17280_v35  ;;  %21713 = vst [vmem:[#allocation111_spill] sm:$0xff] %v17282_v29  ;;  %v3390_v16 = vpop.f32.mrb[141].mxu0  ;;  %v15275_v29 = vld [vmem:[%s21581_s0 + $0x814] ss:$8 sps:$4 sm:$0xff]  }
 0x42e   :  { %v17287_v0 = vpop.f32.mrb[142].mxu0 }
 0x42f   :  { %21714 = vst [vmem:[#allocation112_spill] sm:$0xff] %v17287_v0  ;;  %v3393_v55 = vpop.f32.mrb[143].mxu0 }
 0x431   :  { %3603 = vmatmul.mubr.bf16.gmra.mrb[248].mxu0 %v15264_v25 }
 0x432   :  { %3610 = vmatprep.mubr.bf16.mxu0 %v15269_v50 }
 0x434   :  { %v17292_v4 = vpop.f32.mrb[144].mxu0 }
 0x435   :  { %v3398_v11 = vpop.f32.mrb[145].mxu0 }
 0x436   :  { %v3399_v40 = vpop.f32.mrb[146].mxu0  ;;  %v15270_v11 = vld [vmem:[%s21581_s0 + $0x800] ss:$8 sps:$4 sm:$0xff]  }
 0x437   :  { %v3401_v17 = vpop.f32.mrb[147].mxu0  ;;  %v3400_v16 = vadd.f32 %v17180_v1, %v3399_v40 }
 0x439   :  { %3611 = vmatmul.mubr.bf16.gmra.mrb[252].mxu0 %v15267_v5  ;;  %v4396_v35 = vmax.f32 %v3400_v16, 0.0 }
 0x43a   :  { %3618 = vmatprep.mubr.bf16.mxu0 %v15272_v59 }
 0x43c   :  { %v3404_v55 = vpop.f32.mrb[148].mxu0 }
 0x43d   :  { %v3405_v25 = vadd.f32 %v17180_v1, %v3404_v55  ;;  %v3406_v50 = vpop.f32.mrb[149].mxu0 }
 0x43e   :  { %v3407_v0 = vpop.f32.mrb[150].mxu0 }
 0x43f   :  { %v4397_v31 = vmax.f32 %v3405_v25, 0.0  ;;  %v3409_v17 = vpop.f32.mrb[151].mxu0  ;;  %v3408_v40 = vadd.f32 %v17180_v1, %v3407_v0 }
 0x441   :  { %v13935_v5 = vpack.i.bf16 %v4397_v31, %v4396_v35  ;;  %3619 = vmatmul.mubr.bf16.gmra.mrb[0].mxu0 %v15270_v11  ;;  %v15278_v31 = vld [vmem:[%s21581_s0 + $0x824] ss:$8 sps:$4 sm:$0xff]   ;;  %v4398_v35 = vmax.f32 %v3408_v40, 0.0  ;;  %v15281_v40 = vld [vmem:[%s21581_s0 + $0x834] ss:$8 sps:$4 sm:$0xff]  }
 0x442   :  { %3626 = vmatprep.mubr.bf16.mxu0 %v15275_v29 }
 0x443   :  { %13936 = vrot.lane.b32.xlu1 %v13935_v5, %s15999_s13 }
 0x444   :  { %v3412_v59 = vpop.f32.mrb[152].mxu0 }
 0x445   :  { %v3413_v55 = vadd.f32 %v17180_v1, %v3412_v59  ;;  %v3414_v50 = vpop.f32.mrb[153].mxu0  ;;  %v15276_v59 = vld [vmem:[%s21581_s0 + $0x820] ss:$8 sps:$4 sm:$0xff]  }
 0x446   :  { %v3415_v38 = vpop.f32.mrb[154].mxu0 }
 0x447   :  { %v4399_v29 = vmax.f32 %v3413_v55, 0.0  ;;  %v3417_v16 = vpop.f32.mrb[155].mxu0  ;;  %v3416_v25 = vadd.f32 %v17180_v1, %v3415_v38 }
 0x449   :  { %v13940_v0 = vpack.i.bf16 %v4399_v29, %v4398_v35  ;;  %3627 = vmatmul.mubr.bf16.gmra.mrb[4].mxu0 %v15273_v46  ;;  %v4400_v55 = vmax.f32 %v3416_v25, 0.0  ;;  %v15284_v25 = vld [vmem:[%s21581_s0 + $0x844] ss:$8 sps:$4 sm:$0xff]  }
 0x44a   :  { %3634 = vmatprep.mubr.bf16.mxu0 %v15278_v31 }
 0x44b   :  { %13941 = vrot.lane.b32.xlu1 %v13940_v0, %s15999_s13 }
 0x44c   :  { %v3420_v11 = vpop.f32.mrb[156].mxu0 }
 0x44d   :  { %v3421_v17 = vadd.f32 %v17180_v1, %v3420_v11  ;;  %v3422_v5 = vpop.f32.mrb[157].mxu0  ;;  %v15279_v11 = vld [vmem:[%s21581_s0 + $0x830] ss:$8 sps:$4 sm:$0xff]  }
 0x44e   :  { %v3423_v50 = vpop.f32.mrb[158].mxu0 }
 0x44f   :  { %v4401_v46 = vmax.f32 %v3421_v17, 0.0  ;;  %v3425_v31 = vpop.f32.mrb[159].mxu0  ;;  %v3424_v38 = vadd.f32 %v17180_v1, %v3423_v50 }
 0x451   :  { %v13945_v35 = vpack.i.bf16 %v4401_v46, %v4400_v55  ;;  %3635 = vmatmul.mubr.bf16.gmra.mrb[8].mxu0 %v15276_v59  ;;  %v4402_v17 = vmax.f32 %v3424_v38, 0.0  ;;  %v15287_v38 = vld [vmem:[%s21581_s0 + $0x854] ss:$8 sps:$4 sm:$0xff]  }
 0x452   :  { %3642 = vmatprep.mubr.bf16.mxu0 %v15281_v40 }
 0x453   :  { %13946 = vrot.lane.b32.xlu1 %v13945_v35, %s15999_s13 }
 0x454   :  { %v3428_v29 = vpop.f32.mrb[160].mxu0 }
 0x455   :  { %v3429_v16 = vadd.f32 %v17180_v1, %v3428_v29  ;;  %v3430_v0 = vpop.f32.mrb[161].mxu0  ;;  %v15282_v29 = vld [vmem:[%s21581_s0 + $0x840] ss:$8 sps:$4 sm:$0xff]  }
 0x456   :  { %v3431_v5 = vpop.f32.mrb[162].mxu0 }
 0x457   :  { %v4403_v59 = vmax.f32 %v3429_v16, 0.0  ;;  %v3433_v40 = vpop.f32.mrb[163].mxu0  ;;  %v3432_v50 = vadd.f32 %v17180_v1, %v3431_v5 }
 0x459   :  { %v13950_v55 = vpack.i.bf16 %v4403_v59, %v4402_v17  ;;  %3643 = vmatmul.mubr.bf16.gmra.mrb[12].mxu0 %v15279_v11  ;;  %v4404_v16 = vmax.f32 %v3432_v50, 0.0  ;;  %v15290_v50 = vld [vmem:[%s21581_s0 + $0x864] ss:$8 sps:$4 sm:$0xff]  }
 0x45a   :  { %3650 = vmatprep.mubr.bf16.mxu0 %v15284_v25 }
 0x45b   :  { %13951 = vrot.lane.b32.xlu1 %v13950_v55, %s15999_s13 }
 0x45c   :  { %v3436_v46 = vpop.f32.mrb[164].mxu0 }
 0x45d   :  { %v3437_v31 = vadd.f32 %v17180_v1, %v3436_v46  ;;  %v3438_v35 = vpop.f32.mrb[165].mxu0  ;;  %v15285_v46 = vld [vmem:[%s21581_s0 + $0x850] ss:$8 sps:$4 sm:$0xff]  }
 0x45e   :  { %v3439_v0 = vpop.f32.mrb[166].mxu0 }
 0x45f   :  { %v4405_v11 = vmax.f32 %v3437_v31, 0.0  ;;  %v3441_v25 = vpop.f32.mrb[167].mxu0  ;;  %v3440_v5 = vadd.f32 %v17180_v1, %v3439_v0 }
 0x460   :  { %v15338_v25 = vld [vmem:[%s21581_s0 + $0xa34] ss:$8 sps:$4 sm:$0xff]  }
 0x461   :  { %v17344_v17 = vpack.i.bf16 %v4405_v11, %v4404_v16  ;;  %3651 = vmatmul.mubr.bf16.gmra.mrb[16].mxu0 %v15282_v29  ;;  %v4406_v31 = vmax.f32 %v3440_v5, 0.0  ;;  %v15288_v5 = vld [vmem:[%s21581_s0 + $0x860] ss:$8 sps:$4 sm:$0xff]   ;;  %3898 = vmatprep.mubr.bf16.mxu1 %v15338_v25 }
 0x462   :  { %3658 = vmatprep.mubr.bf16.mxu0 %v15287_v38 }
 0x464   :  { %v3444_v59 = vpop.f32.mrb[168].mxu0 }
 0x465   :  { %v3445_v40 = vadd.f32 %v17180_v1, %v3444_v59  ;;  %v3446_v55 = vpop.f32.mrb[169].mxu0 }
 0x466   :  { %v3447_v35 = vpop.f32.mrb[170].mxu0 }
 0x467   :  { %v4407_v16 = vmax.f32 %v3445_v40, 0.0  ;;  %v3449_v11 = vpop.f32.mrb[171].mxu0  ;;  %v3448_v0 = vadd.f32 %v17180_v1, %v3447_v35  ;;  %v15336_v40 = vld [vmem:[%s21581_s0 + $0xa30] ss:$8 sps:$4 sm:$0xff]   ;;  %v15293_v35 = vld [vmem:[%s21581_s0 + $0x874] ss:$8 sps:$4 sm:$0xff]  }
 0x468   :  { %3899 = vmatmul.mubr.bf16.vlgmr.msra.gmra.mrb[0].mxu1 %v15336_v40 }
 0x469   :  { %v13955_v29 = vpack.i.bf16 %v4407_v16, %v4406_v31  ;;  %3659 = vmatmul.mubr.bf16.gmra.mrb[20].mxu0 %v15285_v46 }
 0x46a   :  { %3666 = vmatprep.mubr.bf16.mxu0 %v15290_v50  ;;  %v4408_v50 = vmax.f32 %v3448_v0, 0.0  ;;  %v15296_v0 = vld [vmem:[%s21581_s0 + $0x884] ss:$8 sps:$4 sm:$0xff]  }
 0x46b   :  { %13956 = vrot.lane.b32.xlu1 %v13955_v29, %s15999_s13 }
 0x46c   :  { %v3452_v38 = vpop.f32.mrb[172].mxu0 }
 0x46d   :  { %v3453_v59 = vadd.f32 %v17180_v1, %v3452_v38  ;;  %v3454_v55 = vpop.f32.mrb[173].mxu0 }
 0x46e   :  { %v3455_v46 = vpop.f32.mrb[174].mxu0 }
 0x46f   :  { %v4409_v31 = vmax.f32 %v3453_v59, 0.0  ;;  %v3457_v16 = vpop.f32.mrb[175].mxu0  ;;  %v3456_v29 = vadd.f32 %v17180_v1, %v3455_v46 }
 0x470   :  { %v15294_v16 = vld [vmem:[%s21581_s0 + $0x880] ss:$8 sps:$4 sm:$0xff]  }
 0x471   :  { %v13960_v11 = vpack.i.bf16 %v4409_v31, %v4408_v50  ;;  %3667 = vmatmul.mubr.bf16.gmra.mrb[24].mxu0 %v15288_v5  ;;  %v4410_v59 = vmax.f32 %v3456_v29, 0.0  ;;  %v15299_v29 = vld [vmem:[%s21581_s0 + $0x894] ss:$8 sps:$4 sm:$0xff]  }
 0x472   :  { %3674 = vmatprep.mubr.bf16.mxu0 %v15293_v35 }
 0x473   :  { %13961 = vrot.lane.b32.xlu0 %v13960_v11, %s15999_s13 }
 0x474   :  { %v3460_v38 = vpop.f32.mrb[176].mxu0 }
 0x475   :  { %v3461_v55 = vadd.f32 %v17180_v1, %v3460_v38  ;;  %v3462_v9 = vpop.f32.mrb[177].mxu0 }
 0x476   :  { %v3463_v25 = vpop.f32.mrb[178].mxu0 }
 0x477   :  { %v4411_v5 = vmax.f32 %v3461_v55, 0.0  ;;  %v3465_v40 = vpop.f32.mrb[179].mxu0  ;;  %v3464_v46 = vadd.f32 %v17180_v1, %v3463_v25 }
 0x479   :  { %v13965_v35 = vpack.i.bf16 %v4411_v5, %v4410_v59  ;;  %3675 = vmatmul.mubr.bf16.gmra.mrb[28].mxu0 %v15291_v44  ;;  %v4412_v38 = vmax.f32 %v3464_v46, 0.0  ;;  %v15302_v46 = vld [vmem:[%s21581_s0 + $0x8a4] ss:$8 sps:$4 sm:$0xff]  }
 0x47a   :  { %3682 = vmatprep.mubr.bf16.mxu0 %v15296_v0 }
 0x47b   :  { %13966 = vrot.lane.b32.xlu0 %v13965_v35, %s15999_s13  ;;  %v15297_v35 = vld [vmem:[%s21581_s0 + $0x890] ss:$8 sps:$4 sm:$0xff]  }
 0x47c   :  { %v3468_v9 = vpop.f32.mrb[180].mxu0 }
 0x47d   :  { %v3469_v50 = vadd.f32 %v17180_v1, %v3468_v9  ;;  %v3470_v31 = vpop.f32.mrb[181].mxu0 }
 0x47e   :  { %v3471_v11 = vpop.f32.mrb[182].mxu0 }
 0x47f   :  { %v4413_v44 = vmax.f32 %v3469_v50, 0.0  ;;  %v3473_v55 = vpop.f32.mrb[183].mxu0  ;;  %v3472_v25 = vadd.f32 %v17180_v1, %v3471_v11 }
 0x481   :  { %v13970_v0 = vpack.i.bf16 %v4413_v44, %v4412_v38  ;;  %3683 = vmatmul.mubr.bf16.gmra.mrb[32].mxu0 %v15294_v16  ;;  %v4414_v50 = vmax.f32 %v3472_v25, 0.0  ;;  %v15305_v25 = vld [vmem:[%s21581_s0 + $0x8b4] ss:$8 sps:$4 sm:$0xff]  }
 0x482   :  { %3690 = vmatprep.mubr.bf16.mxu0 %v15299_v29 }
 0x483   :  { %13971 = vrot.lane.b32.xlu0 %v13970_v0, %s15999_s13  ;;  %v15300_v0 = vld [vmem:[%s21581_s0 + $0x8a0] ss:$8 sps:$4 sm:$0xff]  }
 0x484   :  { %v3476_v59 = vpop.f32.mrb[184].mxu0 }
 0x485   :  { %v3477_v5 = vadd.f32 %v17180_v1, %v3476_v59  ;;  %v3478_v40 = vpop.f32.mrb[185].mxu0 }
 0x486   :  { %v3479_v9 = vpop.f32.mrb[186].mxu0 }
 0x487   :  { %v4415_v31 = vmax.f32 %v3477_v5, 0.0  ;;  %v3481_v16 = vpop.f32.mrb[187].mxu0  ;;  %v3480_v11 = vadd.f32 %v17180_v1, %v3479_v9 }
 0x489   :  { %v17396_v29 = vpack.i.bf16 %v4415_v31, %v4414_v50  ;;  %3691 = vmatmul.mubr.bf16.gmra.mrb[36].mxu0 %v15297_v35  ;;  %v4416_v5 = vmax.f32 %v3480_v11, 0.0  ;;  %v15308_v11 = vld [vmem:[%s21581_s0 + $0x8c4] ss:$8 sps:$4 sm:$0xff]  }
 0x48a   :  { %3698 = vmatprep.mubr.bf16.mxu0 %v15302_v46 }
 0x48c   :  { %v3484_v38 = vpop.f32.mrb[188].mxu0 }
 0x48d   :  { %v3485_v44 = vadd.f32 %v17180_v1, %v3484_v38  ;;  %v3486_v55 = vpop.f32.mrb[189].mxu0  ;;  %v15303_v38 = vld [vmem:[%s21581_s0 + $0x8b0] ss:$8 sps:$4 sm:$0xff]  }
 0x48e   :  { %v3487_v59 = vpop.f32.mrb[190].mxu0 }
 0x48f   :  { %v4417_v40 = vmax.f32 %v3485_v44, 0.0  ;;  %v3489_v50 = vpop.f32.mrb[191].mxu0  ;;  %v3488_v9 = vadd.f32 %v17180_v1, %v3487_v59 }
 0x490   :  { %v3397_v50 = vadd.f32 %v17180_v1, %v17292_v4 }
 0x491   :  { %v17406_v35 = vpack.i.bf16 %v4417_v40, %v4416_v5  ;;  %3699 = vmatmul.mubr.bf16.gmra.mrb[40].mxu0 %v15300_v0  ;;  %v4418_v44 = vmax.f32 %v3488_v9, 0.0 }
 0x492   :  { %3706 = vmatprep.mubr.bf16.mxu0 %v15305_v25 }
 0x494   :  { %v3492_v46 = vpop.f32.mrb[192].mxu0 }
 0x495   :  { %v3493_v31 = vadd.f32 %v17180_v1, %v3492_v46  ;;  %v3494_v16 = vpop.f32.mrb[193].mxu0 }
 0x496   :  { %v3495_v55 = vpop.f32.mrb[194].mxu0 }
 0x497   :  { %v4419_v5 = vmax.f32 %v3493_v31, 0.0  ;;  %v3497_v40 = vpop.f32.mrb[195].mxu0  ;;  %v3496_v59 = vadd.f32 %v17180_v1, %v3495_v55  ;;  %v15311_v31 = vld [vmem:[%s21581_s0 + $0x8d4] ss:$8 sps:$4 sm:$0xff]  }
 0x499   :  { %v17416_v0 = vpack.i.bf16 %v4419_v5, %v4418_v44  ;;  %3707 = vmatmul.mubr.bf16.gmra.mrb[44].mxu0 %v15303_v38  ;;  %v4420_v38 = vmax.f32 %v3496_v59, 0.0  ;;  %v4395_v5 = vmax.f32 %v3397_v50, 0.0  ;;  %v15309_v59 = vld [vmem:[%s21581_s0 + $0x8d0] ss:$8 sps:$4 sm:$0xff]   ;;  %v15314_v50 = vld [vmem:[%s21581_s0 + $0x8e4] ss:$8 sps:$4 sm:$0xff]  }
 0x49a   :  { %3714 = vmatprep.mubr.bf16.mxu0 %v15308_v11 }
 0x49c   :  { %v3500_v25 = vpop.f32.mrb[196].mxu0 }
 0x49d   :  { %v3501_v46 = vadd.f32 %v17180_v1, %v3500_v25  ;;  %v3502_v16 = vpop.f32.mrb[197].mxu0 }
 0x49e   :  { %v3503_v9 = vpop.f32.mrb[198].mxu0 }
 0x49f   :  { %v4421_v11 = vmax.f32 %v3501_v46, 0.0  ;;  %v3504_v55 = vadd.f32 %v17180_v1, %v3503_v9  ;;  %v3505_v44 = vpop.f32.mrb[199].mxu0 }
 0x4a1   :  { %v17429_v40 = vpack.i.bf16 %v4421_v11, %v4420_v38  ;;  %v4422_v4 = vmax.f32 %v3504_v55, 0.0  ;;  %3715 = vmatmul.mubr.bf16.gmra.mrb[48].mxu0 %v15306_v52 }
 0x4a2   :  { %3722 = vmatprep.mubr.bf16.mxu0 %v15311_v31 }
 0x4a3   :  { %v17431_v25 = vpack.i.bf16 %v4422_v4, %v4395_v5  ;;  %v15312_v5 = vld [vmem:[%s21581_s0 + $0x8e0] ss:$8 sps:$4 sm:$0xff]  }
 0x4a4   :  { %v3508_v16 = vpop.f32.mrb[200].mxu0 }
 0x4a5   :  { %v3509_v58 = vadd.f32 %v17180_v1, %v3508_v16  ;;  %v3510_v22 = vpop.f32.mrb[201].mxu0  ;;  %v15317_v16 = vld [vmem:[%s21581_s0 + $0x8f4] ss:$8 sps:$4 sm:$0xff]  }
 0x4a6   :  { %v3511_v46 = vpop.f32.mrb[202].mxu0 }
 0x4a7   :  { %v3512_v9 = vadd.f32 %v17180_v1, %v3511_v46  ;;  %v3513_v38 = vpop.f32.mrb[203].mxu0  ;;  %v4423_v52 = vmax.f32 %v3509_v58, 0.0 }
 0x4a9   :  { %v4424_v31 = vmax.f32 %v3512_v9, 0.0  ;;  %3723 = vmatmul.mubr.bf16.gmra.mrb[52].mxu0 %v15309_v59 }
 0x4aa   :  { %3730 = vmatprep.mubr.bf16.mxu0 %v15314_v50 }
 0x4ab   :  { %v17441_v11 = vpack.i.bf16 %v4424_v31, %v4423_v52 }
 0x4ac   :  { %v3516_v55 = vpop.f32.mrb[204].mxu0 }
 0x4ad   :  { %v3517_v22 = vadd.f32 %v17180_v1, %v3516_v55  ;;  %v3518_v44 = vpop.f32.mrb[205].mxu0  ;;  %v15315_v55 = vld [vmem:[%s21581_s0 + $0x8f0] ss:$8 sps:$4 sm:$0xff]  }
 0x4ae   :  { %v3519_v4 = vpop.f32.mrb[206].mxu0 }
 0x4af   :  { %v3520_v58 = vadd.f32 %v17180_v1, %v3519_v4  ;;  %v3521_v46 = vpop.f32.mrb[207].mxu0  ;;  %v4425_v59 = vmax.f32 %v3517_v22, 0.0  ;;  %v15320_v4 = vld [vmem:[%s21581_s0 + $0x904] ss:$8 sps:$4 sm:$0xff]  }
 0x4b1   :  { %v4426_v50 = vmax.f32 %v3520_v58, 0.0  ;;  %3731 = vmatmul.mubr.bf16.gmra.mrb[56].mxu0 %v15312_v5 }
 0x4b2   :  { %3738 = vmatprep.mubr.bf16.mxu0 %v15317_v16 }
 0x4b3   :  { %v17451_v9 = vpack.i.bf16 %v4426_v50, %v4425_v59 }
 0x4b4   :  { %v3524_v38 = vpop.f32.mrb[208].mxu0 }
 0x4b5   :  { %v3525_v52 = vadd.f32 %v17180_v1, %v3524_v38  ;;  %v3526_v31 = vpop.f32.mrb[209].mxu0 }
 0x4b6   :  { %v3527_v44 = vpop.f32.mrb[210].mxu0  ;;  %v15318_v31 = vld [vmem:[%s21581_s0 + $0x900] ss:$8 sps:$4 sm:$0xff]  }
 0x4b7   :  { %v3528_v22 = vadd.f32 %v17180_v1, %v3527_v44  ;;  %v3529_v58 = vpop.f32.mrb[211].mxu0  ;;  %v4427_v5 = vmax.f32 %v3525_v52, 0.0  ;;  %v15323_v44 = vld [vmem:[%s21581_s0 + $0x914] ss:$8 sps:$4 sm:$0xff]  }
 0x4b9   :  { %v4428_v16 = vmax.f32 %v3528_v22, 0.0  ;;  %3739 = vmatmul.mubr.bf16.gmra.mrb[60].mxu0 %v15315_v55 }
 0x4ba   :  { %3746 = vmatprep.mubr.bf16.mxu0 %v15320_v4 }
 0x4bb   :  { %v17461_v46 = vpack.i.bf16 %v4428_v16, %v4427_v5 }
 0x4bc   :  { %v3532_v59 = vpop.f32.mrb[212].mxu0 }
 0x4bd   :  { %v3533_v50 = vadd.f32 %v17180_v1, %v3532_v59  ;;  %v3534_v38 = vpop.f32.mrb[213].mxu0 }
 0x4be   :  { %v3535_v47 = vpop.f32.mrb[214].mxu0  ;;  %v15321_v38 = vld [vmem:[%s21581_s0 + $0x910] ss:$8 sps:$4 sm:$0xff]  }
 0x4bf   :  { %v3536_v52 = vadd.f32 %v17180_v1, %v3535_v47  ;;  %v3537_v22 = vpop.f32.mrb[215].mxu0  ;;  %v4429_v55 = vmax.f32 %v3533_v50, 0.0  ;;  %v15326_v47 = vld [vmem:[%s21581_s0 + $0x924] ss:$8 sps:$4 sm:$0xff]  }
 0x4c1   :  { %v4430_v4 = vmax.f32 %v3536_v52, 0.0  ;;  %3747 = vmatmul.mubr.bf16.gmra.mrb[64].mxu0 %v15318_v31 }
 0x4c2   :  { %3754 = vmatprep.mubr.bf16.mxu0 %v15323_v44 }
 0x4c3   :  { %v17471_v58 = vpack.i.bf16 %v4430_v4, %v4429_v55  ;;  %v15375_v4 = vld [vmem:[%s21581_s0 + $0xa44] ss:$8 sps:$4 sm:$0xff]  }
 0x4c4   :  { %v3540_v5 = vpop.f32.mrb[216].mxu0  ;;  %3906 = vmatprep.mubr.bf16.mxu1 %v15375_v4  ;;  %v15332_v4 = vld [vmem:[%s21581_s0 + $0x944] ss:$8 sps:$4 sm:$0xff]  }
 0x4c5   :  { %v3541_v16 = vadd.f32 %v17180_v1, %v3540_v5  ;;  %v3542_v59 = vpop.f32.mrb[217].mxu0 }
 0x4c6   :  { %v3543_v61 = vpop.f32.mrb[218].mxu0 }
 0x4c7   :  { %v3544_v50 = vadd.f32 %v17180_v1, %v3543_v61  ;;  %v3545_v52 = vpop.f32.mrb[219].mxu0  ;;  %v4431_v31 = vmax.f32 %v3541_v16, 0.0  ;;  %v15377_v61 = vld [vmem:[%s21581_s0 + $0xa40] ss:$8 sps:$4 sm:$0xff]  }
 0x4c8   :  { %3907 = vmatmul.mubr.bf16.gmra.mrb[4].mxu1 %v15377_v61 }
 0x4c9   :  { %v4432_v44 = vmax.f32 %v3544_v50, 0.0  ;;  %3755 = vmatmul.mubr.bf16.gmra.mrb[68].mxu0 %v15321_v38  ;;  %v15329_v38 = vld [vmem:[%s21581_s0 + $0x934] ss:$8 sps:$4 sm:$0xff]  }
 0x4ca   :  { %3762 = vmatprep.mubr.bf16.mxu0 %v15326_v47 }
 0x4cb   :  { %v17481_v22 = vpack.i.bf16 %v4432_v44, %v4431_v31 }
 0x4cc   :  { %v3548_v55 = vpop.f32.mrb[220].mxu0 }
 0x4cd   :  { %21715 = vst [vmem:[#allocation113_spill] sm:$0xff] %v17481_v22  ;;  %v3549_v5 = vadd.f32 %v17180_v1, %v3548_v55  ;;  %v3550_v59 = vpop.f32.mrb[221].mxu0 }
 0x4ce   :  { %v3551_v16 = vpop.f32.mrb[222].mxu0 }
 0x4cf   :  { %v3552_v47 = vadd.f32 %v17180_v1, %v3551_v16  ;;  %v3553_v50 = vpop.f32.mrb[223].mxu0  ;;  %v4433_v52 = vmax.f32 %v3549_v5, 0.0 }
 0x4d1   :  { %v4434_v31 = vmax.f32 %v3552_v47, 0.0  ;;  %3763 = vmatmul.mubr.bf16.gmra.mrb[72].mxu0 %v15324_v53 }
 0x4d2   :  { %3770 = vmatprep.mubr.bf16.mxu0 %v15329_v38 }
 0x4d3   :  { %v17497_v44 = vpack.i.bf16 %v4434_v31, %v4433_v52  ;;  %v15330_v52 = vld [vmem:[%s21581_s0 + $0x940] ss:$8 sps:$4 sm:$0xff]  }
 0x4d4   :  { %v3556_v55 = vpop.f32.mrb[224].mxu0 }
 0x4d5   :  { %21716 = vst [vmem:[#allocation114_spill] sm:$0xff] %v17497_v44  ;;  %v3557_v59 = vadd.f32 %v17180_v1, %v3556_v55  ;;  %v3558_v37 = vpop.f32.mrb[225].mxu0 }
 0x4d6   :  { %v3559_v49 = vpop.f32.mrb[226].mxu0 }
 0x4d7   :  { %v3560_v5 = vadd.f32 %v17180_v1, %v3559_v49  ;;  %v3561_v61 = vpop.f32.mrb[227].mxu0  ;;  %v4435_v53 = vmax.f32 %v3557_v59, 0.0  ;;  %v15335_v49 = vld [vmem:[%s21581_s0 + $0x954] ss:$8 sps:$4 sm:$0xff]  }
 0x4d9   :  { %v4436_v16 = vmax.f32 %v3560_v5, 0.0  ;;  %3771 = vmatmul.mubr.bf16.gmra.mrb[76].mxu0 %v15327_v41 }
 0x4da   :  { %3778 = vmatprep.mubr.bf16.mxu0 %v15332_v4 }
 0x4db   :  { %v17507_v38 = vpack.i.bf16 %v4436_v16, %v4435_v53 }
 0x4dc   :  { %v3564_v47 = vpop.f32.mrb[228].mxu0 }
 0x4dd   :  { %21717 = vst [vmem:[#allocation115_spill] sm:$0xff] %v17507_v38  ;;  %v3565_v37 = vadd.f32 %v17180_v1, %v3564_v47  ;;  %v3566_v50 = vpop.f32.mrb[229].mxu0  ;;  %v15333_v47 = vld [vmem:[%s21581_s0 + $0x950] ss:$8 sps:$4 sm:$0xff]   ;;  %v15363_v38 = vld [vmem:[%s21581_s0 + $0x9e0] ss:$8 sps:$4 sm:$0xff]  }
 0x4de   :  { %v3567_v31 = vpop.f32.mrb[230].mxu0 }
 0x4df   :  { %v3568_v55 = vadd.f32 %v17180_v1, %v3567_v31  ;;  %v3569_v59 = vpop.f32.mrb[231].mxu0  ;;  %v4437_v41 = vmax.f32 %v3565_v37, 0.0  ;;  %v15341_v31 = vld [vmem:[%s21581_s0 + $0x964] ss:$8 sps:$4 sm:$0xff]  }
 0x4e1   :  { %v4438_v4 = vmax.f32 %v3568_v55, 0.0  ;;  %3779 = vmatmul.mubr.bf16.gmra.mrb[80].mxu0 %v15330_v52 }
 0x4e2   :  { %3786 = vmatprep.mubr.bf16.mxu0 %v15335_v49 }
 0x4e3   :  { %v17517_v5 = vpack.i.bf16 %v4438_v4, %v4437_v41 }
 0x4e4   :  { %v3572_v61 = vpop.f32.mrb[232].mxu0 }
 0x4e5   :  { %21718 = vst [vmem:[#allocation116_spill] sm:$0xff] %v17517_v5  ;;  %v3573_v53 = vadd.f32 %v17180_v1, %v3572_v61  ;;  %v3574_v16 = vpop.f32.mrb[233].mxu0 }
 0x4e6   :  { %v3575_v50 = vpop.f32.mrb[234].mxu0  ;;  %v15339_v16 = vld [vmem:[%s21581_s0 + $0x960] ss:$8 sps:$4 sm:$0xff]  }
 0x4e7   :  { %v3576_v37 = vadd.f32 %v17180_v1, %v3575_v50  ;;  %v3577_v55 = vpop.f32.mrb[235].mxu0  ;;  %v4439_v52 = vmax.f32 %v3573_v53, 0.0  ;;  %v15344_v50 = vld [vmem:[%s21581_s0 + $0x974] ss:$8 sps:$4 sm:$0xff]  }
 0x4e9   :  { %v4440_v49 = vmax.f32 %v3576_v37, 0.0  ;;  %3787 = vmatmul.mubr.bf16.gmra.mrb[84].mxu0 %v15333_v47 }
 0x4ea   :  { %3794 = vmatprep.mubr.bf16.mxu0 %v15341_v31 }
 0x4eb   :  { %v17527_v59 = vpack.i.bf16 %v4440_v49, %v4439_v52 }
 0x4ec   :  { %v3580_v41 = vpop.f32.mrb[236].mxu0 }
 0x4ed   :  { %21719 = vst [vmem:[#allocation117_spill] sm:$0xff] %v17527_v59  ;;  %v3581_v4 = vadd.f32 %v17180_v1, %v3580_v41  ;;  %v3582_v61 = vpop.f32.mrb[237].mxu0 }
 0x4ee   :  { %v3583_v5 = vpop.f32.mrb[238].mxu0  ;;  %v15342_v61 = vld [vmem:[%s21581_s0 + $0x970] ss:$8 sps:$4 sm:$0xff]  }
 0x4ef   :  { %v3584_v53 = vadd.f32 %v17180_v1, %v3583_v5  ;;  %v3585_v37 = vpop.f32.mrb[239].mxu0  ;;  %v4441_v47 = vmax.f32 %v3581_v4, 0.0  ;;  %v15347_v5 = vld [vmem:[%s21581_s0 + $0x984] ss:$8 sps:$4 sm:$0xff]  }
 0x4f1   :  { %v4442_v31 = vmax.f32 %v3584_v53, 0.0  ;;  %3795 = vmatmul.mubr.bf16.gmra.mrb[88].mxu0 %v15339_v16 }
 0x4f2   :  { %3802 = vmatprep.mubr.bf16.mxu0 %v15344_v50 }
 0x4f3   :  { %v17537_v55 = vpack.i.bf16 %v4442_v31, %v4441_v47 }
 0x4f4   :  { %v3588_v52 = vpop.f32.mrb[240].mxu0 }
 0x4f5   :  { %21720 = vst [vmem:[#allocation118_spill] sm:$0xff] %v17537_v55  ;;  %v3589_v49 = vadd.f32 %v17180_v1, %v3588_v52  ;;  %v3590_v41 = vpop.f32.mrb[241].mxu0 }
 0x4f6   :  { %v3591_v59 = vpop.f32.mrb[242].mxu0  ;;  %v15345_v41 = vld [vmem:[%s21581_s0 + $0x980] ss:$8 sps:$4 sm:$0xff]  }
 0x4f7   :  { %v3592_v4 = vadd.f32 %v17180_v1, %v3591_v59  ;;  %v3593_v53 = vpop.f32.mrb[243].mxu0  ;;  %v4443_v16 = vmax.f32 %v3589_v49, 0.0  ;;  %v15350_v59 = vld [vmem:[%s21581_s0 + $0x994] ss:$8 sps:$4 sm:$0xff]  }
 0x4f9   :  { %v4444_v50 = vmax.f32 %v3592_v4, 0.0  ;;  %3803 = vmatmul.mubr.bf16.gmra.mrb[92].mxu0 %v15342_v61 }
 0x4fa   :  { %3810 = vmatprep.mubr.bf16.mxu0 %v15347_v5 }
 0x4fb   :  { %v17547_v37 = vpack.i.bf16 %v4444_v50, %v4443_v16 }
 0x4fc   :  { %v3596_v47 = vpop.f32.mrb[244].mxu0 }
 0x4fd   :  { %21721 = vst [vmem:[#allocation119_spill] sm:$0xff] %v17547_v37  ;;  %v3597_v31 = vadd.f32 %v17180_v1, %v3596_v47  ;;  %v3598_v52 = vpop.f32.mrb[245].mxu0 }
 0x4fe   :  { %v3599_v55 = vpop.f32.mrb[246].mxu0  ;;  %v15348_v52 = vld [vmem:[%s21581_s0 + $0x990] ss:$8 sps:$4 sm:$0xff]  }
 0x4ff   :  { %v3600_v49 = vadd.f32 %v17180_v1, %v3599_v55  ;;  %v3601_v4 = vpop.f32.mrb[247].mxu0  ;;  %v4445_v61 = vmax.f32 %v3597_v31, 0.0  ;;  %v15353_v55 = vld [vmem:[%s21581_s0 + $0x9a4] ss:$8 sps:$4 sm:$0xff]  }
 0x501   :  { %v4446_v5 = vmax.f32 %v3600_v49, 0.0  ;;  %3811 = vmatmul.mubr.bf16.gmra.mrb[96].mxu0 %v15345_v41 }
 0x502   :  { %3818 = vmatprep.mubr.bf16.mxu0 %v15350_v59 }
 0x503   :  { %v17557_v53 = vpack.i.bf16 %v4446_v5, %v4445_v61 }
 0x504   :  { %v3604_v16 = vpop.f32.mrb[248].mxu0 }
 0x505   :  { %21722 = vst [vmem:[#allocation120_spill] sm:$0xff] %v17557_v53  ;;  %v3605_v50 = vadd.f32 %v17180_v1, %v3604_v16  ;;  %v3606_v47 = vpop.f32.mrb[249].mxu0 }
 0x506   :  { %v3607_v37 = vpop.f32.mrb[250].mxu0  ;;  %v15351_v47 = vld [vmem:[%s21581_s0 + $0x9a0] ss:$8 sps:$4 sm:$0xff]  }
 0x507   :  { %v3608_v31 = vadd.f32 %v17180_v1, %v3607_v37  ;;  %v3609_v49 = vpop.f32.mrb[251].mxu0  ;;  %v4447_v41 = vmax.f32 %v3605_v50, 0.0  ;;  %v15356_v37 = vld [vmem:[%s21581_s0 + $0x9b4] ss:$8 sps:$4 sm:$0xff]  }
 0x509   :  { %v4448_v59 = vmax.f32 %v3608_v31, 0.0  ;;  %3819 = vmatmul.mubr.bf16.gmra.mrb[100].mxu0 %v15348_v52 }
 0x50a   :  { %3826 = vmatprep.mubr.bf16.mxu0 %v15353_v55 }
 0x50b   :  { %v17567_v4 = vpack.i.bf16 %v4448_v59, %v4447_v41  ;;  %v17582_v59 = vld [vmem:[%s21582_s2] ss:$0 sm:$0xff] }
 0x50c   :  { %v3612_v61 = vpop.f32.mrb[252].mxu0 }
 0x50d   :  { %21723 = vst [vmem:[#allocation121_spill] sm:$0xff] %v17567_v4  ;;  %v3613_v5 = vadd.f32 %v17180_v1, %v3612_v61  ;;  %v3614_v16 = vpop.f32.mrb[253].mxu0 }
 0x50e   :  { %v3615_v53 = vpop.f32.mrb[254].mxu0 }
 0x50f   :  { %v3616_v50 = vadd.f32 %v17180_v1, %v3615_v53  ;;  %v3617_v31 = vpop.f32.mrb[255].mxu0  ;;  %v4449_v52 = vmax.f32 %v3613_v5, 0.0  ;;  %v15354_v1 = vld [vmem:[%s21581_s0 + $0x9b0] ss:$8 sps:$4 sm:$0xff]   ;;  %v15359_v5 = vld [vmem:[%s21581_s0 + $0x9c4] ss:$8 sps:$4 sm:$0xff]  }
 0x510   :  { %v15383_v31 = vld [vmem:[%s21581_s0 + $0xa50] ss:$8 sps:$4 sm:$0xff]  }
 0x511   :  { %v4450_v55 = vmax.f32 %v3616_v50, 0.0  ;;  %3827 = vmatmul.mubr.bf16.gmra.mrb[104].mxu0 %v15351_v47  ;;  %v15381_v50 = vld [vmem:[%s21581_s0 + $0xa54] ss:$8 sps:$4 sm:$0xff]  }
 0x512   :  { %3834 = vmatprep.mubr.bf16.mxu0 %v15356_v37  ;;  %3914 = vmatprep.mubr.bf16.mxu1 %v15381_v50 }
 0x513   :  { %v17577_v49 = vpack.i.bf16 %v4450_v55, %v4449_v52  ;;  %3915 = vmatmul.mubr.bf16.gmra.mrb[8].mxu1 %v15383_v31 }
 0x514   :  { %v3620_v41 = vpop.f32.mrb[0].mxu0 }
 0x515   :  { %21724 = vst [vmem:[#allocation122_spill] sm:$0xff] %v17577_v49  ;;  %v3621_v61 = vadd.f32 %v17582_v59, %v3620_v41  ;;  %v3622_v16 = vpop.f32.mrb[1].mxu0  ;;  %v15357_v49 = vld [vmem:[%s21581_s0 + $0x9c0] ss:$8 sps:$4 sm:$0xff]  }
 0x516   :  { %v3623_v53 = vpop.f32.mrb[2].mxu0 }
 0x517   :  { %v3624_v47 = vadd.f32 %v17582_v59, %v3623_v53  ;;  %v3625_v37 = vpop.f32.mrb[3].mxu0  ;;  %v4451_v52 = vmax.f32 %v3621_v61, 0.0  ;;  %v15362_v61 = vld [vmem:[%s21581_s0 + $0x9d4] ss:$8 sps:$4 sm:$0xff]  }
 0x519   :  { %v4452_v55 = vmax.f32 %v3624_v47, 0.0  ;;  %3835 = vmatmul.mubr.bf16.gmra.mrb[108].mxu0 %v15354_v1 }
 0x51a   :  { %3842 = vmatprep.mubr.bf16.mxu0 %v15359_v5 }
 0x51b   :  { %v17598_v41 = vpack.i.bf16 %v4452_v55, %v4451_v52 }
 0x51c   :  { %v3628_v16 = vpop.f32.mrb[4].mxu0 }
 0x51d   :  { %21725 = vst [vmem:[#allocation123_spill] sm:$0xff] %v17598_v41  ;;  %v3629_v53 = vadd.f32 %v17582_v59, %v3628_v16  ;;  %v3630_v37 = vpop.f32.mrb[5].mxu0  ;;  %v15384_v41 = vld [vmem:[%s21581_s0 + $0xa64] ss:$8 sps:$4 sm:$0xff]  }
 0x51e   :  { %v3631_v4 = vpop.f32.mrb[6].mxu0  ;;  %v15360_v37 = vld [vmem:[%s21581_s0 + $0x9d0] ss:$8 sps:$4 sm:$0xff]   ;;  %3922 = vmatprep.mubr.bf16.mxu1 %v15384_v41  ;;  %v15368_v41 = vld [vmem:[%s21581_s0 + $0x9f4] ss:$8 sps:$4 sm:$0xff]  }
 0x51f   :  { %v3632_v1 = vadd.f32 %v17582_v59, %v3631_v4  ;;  %v3633_v47 = vpop.f32.mrb[7].mxu0  ;;  %v4453_v5 = vmax.f32 %v3629_v53, 0.0  ;;  %v15386_v53 = vld [vmem:[%s21581_s0 + $0xa60] ss:$8 sps:$4 sm:$0xff]  }
 0x520   :  { %3923 = vmatmul.mubr.bf16.gmra.mrb[12].mxu1 %v15386_v53 }
 0x521   :  { %v4454_v50 = vmax.f32 %v3632_v1, 0.0  ;;  %3843 = vmatmul.mubr.bf16.gmra.mrb[112].mxu0 %v15357_v49  ;;  %v15365_v49 = vld [vmem:[%s21581_s0 + $0x9e4] ss:$8 sps:$4 sm:$0xff]  }
 0x522   :  { %3850 = vmatprep.mubr.bf16.mxu0 %v15362_v61 }
 0x523   :  { %v17608_v31 = vpack.i.bf16 %v4454_v50, %v4453_v5 }
 0x524   :  { %v3636_v52 = vpop.f32.mrb[8].mxu0 }
 0x525   :  { %21726 = vst [vmem:[#allocation124_spill] sm:$0xff] %v17608_v31  ;;  %v3637_v55 = vadd.f32 %v17582_v59, %v3636_v52  ;;  %v3638_v16 = vpop.f32.mrb[9].mxu0 }
 0x526   :  { %v3639_v4 = vpop.f32.mrb[10].mxu0 }
 0x527   :  { %v3640_v61 = vadd.f32 %v17582_v59, %v3639_v4  ;;  %v3641_v1 = vpop.f32.mrb[11].mxu0  ;;  %v4455_v47 = vmax.f32 %v3637_v55, 0.0 }
 0x529   :  { %v4456_v5 = vmax.f32 %v3640_v61, 0.0  ;;  %3851 = vmatmul.mubr.bf16.gmra.mrb[116].mxu0 %v15360_v37  ;;  %v15387_v37 = vld [vmem:[%s21581_s0 + $0xa74] ss:$8 sps:$4 sm:$0xff]  }
 0x52a   :  { %3858 = vmatprep.mubr.bf16.mxu0 %v15365_v49  ;;  %3930 = vmatprep.mubr.bf16.mxu1 %v15387_v37 }
 0x52b   :  { %v17624_v50 = vpack.i.bf16 %v4456_v5, %v4455_v47  ;;  %v15366_v5 = vld [vmem:[%s21581_s0 + $0x9f0] ss:$8 sps:$4 sm:$0xff]  }
 0x52c   :  { %v3644_v52 = vpop.f32.mrb[12].mxu0 }
 0x52d   :  { %21727 = vst [vmem:[#allocation125_spill] sm:$0xff] %v17624_v50  ;;  %v3645_v16 = vadd.f32 %v17582_v59, %v3644_v52  ;;  %v3646_v31 = vpop.f32.mrb[13].mxu0 }
 0x52e   :  { %v3647_v44 = vpop.f32.mrb[14].mxu0  ;;  %v15389_v31 = vld [vmem:[%s21581_s0 + $0xa70] ss:$8 sps:$4 sm:$0xff]  }
 0x52f   :  { %v3648_v55 = vadd.f32 %v17582_v59, %v3647_v44  ;;  %v3649_v4 = vpop.f32.mrb[15].mxu0  ;;  %v4457_v49 = vmax.f32 %v3645_v16, 0.0  ;;  %3931 = vmatmul.mubr.bf16.gmra.mrb[16].mxu1 %v15389_v31  ;;  %v15371_v16 = vld [vmem:[%s21581_s0 + $0xa04] ss:$8 sps:$4 sm:$0xff]  }
 0x530   :  { %v15390_v31 = vld [vmem:[%s21581_s0 + $0xa84] ss:$8 sps:$4 sm:$0xff]  }
 0x531   :  { %v4458_v53 = vmax.f32 %v3648_v55, 0.0  ;;  %3859 = vmatmul.mubr.bf16.gmra.mrb[120].mxu0 %v15363_v38  ;;  %3938 = vmatprep.mubr.bf16.mxu1 %v15390_v31 }
 0x532   :  { %3866 = vmatprep.mubr.bf16.mxu0 %v15368_v41 }
 0x533   :  { %v17640_v61 = vpack.i.bf16 %v4458_v53, %v4457_v49  ;;  %v15392_v53 = vld [vmem:[%s21581_s0 + $0xa80] ss:$8 sps:$4 sm:$0xff]  }
 0x534   :  { %v3652_v1 = vpop.f32.mrb[16].mxu0 }
 0x535   :  { %21728 = vst [vmem:[#allocation126_spill] sm:$0xff] %v17640_v61  ;;  %v3653_v44 = vadd.f32 %v17582_v59, %v3652_v1  ;;  %v3654_v47 = vpop.f32.mrb[17].mxu0  ;;  %v15393_v61 = vld [vmem:[%s21581_s0 + $0xa94] ss:$8 sps:$4 sm:$0xff]  }
 0x536   :  { %v3655_v52 = vpop.f32.mrb[18].mxu0 }
 0x537   :  { %v3656_v38 = vadd.f32 %v17582_v59, %v3655_v52  ;;  %v3657_v55 = vpop.f32.mrb[19].mxu0  ;;  %v4459_v41 = vmax.f32 %v3653_v44, 0.0  ;;  %v15369_v44 = vld [vmem:[%s21581_s0 + $0xa00] ss:$8 sps:$4 sm:$0xff]   ;;  %v15374_v52 = vld [vmem:[%s21581_s0 + $0xa14] ss:$8 sps:$4 sm:$0xff]   ;;  %3939 = vmatmul.mubr.bf16.gmra.mrb[20].mxu1 %v15392_v53 }
 0x538   :  { %3946 = vmatprep.mubr.bf16.mxu1 %v15393_v61  ;;  %v15378_v61 = vld [vmem:[%s21581_s0 + $0xa20] ss:$8 sps:$4 sm:$0xff]  }
 0x539   :  { %v4460_v4 = vmax.f32 %v3656_v38, 0.0  ;;  %3867 = vmatmul.mubr.bf16.gmra.mrb[124].mxu0 %v15366_v5 }
 0x53a   :  { %3874 = vmatprep.mubr.bf16.mxu0 %v15371_v16 }
 0x53b   :  { %v17650_v37 = vpack.i.bf16 %v4460_v4, %v4459_v41  ;;  %v17666_v4 = vpop.f32.mrb[0].mxu1 }
 0x53c   :  { %v3660_v49 = vpop.f32.mrb[20].mxu0 }
 0x53d   :  { %21729 = vst [vmem:[#allocation127_spill] sm:$0xff] %v17650_v37  ;;  %v3661_v1 = vadd.f32 %v17582_v59, %v3660_v49  ;;  %v3662_v47 = vpop.f32.mrb[21].mxu0 }
 0x53e   :  { %v3663_v5 = vpop.f32.mrb[22].mxu0  ;;  %v3902_v47 = vpop.f32.mrb[1].mxu1 }
 0x53f   :  { %v3664_v16 = vadd.f32 %v17582_v59, %v3663_v5  ;;  %v3665_v38 = vpop.f32.mrb[23].mxu0  ;;  %v4461_v55 = vmax.f32 %v3661_v1, 0.0  ;;  %v17670_v31 = vpop.f32.mrb[2].mxu1  ;;  %v15372_v1 = vld [vmem:[%s21581_s0 + $0xa10] ss:$8 sps:$4 sm:$0xff]  }
 0x540   :  { %v15380_v38 = vld [vmem:[%s21581_s0 + $0xa24] ss:$8 sps:$4 sm:$0xff]  }
 0x541   :  { %v4462_v41 = vmax.f32 %v3664_v16, 0.0  ;;  %3875 = vmatmul.mubr.bf16.gmra.mrb[128].mxu0 %v15369_v44  ;;  %v15395_v44 = vld [vmem:[%s21581_s0 + $0xa90] ss:$8 sps:$4 sm:$0xff]  }
 0x542   :  { %3882 = vmatprep.mubr.bf16.mxu0 %v15374_v52  ;;  %v3905_v52 = vpop.f32.mrb[3].mxu1  ;;  %3947 = vmatmul.mubr.bf16.gmra.mrb[24].mxu1 %v15395_v44 }
 0x543   :  { %v17668_v49 = vpack.i.bf16 %v4462_v41, %v4461_v55  ;;  %v15396_v52 = vld [vmem:[%s21581_s0 + $0xaa4] ss:$8 sps:$4 sm:$0xff]  }
 0x544   :  { %v3668_v37 = vpop.f32.mrb[24].mxu0  ;;  %3954 = vmatprep.mubr.bf16.mxu1 %v15396_v52  ;;  %v15401_v52 = vld [vmem:[%s21581_s0 + $0xab0] ss:$8 sps:$4 sm:$0xff]  }
 0x545   :  { %21730 = vst [vmem:[#allocation128_spill] sm:$0xff] %v17668_v49  ;;  %v3669_v53 = vadd.f32 %v17582_v59, %v3668_v37  ;;  %v3670_v5 = vpop.f32.mrb[25].mxu0 }
 0x546   :  { %v3671_v16 = vpop.f32.mrb[26].mxu0 }
 0x547   :  { %v3672_v55 = vadd.f32 %v17582_v59, %v3671_v16  ;;  %v3673_v41 = vpop.f32.mrb[27].mxu0  ;;  %v4463_v37 = vmax.f32 %v3669_v53, 0.0  ;;  %v15398_v53 = vld [vmem:[%s21581_s0 + $0xaa0] ss:$8 sps:$4 sm:$0xff]  }
 0x549   :  { %v4464_v47 = vmax.f32 %v3672_v55, 0.0  ;;  %3883 = vmatmul.mubr.bf16.gmra.mrb[132].mxu0 %v15372_v1 }
 0x54a   :  { %3890 = vmatprep.mubr.bf16.mxu0 %v15380_v38  ;;  %3955 = vmatmul.mubr.bf16.gmra.mrb[28].mxu1 %v15398_v53 }
 0x54b   :  { %v17686_v5 = vpack.i.bf16 %v4464_v47, %v4463_v37 }
 0x54c   :  { %v3676_v49 = vpop.f32.mrb[28].mxu0 }
 0x54d   :  { %21731 = vst [vmem:[#allocation129_spill] sm:$0xff] %v17686_v5  ;;  %v3677_v50 = vadd.f32 %v17582_v59, %v3676_v49  ;;  %v3678_v32 = vpop.f32.mrb[29].mxu0  ;;  %v15399_v49 = vld [vmem:[%s21581_s0 + $0xab4] ss:$8 sps:$4 sm:$0xff]  }
 0x54e   :  { %v3679_v1 = vpop.f32.mrb[30].mxu0  ;;  %3962 = vmatprep.mubr.bf16.mxu1 %v15399_v49  ;;  %v15404_v49 = vld [vmem:[%s21581_s0 + $0xac0] ss:$8 sps:$4 sm:$0xff]   ;;  %v15429_v5 = vld [vmem:[%s21581_s0 + $0xb54] ss:$8 sps:$4 sm:$0xff]  }
 0x54f   :  { %v3680_v44 = vadd.f32 %v17582_v59, %v3679_v1  ;;  %v3681_v16 = vpop.f32.mrb[31].mxu0  ;;  %v4465_v38 = vmax.f32 %v3677_v50, 0.0 }
 0x551   :  { %v4466_v55 = vmax.f32 %v3680_v44, 0.0  ;;  %3891 = vmatmul.mubr.bf16.gmra.mrb[136].mxu0 %v15378_v61 }
 0x552   :  { %3963 = vmatmul.mubr.bf16.gmra.mrb[32].mxu1 %v15401_v52 }
 0x553   :  { %v17699_v41 = vpack.i.bf16 %v4466_v55, %v4465_v38  ;;  %v15402_v55 = vld [vmem:[%s21581_s0 + $0xac4] ss:$8 sps:$4 sm:$0xff]  }
 0x554   :  { %v3684_v32 = vpop.f32.mrb[32].mxu0  ;;  %3970 = vmatprep.mubr.bf16.mxu1 %v15402_v55  ;;  %v15407_v55 = vld [vmem:[%s21581_s0 + $0xad0] ss:$8 sps:$4 sm:$0xff]  }
 0x555   :  { %21732 = vst [vmem:[#allocation130_spill] sm:$0xff] %v17699_v41  ;;  %v3685_v37 = vadd.f32 %v17582_v59, %v3684_v32  ;;  %v3686_v47 = vpop.f32.mrb[33].mxu0 }
 0x556   :  { %v3687_v1 = vpop.f32.mrb[34].mxu0 }
 0x557   :  { %v3688_v50 = vadd.f32 %v17582_v59, %v3687_v1  ;;  %v3689_v53 = vpop.f32.mrb[35].mxu0  ;;  %v4467_v61 = vmax.f32 %v3685_v37, 0.0 }
 0x559   :  { %v4468_v44 = vmax.f32 %v3688_v50, 0.0 }
 0x55a   :  { %3971 = vmatmul.mubr.bf16.gmra.mrb[36].mxu1 %v15404_v49 }
 0x55b   :  { %v17709_v16 = vpack.i.bf16 %v4468_v44, %v4467_v61  ;;  %v15405_v44 = vld [vmem:[%s21581_s0 + $0xad4] ss:$8 sps:$4 sm:$0xff]  }
 0x55c   :  { %v3692_v38 = vpop.f32.mrb[36].mxu0  ;;  %3978 = vmatprep.mubr.bf16.mxu1 %v15405_v44  ;;  %v15410_v44 = vld [vmem:[%s21581_s0 + $0xae0] ss:$8 sps:$4 sm:$0xff]  }
 0x55d   :  { %21733 = vst [vmem:[#allocation131_spill] sm:$0xff] %v17709_v16  ;;  %v3693_v32 = vadd.f32 %v17582_v59, %v3692_v38  ;;  %v3694_v47 = vpop.f32.mrb[37].mxu0 }
 0x55e   :  { %v3695_v41 = vpop.f32.mrb[38].mxu0 }
 0x55f   :  { %v3696_v52 = vadd.f32 %v17582_v59, %v3695_v41  ;;  %v3697_v37 = vpop.f32.mrb[39].mxu0  ;;  %v4469_v1 = vmax.f32 %v3693_v32, 0.0 }
 0x561   :  { %v4470_v50 = vmax.f32 %v3696_v52, 0.0 }
 0x562   :  { %3979 = vmatmul.mubr.bf16.gmra.mrb[40].mxu1 %v15407_v55 }
 0x563   :  { %v17719_v53 = vpack.i.bf16 %v4470_v50, %v4469_v1  ;;  %v15408_v50 = vld [vmem:[%s21581_s0 + $0xae4] ss:$8 sps:$4 sm:$0xff]  }
 0x564   :  { %v3700_v61 = vpop.f32.mrb[40].mxu0  ;;  %3986 = vmatprep.mubr.bf16.mxu1 %v15408_v50  ;;  %v15413_v50 = vld [vmem:[%s21581_s0 + $0xaf0] ss:$8 sps:$4 sm:$0xff]  }
 0x565   :  { %21734 = vst [vmem:[#allocation132_spill] sm:$0xff] %v17719_v53  ;;  %v3701_v38 = vadd.f32 %v17582_v59, %v3700_v61  ;;  %v3702_v47 = vpop.f32.mrb[41].mxu0 }
 0x566   :  { %v3703_v16 = vpop.f32.mrb[42].mxu0 }
 0x567   :  { %v3704_v41 = vadd.f32 %v17582_v59, %v3703_v16  ;;  %v3705_v32 = vpop.f32.mrb[43].mxu0  ;;  %v4471_v49 = vmax.f32 %v3701_v38, 0.0 }
 0x569   :  { %v4472_v52 = vmax.f32 %v3704_v41, 0.0 }
 0x56a   :  { %3987 = vmatmul.mubr.bf16.gmra.mrb[44].mxu1 %v15410_v44 }
 0x56b   :  { %v17729_v37 = vpack.i.bf16 %v4472_v52, %v4471_v49  ;;  %v15411_v52 = vld [vmem:[%s21581_s0 + $0xaf4] ss:$8 sps:$4 sm:$0xff]  }
 0x56c   :  { %v3708_v1 = vpop.f32.mrb[44].mxu0  ;;  %3994 = vmatprep.mubr.bf16.mxu1 %v15411_v52  ;;  %v15416_v52 = vld [vmem:[%s21581_s0 + $0xb00] ss:$8 sps:$4 sm:$0xff]  }
 0x56d   :  { %21735 = vst [vmem:[#allocation133_spill] sm:$0xff] %v17729_v37  ;;  %v3709_v61 = vadd.f32 %v17582_v59, %v3708_v1  ;;  %v3710_v47 = vpop.f32.mrb[45].mxu0 }
 0x56e   :  { %v3711_v53 = vpop.f32.mrb[46].mxu0 }
 0x56f   :  { %v3712_v16 = vadd.f32 %v17582_v59, %v3711_v53  ;;  %v3713_v38 = vpop.f32.mrb[47].mxu0  ;;  %v4473_v55 = vmax.f32 %v3709_v61, 0.0 }
 0x571   :  { %v4474_v41 = vmax.f32 %v3712_v16, 0.0 }
 0x572   :  { %3995 = vmatmul.mubr.bf16.gmra.mrb[48].mxu1 %v15413_v50 }
 0x573   :  { %v17739_v32 = vpack.i.bf16 %v4474_v41, %v4473_v55  ;;  %v15414_v41 = vld [vmem:[%s21581_s0 + $0xb04] ss:$8 sps:$4 sm:$0xff]  }
 0x574   :  { %v3716_v49 = vpop.f32.mrb[48].mxu0  ;;  %4002 = vmatprep.mubr.bf16.mxu1 %v15414_v41  ;;  %v15419_v41 = vld [vmem:[%s21581_s0 + $0xb10] ss:$8 sps:$4 sm:$0xff]  }
 0x575   :  { %21736 = vst [vmem:[#allocation134_spill] sm:$0xff] %v17739_v32  ;;  %v3717_v1 = vadd.f32 %v17582_v59, %v3716_v49  ;;  %v3718_v47 = vpop.f32.mrb[49].mxu0 }
 0x576   :  { %v3719_v37 = vpop.f32.mrb[50].mxu0 }
 0x577   :  { %v3720_v53 = vadd.f32 %v17582_v59, %v3719_v37  ;;  %v3721_v61 = vpop.f32.mrb[51].mxu0  ;;  %v4475_v44 = vmax.f32 %v3717_v1, 0.0 }
 0x579   :  { %v4476_v16 = vmax.f32 %v3720_v53, 0.0 }
 0x57a   :  { %4003 = vmatmul.mubr.bf16.gmra.mrb[52].mxu1 %v15416_v52 }
 0x57b   :  { %v17749_v38 = vpack.i.bf16 %v4476_v16, %v4475_v44  ;;  %v15417_v16 = vld [vmem:[%s21581_s0 + $0xb14] ss:$8 sps:$4 sm:$0xff]  }
 0x57c   :  { %v3724_v55 = vpop.f32.mrb[52].mxu0  ;;  %4010 = vmatprep.mubr.bf16.mxu1 %v15417_v16  ;;  %v15422_v16 = vld [vmem:[%s21581_s0 + $0xb20] ss:$8 sps:$4 sm:$0xff]  }
 0x57d   :  { %21737 = vst [vmem:[#allocation135_spill] sm:$0xff] %v17749_v38  ;;  %v3725_v49 = vadd.f32 %v17582_v59, %v3724_v55  ;;  %v3726_v47 = vpop.f32.mrb[53].mxu0 }
 0x57e   :  { %v3727_v32 = vpop.f32.mrb[54].mxu0 }
 0x57f   :  { %v3728_v37 = vadd.f32 %v17582_v59, %v3727_v32  ;;  %v3729_v1 = vpop.f32.mrb[55].mxu0  ;;  %v4477_v50 = vmax.f32 %v3725_v49, 0.0 }
 0x581   :  { %v4478_v53 = vmax.f32 %v3728_v37, 0.0 }
 0x582   :  { %4011 = vmatmul.mubr.bf16.gmra.mrb[56].mxu1 %v15419_v41 }
 0x583   :  { %v17759_v61 = vpack.i.bf16 %v4478_v53, %v4477_v50  ;;  %v15420_v53 = vld [vmem:[%s21581_s0 + $0xb24] ss:$8 sps:$4 sm:$0xff]  }
 0x584   :  { %v3732_v44 = vpop.f32.mrb[56].mxu0  ;;  %4018 = vmatprep.mubr.bf16.mxu1 %v15420_v53  ;;  %v15425_v53 = vld [vmem:[%s21581_s0 + $0xb30] ss:$8 sps:$4 sm:$0xff]  }
 0x585   :  { %21738 = vst [vmem:[#allocation136_spill] sm:$0xff] %v17759_v61  ;;  %v3733_v55 = vadd.f32 %v17582_v59, %v3732_v44  ;;  %v3734_v47 = vpop.f32.mrb[57].mxu0 }
 0x586   :  { %v3735_v38 = vpop.f32.mrb[58].mxu0 }
 0x587   :  { %v3736_v32 = vadd.f32 %v17582_v59, %v3735_v38  ;;  %v3737_v49 = vpop.f32.mrb[59].mxu0  ;;  %v4479_v52 = vmax.f32 %v3733_v55, 0.0 }
 0x589   :  { %v4480_v37 = vmax.f32 %v3736_v32, 0.0 }
 0x58a   :  { %4019 = vmatmul.mubr.bf16.gmra.mrb[60].mxu1 %v15422_v16 }
 0x58b   :  { %v17769_v1 = vpack.i.bf16 %v4480_v37, %v4479_v52  ;;  %v15423_v37 = vld [vmem:[%s21581_s0 + $0xb34] ss:$8 sps:$4 sm:$0xff]  }
 0x58c   :  { %v3740_v50 = vpop.f32.mrb[60].mxu0  ;;  %4026 = vmatprep.mubr.bf16.mxu1 %v15423_v37  ;;  %v15428_v37 = vld [vmem:[%s21581_s0 + $0xb40] ss:$8 sps:$4 sm:$0xff]  }
 0x58d   :  { %21739 = vst [vmem:[#allocation137_spill] sm:$0xff] %v17769_v1  ;;  %v3741_v44 = vadd.f32 %v17582_v59, %v3740_v50  ;;  %v3742_v47 = vpop.f32.mrb[61].mxu0 }
 0x58e   :  { %v3743_v61 = vpop.f32.mrb[62].mxu0 }
 0x58f   :  { %v3744_v38 = vadd.f32 %v17582_v59, %v3743_v61  ;;  %v3745_v55 = vpop.f32.mrb[63].mxu0  ;;  %v4481_v41 = vmax.f32 %v3741_v44, 0.0 }
 0x591   :  { %v4482_v32 = vmax.f32 %v3744_v38, 0.0 }
 0x592   :  { %4027 = vmatmul.mubr.bf16.gmra.mrb[64].mxu1 %v15425_v53 }
 0x593   :  { %v17779_v49 = vpack.i.bf16 %v4482_v32, %v4481_v41  ;;  %v15426_v32 = vld [vmem:[%s21581_s0 + $0xb44] ss:$8 sps:$4 sm:$0xff]  }
 0x594   :  { %v3748_v52 = vpop.f32.mrb[64].mxu0  ;;  %4034 = vmatprep.mubr.bf16.mxu1 %v15426_v32 }
 0x595   :  { %21740 = vst [vmem:[#allocation138_spill] sm:$0xff] %v17779_v49  ;;  %v3749_v50 = vadd.f32 %v17582_v59, %v3748_v52  ;;  %v3750_v47 = vpop.f32.mrb[65].mxu0 }
 0x596   :  { %v3751_v1 = vpop.f32.mrb[66].mxu0 }
 0x597   :  { %v3752_v61 = vadd.f32 %v17582_v59, %v3751_v1  ;;  %v3753_v44 = vpop.f32.mrb[67].mxu0  ;;  %v4483_v16 = vmax.f32 %v3749_v50, 0.0 }
 0x599   :  { %v4484_v38 = vmax.f32 %v3752_v61, 0.0 }
 0x59a   :  { %4035 = vmatmul.mubr.bf16.gmra.mrb[68].mxu1 %v15428_v37 }
 0x59b   :  { %v17789_v55 = vpack.i.bf16 %v4484_v38, %v4483_v16  ;;  %v3908_v44 = vpop.f32.mrb[4].mxu1  ;;  %4042 = vmatprep.mubr.bf16.mxu1 %v15429_v5 }
 0x59c   :  { %v3756_v41 = vpop.f32.mrb[68].mxu0  ;;  %v3909_v38 = vadd.f32 %v17582_v59, %v3908_v44 }
 0x59d   :  { %21741 = vst [vmem:[#allocation139_spill] sm:$0xff] %v17789_v55  ;;  %v3757_v52 = vadd.f32 %v17582_v59, %v3756_v41  ;;  %v3758_v47 = vpop.f32.mrb[69].mxu0  ;;  %v3910_v55 = vpop.f32.mrb[5].mxu1 }
 0x59e   :  { %v3759_v49 = vpop.f32.mrb[70].mxu0  ;;  %v3911_v47 = vpop.f32.mrb[6].mxu1 }
 0x59f   :  { %v3760_v1 = vadd.f32 %v17582_v59, %v3759_v49  ;;  %v3761_v50 = vpop.f32.mrb[71].mxu0  ;;  %v4485_v53 = vmax.f32 %v3757_v52, 0.0  ;;  %v4523_v49 = vmax.f32 %v3909_v38, 0.0  ;;  %v3912_v37 = vadd.f32 %v17582_v59, %v3911_v47  ;;  %v15431_v52 = vld [vmem:[%s21581_s0 + $0xb50] ss:$8 sps:$4 sm:$0xff]  }
 0x5a0   :  { %v15432_v38 = vld [vmem:[%s21581_s0 + $0xb64] ss:$8 sps:$4 sm:$0xff]  }
 0x5a1   :  { %v4486_v61 = vmax.f32 %v3760_v1, 0.0  ;;  %v3913_v1 = vpop.f32.mrb[7].mxu1 }
 0x5a2   :  { %4043 = vmatmul.mubr.bf16.gmra.mrb[72].mxu1 %v15431_v52 }
 0x5a3   :  { %v17799_v16 = vpack.i.bf16 %v4486_v61, %v4485_v53  ;;  %v4524_v61 = vmax.f32 %v3912_v37, 0.0  ;;  %4050 = vmatprep.mubr.bf16.mxu1 %v15432_v38 }
 0x5a4   :  { %v3764_v41 = vpop.f32.mrb[72].mxu0 }
 0x5a5   :  { %21742 = vst [vmem:[#allocation140_spill] sm:$0xff] %v17799_v16  ;;  %v3765_v32 = vadd.f32 %v17582_v59, %v3764_v41  ;;  %v3766_v28 = vpop.f32.mrb[73].mxu0  ;;  %v17811_v22 = vpack.i.bf16 %v4524_v61, %v4523_v49  ;;  %v15434_v41 = vld [vmem:[%s21581_s0 + $0xb60] ss:$8 sps:$4 sm:$0xff]  }
 0x5a6   :  { %v3767_v50 = vpop.f32.mrb[74].mxu0 }
 0x5a7   :  { %v3768_v55 = vadd.f32 %v17582_v59, %v3767_v50  ;;  %v3769_v53 = vpop.f32.mrb[75].mxu0  ;;  %v4487_v44 = vmax.f32 %v3765_v32, 0.0 }
 0x5a8   :  { %v15437_v53 = vld [vmem:[%s21581_s0 + $0xb70] ss:$8 sps:$4 sm:$0xff]  }
 0x5a9   :  { %v4488_v16 = vmax.f32 %v3768_v55, 0.0 }
 0x5aa   :  { %4051 = vmatmul.mubr.bf16.gmra.mrb[76].mxu1 %v15434_v41 }
 0x5ab   :  { %v17813_v28 = vpack.i.bf16 %v4488_v16, %v4487_v44  ;;  %v15435_v16 = vld [vmem:[%s21581_s0 + $0xb74] ss:$8 sps:$4 sm:$0xff]   ;;  %v15438_v44 = vld [vmem:[%s21581_s0 + $0xb84] ss:$8 sps:$4 sm:$0xff]  }
 0x5ac   :  { %v3772_v5 = vpop.f32.mrb[76].mxu0  ;;  %4058 = vmatprep.mubr.bf16.mxu1 %v15435_v16  ;;  %v15440_v16 = vld [vmem:[%s21581_s0 + $0xb80] ss:$8 sps:$4 sm:$0xff]  }
 0x5ad   :  { %21743 = vst [vmem:[#allocation141_spill] sm:$0xff] %v17813_v28  ;;  %v3773_v47 = vadd.f32 %v17582_v59, %v3772_v5  ;;  %v3774_v1 = vpop.f32.mrb[77].mxu0 }
 0x5ae   :  { %v3775_v37 = vpop.f32.mrb[78].mxu0 }
 0x5af   :  { %v3776_v32 = vadd.f32 %v17582_v59, %v3775_v37  ;;  %v3777_v49 = vpop.f32.mrb[79].mxu0  ;;  %v4489_v52 = vmax.f32 %v3773_v47, 0.0 }
 0x5b1   :  { %v4490_v50 = vmax.f32 %v3776_v32, 0.0 }
 0x5b2   :  { %4059 = vmatmul.mubr.bf16.gmra.mrb[80].mxu1 %v15437_v53 }
 0x5b3   :  { %v17826_v55 = vpack.i.bf16 %v4490_v50, %v4489_v52  ;;  %4066 = vmatprep.mubr.bf16.mxu1 %v15438_v44  ;;  %v15441_v44 = vld [vmem:[%s21581_s0 + $0xb94] ss:$8 sps:$4 sm:$0xff]  }
 0x5b4   :  { %v3780_v61 = vpop.f32.mrb[80].mxu0 }
 0x5b5   :  { %21744 = vst [vmem:[#allocation142_spill] sm:$0xff] %v17826_v55  ;;  %v3781_v38 = vadd.f32 %v17582_v59, %v3780_v61  ;;  %v3782_v41 = vpop.f32.mrb[81].mxu0 }
 0x5b6   :  { %v3783_v5 = vpop.f32.mrb[82].mxu0  ;;  %v3904_v41 = vadd.f32 %v17582_v59, %v17670_v31 }
 0x5b7   :  { %v3784_v1 = vadd.f32 %v17582_v59, %v3783_v5  ;;  %v3785_v47 = vpop.f32.mrb[83].mxu0  ;;  %v4491_v37 = vmax.f32 %v3781_v38, 0.0 }
 0x5b8   :  { %v4522_v5 = vmax.f32 %v3904_v41, 0.0  ;;  %v15443_v47 = vld [vmem:[%s21581_s0 + $0xb90] ss:$8 sps:$4 sm:$0xff]  }
 0x5b9   :  { %v4492_v32 = vmax.f32 %v3784_v1, 0.0 }
 0x5ba   :  { %4067 = vmatmul.mubr.bf16.gmra.mrb[84].mxu1 %v15440_v16 }
 0x5bb   :  { %v17836_v49 = vpack.i.bf16 %v4492_v32, %v4491_v37  ;;  %4074 = vmatprep.mubr.bf16.mxu1 %v15441_v44 }
 0x5bc   :  { %v17841_v52 = vpop.f32.mrb[84].mxu0 }
 0x5bd   :  { %21745 = vst [vmem:[#allocation143_spill] sm:$0xff] %v17836_v49  ;;  %21746 = vst [vmem:[#allocation144_spill] sm:$0xff] %v17841_v52  ;;  %v3790_v50 = vpop.f32.mrb[85].mxu0 }
 0x5be   :  { %v17843_v55 = vpop.f32.mrb[86].mxu0 }
 0x5bf   :  { %21747 = vst [vmem:[#allocation145_spill] sm:$0xff] %v17843_v55  ;;  %v3793_v61 = vpop.f32.mrb[87].mxu0  ;;  %v15446_v55 = vld [vmem:[%s21581_s0 + $0xba0] ss:$8 sps:$4 sm:$0xff]  }
 0x5c2   :  { %4075 = vmatmul.mubr.bf16.gmra.mrb[88].mxu1 %v15443_v47 }
 0x5c4   :  { %v3796_v53 = vpop.f32.mrb[88].mxu0 }
 0x5c5   :  { %v3797_v38 = vadd.f32 %v17582_v59, %v3796_v53  ;;  %v3798_v1 = vpop.f32.mrb[89].mxu0  ;;  %v15444_v53 = vld [vmem:[%s21581_s0 + $0xba4] ss:$8 sps:$4 sm:$0xff]  }
 0x5c6   :  { %v3799_v37 = vpop.f32.mrb[90].mxu0  ;;  %4082 = vmatprep.mubr.bf16.mxu1 %v15444_v53 }
 0x5c7   :  { %v4495_v32 = vmax.f32 %v3797_v38, 0.0  ;;  %v3801_v16 = vpop.f32.mrb[91].mxu0  ;;  %v3800_v31 = vadd.f32 %v17582_v59, %v3799_v37 }
 0x5c9   :  { %v17854_v50 = vpack.i.bf16 %v4522_v5, %v4495_v32  ;;  %v4496_v38 = vmax.f32 %v3800_v31, 0.0  ;;  %v15449_v31 = vld [vmem:[%s21581_s0 + $0xbb0] ss:$8 sps:$4 sm:$0xff]  }
 0x5ca   :  { %4083 = vmatmul.mubr.bf16.gmra.mrb[92].mxu1 %v15446_v55 }
 0x5cc   :  { %v3804_v61 = vpop.f32.mrb[92].mxu0 }
 0x5cd   :  { %v3805_v41 = vadd.f32 %v17582_v59, %v3804_v61  ;;  %v3806_v1 = vpop.f32.mrb[93].mxu0  ;;  %v15447_v61 = vld [vmem:[%s21581_s0 + $0xbb4] ss:$8 sps:$4 sm:$0xff]  }
 0x5ce   :  { %v3807_v44 = vpop.f32.mrb[94].mxu0  ;;  %4090 = vmatprep.mubr.bf16.mxu1 %v15447_v61 }
 0x5cf   :  { %v4497_v47 = vmax.f32 %v3805_v41, 0.0  ;;  %v3809_v5 = vpop.f32.mrb[95].mxu0  ;;  %v3808_v37 = vadd.f32 %v17582_v59, %v3807_v44 }
 0x5d1   :  { %v13975_v32 = vpack.i.bf16 %v4497_v47, %v4496_v38  ;;  %v4498_v55 = vmax.f32 %v3808_v37, 0.0  ;;  %v15452_v37 = vld [vmem:[%s21581_s0 + $0xbc0] ss:$8 sps:$4 sm:$0xff]  }
 0x5d2   :  { %4091 = vmatmul.mubr.bf16.gmra.mrb[96].mxu1 %v15449_v31 }
 0x5d3   :  { %13976 = vrot.lane.b32.xlu1 %v13975_v32, %s16000_s26 }
 0x5d4   :  { %v3812_v16 = vpop.f32.mrb[96].mxu0 }
 0x5d5   :  { %v3813_v1 = vadd.f32 %v17582_v59, %v3812_v16  ;;  %v3814_v52 = vpop.f32.mrb[97].mxu0 }
 0x5d6   :  { %v3815_v53 = vpop.f32.mrb[98].mxu0  ;;  %v15450_v52 = vld [vmem:[%s21581_s0 + $0xbc4] ss:$8 sps:$4 sm:$0xff]  }
 0x5d7   :  { %v4499_v41 = vmax.f32 %v3813_v1, 0.0  ;;  %v3817_v44 = vpop.f32.mrb[99].mxu0  ;;  %13981 = vrot.lane.b32.xlu1 %v16845_v56, %s15998_s17  ;;  %v3816_v47 = vadd.f32 %v17582_v59, %v3815_v53  ;;  %4098 = vmatprep.mubr.bf16.mxu1 %v15450_v52 }
 0x5d8   :  { %v15453_v44 = vld [vmem:[%s21581_s0 + $0xbd4] ss:$8 sps:$4 sm:$0xff]  }
 0x5d9   :  { %v13985_v38 = vpack.i.bf16 %v4499_v41, %v4498_v55  ;;  %v4500_v56 = vmax.f32 %v3816_v47, 0.0  ;;  %v15455_v47 = vld [vmem:[%s21581_s0 + $0xbd0] ss:$8 sps:$4 sm:$0xff]  }
 0x5da   :  { %4099 = vmatmul.mubr.bf16.gmra.mrb[100].mxu1 %v15452_v37 }
 0x5db   :  { %13986 = vrot.lane.b32.xlu1 %v13985_v38, %s16000_s26  ;;  %4106 = vmatprep.mubr.bf16.mxu1 %v15453_v44 }
 0x5dc   :  { %v3820_v5 = vpop.f32.mrb[100].mxu0 }
 0x5dd   :  { %v3821_v32 = vadd.f32 %v17582_v59, %v3820_v5  ;;  %v3822_v16 = vpop.f32.mrb[101].mxu0 }
 0x5de   :  { %v3823_v61 = vpop.f32.mrb[102].mxu0 }
 0x5df   :  { %v4501_v1 = vmax.f32 %v3821_v32, 0.0  ;;  %v3825_v31 = vpop.f32.mrb[103].mxu0  ;;  %v3824_v55 = vadd.f32 %v17582_v59, %v3823_v61 }
 0x5e0   :  { %v15456_v31 = vld [vmem:[%s21581_s0 + $0xbe4] ss:$8 sps:$4 sm:$0xff]  }
 0x5e1   :  { %v13990_v53 = vpack.i.bf16 %v4501_v1, %v4500_v56  ;;  %v4502_v32 = vmax.f32 %v3824_v55, 0.0  ;;  %v15458_v55 = vld [vmem:[%s21581_s0 + $0xbe0] ss:$8 sps:$4 sm:$0xff]  }
 0x5e2   :  { %4107 = vmatmul.mubr.bf16.gmra.mrb[104].mxu1 %v15455_v47 }
 0x5e3   :  { %13991 = vrot.lane.b32.xlu1 %v13990_v53, %s16000_s26  ;;  %4114 = vmatprep.mubr.bf16.mxu1 %v15456_v31 }
 0x5e4   :  { %v3828_v41 = vpop.f32.mrb[104].mxu0 }
 0x5e5   :  { %v3829_v38 = vadd.f32 %v17582_v59, %v3828_v41  ;;  %v3830_v5 = vpop.f32.mrb[105].mxu0 }
 0x5e6   :  { %v3831_v52 = vpop.f32.mrb[106].mxu0  ;;  %v3916_v5 = vpop.f32.mrb[8].mxu1 }
 0x5e7   :  { %v4503_v16 = vmax.f32 %v3829_v38, 0.0  ;;  %v3833_v37 = vpop.f32.mrb[107].mxu0  ;;  %v3832_v56 = vadd.f32 %v17582_v59, %v3831_v52  ;;  %v3917_v38 = vadd.f32 %v17582_v59, %v3916_v5  ;;  %v3918_v47 = vpop.f32.mrb[9].mxu1 }
 0x5e8   :  { %v3919_v37 = vpop.f32.mrb[10].mxu1 }
 0x5e9   :  { %v13995_v61 = vpack.i.bf16 %v4503_v16, %v4502_v32  ;;  %v4504_v52 = vmax.f32 %v3832_v56, 0.0  ;;  %v4525_v49 = vmax.f32 %v3917_v38, 0.0  ;;  %v15459_v56 = vld [vmem:[%s21581_s0 + $0xbf4] ss:$8 sps:$4 sm:$0xff]  }
 0x5ea   :  { %4115 = vmatmul.mubr.bf16.gmra.mrb[108].mxu1 %v15458_v55 }
 0x5eb   :  { %13996 = vrot.lane.b32.xlu1 %v13995_v61, %s16000_s26  ;;  %v3920_v61 = vadd.f32 %v17582_v59, %v3919_v37  ;;  %4122 = vmatprep.mubr.bf16.mxu1 %v15459_v56 }
 0x5ec   :  { %v3836_v1 = vpop.f32.mrb[108].mxu0 }
 0x5ed   :  { %v3837_v53 = vadd.f32 %v17582_v59, %v3836_v1  ;;  %v3838_v41 = vpop.f32.mrb[109].mxu0  ;;  %v3921_v1 = vpop.f32.mrb[11].mxu1  ;;  %v4526_v28 = vmax.f32 %v3920_v61, 0.0 }
 0x5ee   :  { %v3839_v44 = vpop.f32.mrb[110].mxu0 }
 0x5ef   :  { %v4505_v32 = vmax.f32 %v3837_v53, 0.0  ;;  %v3841_v16 = vpop.f32.mrb[111].mxu0  ;;  %14011 = vrot.lane.b32.xlu1 %v17344_v17, %s15999_s13  ;;  %v3840_v2 = vadd.f32 %v17582_v59, %v3839_v44  ;;  %v15461_v53 = vld [vmem:[%s21581_s0 + $0xbf0] ss:$8 sps:$4 sm:$0xff]   ;;  %v17915_v55 = vpack.i.bf16 %v4526_v28, %v4525_v49 }
 0x5f1   :  { %v14015_v41 = vpack.i.bf16 %v4505_v32, %v4504_v52  ;;  %v4506_v47 = vmax.f32 %v3840_v2, 0.0  ;;  %v15462_v2 = vld [vmem:[%s21581_s0 + $0xc04] ss:$8 sps:$4 sm:$0xff]  }
 0x5f2   :  { %4123 = vmatmul.mubr.bf16.gmra.mrb[112].mxu1 %v15461_v53 }
 0x5f3   :  { %14016 = vrot.lane.b32.xlu1 %v14015_v41, %s16000_s26  ;;  %v3924_v37 = vpop.f32.mrb[12].mxu1  ;;  %4130 = vmatprep.mubr.bf16.mxu1 %v15462_v2 }
 0x5f4   :  { %v3844_v5 = vpop.f32.mrb[112].mxu0  ;;  %v3925_v49 = vadd.f32 %v17582_v59, %v3924_v37  ;;  %v3926_v61 = vpop.f32.mrb[13].mxu1 }
 0x5f5   :  { %v3845_v31 = vadd.f32 %v17582_v59, %v3844_v5  ;;  %v3846_v17 = vpop.f32.mrb[113].mxu0  ;;  %v3927_v41 = vpop.f32.mrb[14].mxu1  ;;  %v15464_v5 = vld [vmem:[%s21581_s0 + $0xc00] ss:$8 sps:$4 sm:$0xff]   ;;  %v15467_v61 = vld [vmem:[%s21581_s0 + $0xc10] ss:$8 sps:$4 sm:$0xff]  }
 0x5f6   :  { %v3847_v38 = vpop.f32.mrb[114].mxu0  ;;  %v3928_v56 = vadd.f32 %v17582_v59, %v3927_v41 }
 0x5f7   :  { %v4507_v44 = vmax.f32 %v3845_v31, 0.0  ;;  %v3849_v52 = vpop.f32.mrb[115].mxu0  ;;  %14031 = vrot.lane.b32.xlu1 %v17406_v35, %s15999_s13  ;;  %v3848_v16 = vadd.f32 %v17582_v59, %v3847_v38  ;;  %v3929_v31 = vpop.f32.mrb[15].mxu1 }
 0x5f9   :  { %v14000_v32 = vpack.i.bf16 %v4507_v44, %v4506_v47  ;;  %v4508_v17 = vmax.f32 %v3848_v16, 0.0  ;;  %v4527_v47 = vmax.f32 %v3925_v49, 0.0  ;;  %v4528_v44 = vmax.f32 %v3928_v56, 0.0 }
 0x5fa   :  { %4131 = vmatmul.mubr.bf16.gmra.mrb[116].mxu1 %v15464_v5 }
 0x5fb   :  { %14036 = vrot.lane.b32.xlu1 %v16910_v43, %s15998_s17  ;;  %14001 = vrot.lane.b32.xlu0 %v14000_v32, %s16000_s26  ;;  %v17940_v16 = vpack.i.bf16 %v4528_v44, %v4527_v47 }
 0x5fc   :  { %v3852_v28 = vpop.f32.mrb[116].mxu0 }
 0x5fd   :  { %v3853_v35 = vadd.f32 %v17582_v59, %v3852_v28  ;;  %v3854_v1 = vpop.f32.mrb[117].mxu0 }
 0x5fe   :  { %v3855_v43 = vpop.f32.mrb[118].mxu0 }
 0x5ff   :  { %v4509_v53 = vmax.f32 %v3853_v35, 0.0  ;;  %v3857_v38 = vpop.f32.mrb[119].mxu0  ;;  %14061 = vrot.lane.b32.xlu1 %v17429_v40, %s15999_s13  ;;  %14006 = vrot.lane.b32.xlu0 %v17396_v29, %s15999_s13  ;;  %v3856_v32 = vadd.f32 %v17582_v59, %v3855_v43  ;;  %v15465_v40 = vld [vmem:[%s21581_s0 + $0xc14] ss:$8 sps:$4 sm:$0xff]  }
 0x600   :  { %4138 = vmatprep.mubr.bf16.mxu1 %v15465_v40 }
 0x601   :  { %v14020_v52 = vpack.i.bf16 %v4509_v53, %v4508_v17 }
 0x602   :  { %v3932_v49 = vpop.f32.mrb[16].mxu1  ;;  %4139 = vmatmul.mubr.bf16.gmra.mrb[120].mxu1 %v15467_v61 }
 0x603   :  { %14021 = vrot.lane.b32.xlu0 %v14020_v52, %s16000_s26  ;;  %14066 = vrot.lane.b32.xlu1 %v16925_v26, %s15998_s17  ;;  %v3933_v35 = vadd.f32 %v17582_v59, %v3932_v49  ;;  %v3934_v1 = vpop.f32.mrb[17].mxu1  ;;  %v4510_v26 = vmax.f32 %v3856_v32, 0.0  ;;  %v15470_v32 = vld [vmem:[%s21581_s0 + $0xc20] ss:$8 sps:$4 sm:$0xff]  }
 0x604   :  { %v3860_v37 = vpop.f32.mrb[120].mxu0  ;;  %v3935_v43 = vpop.f32.mrb[18].mxu1 }
 0x605   :  { %v3861_v29 = vadd.f32 %v17582_v59, %v3860_v37  ;;  %v3862_v28 = vpop.f32.mrb[121].mxu0  ;;  %v3936_v56 = vadd.f32 %v17582_v59, %v3935_v43  ;;  %v3937_v31 = vpop.f32.mrb[19].mxu1  ;;  %v4529_v53 = vmax.f32 %v3933_v35, 0.0 }
 0x606   :  { %v3863_v2 = vpop.f32.mrb[122].mxu0  ;;  %v15471_v31 = vld [vmem:[%s21581_s0 + $0xc34] ss:$8 sps:$4 sm:$0xff]  }
 0x607   :  { %v4511_v41 = vmax.f32 %v3861_v29, 0.0  ;;  %v3865_v5 = vpop.f32.mrb[123].mxu0  ;;  %14026 = vrot.lane.b32.xlu0 %v16900_v13, %s15998_s17  ;;  %14081 = vrot.lane.b32.xlu1 %v17854_v50, %s16000_s26  ;;  %v4530_v38 = vmax.f32 %v3936_v56, 0.0  ;;  %v3864_v47 = vadd.f32 %v17582_v59, %v3863_v2  ;;  %v15468_v13 = vld [vmem:[%s21581_s0 + $0xc24] ss:$8 sps:$4 sm:$0xff]  }
 0x608   :  { %4146 = vmatprep.mubr.bf16.mxu1 %v15468_v13 }
 0x609   :  { %v14040_v17 = vpack.i.bf16 %v4511_v41, %v4510_v26  ;;  %v17964_v37 = vpack.i.bf16 %v4530_v38, %v4529_v53  ;;  %v4512_v29 = vmax.f32 %v3864_v47, 0.0  ;;  %v15473_v38 = vld [vmem:[%s21581_s0 + $0xc30] ss:$8 sps:$4 sm:$0xff]  }
 0x60a   :  { %4147 = vmatmul.mubr.bf16.gmra.mrb[124].mxu1 %v15470_v32  ;;  %v3940_v2 = vpop.f32.mrb[20].mxu1 }
 0x60b   :  { %14041 = vrot.lane.b32.xlu0 %v14040_v17, %s16000_s26  ;;  %v3941_v35 = vadd.f32 %v17582_v59, %v3940_v2  ;;  %v3942_v1 = vpop.f32.mrb[21].mxu1  ;;  %4154 = vmatprep.mubr.bf16.mxu1 %v15471_v31 }
 0x60c   :  { %v3868_v44 = vpop.f32.mrb[124].mxu0  ;;  %v3943_v41 = vpop.f32.mrb[22].mxu1 }
 0x60d   :  { %v3869_v52 = vadd.f32 %v17582_v59, %v3868_v44  ;;  %v3870_v50 = vpop.f32.mrb[125].mxu0  ;;  %v3944_v43 = vadd.f32 %v17582_v59, %v3943_v41  ;;  %v3945_v56 = vpop.f32.mrb[23].mxu1  ;;  %v4531_v53 = vmax.f32 %v3941_v35, 0.0 }
 0x60e   :  { %v3871_v40 = vpop.f32.mrb[126].mxu0 }
 0x60f   :  { %v4513_v28 = vmax.f32 %v3869_v52, 0.0  ;;  %v3873_v49 = vpop.f32.mrb[127].mxu0  ;;  %14046 = vrot.lane.b32.xlu0 %v17416_v0, %s15999_s13  ;;  %v3872_v26 = vadd.f32 %v17582_v59, %v3871_v40  ;;  %v4532_v44 = vmax.f32 %v3944_v43, 0.0 }
 0x611   :  { %v14050_v61 = vpack.i.bf16 %v4513_v28, %v4512_v29  ;;  %v4514_v13 = vmax.f32 %v3872_v26, 0.0  ;;  %v17981_v40 = vpack.i.bf16 %v4532_v44, %v4531_v53  ;;  %v17986_v29 = vld [vmem:[%s21582_s2] ss:$0 sm:$0xff] }
 0x612   :  { %4155 = vmatmul.mubr.bf16.gmra.mrb[128].mxu1 %v15473_v38 }
 0x613   :  { %14051 = vrot.lane.b32.xlu0 %v14050_v61, %s16000_s26  ;;  %21748 = vst [vmem:[#allocation146_spill] sm:$0xff] %v17981_v40 }
 0x614   :  { %v3876_v5 = vpop.f32.mrb[128].mxu0 }
 0x615   :  { %v3877_v0 = vadd.f32 %v17582_v59, %v3876_v5  ;;  %v3878_v17 = vpop.f32.mrb[129].mxu0  ;;  %v3948_v59 = vpop.f32.mrb[24].mxu1  ;;  %v15476_v5 = vld [vmem:[%s21581_s0 + $0xc40] ss:$8 sps:$4 sm:$0xff]  }
 0x616   :  { %v3879_v47 = vpop.f32.mrb[130].mxu0  ;;  %v3950_v49 = vpop.f32.mrb[25].mxu1  ;;  %v3949_v2 = vadd.f32 %v17986_v29, %v3948_v59 }
 0x617   :  { %v4515_v52 = vmax.f32 %v3877_v0, 0.0  ;;  %v3881_v50 = vpop.f32.mrb[131].mxu0  ;;  %14056 = vrot.lane.b32.xlu0 %v16923_v62, %s15998_s17  ;;  %v3880_v28 = vadd.f32 %v17986_v29, %v3879_v47  ;;  %v3951_v35 = vpop.f32.mrb[26].mxu1  ;;  %v15474_v62 = vld [vmem:[%s21581_s0 + $0xc44] ss:$8 sps:$4 sm:$0xff]  }
 0x618   :  { %v3952_v41 = vadd.f32 %v17986_v29, %v3951_v35  ;;  %v3953_v43 = vpop.f32.mrb[27].mxu1  ;;  %v4533_v31 = vmax.f32 %v3949_v2, 0.0  ;;  %4162 = vmatprep.mubr.bf16.mxu1 %v15474_v62  ;;  %v18004_v50 = vpop.permute.xlu1 %13896  ;;  %v15479_v2 = vld [vmem:[%s21581_s0 + $0xc50] ss:$8 sps:$4 sm:$0xff]  }
 0x619   :  { %v14070_v32 = vpack.i.bf16 %v4515_v52, %v4514_v13  ;;  %v4516_v0 = vmax.f32 %v3880_v28, 0.0 }
 0x61a   :  { %v4534_v38 = vmax.f32 %v3952_v41, 0.0  ;;  %4163 = vmatmul.mubr.bf16.gmra.mrb[132].mxu1 %v15476_v5 }
 0x61b   :  { %14071 = vrot.lane.b32.xlu0 %v14070_v32, %s16000_s26  ;;  %v3901_v32 = vadd.f32 %v17986_v29, %v17666_v4 }
 0x61c   :  { %v3884_v61 = vpop.f32.mrb[132].mxu0  ;;  %v18002_v13 = vpack.i.bf16 %v4534_v38, %v4533_v31 }
 0x61d   :  { %v3885_v1 = vadd.f32 %v17986_v29, %v3884_v61  ;;  %v3886_v26 = vpop.f32.mrb[133].mxu0  ;;  %v3956_v52 = vpop.f32.mrb[28].mxu1  ;;  %v4521_v43 = vmax.f32 %v3901_v32, 0.0 }
 0x61e   :  { %v3887_v56 = vpop.f32.mrb[134].mxu0  ;;  %21749 = vst [vmem:[#allocation147_spill] sm:$0xff] %v18002_v13  ;;  %v3957_v59 = vadd.f32 %v17986_v29, %v3956_v52  ;;  %v3958_v28 = vpop.f32.mrb[29].mxu1 }
 0x61f   :  { %v4517_v17 = vmax.f32 %v3885_v1, 0.0  ;;  %14076 = vrot.lane.b32.xlu0 %v17431_v25, %s15999_s13  ;;  %v3889_v53 = vpop.f32.mrb[135].mxu0  ;;  %v3888_v44 = vadd.f32 %v17986_v29, %v3887_v56  ;;  %v15477_v25 = vld [vmem:[%s21581_s0 + $0xc54] ss:$8 sps:$4 sm:$0xff]   ;;  %v3959_v61 = vpop.f32.mrb[30].mxu1 }
 0x620   :  { %v4535_v4 = vmax.f32 %v3957_v59, 0.0  ;;  %v3960_v26 = vadd.f32 %v17986_v29, %v3959_v61  ;;  %4170 = vmatprep.mubr.bf16.mxu1 %v15477_v25  ;;  %v3961_v41 = vpop.f32.mrb[31].mxu1  ;;  %v18021_v53 = vpop.permute.xlu1 %13901  ;;  %v15480_v25 = vld [vmem:[%s21583_s3] sm:$0xff]  }
 0x621   :  { %v14085_v47 = vpack.i.bf16 %v4517_v17, %v4516_v0  ;;  %v4518_v35 = vmax.f32 %v3888_v44, 0.0  ;;  %6781 = vmatpush1.bf16.msra.mxu1 %v15480_v25 }
 0x622   :  { %v4536_v17 = vmax.f32 %v3960_v26, 0.0  ;;  %4171 = vmatmul.mubr.bf16.gmra.mrb[136].mxu1 %v15479_v2  ;;  %v21751_v26 = vmov 0  }
 0x623   :  { %14086 = vrot.lane.b32.xlu0 %v14085_v47, %s16000_s26  ;;  %6782 = vmatprep.subr.bf16.mxu1 %v21751_v26 }
 0x624   :  { %v3892_v49 = vpop.f32.mrb[136].mxu0  ;;  %v18023_v44 = vpack.i.bf16 %v4536_v17, %v4535_v4  ;;  %v15484_v4 = vld [vmem:[%s21583_s3 + $0x8] sm:$0xff]  }
 0x625   :  { %v3893_v62 = vadd.f32 %v17986_v29, %v3892_v49  ;;  %v3894_v1 = vpop.f32.mrb[137].mxu0  ;;  %v3964_v52 = vpop.f32.mrb[32].mxu1  ;;  %6783 = vmatpush1.bf16.msra.mxu1 %v15484_v4 }
 0x626   :  { %v3895_v5 = vpop.f32.mrb[138].mxu0  ;;  %21750 = vst [vmem:[#allocation148_spill] sm:$0xff] %v18023_v44  ;;  %v3966_v32 = vpop.f32.mrb[33].mxu1  ;;  %v15483_v1 = vld [vmem:[%s21581_s0 + $0xc60] ss:$8 sps:$4 sm:$0xff]   ;;  %6784 = vmatprep.subr.bf16.mxu1 %v21751_v26 }
 0x627   :  { %v4519_v56 = vmax.f32 %v3893_v62, 0.0  ;;  %14091 = vrot.lane.b32.xlu0 %v16935_v34, %s15998_s17  ;;  %v3896_v31 = vadd.f32 %v17986_v29, %v3895_v5  ;;  %v3897_v0 = vpop.f32.mrb[139].mxu0  ;;  %v3965_v34 = vadd.f32 %v17986_v29, %v3964_v52  ;;  %v3967_v28 = vpop.f32.mrb[34].mxu1  ;;  %v15488_v32 = vld [vmem:[%s21581_s0 + $0xc70] ss:$8 sps:$4 sm:$0xff]  }
 0x628   :  { %v18032_v49 = vpop.permute.xlu1 %13906  ;;  %v3968_v2 = vadd.f32 %v17986_v29, %v3967_v28  ;;  %v15489_v28 = vld [vmem:[%s21583_s3 + $0x18] sm:$0xff]  }
 0x629   :  { %v14095_v38 = vpack.i.bf16 %v4519_v56, %v4518_v35  ;;  %v4520_v47 = vmax.f32 %v3896_v31, 0.0  ;;  %v4537_v61 = vmax.f32 %v3965_v34, 0.0  ;;  %v3969_v35 = vpop.f32.mrb[35].mxu1  ;;  %v15485_v31 = vld [vmem:[%s21583_s3 + $0x10] sm:$0xff]  }
 0x62a   :  { %v4538_v62 = vmax.f32 %v3968_v2, 0.0  ;;  %6785 = vmatpush1.bf16.msra.mxu1 %v15485_v31  ;;  %v13892_v31 = vpop.permute.xlu0 %13891 }
 0x62b   :  { %v14110_v59 = vpack.i.bf16 %v4521_v43, %v4520_v47  ;;  %14106 = vrot.lane.b32.xlu0 %v17811_v22, %s16000_s26  ;;  %14096 = vrot.lane.b32.xlu1 %v14095_v38, %s16000_s26  ;;  %v15481_v22 = vld [vmem:[%s21581_s0 + $0xc64] ss:$8 sps:$4 sm:$0xff]  }
 0x62c   :  { %4178 = vmatprep.mubr.bf16.mxu1 %v15481_v22  ;;  %v18048_v41 = vpop.permute.xlu1 %13936  ;;  %v18050_v5 = vpack.i.bf16 %v4538_v62, %v4537_v61  ;;  %6786 = vmatprep.subr.bf16.mxu1 %v21751_v26  ;;  %v15490_v62 = vld [vmem:[%s21583_s3 + $0x20] sm:$0xff]  }
 0x62d   :  { %4179 = vmatmul.mubr.bf16.gmra.mrb[140].mxu1 %v15483_v1  ;;  %v3972_v43 = vpop.f32.mrb[36].mxu1 }
 0x62e   :  { %21752 = vst [vmem:[#allocation149_spill] sm:$0xff] %v18050_v5  ;;  %v3974_v56 = vpop.f32.mrb[37].mxu1  ;;  %6787 = vmatpush1.bf16.msra.mxu1 %v15489_v28  ;;  %v13894_v28 = vunpack.i.h.bf16 %v13892_v31 }
 0x62f   :  { %14111 = vrot.lane.b32.xlu0 %v14110_v59, %s16000_s26  ;;  %14101 = vrot.lane.b32.xlu1 %v17441_v11, %s15999_s13  ;;  %v3973_v11 = vadd.f32 %v17986_v29, %v3972_v43  ;;  %v3975_v0 = vpop.f32.mrb[38].mxu1  ;;  %v15486_v59 = vld [vmem:[%s21581_s0 + $0xc74] ss:$8 sps:$4 sm:$0xff]  }
 0x630   :  { %v18057_v17 = vpop.permute.xlu1 %13941  ;;  %v3976_v47 = vadd.f32 %v17986_v29, %v3975_v0  ;;  %v3977_v52 = vpop.f32.mrb[39].mxu1  ;;  %4186 = vmatprep.mubr.bf16.mxu1 %v15486_v59  ;;  %6788 = vmatprep.subr.bf16.mxu1 %v21751_v26  ;;  %v2600_v0 = vadd.f32 %v17986_v29, %v16293_v12  ;;  %v13893_v59 = vunpack.i.l.bf16 %v13892_v31 }
 0x631   :  { %v4539_v38 = vmax.f32 %v3973_v11, 0.0  ;;  %v2605_v52 = vadd.f32 %v17986_v29, %v16298_v15  ;;  %v15492_v15 = vld [vmem:[%s21583_s3 + $0x30] sm:$0xff]  }
 0x632   :  { %v4540_v34 = vmax.f32 %v3976_v47, 0.0  ;;  %6789 = vmatpush1.bf16.msra.mxu1 %v15490_v62  ;;  %v15491_v47 = vld [vmem:[%s21583_s3 + $0x28] sm:$0xff]   ;;  %v4196_v12 = vmax.f32 %v2600_v0, 0.0 }
 0x633   :  { %6790 = vmatprep.subr.bf16.mxu1 %v21751_v26 }
 0x634   :  { %v18070_v25 = vpop.permute.xlu1 %13946  ;;  %v18072_v61 = vpack.i.bf16 %v4540_v34, %v4539_v38 }
 0x635   :  { %4187 = vmatmul.mubr.bf16.gmra.mrb[144].mxu1 %v15488_v32  ;;  %v3980_v2 = vpop.f32.mrb[40].mxu1 }
 0x636   :  { %21753 = vst [vmem:[#allocation150_spill] sm:$0xff] %v18072_v61  ;;  %v3981_v35 = vadd.f32 %v17986_v29, %v3980_v2  ;;  %v3982_v22 = vpop.f32.mrb[41].mxu1  ;;  %6791 = vmatpush1.bf16.msra.mxu1 %v15491_v47 }
 0x637   :  { %v3983_v1 = vpop.f32.mrb[42].mxu1  ;;  %v13938_v22 = vunpack.i.l.bf16 %v18048_v41  ;;  %6792 = vmatprep.subr.bf16.mxu1 %v21751_v26 }
 0x638   :  { %v18079_v4 = vpop.permute.xlu1 %13951  ;;  %v4541_v43 = vmax.f32 %v3981_v35, 0.0  ;;  %v3984_v11 = vadd.f32 %v17986_v29, %v3983_v1  ;;  %v3985_v56 = vpop.f32.mrb[43].mxu1  ;;  %v13939_v35 = vunpack.i.h.bf16 %v18048_v41  ;;  %v4197_v1 = vmax.f32 %v2605_v52, 0.0 }
 0x639   :  { %v5797_v56 = vsel %vm5795_vm0, %v4196_v12, %v13893_v59  ;;  %v15493_v59 = vld [vmem:[%s21583_s3 + $0x38] sm:$0xff]  }
 0x63a   :  { %v4542_v38 = vmax.f32 %v3984_v11, 0.0  ;;  %v5798_v41 = vsel %vm5795_vm0, %v4197_v1, %v13894_v28  ;;  %6793 = vmatpush1.bf16.msra.mxu1 %v15492_v15  ;;  %v5898_v61 = vsel %vm5896_vm1, %v5797_v56, %v13938_v22 }
 0x63b   :  { %v5899_v52 = vsel %vm5896_vm1, %v5798_v41, %v13939_v35  ;;  %6794 = vmatprep.subr.bf16.mxu1 %v21751_v26 }
 0x63c   :  { %v18090_v34 = vpop.permute.xlu1 %13956  ;;  %v18092_v32 = vpack.i.bf16 %v4542_v38, %v4541_v43 }
 0x63d   :  { %v3988_v2 = vpop.f32.mrb[44].mxu1 }
 0x63e   :  { %21754 = vst [vmem:[#allocation151_spill] sm:$0xff] %v18092_v32  ;;  %v3990_v62 = vpop.f32.mrb[45].mxu1  ;;  %v3989_v43 = vadd.f32 %v17986_v29, %v3988_v2  ;;  %6795 = vmatpush1.bf16.msra.mxu1 %v15493_v59 }
 0x63f   :  { %v3991_v11 = vpop.f32.mrb[46].mxu1  ;;  %6796 = vmatprep.subr.bf16.mxu1 %v21751_v26 }
 0x640   :  { %v3992_v0 = vadd.f32 %v17986_v29, %v3991_v11  ;;  %v3993_v38 = vpop.f32.mrb[47].mxu1  ;;  %v4543_v32 = vmax.f32 %v3989_v43, 0.0  ;;  %v18126_v11 = vpop.permute.xlu0 %13911 }
 0x642   :  { %v4544_v5 = vmax.f32 %v3992_v0, 0.0  ;;  %v15495_v0 = vld [vmem:[%s21583_s3 + $0x48] sm:$0xff]  }
 0x644   :  { %v18118_v15 = vpack.i.bf16 %v4544_v5, %v4543_v32  ;;  %v18135_v38 = vpop.permute.xlu0 %13916 }
 0x645   :  { %v13977_v31 = vpop.permute.xlu1 %13976  ;;  %v3996_v35 = vpop.f32.mrb[48].mxu1 }
 0x646   :  { %v13979_v47 = vunpack.i.h.bf16 %v13977_v31  ;;  %v13978_v62 = vunpack.i.l.bf16 %v13977_v31  ;;  %21757 = vst [vmem:[#allocation154_spill] sm:$0xff] %v18118_v15  ;;  %v3997_v22 = vadd.f32 %v17986_v29, %v3996_v35  ;;  %v3998_v1 = vpop.f32.mrb[49].mxu1 }
 0x647   :  { %v3999_v43 = vpop.f32.mrb[50].mxu1 }
 0x648   :  { %v18111_v2 = vsel %vm5997_vm2, %v5898_v61, %v13978_v62  ;;  %v18114_v28 = vsel %vm5997_vm2, %v5899_v52, %v13979_v47  ;;  %v15494_v61 = vld [vmem:[%s21583_s3 + $0x40] sm:$0xff]   ;;  %v4545_v56 = vmax.f32 %v3997_v22, 0.0  ;;  %v4000_v5 = vadd.f32 %v17986_v29, %v3999_v43  ;;  %v4001_v32 = vpop.f32.mrb[51].mxu1 }
 0x649   :  { %21755 = vst [vmem:[#allocation152_spill] sm:$0xff] %v18111_v2  ;;  %21756 = vst [vmem:[#allocation153_spill] sm:$0xff] %v18114_v28  ;;  %v14115_v12 = vpack.i.bf16 %v18114_v28, %v18111_v2  ;;  %6797 = vmatpush1.bf16.msra.mxu1 %v15494_v61  ;;  %v2645_v2 = vadd.f32 %v17986_v29, %v16348_v45  ;;  %v15501_v45 = vld [vmem:[%s21583_s3 + $0x78] sm:$0xff]  }
 0x64a   :  { %v4546_v31 = vmax.f32 %v4000_v5, 0.0  ;;  %6798 = vmatprep.subr.bf16.mxu1 %v21751_v26 }
 0x64b   :  { %14116 = vrot.lane.b32.xlu1 %v14115_v12, %s16001_s10  ;;  %v18146_v12 = vpop.permute.xlu0 %13921 }
 0x64c   :  { %v18137_v41 = vpack.i.bf16 %v4546_v31, %v4545_v56 }
 0x64d   :  { %6799 = vmatpush1.bf16.msra.mxu1 %v15495_v0  ;;  %v4004_v47 = vpop.f32.mrb[52].mxu1  ;;  %v15498_v0 = vld [vmem:[%s21583_s3 + $0x60] sm:$0xff]  }
 0x64e   :  { %21758 = vst [vmem:[#allocation155_spill] sm:$0xff] %v18137_v41  ;;  %v4005_v62 = vadd.f32 %v17986_v29, %v4004_v47  ;;  %v4006_v52 = vpop.f32.mrb[53].mxu1  ;;  %6800 = vmatprep.subr.bf16.mxu1 %v21751_v26  ;;  %v4207_v41 = vmax.f32 %v2645_v2, 0.0 }
 0x64f   :  { %14131 = vrot.lane.b32.xlu1 %v16945_v20, %s15998_s17  ;;  %v15496_v20 = vld [vmem:[%s21583_s3 + $0x50] sm:$0xff]   ;;  %v4007_v59 = vpop.f32.mrb[54].mxu1  ;;  %v18153_v43 = vpop.permute.xlu0 %13926 }
 0x650   :  { %v4547_v35 = vmax.f32 %v4005_v62, 0.0  ;;  %v4008_v22 = vadd.f32 %v17986_v29, %v4007_v59  ;;  %v4009_v1 = vpop.f32.mrb[55].mxu1 }
 0x651   :  { %6801 = vmatpush1.bf16.msra.mxu1 %v15496_v20  ;;  %v2608_v1 = vadd.f32 %v17986_v29, %v16303_v18 }
 0x652   :  { %v4548_v61 = vmax.f32 %v4008_v22, 0.0  ;;  %6802 = vmatprep.subr.bf16.mxu1 %v21751_v26  ;;  %v15499_v22 = vld [vmem:[%s21583_s3 + $0x68] sm:$0xff]  }
 0x653   :  { %14141 = vrot.lane.b32.xlu1 %v17915_v55, %s16000_s26  ;;  %v15497_v55 = vld [vmem:[%s21583_s3 + $0x58] sm:$0xff]   ;;  %v18162_v62 = vpop.permute.xlu0 %13931 }
 0x654   :  { %v18155_v56 = vpack.i.bf16 %v4548_v61, %v4547_v35  ;;  %v18171_v61 = vpop.permute.xlu1 %13981 }
 0x655   :  { %6803 = vmatpush1.bf16.msra.mxu1 %v15497_v55  ;;  %v4012_v5 = vpop.f32.mrb[56].mxu1 }
 0x656   :  { %21759 = vst [vmem:[#allocation156_spill] sm:$0xff] %v18155_v56  ;;  %v4013_v32 = vadd.f32 %v17986_v29, %v4012_v5  ;;  %v4014_v31 = vpop.f32.mrb[57].mxu1  ;;  %6804 = vmatprep.subr.bf16.mxu1 %v21751_v26 }
 0x657   :  { %v4015_v47 = vpop.f32.mrb[58].mxu1  ;;  %v18173_v55 = vpop.permute.xlu0 %13961 }
 0x658   :  { %v4549_v52 = vmax.f32 %v4013_v32, 0.0  ;;  %v4016_v20 = vadd.f32 %v17986_v29, %v4015_v47  ;;  %v4017_v59 = vpop.f32.mrb[59].mxu1  ;;  %v2613_v32 = vadd.f32 %v17986_v29, %v16308_v21  ;;  %v18185_v47 = vadd.f32 %v17986_v29, %v16318_v27 }
 0x659   :  { %6805 = vmatpush1.bf16.msra.mxu1 %v15498_v0  ;;  %v18181_v0 = vadd.f32 %v17986_v29, %v16313_v24  ;;  %v4198_v21 = vmax.f32 %v2608_v1, 0.0  ;;  %v18194_v59 = vadd.f32 %v17986_v29, %v16323_v30  ;;  %v18198_v24 = vadd.f32 %v17986_v29, %v16328_v33 }
 0x65a   :  { %v4550_v35 = vmax.f32 %v4016_v20, 0.0  ;;  %6806 = vmatprep.subr.bf16.mxu1 %v21751_v26  ;;  %v4199_v30 = vmax.f32 %v2613_v32, 0.0  ;;  %v18213_v33 = vadd.f32 %v17986_v29, %v16353_v48 }
 0x65c   :  { %v18175_v5 = vpack.i.bf16 %v4550_v35, %v4549_v52  ;;  %v15500_v52 = vld [vmem:[%s21583_s3 + $0x70] sm:$0xff]   ;;  %v18202_v35 = vadd.f32 %v17986_v29, %v16333_v36  ;;  %v18217_v36 = vadd.f32 %v17986_v29, %v16358_v51  ;;  %v13899_v51 = vunpack.i.h.bf16 %v18004_v50 }
 0x65d   :  { %6807 = vmatpush1.bf16.msra.mxu1 %v15499_v22  ;;  %v4020_v31 = vpop.f32.mrb[60].mxu1  ;;  %v2640_v22 = vadd.f32 %v17986_v29, %v16343_v42  ;;  %v4208_v15 = vmax.f32 %v18213_v33, 0.0 }
 0x65e   :  { %21760 = vst [vmem:[#allocation157_spill] sm:$0xff] %v18175_v5  ;;  %v4021_v18 = vadd.f32 %v17986_v29, %v4020_v31  ;;  %v4022_v20 = vpop.f32.mrb[61].mxu1  ;;  %6808 = vmatprep.subr.bf16.mxu1 %v21751_v26  ;;  %v18206_v31 = vpop.permute.xlu0 %13966  ;;  %v4209_v48 = vmax.f32 %v18217_v36, 0.0  ;;  %v5800_v33 = vsel %vm5795_vm0, %v4199_v30, %v13899_v51  ;;  %v13904_v36 = vunpack.i.h.bf16 %v18021_v53 }
 0x65f   :  { %v4023_v27 = vpop.f32.mrb[62].mxu1  ;;  %v18219_v5 = vpop.permute.xlu1 %13986  ;;  %v4206_v56 = vmax.f32 %v2640_v22, 0.0  ;;  %v13959_v22 = vunpack.i.h.bf16 %v18090_v34 }
 0x660   :  { %v4551_v20 = vmax.f32 %v4021_v18, 0.0  ;;  %v4024_v1 = vadd.f32 %v17986_v29, %v4023_v27  ;;  %v4025_v28 = vpop.f32.mrb[63].mxu1  ;;  %v13914_v27 = vunpack.i.h.bf16 %v18126_v11 }
 0x661   :  { %6809 = vmatpush1.bf16.msra.mxu1 %v15500_v52  ;;  %v13898_v28 = vunpack.i.l.bf16 %v18004_v50  ;;  %v13913_v52 = vunpack.i.l.bf16 %v18126_v11  ;;  %v18242_v50 = vadd.f32 %v17986_v29, %v16363_v54 }
 0x662   :  { %v4552_v32 = vmax.f32 %v4024_v1, 0.0  ;;  %6810 = vmatprep.subr.bf16.mxu1 %v21751_v26  ;;  %v18234_v1 = vpop.permute.xlu0 %13971  ;;  %v5808_v42 = vsel %vm5795_vm0, %v4207_v41, %v13914_v27  ;;  %v13903_v41 = vunpack.i.l.bf16 %v18021_v53 }
 0x663   :  { %v18244_v44 = vpop.permute.xlu1 %13991  ;;  %v5799_v18 = vsel %vm5795_vm0, %v4198_v21, %v13898_v28  ;;  %v5807_v54 = vsel %vm5795_vm0, %v4206_v56, %v13913_v52  ;;  %v13943_v21 = vunpack.i.l.bf16 %v18057_v17  ;;  %v5909_v52 = vsel %vm5896_vm1, %v5808_v42, %v13959_v22 }
 0x664   :  { %v18236_v26 = vpack.i.bf16 %v4552_v32, %v4551_v20  ;;  %v13958_v20 = vunpack.i.l.bf16 %v18090_v34 }
 0x665   :  { %6811 = vmatpush1.bf16.msra.mxu1 %v15501_v45  ;;  %v4028_v11 = vpop.f32.mrb[64].mxu1  ;;  %v13944_v45 = vunpack.i.h.bf16 %v18057_v17 }
 0x666   :  { %21761 = vst [vmem:[#allocation158_spill] sm:$0xff] %v18236_v26  ;;  %v4029_v2 = vadd.f32 %v17986_v29, %v4028_v11  ;;  %v4030_v32 = vpop.f32.mrb[65].mxu1  ;;  %v13989_v11 = vunpack.i.h.bf16 %v18219_v5  ;;  %v5908_v27 = vsel %vm5896_vm1, %v5807_v54, %v13958_v20  ;;  %v5900_v20 = vsel %vm5896_vm1, %v5799_v18, %v13943_v21 }
 0x667   :  { %v4031_v26 = vpop.f32.mrb[66].mxu1  ;;  %v13988_v32 = vunpack.i.l.bf16 %v18219_v5  ;;  %v18259_v30 = vpop.permute.xlu1 %13996  ;;  %v5901_v42 = vsel %vm5896_vm1, %v5800_v33, %v13944_v45  ;;  %v18294_v18 = vadd.f32 %v17986_v29, %v16378_v63  ;;  %v21763_v21 = vmax.f32 %v18185_v47, 0.0 }
 0x668   :  { %v4553_v13 = vmax.f32 %v4029_v2, 0.0  ;;  %v4032_v34 = vadd.f32 %v17986_v29, %v4031_v26  ;;  %v4033_v56 = vpop.f32.mrb[67].mxu1  ;;  %v13919_v2 = vunpack.i.h.bf16 %v18135_v38  ;;  %v13918_v26 = vunpack.i.l.bf16 %v18135_v38 }
 0x669   :  { %v2661_v38 = vadd.f32 %v17986_v29, %v16368_v57  ;;  %v18287_v54 = vsel %vm5997_vm2, %v5900_v20, %v13988_v32  ;;  %v13964_v57 = vunpack.i.h.bf16 %v18173_v55 }
 0x66a   :  { %v4554_v17 = vmax.f32 %v4032_v34, 0.0  ;;  %v5809_v32 = vsel %vm5795_vm0, %v4208_v15, %v13918_v26  ;;  %v5810_v63 = vsel %vm5795_vm0, %v4209_v48, %v13919_v2  ;;  %v13993_v15 = vunpack.i.l.bf16 %v18244_v44 }
 0x66c   :  { %v18278_v22 = vpack.i.bf16 %v4554_v17, %v4553_v13  ;;  %v21762_v13 = vmax.f32 %v18181_v0, 0.0 }
 0x66d   :  { %v14002_v28 = vpop.permute.xlu0 %14001  ;;  %v4036_v34 = vpop.f32.mrb[68].mxu1 }
 0x66e   :  { %v14004_v51 = vunpack.i.h.bf16 %v14002_v28  ;;  %v14003_v40 = vunpack.i.l.bf16 %v14002_v28  ;;  %v18290_v28 = vsel %vm5997_vm2, %v5901_v42, %v13989_v11  ;;  %v5801_v33 = vsel %vm5795_vm0, %v21762_v13, %v13903_v41  ;;  %v4038_v45 = vpop.f32.mrb[69].mxu1 }
 0x66f   :  { %v5802_v11 = vsel %vm5795_vm0, %v21763_v21, %v13904_v36  ;;  %v4037_v0 = vadd.f32 %v17986_v29, %v4036_v34  ;;  %v4039_v56 = vpop.f32.mrb[70].mxu1  ;;  %v13949_v41 = vunpack.i.h.bf16 %v18070_v25  ;;  %v13994_v36 = vunpack.i.h.bf16 %v18244_v44 }
 0x670   :  { %v18267_v23 = vsel %vm5997_vm2, %v5908_v27, %v14003_v40  ;;  %v18270_v5 = vsel %vm5997_vm2, %v5909_v52, %v14004_v51  ;;  %v18284_v40 = vadd.f32 %v17986_v29, %v16373_v60  ;;  %v13963_v60 = vunpack.i.l.bf16 %v18173_v55  ;;  %v18307_v51 = vpop.permute.xlu1 %14011  ;;  %v4041_v2 = vpop.f32.mrb[71].mxu1 }
 0x671   :  { %v18272_v19 = vpop.permute.xlu0 %14006  ;;  %v14120_v53 = vpack.i.bf16 %v18270_v5, %v18267_v23  ;;  %v13948_v55 = vunpack.i.l.bf16 %v18070_v25  ;;  %v14125_v52 = vpack.i.bf16 %v18290_v28, %v18287_v54  ;;  %v4040_v47 = vadd.f32 %v17986_v29, %v4039_v56 }
 0x672   :  { %v5910_v26 = vsel %vm5896_vm1, %v5809_v32, %v13963_v60  ;;  %v4555_v25 = vmax.f32 %v4037_v0, 0.0  ;;  %v13924_v42 = vunpack.i.h.bf16 %v18146_v12  ;;  %v13923_v34 = vunpack.i.l.bf16 %v18146_v12 }
 0x673   :  { %14121 = vrot.lane.b32.xlu0 %v14120_v53, %s16001_s10  ;;  %v5911_v53 = vsel %vm5896_vm1, %v5810_v63, %v13964_v57  ;;  %v4556_v20 = vmax.f32 %v4040_v47, 0.0  ;;  %v5902_v60 = vsel %vm5896_vm1, %v5801_v33, %v13948_v55  ;;  %v5903_v57 = vsel %vm5896_vm1, %v5802_v11, %v13949_v41 }
 0x674   :  { %v18338_v12 = vadd.f32 %v17986_v29, %v16338_v39  ;;  %v4210_v63 = vmax.f32 %v18242_v50, 0.0  ;;  %v18341_v0 = vpop.permute.xlu1 %14016  ;;  %v18344_v56 = vsel %vm5997_vm2, %v5902_v60, %v13993_v15  ;;  %v4212_v33 = vmax.f32 %v18284_v40, 0.0 }
 0x675   :  { %v14022_v27 = vpop.permute.xlu0 %14021  ;;  %v18334_v32 = vpack.i.bf16 %v4556_v20, %v4555_v25  ;;  %v13969_v11 = vunpack.i.h.bf16 %v18206_v31  ;;  %v13968_v41 = vunpack.i.l.bf16 %v18206_v31  ;;  %v4044_v39 = vpop.f32.mrb[72].mxu1  ;;  %v4213_v50 = vmax.f32 %v18294_v18, 0.0 }
 0x676   :  { %v14024_v48 = vunpack.i.h.bf16 %v14022_v27  ;;  %v14023_v17 = vunpack.i.l.bf16 %v14022_v27  ;;  %v18347_v27 = vsel %vm5997_vm2, %v5903_v57, %v13994_v36  ;;  %v13909_v55 = vunpack.i.h.bf16 %v18032_v49  ;;  %v4046_v36 = vpop.f32.mrb[73].mxu1 }
 0x677   :  { %14126 = vrot.lane.b32.xlu0 %v14125_v52, %s16001_s10  ;;  %v4211_v52 = vmax.f32 %v2661_v38, 0.0  ;;  %v13908_v47 = vunpack.i.l.bf16 %v18032_v49  ;;  %v4045_v38 = vadd.f32 %v17986_v29, %v4044_v39  ;;  %v5811_v40 = vsel %vm5795_vm0, %v4210_v63, %v13923_v34 }
 0x678   :  { %v18323_v13 = vsel %vm5997_vm2, %v5910_v26, %v14023_v17  ;;  %v18326_v44 = vsel %vm5997_vm2, %v5911_v53, %v14024_v48  ;;  %v13929_v31 = vunpack.i.h.bf16 %v18153_v43  ;;  %v4047_v17 = vpop.f32.mrb[74].mxu1  ;;  %v13928_v25 = vunpack.i.l.bf16 %v18153_v43  ;;  %v18373_v60 = vpop.permute.xlu1 %14031 }
 0x679   :  { %v18328_v45 = vpop.permute.xlu0 %14026  ;;  %v14145_v21 = vpack.i.bf16 %v18326_v44, %v18323_v13  ;;  %v5812_v15 = vsel %vm5795_vm0, %v4211_v52, %v13924_v42  ;;  %v4557_v26 = vmax.f32 %v4045_v38, 0.0  ;;  %v4048_v53 = vadd.f32 %v17986_v29, %v4047_v17  ;;  %v4049_v49 = vpop.f32.mrb[75].mxu1 }
 0x67a   :  { %v13954_v20 = vunpack.i.h.bf16 %v18079_v4  ;;  %v5912_v42 = vsel %vm5896_vm1, %v5811_v40, %v13968_v41  ;;  %v5913_v34 = vsel %vm5896_vm1, %v5812_v15, %v13969_v11  ;;  %v13999_v52 = vunpack.i.h.bf16 %v18259_v30 }
 0x67b   :  { %14136 = vrot.lane.b32.xlu0 %v17451_v9, %s15999_s13  ;;  %14146 = vrot.lane.b32.xlu1 %v14145_v21, %s16001_s10  ;;  %v14150_v9 = vpack.i.bf16 %v18347_v27, %v18344_v56  ;;  %v13953_v21 = vunpack.i.l.bf16 %v18079_v4  ;;  %v4558_v63 = vmax.f32 %v4048_v53, 0.0  ;;  %v13998_v41 = vunpack.i.l.bf16 %v18259_v30 }
 0x67c   :  { %v2677_v11 = vadd.f32 %v17986_v29, %v16388_v6  ;;  %v21764_v38 = vmax.f32 %v18194_v59, 0.0  ;;  %v13973_v40 = vunpack.i.l.bf16 %v18234_v1  ;;  %v13974_v17 = vunpack.i.h.bf16 %v18234_v1 }
 0x67d   :  { %v14042_v48 = vpop.permute.xlu0 %14041  ;;  %v18395_v15 = vpack.i.bf16 %v4558_v63, %v4557_v26 }
 0x67e   :  { %v14044_v2 = vunpack.i.h.bf16 %v14042_v48  ;;  %v14043_v18 = vunpack.i.l.bf16 %v14042_v48  ;;  %v5803_v36 = vsel %vm5795_vm0, %v21764_v38, %v13908_v47  ;;  %v21765_v48 = vmax.f32 %v18198_v24, 0.0 }
 0x67f   :  { %14156 = vrot.lane.b32.xlu0 %v16955_v7, %s15998_s17  ;;  %14151 = vrot.lane.b32.xlu1 %v14150_v9, %s16001_s10  ;;  %v2672_v7 = vadd.f32 %v17986_v29, %v16383_v3  ;;  %v4052_v3 = vpop.f32.mrb[76].mxu1  ;;  %v5813_v9 = vsel %vm5795_vm0, %v4212_v33, %v13928_v25  ;;  %v5814_v47 = vsel %vm5795_vm0, %v4213_v50, %v13929_v31  ;;  %v13933_v50 = vunpack.i.l.bf16 %v18162_v62  ;;  %v18418_v31 = vpop.permute.xlu1 %14036 }
 0x680   :  { %v18376_v57 = vsel %vm5997_vm2, %v5912_v42, %v14043_v18  ;;  %v18379_v43 = vsel %vm5997_vm2, %v5913_v34, %v14044_v2  ;;  %v5804_v30 = vsel %vm5795_vm0, %v21765_v48, %v13909_v55  ;;  %v4053_v6 = vadd.f32 %v17986_v29, %v4052_v3  ;;  %v4054_v59 = vpop.f32.mrb[77].mxu1 }
 0x681   :  { %v18385_v39 = vpop.permute.xlu0 %14046  ;;  %v14165_v4 = vpack.i.bf16 %v18379_v43, %v18376_v57  ;;  %v13934_v2 = vunpack.i.h.bf16 %v18162_v62  ;;  %v5904_v24 = vsel %vm5896_vm1, %v5803_v36, %v13953_v21  ;;  %v5905_v55 = vsel %vm5896_vm1, %v5804_v30, %v13954_v20  ;;  %v4055_v18 = vpop.f32.mrb[78].mxu1 }
 0x682   :  { %v18411_v1 = vsel %vm5997_vm2, %v5904_v24, %v13998_v41  ;;  %v18414_v26 = vsel %vm5997_vm2, %v5905_v55, %v13999_v52  ;;  %v4056_v53 = vadd.f32 %v17986_v29, %v4055_v18  ;;  %v4057_v49 = vpop.f32.mrb[79].mxu1  ;;  %v5914_v20 = vsel %vm5896_vm1, %v5813_v9, %v13973_v40 }
 0x683   :  { %14166 = vrot.lane.b32.xlu0 %v14165_v4, %s16001_s10  ;;  %14161 = vrot.lane.b32.xlu1 %v17461_v46, %s15999_s13  ;;  %v4559_v46 = vmax.f32 %v4053_v6, 0.0  ;;  %v13984_v34 = vunpack.i.h.bf16 %v18171_v61  ;;  %v13983_v21 = vunpack.i.l.bf16 %v18171_v61  ;;  %v5915_v63 = vsel %vm5896_vm1, %v5814_v47, %v13974_v17 }
 0x684   :  { %v4560_v52 = vmax.f32 %v4056_v53, 0.0  ;;  %v14013_v62 = vunpack.i.l.bf16 %v18307_v51  ;;  %v14175_v41 = vpack.i.bf16 %v18414_v26, %v18411_v1  ;;  %v14014_v61 = vunpack.i.h.bf16 %v18307_v51 }
 0x685   :  { %v14052_v33 = vpop.permute.xlu0 %14051  ;;  %v4205_v3 = vmax.f32 %v18338_v12, 0.0  ;;  %v4214_v48 = vmax.f32 %v2672_v7, 0.0  ;;  %v4215_v30 = vmax.f32 %v2677_v11, 0.0  ;;  %v14019_v9 = vunpack.i.h.bf16 %v18341_v0  ;;  %v4060_v12 = vpop.f32.mrb[80].mxu1 }
 0x686   :  { %v14054_v25 = vunpack.i.h.bf16 %v14052_v33  ;;  %v14053_v42 = vunpack.i.l.bf16 %v14052_v33  ;;  %v18443_v40 = vpack.i.bf16 %v4560_v52, %v4559_v46  ;;  %v2680_v17 = vadd.f32 %v17986_v29, %v16393_v10  ;;  %v18460_v11 = vpop.permute.xlu1 %14061  ;;  %v4062_v24 = vpop.f32.mrb[81].mxu1 }
 0x687   :  { %14171 = vrot.lane.b32.xlu0 %v17940_v16, %s16000_s26  ;;  %14181 = vrot.lane.b32.xlu1 %v16965_v8, %s15998_s17  ;;  %v14018_v16 = vunpack.i.l.bf16 %v18341_v0  ;;  %v21766_v51 = vmax.f32 %v18202_v35, 0.0  ;;  %v14009_v59 = vunpack.i.h.bf16 %v18272_v19  ;;  %v14008_v47 = vunpack.i.l.bf16 %v18272_v19 }
 0x688   :  { %v18432_v4 = vsel %vm5997_vm2, %v5914_v20, %v14053_v42  ;;  %v18435_v38 = vsel %vm5997_vm2, %v5915_v63, %v14054_v25  ;;  %v2685_v7 = vadd.f32 %v17986_v29, %v16398_v14  ;;  %v5815_v0 = vsel %vm5795_vm0, %v4214_v48, %v13933_v50  ;;  %v4063_v14 = vpop.f32.mrb[82].mxu1 }
 0x689   :  { %v18439_v36 = vpop.permute.xlu0 %14056  ;;  %v14190_v8 = vpack.i.bf16 %v18435_v38, %v18432_v4  ;;  %v5805_v6 = vsel %vm5795_vm0, %v21766_v51, %v13983_v21  ;;  %v5806_v10 = vsel %vm5795_vm0, %v4205_v3, %v13984_v34  ;;  %v5816_v55 = vsel %vm5795_vm0, %v4215_v30, %v13934_v2  ;;  %v4065_v42 = vpop.f32.mrb[83].mxu1 }
 0x68a   :  { %v5906_v35 = vsel %vm5896_vm1, %v5805_v6, %v14013_v62  ;;  %v5907_v18 = vsel %vm5896_vm1, %v5806_v10, %v14014_v61  ;;  %v4061_v46 = vadd.f32 %v17986_v29, %v4060_v12  ;;  %v4064_v25 = vadd.f32 %v17986_v29, %v4063_v14  ;;  %v21770_v14 = vld [vmem:[#allocation113_spill] sm:$0xff] }
 0x68b   :  { %14176 = vrot.lane.b32.xlu0 %v14175_v41, %s16001_s10  ;;  %14191 = vrot.lane.b32.xlu1 %v14190_v8, %s16001_s10  ;;  %v18466_v33 = vsel %vm5997_vm2, %v5906_v35, %v14018_v16  ;;  %v18470_v50 = vsel %vm5997_vm2, %v5907_v18, %v14019_v9  ;;  %v14029_v20 = vunpack.i.h.bf16 %v18328_v45  ;;  %v5916_v2 = vsel %vm5896_vm1, %v5815_v0, %v14008_v47  ;;  %v21768_v18 = vld [vmem:[#allocation4_spill] sm:$0xff] }
 0x68c   :  { %v5917_v34 = vsel %vm5896_vm1, %v5816_v55, %v14009_v59  ;;  %v4561_v21 = vmax.f32 %v4061_v46, 0.0  ;;  %v14028_v63 = vunpack.i.l.bf16 %v18328_v45  ;;  %v4562_v41 = vmax.f32 %v4064_v25, 0.0  ;;  %v18495_v45 = vpop.permute.xlu1 %14066  ;;  %v21769_v46 = vld [vmem:[#allocation80_spill] sm:$0xff] }
 0x68d   :  { %v14072_v19 = vpop.permute.xlu0 %14071  ;;  %v4216_v16 = vmax.f32 %v2680_v17, 0.0  ;;  %v4217_v8 = vmax.f32 %v2685_v7, 0.0  ;;  %v4068_v48 = vpop.f32.mrb[84].mxu1  ;;  %v14034_v6 = vunpack.i.h.bf16 %v18373_v60  ;;  %v14033_v59 = vunpack.i.l.bf16 %v18373_v60  ;;  %v21767_v7 = vld [vmem:[#allocation3_spill] sm:$0xff] }
 0x68e   :  { %v14074_v53 = vunpack.i.h.bf16 %v14072_v19  ;;  %v14073_v49 = vunpack.i.l.bf16 %v14072_v19  ;;  %v18493_v3 = vpack.i.bf16 %v4562_v41, %v4561_v21  ;;  %v4070_v51 = vpop.f32.mrb[85].mxu1  ;;  %v4069_v47 = vadd.f32 %v17986_v29, %v4068_v48  ;;  %v18510_v19 = vld [vmem:[%s21582_s2] ss:$0 sm:$0xff] }
 0x68f   :  { %14186 = vrot.lane.b32.xlu0 %v17471_v58, %s15999_s13  ;;  %14196 = vrot.lane.b32.xlu1 %v17964_v37, %s16000_s26  ;;  %v14200_v37 = vpack.i.bf16 %v18470_v50, %v18466_v33  ;;  %v5817_v30 = vsel %vm5795_vm0, %v4216_v16, %v14028_v63  ;;  %v5818_v9 = vsel %vm5795_vm0, %v4217_v8, %v14029_v20  ;;  %v4071_v12 = vpop.f32.mrb[86].mxu1  ;;  %v14049_v8 = vunpack.i.h.bf16 %v18385_v39 }
 0x690   :  { %v18482_v52 = vsel %vm5997_vm2, %v5916_v2, %v14073_v49  ;;  %v18485_v62 = vsel %vm5997_vm2, %v5917_v34, %v14074_v53  ;;  %v2688_v0 = vadd.f32 %v17986_v29, %v21767_v7  ;;  %v4072_v24 = vadd.f32 %v17986_v29, %v4071_v12  ;;  %v4073_v55 = vpop.f32.mrb[87].mxu1  ;;  %v18528_v21 = vpop.permute.xlu1 %14081 }
 0x691   :  { %v18487_v61 = vpop.permute.xlu0 %14076  ;;  %v14205_v58 = vpack.i.bf16 %v18485_v62, %v18482_v52  ;;  %v2693_v60 = vadd.f32 %v18510_v19, %v21768_v18  ;;  %v5918_v53 = vsel %vm5896_vm1, %v5817_v30, %v14033_v59  ;;  %v5919_v49 = vsel %vm5896_vm1, %v5818_v9, %v14034_v6  ;;  %v21771_v30 = vld [vmem:[#allocation146_spill] sm:$0xff]  ;;  %v21772_v9 = vld [vmem:[#allocation5_spill] sm:$0xff] }
 0x692   :  { %v4563_v29 = vmax.f32 %v4069_v47, 0.0  ;;  %v4564_v20 = vmax.f32 %v4072_v24, 0.0  ;;  %v14039_v2 = vunpack.i.h.bf16 %v18418_v31  ;;  %v14038_v34 = vunpack.i.l.bf16 %v18418_v31  ;;  %v21773_v6 = vld [vmem:[#allocation6_spill] sm:$0xff] }
 0x693   :  { %14206 = vrot.lane.b32.xlu0 %v14205_v58, %s16001_s10  ;;  %14201 = vrot.lane.b32.xlu1 %v14200_v37, %s16001_s10  ;;  %v4218_v37 = vmax.f32 %v2688_v0, 0.0  ;;  %v4219_v16 = vmax.f32 %v2693_v60, 0.0  ;;  %v14048_v48 = vunpack.i.l.bf16 %v18385_v39  ;;  %v2696_v51 = vadd.f32 %v18510_v19, %v21772_v9  ;;  %v21774_v60 = vld [vmem:[#allocation81_spill] sm:$0xff] }
 0x694   :  { %v18534_v58 = vpack.i.bf16 %v4564_v20, %v4563_v29  ;;  %v2701_v59 = vadd.f32 %v18510_v19, %v21773_v6  ;;  %v14063_v6 = vunpack.i.l.bf16 %v18460_v11 }
 0x695   :  { %v14087_v17 = vpop.permute.xlu0 %14086  ;;  %v4076_v31 = vpop.f32.mrb[88].mxu1  ;;  %v5819_v47 = vsel %vm5795_vm0, %v4218_v37, %v14038_v34  ;;  %v5820_v12 = vsel %vm5795_vm0, %v4219_v16, %v14039_v2  ;;  %v4220_v2 = vmax.f32 %v2696_v51, 0.0  ;;  %v14064_v51 = vunpack.i.h.bf16 %v18460_v11 }
 0x696   :  { %v14089_v10 = vunpack.i.h.bf16 %v14087_v17  ;;  %v14088_v35 = vunpack.i.l.bf16 %v14087_v17  ;;  %v4078_v17 = vpop.f32.mrb[89].mxu1  ;;  %v4077_v0 = vadd.f32 %v18510_v19, %v4076_v31  ;;  %v4221_v34 = vmax.f32 %v2701_v59, 0.0  ;;  %v21776_v59 = vld [vmem:[#allocation147_spill] sm:$0xff] }
 0x697   :  { %14211 = vrot.lane.b32.xlu0 %v21769_v46, %s15998_s17  ;;  %14216 = vrot.lane.b32.xlu1 %v21770_v14, %s15999_s13  ;;  %v4079_v18 = vpop.f32.mrb[90].mxu1  ;;  %v21775_v46 = vld [vmem:[#allocation114_spill] sm:$0xff]  ;;  %v5920_v14 = vsel %vm5896_vm1, %v5819_v47, %v14048_v48 }
 0x698   :  { %v18521_v25 = vsel %vm5997_vm2, %v5918_v53, %v14088_v35  ;;  %v18524_v42 = vsel %vm5997_vm2, %v5919_v49, %v14089_v10  ;;  %v14059_v10 = vunpack.i.h.bf16 %v18439_v36  ;;  %v14058_v35 = vunpack.i.l.bf16 %v18439_v36  ;;  %v4081_v20 = vpop.f32.mrb[91].mxu1 }
 0x699   :  { %v18530_v63 = vpop.permute.xlu0 %14091  ;;  %v14230_v41 = vpack.i.bf16 %v18524_v42, %v18521_v25  ;;  %v5921_v53 = vsel %vm5896_vm1, %v5820_v12, %v14049_v8  ;;  %v4565_v49 = vmax.f32 %v4077_v0, 0.0  ;;  %v4080_v29 = vadd.f32 %v18510_v19, %v4079_v18  ;;  %v21777_v12 = vld [vmem:[#allocation8_spill] sm:$0xff] }
 0x69a   :  { %v5821_v48 = vsel %vm5795_vm0, %v4220_v2, %v14058_v35  ;;  %v5822_v8 = vsel %vm5795_vm0, %v4221_v34, %v14059_v10  ;;  %v21778_v35 = vld [vmem:[#allocation7_spill] sm:$0xff]  ;;  %v21779_v2 = vld [vmem:[#allocation82_spill] sm:$0xff] }
 0x69b   :  { %14221 = vrot.lane.b32.xlu0 %v21771_v30, %s16000_s26  ;;  %14231 = vrot.lane.b32.xlu1 %v14230_v41, %s16001_s10  ;;  %v4566_v30 = vmax.f32 %v4080_v29, 0.0  ;;  %v5923_v11 = vsel %vm5896_vm1, %v5822_v8, %v14064_v51  ;;  %v21780_v34 = vld [vmem:[#allocation115_spill] sm:$0xff]  ;;  %v14079_v8 = vunpack.i.h.bf16 %v18487_v61 }
 0x69d   :  { %v18547_v7 = vpop.permute.xlu0 %14106  ;;  %v14097_v39 = vpop.permute.xlu1 %14096  ;;  %v18574_v17 = vpack.i.bf16 %v4566_v30, %v4565_v49  ;;  %v14069_v30 = vunpack.i.h.bf16 %v18495_v45 }
 0x69e   :  { %v14099_v24 = vunpack.i.h.bf16 %v14097_v39  ;;  %v14098_v55 = vunpack.i.l.bf16 %v14097_v39  ;;  %v4084_v47 = vpop.f32.mrb[92].mxu1  ;;  %v2709_v39 = vadd.f32 %v18510_v19, %v21777_v12 }
 0x69f   :  { %14226 = vrot.lane.b32.xlu0 %v21774_v60, %s15998_s17  ;;  %14236 = vrot.lane.b32.xlu1 %v21775_v46, %s15999_s13  ;;  %v4086_v10 = vpop.f32.mrb[93].mxu1  ;;  %v4085_v18 = vadd.f32 %v18510_v19, %v4084_v47  ;;  %v14093_v46 = vunpack.i.l.bf16 %v18530_v63  ;;  %v21781_v47 = vld [vmem:[#allocation148_spill] sm:$0xff] }
 0x6a0   :  { %v18560_v36 = vsel %vm5997_vm2, %v5920_v14, %v14098_v55  ;;  %v18563_v41 = vsel %vm5997_vm2, %v5921_v53, %v14099_v24  ;;  %v2704_v24 = vadd.f32 %v18510_v19, %v21778_v35  ;;  %v5922_v55 = vsel %vm5896_vm1, %v5821_v48, %v14063_v6  ;;  %v4087_v60 = vpop.f32.mrb[94].mxu1 }
 0x6a1   :  { %v14112_v37 = vpop.permute.xlu0 %14111  ;;  %v14250_v16 = vpack.i.bf16 %v18563_v41, %v18560_v36  ;;  %v18578_v0 = vpop.permute.xlu1 %14101  ;;  %v4088_v49 = vadd.f32 %v18510_v19, %v4087_v60  ;;  %v14108_v6 = vunpack.i.l.bf16 %v18547_v7 }
 0x6a2   :  { %v14114_v31 = vunpack.i.h.bf16 %v14112_v37  ;;  %v14113_v9 = vunpack.i.l.bf16 %v14112_v37  ;;  %v4089_v29 = vpop.f32.mrb[95].mxu1  ;;  %v14103_v20 = vunpack.i.l.bf16 %v18578_v0  ;;  %v4567_v37 = vmax.f32 %v4085_v18, 0.0 }
 0x6a3   :  { %14241 = vrot.lane.b32.xlu0 %v21776_v59, %s16000_s26  ;;  %14251 = vrot.lane.b32.xlu1 %v14250_v16, %s16001_s10  ;;  %v4223_v16 = vmax.f32 %v2709_v39, 0.0  ;;  %v4568_v48 = vmax.f32 %v4088_v49, 0.0  ;;  %v14084_v18 = vunpack.i.h.bf16 %v18528_v21  ;;  %v21783_v29 = vld [vmem:[#allocation83_spill] sm:$0xff] }
 0x6a4   :  { %v18587_v14 = vsel %vm5997_vm2, %v5922_v55, %v14113_v9  ;;  %v18590_v53 = vsel %vm5997_vm2, %v5923_v11, %v14114_v31  ;;  %v4222_v9 = vmax.f32 %v2704_v24, 0.0 }
 0x6a5   :  { %v14270_v31 = vpack.i.bf16 %v18590_v53, %v18587_v14  ;;  %v5824_v51 = vsel %vm5795_vm0, %v4223_v16, %v14093_v46  ;;  %v18604_v59 = vpack.i.bf16 %v4568_v48, %v4567_v37  ;;  %v4092_v39 = vpop.f32.mrb[96].mxu1  ;;  %v21785_v48 = vld [vmem:[#allocation149_spill] sm:$0xff] }
 0x6a6   :  { %v5925_v12 = vsel %vm5896_vm1, %v5824_v51, %v14103_v20  ;;  %v5823_v10 = vsel %vm5795_vm0, %v4222_v9, %v14069_v30  ;;  %v4094_v35 = vpop.f32.mrb[97].mxu1  ;;  %v4093_v24 = vadd.f32 %v18510_v19, %v4092_v39  ;;  %v21784_v20 = vld [vmem:[#allocation116_spill] sm:$0xff] }
 0x6a7   :  { %14246 = vrot.lane.b32.xlu0 %v21779_v2, %s15998_s17  ;;  %14256 = vrot.lane.b32.xlu1 %v21780_v34, %s15999_s13  ;;  %v5924_v55 = vsel %vm5896_vm1, %v5823_v10, %v14079_v8  ;;  %v4095_v11 = vpop.f32.mrb[98].mxu1  ;;  %v18615_v60 = vsel %vm5997_vm2, %v5925_v12, %v14108_v6  ;;  %v21786_v39 = vld [vmem:[#allocation84_spill] sm:$0xff]  ;;  %v21787_v10 = vld [vmem:[#allocation117_spill] sm:$0xff] }
 0x6a8   :  { %21782 = vst [vmem:[#allocation3_spill] sm:$0xff] %v18615_v60  ;;  %v4096_v46 = vadd.f32 %v18510_v19, %v4095_v11  ;;  %v4097_v49 = vpop.f32.mrb[99].mxu1  ;;  %v4569_v2 = vmax.f32 %v4093_v24, 0.0  ;;  %v18623_v34 = vsel %vm5997_vm2, %v5924_v55, %v14084_v18  ;;  %v21788_v24 = vld [vmem:[#allocation150_spill] sm:$0xff] }
 0x6a9   :  { %v14285_v16 = vpack.i.bf16 %v18615_v60, %v18623_v34  ;;  %v21804_v60 = vld [vmem:[#allocation10_spill] sm:$0xff] }
 0x6aa   :  { %v4570_v37 = vmax.f32 %v4096_v46, 0.0 }
 0x6ab   :  { %14261 = vrot.lane.b32.xlu0 %v21781_v47, %s16000_s26  ;;  %14271 = vrot.lane.b32.xlu1 %v14270_v31, %s16001_s10 }
 0x6ac   :  { %v18627_v30 = vpack.i.bf16 %v4570_v37, %v4569_v2  ;;  %v21789_v37 = vld [vmem:[#allocation85_spill] sm:$0xff] }
 0x6ad   :  { %v4100_v8 = vpop.f32.mrb[100].mxu1 }
 0x6ae   :  { %v4101_v31 = vadd.f32 %v18510_v19, %v4100_v8  ;;  %v4102_v9 = vpop.f32.mrb[101].mxu1  ;;  %v21790_v8 = vld [vmem:[#allocation151_spill] sm:$0xff] }
 0x6af   :  { %14266 = vrot.lane.b32.xlu0 %v21783_v29, %s15998_s17  ;;  %14276 = vrot.lane.b32.xlu1 %v21784_v20, %s15999_s13  ;;  %v4103_v51 = vpop.f32.mrb[102].mxu1 }
 0x6b0   :  { %v4571_v6 = vmax.f32 %v4101_v31, 0.0  ;;  %v4104_v47 = vadd.f32 %v18510_v19, %v4103_v51  ;;  %v4105_v12 = vpop.f32.mrb[103].mxu1 }
 0x6b2   :  { %v4572_v35 = vmax.f32 %v4104_v47, 0.0 }
 0x6b3   :  { %14281 = vrot.lane.b32.xlu0 %v21785_v48, %s16000_s26  ;;  %14286 = vrot.lane.b32.xlu1 %v14285_v16, %s16001_s10 }
 0x6b4   :  { %v18638_v55 = vpack.i.bf16 %v4572_v35, %v4571_v6 }
 0x6b5   :  { %v4108_v11 = vpop.f32.mrb[104].mxu1 }
 0x6b6   :  { %v4109_v18 = vadd.f32 %v18510_v19, %v4108_v11  ;;  %v4110_v46 = vpop.f32.mrb[105].mxu1  ;;  %v21792_v11 = vld [vmem:[#allocation154_spill] sm:$0xff] }
 0x6b7   :  { %14291 = vrot.lane.b32.xlu0 %v21786_v39, %s15998_s17  ;;  %14296 = vrot.lane.b32.xlu1 %v21787_v10, %s15999_s13  ;;  %v4111_v49 = vpop.f32.mrb[106].mxu1  ;;  %v21791_v10 = vld [vmem:[#allocation86_spill] sm:$0xff] }
 0x6b8   :  { %v4573_v29 = vmax.f32 %v4109_v18, 0.0  ;;  %v4112_v20 = vadd.f32 %v18510_v19, %v4111_v49  ;;  %v4113_v2 = vpop.f32.mrb[107].mxu1 }
 0x6ba   :  { %v4574_v16 = vmax.f32 %v4112_v20, 0.0 }
 0x6bb   :  { %14301 = vrot.lane.b32.xlu0 %v21788_v24, %s16000_s26 }
 0x6bc   :  { %v18646_v48 = vpack.i.bf16 %v4574_v16, %v4573_v29  ;;  %v21793_v16 = vld [vmem:[#allocation87_spill] sm:$0xff] }
 0x6bd   :  { %v4116_v31 = vpop.f32.mrb[108].mxu1 }
 0x6be   :  { %v4117_v9 = vadd.f32 %v18510_v19, %v4116_v31  ;;  %v4118_v51 = vpop.f32.mrb[109].mxu1 }
 0x6bf   :  { %14311 = vrot.lane.b32.xlu0 %v21789_v37, %s15998_s17  ;;  %v4119_v6 = vpop.f32.mrb[110].mxu1 }
 0x6c0   :  { %v4575_v47 = vmax.f32 %v4117_v9, 0.0  ;;  %v4120_v12 = vadd.f32 %v18510_v19, %v4119_v6  ;;  %v4121_v39 = vpop.f32.mrb[111].mxu1  ;;  %v21795_v9 = vld [vmem:[#allocation155_spill] sm:$0xff] }
 0x6c2   :  { %v4576_v35 = vmax.f32 %v4120_v12, 0.0 }
 0x6c3   :  { %14321 = vrot.lane.b32.xlu0 %v21790_v8, %s16000_s26 }
 0x6c4   :  { %v18654_v24 = vpack.i.bf16 %v4576_v35, %v4575_v47 }
 0x6c5   :  { %v4124_v18 = vpop.f32.mrb[112].mxu1 }
 0x6c6   :  { %v4125_v46 = vadd.f32 %v18510_v19, %v4124_v18  ;;  %v4126_v49 = vpop.f32.mrb[113].mxu1 }
 0x6c7   :  { %14331 = vrot.lane.b32.xlu0 %v21791_v10, %s15998_s17  ;;  %v4127_v29 = vpop.f32.mrb[114].mxu1  ;;  %v21798_v49 = vld [vmem:[#allocation2_spill] sm:$0xff] }
 0x6c8   :  { %v4577_v20 = vmax.f32 %v4125_v46, 0.0  ;;  %v4128_v2 = vadd.f32 %v18510_v19, %v4127_v29  ;;  %v4129_v37 = vpop.f32.mrb[115].mxu1  ;;  %v2597_v29 = vadd.f32 %v18510_v19, %v21798_v49 }
 0x6ca   :  { %v4578_v8 = vmax.f32 %v4128_v2, 0.0 }
 0x6cb   :  { %14341 = vrot.lane.b32.xlu0 %v21792_v11, %s16000_s26  ;;  %v21796_v11 = vld [vmem:[#allocation88_spill] sm:$0xff] }
 0x6cc   :  { %v18662_v31 = vpack.i.bf16 %v4578_v8, %v4577_v20  ;;  %v21799_v20 = vld [vmem:[#allocation156_spill] sm:$0xff]  ;;  %v14068_v8 = vunpack.i.l.bf16 %v18495_v45  ;;  %v14083_v45 = vunpack.i.l.bf16 %v18528_v21 }
 0x6cd   :  { %v4132_v51 = vpop.f32.mrb[116].mxu1 }
 0x6ce   :  { %21794 = vst [vmem:[#allocation4_spill] sm:$0xff] %v18662_v31  ;;  %v4133_v6 = vadd.f32 %v18510_v19, %v4132_v51  ;;  %v4134_v47 = vpop.f32.mrb[117].mxu1 }
 0x6cf   :  { %14351 = vrot.lane.b32.xlu0 %v21793_v16, %s15998_s17  ;;  %v4135_v12 = vpop.f32.mrb[118].mxu1 }
 0x6d0   :  { %v4579_v39 = vmax.f32 %v4133_v6, 0.0  ;;  %v4136_v10 = vadd.f32 %v18510_v19, %v4135_v12  ;;  %v4137_v35 = vpop.f32.mrb[119].mxu1  ;;  %v14078_v6 = vunpack.i.l.bf16 %v18487_v61 }
 0x6d1   :  { %v21800_v35 = vld [vmem:[#allocation89_spill] sm:$0xff] }
 0x6d2   :  { %v4580_v18 = vmax.f32 %v4136_v10, 0.0  ;;  %v4195_v10 = vmax.f32 %v2597_v29, 0.0 }
 0x6d3   :  { %14361 = vrot.lane.b32.xlu0 %v21795_v9, %s16000_s26  ;;  %v14117_v9 = vpop.permute.xlu1 %14116 }
 0x6d4   :  { %v18670_v46 = vpack.i.bf16 %v4580_v18, %v4579_v39  ;;  %v5796_v18 = vsel %vm5795_vm0, %v4195_v10, %v14068_v8 }
 0x6d5   :  { %v4140_v2 = vpop.f32.mrb[120].mxu1  ;;  %v5897_v49 = vsel %vm5896_vm1, %v5796_v18, %v14078_v6 }
 0x6d6   :  { %21797 = vst [vmem:[#allocation80_spill] sm:$0xff] %v18670_v46  ;;  %v4141_v37 = vadd.f32 %v18510_v19, %v4140_v2  ;;  %v4142_v16 = vpop.f32.mrb[121].mxu1  ;;  %v14119_v2 = vunpack.i.h.bf16 %v14117_v9  ;;  %v5998_v6 = vsel %vm5997_vm2, %v5897_v49, %v14083_v45  ;;  %v14094_v45 = vunpack.i.h.bf16 %v18530_v63 }
 0x6d7   :  { %14371 = vrot.lane.b32.xlu0 %v21796_v11, %s15998_s17  ;;  %v4143_v51 = vpop.f32.mrb[122].mxu1  ;;  %v14118_v16 = vunpack.i.l.bf16 %v14117_v9  ;;  %v18687_v61 = vpop.permute.xlu1 %14131 }
 0x6d8   :  { %v4581_v47 = vmax.f32 %v4141_v37, 0.0  ;;  %v4144_v12 = vadd.f32 %v18510_v19, %v4143_v51  ;;  %v4145_v39 = vpop.f32.mrb[123].mxu1  ;;  %v21802_v37 = vld [vmem:[#allocation157_spill] sm:$0xff] }
 0x6d9   :  { %v21803_v39 = vld [vmem:[#allocation9_spill] sm:$0xff] }
 0x6da   :  { %v4582_v11 = vmax.f32 %v4144_v12, 0.0  ;;  %v2712_v8 = vadd.f32 %v18510_v19, %v21803_v39  ;;  %v21806_v39 = vld [vmem:[#allocation90_spill] sm:$0xff] }
 0x6db   :  { %14381 = vrot.lane.b32.xlu0 %v21799_v20, %s16000_s26  ;;  %v18703_v49 = vpop.permute.xlu1 %14141 }
 0x6dc   :  { %v18684_v20 = vpack.i.bf16 %v4582_v11, %v4581_v47 }
 0x6dd   :  { %v4148_v29 = vpop.f32.mrb[124].mxu1 }
 0x6de   :  { %21801 = vst [vmem:[#allocation113_spill] sm:$0xff] %v18684_v20  ;;  %v4149_v51 = vadd.f32 %v18510_v19, %v4148_v29  ;;  %v4150_v12 = vpop.f32.mrb[125].mxu1  ;;  %v21805_v20 = vld [vmem:[#allocation152_spill] sm:$0xff] }
 0x6df   :  { %14391 = vrot.lane.b32.xlu0 %v21800_v35, %s15998_s17  ;;  %v4151_v10 = vpop.f32.mrb[126].mxu1  ;;  %v6496_v29 = vsel %vm6494_vm3, %v21805_v20, %v14119_v2  ;;  %v6495_v12 = vsel %vm6494_vm3, %v5998_v6, %v14118_v16  ;;  %v14133_v20 = vunpack.i.l.bf16 %v18687_v61  ;;  %v4224_v6 = vmax.f32 %v2712_v8, 0.0 }
 0x6e0   :  { %v4583_v9 = vmax.f32 %v4149_v51, 0.0  ;;  %v4152_v11 = vadd.f32 %v18510_v19, %v4151_v10  ;;  %v4153_v18 = vpop.f32.mrb[127].mxu1  ;;  %v14109_v8 = vunpack.i.h.bf16 %v18547_v7 }
 0x6e1   :  { %v6594_v18 = vpack.c.bf16 %v6496_v29, %v6495_v12  ;;  %v14143_v12 = vunpack.i.l.bf16 %v18703_v49 }
 0x6e2   :  { %v4584_v10 = vmax.f32 %v4152_v11, 0.0 }
 0x6e3   :  { %14401 = vrot.lane.b32.xlu0 %v21802_v37, %s16000_s26  ;;  %v2717_v37 = vadd.f32 %v18510_v19, %v21804_v60  ;;  %v14104_v60 = vunpack.i.h.bf16 %v18578_v0  ;;  %v5825_v0 = vsel %vm5795_vm0, %v4224_v6, %v14094_v45  ;;  %v21809_v6 = vld [vmem:[#allocation153_spill] sm:$0xff] }
 0x6e5   :  { %v14122_v47 = vpop.permute.xlu0 %14121  ;;  %v4225_v46 = vmax.f32 %v2717_v37, 0.0  ;;  %v5926_v29 = vsel %vm5896_vm1, %v5825_v0, %v14104_v60 }
 0x6e6   :  { %v14124_v21 = vunpack.i.h.bf16 %v14122_v47  ;;  %v14123_v35 = vunpack.i.l.bf16 %v14122_v47 }
 0x6e7   :  { %14411 = vrot.lane.b32.xlu0 %v21806_v39, %s15998_s17  ;;  %v18714_v39 = vpack.i.bf16 %v4584_v10, %v4583_v9  ;;  %v5826_v9 = vsel %vm5795_vm0, %v4225_v46, %v14133_v20 }
 0x6e8   :  { %v6505_v51 = vsel %vm6494_vm3, %v18470_v50, %v14123_v35  ;;  %v6506_v47 = vsel %vm6494_vm3, %v18267_v23, %v14124_v21  ;;  %v21807_v50 = vld [vmem:[#allocation158_spill] sm:$0xff]  ;;  %v4156_v23 = vpop.f32.mrb[128].mxu1 }
 0x6e9   :  { %v14127_v2 = vpop.permute.xlu0 %14126  ;;  %v18712_v16 = vpack.c.bf16 %v6506_v47, %v6505_v51  ;;  %v4157_v21 = vadd.f32 %v18510_v19, %v4156_v23  ;;  %v4158_v35 = vpop.f32.mrb[129].mxu1 }
 0x6ea   :  { %v14129_v63 = vunpack.i.h.bf16 %v14127_v2  ;;  %v14128_v31 = vunpack.i.l.bf16 %v14127_v2  ;;  %v4159_v45 = vpop.f32.mrb[130].mxu1  ;;  %v21808_v2 = vld [vmem:[#allocation91_spill] sm:$0xff] }
 0x6eb   :  { %6812 = vmatprep.mubr.bf16.mxu1 %v18712_v16  ;;  %14421 = vrot.lane.b32.xlu0 %v21807_v50, %s16000_s26  ;;  %v4585_v20 = vmax.f32 %v4157_v21, 0.0  ;;  %v4161_v60 = vpop.f32.mrb[131].mxu1  ;;  %v21810_v50 = vld [vmem:[#allocation11_spill] sm:$0xff] }
 0x6ec   :  { %6813 = vmatmul.mubr.bf16.vlgmr.msra.gmra.mrb[148].mxu1 %v6594_v18  ;;  %v6497_v7 = vsel %vm6494_vm3, %v21809_v6, %v14128_v31  ;;  %v6498_v46 = vsel %vm6494_vm3, %v18287_v54, %v14129_v63  ;;  %v4160_v18 = vadd.f32 %v18510_v19, %v4159_v45  ;;  %v2720_v23 = vadd.f32 %v18510_v19, %v21810_v50 }
 0x6ed   :  { %v18723_v11 = vpop.permute.xlu0 %14136  ;;  %v14147_v37 = vpop.permute.xlu1 %14146 }
 0x6ee   :  { %v14138_v51 = vunpack.i.l.bf16 %v18723_v11  ;;  %v14149_v47 = vunpack.i.h.bf16 %v14147_v37  ;;  %v14148_v10 = vunpack.i.l.bf16 %v14147_v37  ;;  %v4586_v45 = vmax.f32 %v4160_v18, 0.0 }
 0x6ef   :  { %14431 = vrot.lane.b32.xlu0 %v21808_v2, %s15998_s17  ;;  %v21811_v2 = vld [vmem:[#allocation12_spill] sm:$0xff]  ;;  %v4226_v50 = vmax.f32 %v2720_v23, 0.0 }
 0x6f0   :  { %v6507_v0 = vsel %vm6494_vm3, %v18270_v5, %v14148_v10  ;;  %v6508_v35 = vsel %vm6494_vm3, %v18323_v13, %v14149_v47  ;;  %v5927_v37 = vsel %vm5896_vm1, %v5826_v9, %v14138_v51  ;;  %v2725_v31 = vadd.f32 %v18510_v19, %v21811_v2  ;;  %v4164_v47 = vpop.f32.mrb[132].mxu1  ;;  %v21812_v2 = vld [vmem:[#allocation92_spill] sm:$0xff] }
 0x6f1   :  { %v18744_v6 = vpop.permute.xlu0 %14156  ;;  %v14152_v54 = vpop.permute.xlu1 %14151  ;;  %v18746_v63 = vpack.c.bf16 %v6508_v35, %v6507_v0  ;;  %v18749_v21 = vsel %vm5997_vm2, %v5927_v37, %v14143_v12  ;;  %v18752_v5 = vsel %vm5997_vm2, %v5926_v29, %v14109_v8  ;;  %v6596_v10 = vpack.c.bf16 %v6498_v46, %v6497_v7 }
 0x6f2   :  { %v14153_v60 = vunpack.i.l.bf16 %v14152_v54  ;;  %v14154_v13 = vunpack.i.h.bf16 %v14152_v54  ;;  %v14305_v9 = vpack.i.bf16 %v18749_v21, %v18752_v5  ;;  %v18759_v51 = vpack.i.bf16 %v4586_v45, %v4585_v20  ;;  %v4166_v18 = vpop.f32.mrb[133].mxu1 }
 0x6f3   :  { %14441 = vrot.lane.b32.xlu0 %v18278_v22, %s16000_s26  ;;  %6820 = vmatprep.mubr.bf16.mxu1 %v18746_v63  ;;  %v14134_v12 = vunpack.i.h.bf16 %v18687_v61  ;;  %v4227_v8 = vmax.f32 %v2725_v31, 0.0  ;;  %v14139_v29 = vunpack.i.h.bf16 %v18723_v11  ;;  %v4165_v46 = vadd.f32 %v18510_v19, %v4164_v47  ;;  %v4167_v37 = vpop.f32.mrb[134].mxu1  ;;  %v21814_v18 = vld [vmem:[#allocation14_spill] sm:$0xff] }
 0x6f4   :  { %6821 = vmatmul.mubr.bf16.gmra.mrb[152].mxu1 %v6596_v10  ;;  %14306 = vrot.lane.b32.xlu1 %v14305_v9, %s16001_s10  ;;  %v14158_v0 = vunpack.i.l.bf16 %v18744_v6  ;;  %v6499_v61 = vsel %vm6494_vm3, %v18290_v28, %v14153_v60  ;;  %v6500_v11 = vsel %vm6494_vm3, %v18344_v56, %v14154_v13  ;;  %v4168_v54 = vadd.f32 %v18510_v19, %v4167_v37  ;;  %v4169_v45 = vpop.f32.mrb[135].mxu1  ;;  %v21813_v10 = vld [vmem:[#allocation13_spill] sm:$0xff]  ;;  %v21815_v56 = vld [vmem:[#allocation118_spill] sm:$0xff] }
 0x6f5   :  { %v14167_v7 = vpop.permute.xlu0 %14166  ;;  %v18764_v22 = vpop.permute.xlu1 %14161  ;;  %v4587_v31 = vmax.f32 %v4165_v46, 0.0  ;;  %v2728_v9 = vadd.f32 %v18510_v19, %v21813_v10  ;;  %v5827_v47 = vsel %vm5795_vm0, %v4226_v50, %v14134_v12 }
 0x6f6   :  { %v14169_v20 = vunpack.i.h.bf16 %v14167_v7  ;;  %v14168_v35 = vunpack.i.l.bf16 %v14167_v7  ;;  %v14163_v23 = vunpack.i.l.bf16 %v18764_v22  ;;  %v2733_v7 = vadd.f32 %v18510_v19, %v21814_v18  ;;  %v4172_v10 = vpop.f32.mrb[136].mxu1 }
 0x6f7   :  { %14451 = vrot.lane.b32.xlu0 %v21812_v2, %s15998_s17  ;;  %v5928_v12 = vsel %vm5896_vm1, %v5827_v47, %v14139_v29  ;;  %v4588_v50 = vmax.f32 %v4168_v54, 0.0 }
 0x6f8   :  { %v6509_v28 = vsel %vm6494_vm3, %v18326_v44, %v14168_v35  ;;  %v6510_v60 = vsel %vm6494_vm3, %v18376_v57, %v14169_v20  ;;  %14316 = vrot.lane.b32.xlu1 %v21815_v56, %s15999_s13  ;;  %v14144_v44 = vunpack.i.h.bf16 %v18703_v49  ;;  %v5828_v35 = vsel %vm5795_vm0, %v4227_v8, %v14158_v0  ;;  %v4174_v8 = vpop.f32.mrb[137].mxu1 }
 0x6f9   :  { %v18787_v13 = vpop.permute.xlu0 %14171  ;;  %v18789_v46 = vpop.permute.xlu1 %14181  ;;  %v18791_v37 = vpack.c.bf16 %v6510_v60, %v6509_v28  ;;  %v6598_v20 = vpack.c.bf16 %v6500_v11, %v6499_v61  ;;  %v5929_v2 = vsel %vm5896_vm1, %v5828_v35, %v14163_v23  ;;  %v18801_v45 = vpack.i.bf16 %v4588_v50, %v4587_v31 }
 0x6fa   :  { %v14173_v57 = vunpack.i.l.bf16 %v18787_v13  ;;  %v4228_v28 = vmax.f32 %v2728_v9, 0.0  ;;  %v18804_v29 = vsel %vm5997_vm2, %v5928_v12, %v14144_v44  ;;  %v4229_v0 = vmax.f32 %v2733_v7, 0.0  ;;  %v4175_v18 = vpop.f32.mrb[138].mxu1  ;;  %v21816_v7 = vld [vmem:[#allocation93_spill] sm:$0xff] }
 0x6fb   :  { %14461 = vrot.lane.b32.xlu0 %v18334_v32, %s16000_s26  ;;  %6828 = vmatprep.mubr.bf16.mxu1 %v18791_v37  ;;  %v14159_v61 = vunpack.i.h.bf16 %v18744_v6  ;;  %v4173_v31 = vadd.f32 %v18510_v19, %v4172_v10  ;;  %v14164_v56 = vunpack.i.h.bf16 %v18764_v22  ;;  %v14183_v12 = vunpack.i.l.bf16 %v18789_v46  ;;  %v4177_v44 = vpop.f32.mrb[139].mxu1 }
 0x6fc   :  { %6829 = vmatmul.mubr.bf16.gmra.mrb[156].mxu1 %v6598_v20  ;;  %v18807_v49 = vsel %vm5997_vm2, %v5929_v2, %v14173_v57  ;;  %v4176_v50 = vadd.f32 %v18510_v19, %v4175_v18  ;;  %v14174_v2 = vunpack.i.h.bf16 %v18787_v13 }
 0x6fd   :  { %v14177_v32 = vpop.permute.xlu0 %14176  ;;  %v14192_v11 = vpop.permute.xlu1 %14191  ;;  %v14325_v23 = vpack.i.bf16 %v18807_v49, %v18804_v29  ;;  %v4589_v6 = vmax.f32 %v4173_v31, 0.0 }
 0x6fe   :  { %v14179_v54 = vunpack.i.h.bf16 %v14177_v32  ;;  %v14178_v9 = vunpack.i.l.bf16 %v14177_v32  ;;  %v14194_v47 = vunpack.i.h.bf16 %v14192_v11  ;;  %v14193_v60 = vunpack.i.l.bf16 %v14192_v11 }
 0x6ff   :  { %14471 = vrot.lane.b32.xlu0 %v21816_v7, %s15998_s17  ;;  %14326 = vrot.lane.b32.xlu1 %v14325_v23, %s16001_s10  ;;  %v4590_v23 = vmax.f32 %v4176_v50, 0.0 }
 0x700   :  { %v6511_v35 = vsel %vm6494_vm3, %v18379_v43, %v14193_v60  ;;  %v6512_v57 = vsel %vm6494_vm3, %v18432_v4, %v14194_v47  ;;  %v6501_v22 = vsel %vm6494_vm3, %v18347_v27, %v14178_v9  ;;  %v6502_v20 = vsel %vm6494_vm3, %v18411_v1, %v14179_v54  ;;  %v21817_v27 = vld [vmem:[#allocation119_spill] sm:$0xff]  ;;  %v18854_v44 = vpop.f32.mrb[140].mxu1 }
 0x701   :  { %v14187_v10 = vpop.permute.xlu0 %14186  ;;  %v18828_v8 = vpop.permute.xlu1 %14196  ;;  %v18830_v32 = vpack.c.bf16 %v6512_v57, %v6511_v35  ;;  %v6600_v11 = vpack.c.bf16 %v6502_v20, %v6501_v22  ;;  %v5829_v4 = vsel %vm5795_vm0, %v4228_v28, %v14159_v61  ;;  %v5830_v47 = vsel %vm5795_vm0, %v4229_v0, %v14183_v12  ;;  %v21818_v9 = vld [vmem:[#allocation15_spill] sm:$0xff]  ;;  %v21819_v28 = vld [vmem:[#allocation16_spill] sm:$0xff]  ;;  %v21820_v57 = vld [vmem:[#allocation94_spill] sm:$0xff] }
 0x702   :  { %v14188_v31 = vunpack.i.l.bf16 %v14187_v10  ;;  %v14198_v43 = vunpack.i.l.bf16 %v18828_v8  ;;  %v18839_v1 = vpack.i.bf16 %v4590_v23, %v4589_v6  ;;  %v5930_v13 = vsel %vm5896_vm1, %v5829_v4, %v14164_v56  ;;  %v4182_v20 = vpop.f32.mrb[141].mxu1 }
 0x703   :  { %14481 = vrot.lane.b32.xlu0 %v18395_v15, %s16000_s26  ;;  %14336 = vrot.lane.b32.xlu1 %v21817_v27, %s15999_s13  ;;  %v2736_v60 = vadd.f32 %v18510_v19, %v21818_v9  ;;  %v2741_v0 = vadd.f32 %v18510_v19, %v21819_v28  ;;  %v18849_v18 = vsel %vm5997_vm2, %v5930_v13, %v14174_v2  ;;  %v14184_v35 = vunpack.i.h.bf16 %v18789_v46 }
 0x704   :  { %6836 = vmatprep.mubr.bf16.mxu1 %v18830_v32  ;;  %v5931_v54 = vsel %vm5896_vm1, %v5830_v47, %v14188_v31  ;;  %v14189_v46 = vunpack.i.h.bf16 %v14187_v10 }
 0x705   :  { %6837 = vmatmul.mubr.bf16.gmra.mrb[160].mxu1 %v6600_v11  ;;  %v14207_v61 = vpop.permute.xlu0 %14206  ;;  %v14202_v15 = vpop.permute.xlu1 %14201  ;;  %v18852_v12 = vsel %vm5997_vm2, %v5931_v54, %v14198_v43  ;;  %v4230_v13 = vmax.f32 %v2736_v60, 0.0  ;;  %v4231_v54 = vmax.f32 %v2741_v0, 0.0  ;;  %v21822_v0 = vld [vmem:[#allocation120_spill] sm:$0xff] }
 0x706   :  { %v14209_v7 = vunpack.i.h.bf16 %v14207_v61  ;;  %v14208_v6 = vunpack.i.l.bf16 %v14207_v61  ;;  %v14204_v56 = vunpack.i.h.bf16 %v14202_v15  ;;  %v14203_v50 = vunpack.i.l.bf16 %v14202_v15  ;;  %v21821_v15 = vld [vmem:[#allocation17_spill] sm:$0xff] }
 0x707   :  { %14491 = vrot.lane.b32.xlu0 %v21820_v57, %s15998_s17  ;;  %v14345_v22 = vpack.i.bf16 %v18852_v12, %v18849_v18  ;;  %v2744_v60 = vadd.f32 %v18510_v19, %v21821_v15 }
 0x708   :  { %v6513_v2 = vsel %vm6494_vm3, %v18435_v38, %v14208_v6  ;;  %v6514_v11 = vsel %vm6494_vm3, %v18482_v52, %v14209_v7  ;;  %v6503_v23 = vsel %vm6494_vm3, %v18414_v26, %v14203_v50  ;;  %v6504_v31 = vsel %vm6494_vm3, %v18466_v33, %v14204_v56  ;;  %v4183_v26 = vpop.f32.mrb[142].mxu1  ;;  %v21823_v56 = vld [vmem:[#allocation18_spill] sm:$0xff] }
 0x709   :  { %14346 = vrot.lane.b32.xlu1 %v14345_v22, %s16001_s10  ;;  %v14212_v43 = vpop.permute.xlu0 %14211  ;;  %v14217_v4 = vpop.permute.xlu1 %14216  ;;  %v18870_v47 = vpack.c.bf16 %v6514_v11, %v6513_v2  ;;  %v6602_v27 = vpack.c.bf16 %v6504_v31, %v6503_v23  ;;  %v5831_v33 = vsel %vm5795_vm0, %v4230_v13, %v14184_v35  ;;  %v14199_v52 = vunpack.i.h.bf16 %v18828_v8  ;;  %v21824_v2 = vld [vmem:[#allocation95_spill] sm:$0xff] }
 0x70a   :  { %v14213_v38 = vunpack.i.l.bf16 %v14212_v43  ;;  %v14218_v9 = vunpack.i.l.bf16 %v14217_v4  ;;  %v4184_v28 = vadd.f32 %v18510_v19, %v4183_v26  ;;  %v4185_v61 = vpop.f32.mrb[143].mxu1  ;;  %v5932_v6 = vsel %vm5896_vm1, %v5831_v33, %v14189_v46 }
 0x70b   :  { %14501 = vrot.lane.b32.xlu0 %v18443_v40, %s16000_s26  ;;  %6844 = vmatprep.mubr.bf16.mxu1 %v18870_v47  ;;  %v2749_v50 = vadd.f32 %v18510_v19, %v21823_v56  ;;  %v4188_v22 = vpop.f32.mrb[144].mxu1  ;;  %v14214_v20 = vunpack.i.h.bf16 %v14212_v43  ;;  %v18891_v13 = vsel %vm5997_vm2, %v5932_v6, %v14199_v52  ;;  %v14219_v61 = vunpack.i.h.bf16 %v14217_v4  ;;  %v21826_v4 = vld [vmem:[#allocation20_spill] sm:$0xff] }
 0x70c   :  { %v5832_v10 = vsel %vm5795_vm0, %v4231_v54, %v14213_v38  ;;  %v4592_v23 = vmax.f32 %v4184_v28, 0.0  ;;  %v4189_v31 = vadd.f32 %v18510_v19, %v4188_v22  ;;  %v4232_v38 = vmax.f32 %v2744_v60, 0.0  ;;  %v21825_v60 = vld [vmem:[#allocation19_spill] sm:$0xff] }
 0x70d   :  { %14356 = vrot.lane.b32.xlu1 %v21822_v0, %s15999_s13  ;;  %6845 = vmatmul.mubr.bf16.gmra.mrb[164].mxu1 %v6602_v27  ;;  %v14222_v40 = vpop.permute.xlu0 %14221  ;;  %v14232_v7 = vpop.permute.xlu1 %14231  ;;  %v5933_v11 = vsel %vm5896_vm1, %v5832_v10, %v14218_v9  ;;  %v4233_v52 = vmax.f32 %v2749_v50, 0.0  ;;  %v2752_v56 = vadd.f32 %v18510_v19, %v21825_v60  ;;  %v2757_v50 = vadd.f32 %v18510_v19, %v21826_v4 }
 0x70e   :  { %v14223_v8 = vunpack.i.l.bf16 %v14222_v40  ;;  %v14234_v35 = vunpack.i.h.bf16 %v14232_v7  ;;  %v14233_v57 = vunpack.i.l.bf16 %v14232_v7  ;;  %v4190_v27 = vpop.f32.mrb[145].mxu1  ;;  %v4593_v28 = vmax.f32 %v4189_v31, 0.0 }
 0x70f   :  { %14511 = vrot.lane.b32.xlu0 %v21824_v2, %s15998_s17  ;;  %v5833_v0 = vsel %vm5795_vm0, %v4232_v38, %v14214_v20  ;;  %v14224_v7 = vunpack.i.h.bf16 %v14222_v40 }
 0x710   :  { %v18894_v46 = vsel %vm5997_vm2, %v5933_v11, %v14223_v8  ;;  %v6515_v54 = vsel %vm6494_vm3, %v18485_v62, %v14233_v57  ;;  %v6516_v43 = vsel %vm6494_vm3, %v18521_v25, %v14234_v35  ;;  %v18908_v62 = vpack.i.bf16 %v4593_v28, %v4592_v23  ;;  %v21827_v11 = vld [vmem:[#allocation96_spill] sm:$0xff]  ;;  %v21828_v23 = vld [vmem:[#allocation121_spill] sm:$0xff] }
 0x711   :  { %v14227_v26 = vpop.permute.xlu0 %14226  ;;  %v14237_v33 = vpop.permute.xlu1 %14236  ;;  %v14365_v9 = vpack.i.bf16 %v18894_v46, %v18891_v13  ;;  %v18902_v10 = vpack.c.bf16 %v6516_v43, %v6515_v54 }
 0x712   :  { %v14228_v15 = vunpack.i.l.bf16 %v14227_v26  ;;  %v14238_v6 = vunpack.i.l.bf16 %v14237_v33  ;;  %v14229_v31 = vunpack.i.h.bf16 %v14227_v26  ;;  %v14239_v26 = vunpack.i.h.bf16 %v14237_v33 }
 0x713   :  { %14521 = vrot.lane.b32.xlu0 %v18493_v3, %s16000_s26  ;;  %14366 = vrot.lane.b32.xlu1 %v14365_v9, %s16001_s10  ;;  %v5934_v3 = vsel %vm5896_vm1, %v5833_v0, %v14219_v61  ;;  %v4235_v61 = vmax.f32 %v2757_v50, 0.0 }
 0x714   :  { %v5834_v25 = vsel %vm5795_vm0, %v4233_v52, %v14228_v15  ;;  %6851 = vmatprep.mubr.bf16.mxu1 %v18902_v10  ;;  %v18919_v20 = vsel %vm5997_vm2, %v5934_v3, %v14224_v7  ;;  %v4234_v52 = vmax.f32 %v2752_v56, 0.0  ;;  %v21830_v56 = vld [vmem:[#allocation22_spill] sm:$0xff] }
 0x715   :  { %6852 = vmatmul.mubr.bf16.gmra.mrb[168].mxu1 %v18712_v16  ;;  %v14242_v40 = vpop.permute.xlu0 %14241  ;;  %v14252_v8 = vpop.permute.xlu1 %14251  ;;  %v5935_v2 = vsel %vm5896_vm1, %v5834_v25, %v14238_v6  ;;  %v21829_v6 = vld [vmem:[#allocation21_spill] sm:$0xff]  ;;  %v2765_v4 = vadd.f32 %v18510_v19, %v21830_v56 }
 0x716   :  { %v14243_v35 = vunpack.i.l.bf16 %v14242_v40  ;;  %v14254_v57 = vunpack.i.h.bf16 %v14252_v8  ;;  %v14253_v22 = vunpack.i.l.bf16 %v14252_v8  ;;  %v2760_v25 = vadd.f32 %v18510_v19, %v21829_v6 }
 0x717   :  { %14531 = vrot.lane.b32.xlu0 %v21827_v11, %s15998_s17  ;;  %14376 = vrot.lane.b32.xlu1 %v21828_v23, %s15999_s13 }
 0x718   :  { %v18927_v16 = vsel %vm5997_vm2, %v5935_v2, %v14243_v35  ;;  %v6517_v27 = vsel %vm6494_vm3, %v18524_v42, %v14253_v22  ;;  %v6518_v54 = vsel %vm6494_vm3, %v18560_v36, %v14254_v57  ;;  %v5835_v42 = vsel %vm5795_vm0, %v4234_v52, %v14229_v31  ;;  %v21831_v57 = vld [vmem:[#allocation97_spill] sm:$0xff]  ;;  %v21832_v22 = vld [vmem:[#allocation122_spill] sm:$0xff] }
 0x719   :  { %v14247_v43 = vpop.permute.xlu0 %14246  ;;  %v14257_v38 = vpop.permute.xlu1 %14256  ;;  %v14385_v9 = vpack.i.bf16 %v18927_v16, %v18919_v20  ;;  %v18935_v28 = vpack.c.bf16 %v6518_v54, %v6517_v27  ;;  %v14244_v36 = vunpack.i.h.bf16 %v14242_v40  ;;  %v5936_v3 = vsel %vm5896_vm1, %v5835_v42, %v14239_v26 }
 0x71a   :  { %v14248_v15 = vunpack.i.l.bf16 %v14247_v43  ;;  %v14258_v0 = vunpack.i.l.bf16 %v14257_v38  ;;  %v14249_v40 = vunpack.i.h.bf16 %v14247_v43  ;;  %v4236_v31 = vmax.f32 %v2760_v25, 0.0 }
 0x71b   :  { %14541 = vrot.lane.b32.xlu0 %v18534_v58, %s16000_s26  ;;  %14386 = vrot.lane.b32.xlu1 %v14385_v9, %s16001_s10  ;;  %v4237_v52 = vmax.f32 %v2765_v4, 0.0 }
 0x71c   :  { %v5836_v7 = vsel %vm5795_vm0, %v4235_v61, %v14248_v15  ;;  %6859 = vmatprep.mubr.bf16.mxu1 %v18935_v28  ;;  %v14259_v61 = vunpack.i.h.bf16 %v14257_v38  ;;  %v5837_v26 = vsel %vm5795_vm0, %v4236_v31, %v14249_v40 }
 0x71d   :  { %6860 = vmatmul.mubr.bf16.gmra.mrb[172].mxu1 %v18746_v63  ;;  %v14262_v60 = vpop.permute.xlu0 %14261  ;;  %v14272_v33 = vpop.permute.xlu1 %14271  ;;  %v5937_v35 = vsel %vm5896_vm1, %v5836_v7, %v14258_v0  ;;  %v18955_v63 = vsel %vm5997_vm2, %v5936_v3, %v14244_v36  ;;  %v21834_v7 = vld [vmem:[#allocation24_spill] sm:$0xff] }
 0x71e   :  { %v14263_v58 = vunpack.i.l.bf16 %v14262_v60  ;;  %v14274_v50 = vunpack.i.h.bf16 %v14272_v33  ;;  %v14273_v8 = vunpack.i.l.bf16 %v14272_v33  ;;  %v14264_v0 = vunpack.i.h.bf16 %v14262_v60 }
 0x71f   :  { %14551 = vrot.lane.b32.xlu0 %v21831_v57, %s15998_s17  ;;  %14396 = vrot.lane.b32.xlu1 %v21832_v22, %s15999_s13  ;;  %v2773_v38 = vadd.f32 %v18510_v19, %v21834_v7  ;;  %v5938_v60 = vsel %vm5896_vm1, %v5837_v26, %v14259_v61 }
 0x720   :  { %v18958_v2 = vsel %vm5997_vm2, %v5937_v35, %v14263_v58  ;;  %v6519_v11 = vsel %vm6494_vm3, %v18563_v41, %v14273_v8  ;;  %v6520_v23 = vsel %vm6494_vm3, %v18587_v14, %v14274_v50  ;;  %v21833_v14 = vld [vmem:[#allocation23_spill] sm:$0xff]  ;;  %v18981_v4 = vsel %vm5997_vm2, %v5938_v60, %v14264_v0  ;;  %v21835_v50 = vld [vmem:[#allocation98_spill] sm:$0xff]  ;;  %v19044_v60 = vpop.f32.mrb[146].mxu1 }
 0x721   :  { %v14267_v27 = vpop.permute.xlu0 %14266  ;;  %v14277_v54 = vpop.permute.xlu1 %14276  ;;  %v14405_v43 = vpack.i.bf16 %v18958_v2, %v18955_v63  ;;  %v18966_v9 = vpack.c.bf16 %v6520_v23, %v6519_v11  ;;  %v2768_v36 = vadd.f32 %v18510_v19, %v21833_v14  ;;  %v21836_v8 = vld [vmem:[#allocation123_spill] sm:$0xff]  ;;  %v4239_v31 = vmax.f32 %v2773_v38, 0.0  ;;  %v21839_v38 = vld [vmem:[#allocation100_spill] sm:$0xff] }
 0x722   :  { %v14268_v15 = vunpack.i.l.bf16 %v14267_v27  ;;  %v14278_v42 = vunpack.i.l.bf16 %v14277_v54  ;;  %v14269_v19 = vunpack.i.h.bf16 %v14267_v27 }
 0x723   :  { %14561 = vrot.lane.b32.xlu0 %v18574_v17, %s16000_s26  ;;  %14406 = vrot.lane.b32.xlu1 %v14405_v43, %s16001_s10  ;;  %v4238_v23 = vmax.f32 %v2768_v36, 0.0  ;;  %v14279_v43 = vunpack.i.h.bf16 %v14277_v54 }
 0x724   :  { %v5838_v41 = vsel %vm5795_vm0, %v4237_v52, %v14268_v15  ;;  %6867 = vmatprep.mubr.bf16.mxu1 %v18966_v9 }
 0x725   :  { %6868 = vmatmul.mubr.bf16.gmra.mrb[176].mxu1 %v18791_v37  ;;  %v14282_v6 = vpop.permute.xlu0 %14281  ;;  %v14287_v25 = vpop.permute.xlu1 %14286  ;;  %v5939_v58 = vsel %vm5896_vm1, %v5838_v41, %v14278_v42  ;;  %v21838_v42 = vld [vmem:[#allocation124_spill] sm:$0xff] }
 0x726   :  { %v14283_v33 = vunpack.i.l.bf16 %v14282_v6  ;;  %v14289_v17 = vunpack.i.h.bf16 %v14287_v25  ;;  %v14288_v56 = vunpack.i.l.bf16 %v14287_v25 }
 0x727   :  { %14571 = vrot.lane.b32.xlu0 %v21835_v50, %s15998_s17  ;;  %14416 = vrot.lane.b32.xlu1 %v21836_v8, %s15999_s13  ;;  %v21842_v50 = vld [vmem:[#allocation102_spill] sm:$0xff] }
 0x728   :  { %v18989_v37 = vsel %vm5997_vm2, %v5939_v58, %v14283_v33  ;;  %v6521_v3 = vsel %vm6494_vm3, %v18590_v53, %v14288_v56  ;;  %v6522_v40 = vsel %vm6494_vm3, %v18623_v34, %v14289_v17  ;;  %v5839_v53 = vsel %vm5795_vm0, %v4238_v23, %v14269_v19  ;;  %v21841_v17 = vld [vmem:[#allocation101_spill] sm:$0xff]  ;;  %v21843_v19 = vld [vmem:[#allocation103_spill] sm:$0xff] }
 0x729   :  { %v18995_v35 = vpop.permute.xlu0 %14291  ;;  %v18997_v57 = vpop.permute.xlu1 %14296  ;;  %v14425_v22 = vpack.i.bf16 %v18989_v37, %v18981_v4  ;;  %v19001_v11 = vpack.c.bf16 %v6522_v40, %v6521_v3  ;;  %v14284_v34 = vunpack.i.h.bf16 %v14282_v6  ;;  %v5940_v26 = vsel %vm5896_vm1, %v5839_v53, %v14279_v43  ;;  %v21840_v6 = vld [vmem:[#allocation125_spill] sm:$0xff]  ;;  %v21844_v40 = vld [vmem:[#allocation4_spill] sm:$0xff]  ;;  %v19089_v53 = vld [vmem:[%s21582_s2] ss:$0 sm:$0xff] }
 0x72a   :  { %v14293_v27 = vunpack.i.l.bf16 %v18995_v35  ;;  %v14298_v52 = vunpack.i.l.bf16 %v18997_v57 }
 0x72b   :  { %14581 = vrot.lane.b32.xlu0 %v18604_v59, %s16000_s26  ;;  %14426 = vrot.lane.b32.xlu1 %v14425_v22, %s16001_s10  ;;  %v21837_v59 = vld [vmem:[#allocation99_spill] sm:$0xff]  ;;  %v19022_v41 = vsel %vm5997_vm2, %v5940_v26, %v14284_v34  ;;  %v21845_v22 = vld [vmem:[#allocation104_spill] sm:$0xff]  ;;  %v21849_v34 = vld [vmem:[#allocation25_spill] sm:$0xff] }
 0x72c   :  { %v5840_v61 = vsel %vm5795_vm0, %v4239_v31, %v14293_v27  ;;  %6875 = vmatprep.mubr.bf16.mxu1 %v19001_v11  ;;  %v21846_v31 = vld [vmem:[#allocation80_spill] sm:$0xff]  ;;  %v21847_v27 = vld [vmem:[#allocation105_spill] sm:$0xff] }
 0x72d   :  { %6876 = vmatmul.mubr.bf16.gmra.mrb[180].mxu1 %v18830_v32  ;;  %v19012_v15 = vpop.permute.xlu0 %14301  ;;  %v5941_v0 = vsel %vm5896_vm1, %v5840_v61, %v14298_v52  ;;  %v21848_v52 = vld [vmem:[#allocation113_spill] sm:$0xff]  ;;  %v2776_v61 = vadd.f32 %v19089_v53, %v21849_v34  ;;  %v21853_v34 = vld [vmem:[#allocation3_spill] sm:$0xff] }
 0x72e   :  { %v14303_v54 = vunpack.i.l.bf16 %v19012_v15 }
 0x72f   :  { %14591 = vrot.lane.b32.xlu0 %v21837_v59, %s15998_s17  ;;  %14436 = vrot.lane.b32.xlu1 %v21838_v42, %s15999_s13 }
 0x730   :  { %v19025_v14 = vsel %vm5997_vm2, %v5941_v0, %v14303_v54  ;;  %v21850_v54 = vld [vmem:[#allocation26_spill] sm:$0xff]  ;;  %v21851_v0 = vld [vmem:[#allocation41_spill] sm:$0xff] }
 0x731   :  { %v19027_v32 = vpop.permute.xlu0 %14311  ;;  %v14445_v36 = vpack.i.bf16 %v19025_v14, %v19022_v41  ;;  %v2781_v26 = vadd.f32 %v19089_v53, %v21850_v54  ;;  %v2840_v59 = vadd.f32 %v19089_v53, %v21851_v0 }
 0x733   :  { %14601 = vrot.lane.b32.xlu0 %v18627_v30, %s16000_s26  ;;  %14446 = vrot.lane.b32.xlu1 %v14445_v36, %s16001_s10  ;;  %v4193_v30 = vpop.f32.mrb[147].mxu1  ;;  %v14294_v36 = vunpack.i.h.bf16 %v18995_v35 }
 0x735   :  { %v19034_v7 = vpop.permute.xlu0 %14321 }
 0x737   :  { %14611 = vrot.lane.b32.xlu0 %v21839_v38, %s15998_s17  ;;  %14456 = vrot.lane.b32.xlu1 %v21840_v6, %s15999_s13  ;;  %v21852_v6 = vld [vmem:[#allocation106_spill] sm:$0xff] }
 0x739   :  { %v19040_v25 = vpop.permute.xlu0 %14331 }
 0x73b   :  { %14621 = vrot.lane.b32.xlu0 %v18638_v55, %s16000_s26 }
 0x73d   :  { %v19046_v33 = vpop.permute.xlu0 %14341 }
 0x73f   :  { %14631 = vrot.lane.b32.xlu0 %v21841_v17, %s15998_s17 }
 0x741   :  { %v19050_v56 = vpop.permute.xlu0 %14351 }
 0x743   :  { %14641 = vrot.lane.b32.xlu0 %v18646_v48, %s16000_s26 }
 0x745   :  { %v19054_v58 = vpop.permute.xlu0 %14361 }
 0x747   :  { %14651 = vrot.lane.b32.xlu0 %v21842_v50, %s15998_s17  ;;  %v4240_v50 = vmax.f32 %v2776_v61, 0.0  ;;  %v14304_v61 = vunpack.i.h.bf16 %v19012_v15 }
 0x749   :  { %v19058_v8 = vpop.permute.xlu0 %14371  ;;  %v5841_v0 = vsel %vm5795_vm0, %v4240_v50, %v14294_v36 }
 0x74b   :  { %14661 = vrot.lane.b32.xlu0 %v18654_v24, %s16000_s26 }
 0x74d   :  { %v19062_v55 = vpop.permute.xlu0 %14381 }
 0x74f   :  { %14671 = vrot.lane.b32.xlu0 %v21843_v19, %s15998_s17  ;;  %v4241_v19 = vmax.f32 %v2781_v26, 0.0  ;;  %v14323_v26 = vunpack.i.l.bf16 %v19034_v7 }
 0x751   :  { %v19066_v3 = vpop.permute.xlu0 %14391 }
 0x753   :  { %14681 = vrot.lane.b32.xlu0 %v21844_v40, %s16000_s26  ;;  %v4256_v40 = vmax.f32 %v2840_v59, 0.0 }
 0x755   :  { %v19070_v48 = vpop.permute.xlu0 %14401 }
 0x757   :  { %14691 = vrot.lane.b32.xlu0 %v21845_v22, %s15998_s17  ;;  %v14313_v22 = vunpack.i.l.bf16 %v19027_v32 }
 0x759   :  { %v19074_v23 = vpop.permute.xlu0 %14411 }
 0x75b   :  { %14701 = vrot.lane.b32.xlu0 %v21846_v31, %s16000_s26 }
 0x75d   :  { %v19078_v24 = vpop.permute.xlu0 %14421 }
 0x75f   :  { %14711 = vrot.lane.b32.xlu0 %v21847_v27, %s15998_s17  ;;  %v14299_v27 = vunpack.i.h.bf16 %v18997_v57 }
 0x761   :  { %v19082_v43 = vpop.permute.xlu0 %14431  ;;  %v5942_v15 = vsel %vm5896_vm1, %v5841_v0, %v14299_v27  ;;  %v21856_v27 = vld [vmem:[#allocation28_spill] sm:$0xff] }
 0x762   :  { %v19131_v50 = vsel %vm5997_vm2, %v5942_v15, %v14304_v61 }
 0x763   :  { %14721 = vrot.lane.b32.xlu0 %v21848_v52, %s16000_s26 }
 0x765   :  { %v19097_v42 = vpop.permute.xlu0 %14441 }
 0x766   :  { %v14307_v38 = vpop.permute.xlu1 %14306 }
 0x767   :  { %14731 = vrot.lane.b32.xlu0 %v21852_v6, %s15998_s17  ;;  %v14309_v30 = vunpack.i.h.bf16 %v14307_v38  ;;  %v14308_v17 = vunpack.i.l.bf16 %v14307_v38 }
 0x769   :  { %v19103_v31 = vpop.permute.xlu0 %14451  ;;  %v6523_v35 = vsel %vm6494_vm3, %v21853_v34, %v14308_v17  ;;  %v6524_v54 = vsel %vm6494_vm3, %v18752_v5, %v14309_v30  ;;  %v5842_v17 = vsel %vm5795_vm0, %v4241_v19, %v14313_v22  ;;  %v21854_v30 = vld [vmem:[#allocation27_spill] sm:$0xff] }
 0x76a   :  { %v14454_v52 = vunpack.i.h.bf16 %v19103_v31  ;;  %v14317_v59 = vpop.permute.xlu1 %14316  ;;  %v19116_v38 = vpack.c.bf16 %v6524_v54, %v6523_v35 }
 0x76b   :  { %14741 = vrot.lane.b32.xlu0 %v18714_v39, %s16000_s26  ;;  %v14318_v6 = vunpack.i.l.bf16 %v14317_v59  ;;  %v2784_v39 = vadd.f32 %v19089_v53, %v21854_v30  ;;  %v14319_v54 = vunpack.i.h.bf16 %v14317_v59  ;;  %v14324_v59 = vunpack.i.h.bf16 %v19034_v7 }
 0x76c   :  { %v19119_v57 = vsel %vm5795_vm0, %v4256_v40, %v14454_v52  ;;  %6883 = vmatprep.mubr.bf16.mxu1 %v19116_v38  ;;  %v21855_v40 = vld [vmem:[#allocation107_spill] sm:$0xff]  ;;  %v2789_v52 = vadd.f32 %v19089_v53, %v21856_v27 }
 0x76d   :  { %v19123_v5 = vpop.permute.xlu0 %14461  ;;  %v5943_v36 = vsel %vm5896_vm1, %v5842_v17, %v14318_v6  ;;  %6884 = vmatmul.mubr.bf16.gmra.mrb[184].mxu1 %v18870_v47  ;;  %v14314_v47 = vunpack.i.h.bf16 %v19027_v32  ;;  %v4242_v6 = vmax.f32 %v2784_v39, 0.0 }
 0x76e   :  { %v19136_v19 = vsel %vm5997_vm2, %v5943_v36, %v14323_v26  ;;  %v14333_v26 = vunpack.i.l.bf16 %v19040_v25  ;;  %v4243_v15 = vmax.f32 %v2789_v52, 0.0  ;;  %v21858_v52 = vld [vmem:[#allocation108_spill] sm:$0xff] }
 0x76f   :  { %14751 = vrot.lane.b32.xlu0 %v21855_v40, %s15998_s17  ;;  %v14465_v22 = vpack.i.bf16 %v19136_v19, %v19131_v50  ;;  %v5843_v36 = vsel %vm5795_vm0, %v4242_v6, %v14314_v47  ;;  %v21859_v47 = vld [vmem:[#allocation29_spill] sm:$0xff] }
 0x771   :  { %v19143_v34 = vpop.permute.xlu0 %14471  ;;  %v14327_v35 = vpop.permute.xlu1 %14326  ;;  %14466 = vrot.lane.b32.xlu1 %v14465_v22, %s16001_s10  ;;  %v5944_v22 = vsel %vm5896_vm1, %v5843_v36, %v14319_v54 }
 0x772   :  { %v14329_v0 = vunpack.i.h.bf16 %v14327_v35  ;;  %v14328_v61 = vunpack.i.l.bf16 %v14327_v35  ;;  %v2792_v35 = vadd.f32 %v19089_v53, %v21859_v47 }
 0x773   :  { %14761 = vrot.lane.b32.xlu0 %v18759_v51, %s16000_s26  ;;  %v21857_v51 = vld [vmem:[#allocation126_spill] sm:$0xff] }
 0x774   :  { %v6525_v17 = vsel %vm6494_vm3, %v18749_v21, %v14328_v61  ;;  %v6526_v32 = vsel %vm6494_vm3, %v18804_v29, %v14329_v0  ;;  %v5844_v21 = vsel %vm5795_vm0, %v4243_v15, %v14333_v26  ;;  %v14343_v29 = vunpack.i.l.bf16 %v19046_v33  ;;  %v21860_v26 = vld [vmem:[#allocation30_spill] sm:$0xff] }
 0x775   :  { %v19155_v30 = vpop.permute.xlu0 %14481  ;;  %v14337_v40 = vpop.permute.xlu1 %14336  ;;  %v19157_v39 = vpack.c.bf16 %v6526_v32, %v6525_v17  ;;  %14476 = vrot.lane.b32.xlu1 %v21857_v51, %s15999_s13  ;;  %v19174_v0 = vsel %vm5997_vm2, %v5944_v22, %v14324_v59  ;;  %v2797_v17 = vadd.f32 %v19089_v53, %v21860_v26  ;;  %v14334_v32 = vunpack.i.h.bf16 %v19040_v25  ;;  %v21862_v26 = vld [vmem:[#allocation127_spill] sm:$0xff] }
 0x776   :  { %v14338_v27 = vunpack.i.l.bf16 %v14337_v40  ;;  %v14339_v15 = vunpack.i.h.bf16 %v14337_v40  ;;  %v4244_v59 = vmax.f32 %v2792_v35, 0.0  ;;  %v14353_v22 = vunpack.i.l.bf16 %v19050_v56 }
 0x777   :  { %14771 = vrot.lane.b32.xlu0 %v21858_v52, %s15998_s17  ;;  %6890 = vmatprep.mubr.bf16.mxu1 %v19157_v39 }
 0x778   :  { %v5945_v7 = vsel %vm5896_vm1, %v5844_v21, %v14338_v27  ;;  %6891 = vmatmul.mubr.bf16.gmra.mrb[188].mxu1 %v18902_v10  ;;  %v5845_v52 = vsel %vm5795_vm0, %v4244_v59, %v14334_v32 }
 0x779   :  { %v19171_v54 = vpop.permute.xlu0 %14491  ;;  %v19177_v61 = vsel %vm5997_vm2, %v5945_v7, %v14343_v29  ;;  %v4245_v29 = vmax.f32 %v2797_v17, 0.0  ;;  %v21861_v7 = vld [vmem:[#allocation109_spill] sm:$0xff]  ;;  %v5946_v35 = vsel %vm5896_vm1, %v5845_v52, %v14339_v15 }
 0x77a   :  { %v14485_v6 = vpack.i.bf16 %v19177_v61, %v19174_v0 }
 0x77b   :  { %v14347_v10 = vpop.permute.xlu1 %14346  ;;  %14781 = vrot.lane.b32.xlu0 %v18801_v45, %s16000_s26  ;;  %v14363_v45 = vunpack.i.l.bf16 %v19054_v58 }
 0x77c   :  { %v14349_v36 = vunpack.i.h.bf16 %v14347_v10  ;;  %v14348_v27 = vunpack.i.l.bf16 %v14347_v10  ;;  %14486 = vrot.lane.b32.xlu1 %v14485_v6, %s16001_s10 }
 0x77d   :  { %v19188_v51 = vpop.permute.xlu0 %14501 }
 0x77e   :  { %v6527_v21 = vsel %vm6494_vm3, %v18807_v49, %v14348_v27  ;;  %v6528_v25 = vsel %vm6494_vm3, %v18849_v18, %v14349_v36  ;;  %v14344_v49 = vunpack.i.h.bf16 %v19046_v33  ;;  %v5846_v18 = vsel %vm5795_vm0, %v4245_v29, %v14353_v22  ;;  %v21863_v36 = vld [vmem:[#allocation31_spill] sm:$0xff]  ;;  %v21864_v22 = vld [vmem:[#allocation32_spill] sm:$0xff] }
 0x77f   :  { %v14357_v40 = vpop.permute.xlu1 %14356  ;;  %14791 = vrot.lane.b32.xlu0 %v21861_v7, %s15998_s17  ;;  %v19198_v47 = vpack.c.bf16 %v6528_v25, %v6527_v21  ;;  %v4181_v33 = vadd.f32 %v19089_v53, %v18854_v44  ;;  %v2800_v27 = vadd.f32 %v19089_v53, %v21863_v36  ;;  %v14354_v25 = vunpack.i.h.bf16 %v19050_v56  ;;  %v21866_v56 = vld [vmem:[#allocation111_spill] sm:$0xff] }
 0x780   :  { %v14358_v6 = vunpack.i.l.bf16 %v14357_v40  ;;  %14496 = vrot.lane.b32.xlu1 %v21862_v26, %s15999_s13  ;;  %v19213_v10 = vsel %vm5997_vm2, %v5946_v35, %v14344_v49  ;;  %v14373_v44 = vunpack.i.l.bf16 %v19058_v8  ;;  %v21865_v35 = vld [vmem:[#allocation110_spill] sm:$0xff]  ;;  %v14383_v36 = vunpack.i.l.bf16 %v19062_v55 }
 0x781   :  { %6898 = vmatprep.mubr.bf16.mxu1 %v19198_v47  ;;  %v19206_v17 = vpop.permute.xlu0 %14511  ;;  %v4591_v7 = vmax.f32 %v4181_v33, 0.0 }
 0x782   :  { %v5947_v32 = vsel %vm5896_vm1, %v5846_v18, %v14358_v6  ;;  %6899 = vmatmul.mubr.bf16.gmra.mrb[192].mxu1 %v18935_v28  ;;  %v2805_v28 = vadd.f32 %v19089_v53, %v21864_v22  ;;  %v4246_v6 = vmax.f32 %v2800_v27, 0.0  ;;  %v14364_v27 = vunpack.i.h.bf16 %v19054_v58  ;;  %v21869_v58 = vld [vmem:[#allocation34_spill] sm:$0xff] }
 0x783   :  { %14801 = vrot.lane.b32.xlu0 %v18839_v1, %s16000_s26  ;;  %v19216_v15 = vsel %vm5997_vm2, %v5947_v32, %v14363_v45  ;;  %v14359_v45 = vunpack.i.h.bf16 %v14357_v40  ;;  %v3389_v32 = vadd.f32 %v19089_v53, %v21866_v56 }
 0x784   :  { %v14505_v59 = vpack.i.bf16 %v19216_v15, %v19213_v10  ;;  %v4247_v18 = vmax.f32 %v2805_v28, 0.0  ;;  %v5847_v22 = vsel %vm5795_vm0, %v4246_v6, %v14354_v25  ;;  %v2813_v25 = vadd.f32 %v19089_v53, %v21869_v58 }
 0x785   :  { %v19226_v21 = vpop.permute.xlu0 %14521  ;;  %v14367_v1 = vpop.permute.xlu1 %14366  ;;  %v5948_v28 = vsel %vm5896_vm1, %v5847_v22, %v14359_v45  ;;  %v4393_v6 = vmax.f32 %v3389_v32, 0.0  ;;  %v14393_v22 = vunpack.i.l.bf16 %v19066_v3 }
 0x786   :  { %v14369_v29 = vunpack.i.h.bf16 %v14367_v1  ;;  %v14368_v52 = vunpack.i.l.bf16 %v14367_v1  ;;  %14506 = vrot.lane.b32.xlu1 %v14505_v59, %s16001_s10  ;;  %v19265_v56 = vsel %vm5997_vm2, %v5948_v28, %v14364_v27  ;;  %v14403_v28 = vunpack.i.l.bf16 %v19070_v48 }
 0x787   :  { %14811 = vrot.lane.b32.xlu0 %v21865_v35, %s15998_s17 }
 0x788   :  { %v6529_v26 = vsel %vm6494_vm3, %v18852_v12, %v14368_v52  ;;  %v6530_v49 = vsel %vm6494_vm3, %v18891_v13, %v14369_v29  ;;  %v21867_v12 = vld [vmem:[#allocation128_spill] sm:$0xff]  ;;  %v5848_v13 = vsel %vm5795_vm0, %v4247_v18, %v14373_v44  ;;  %v21868_v29 = vld [vmem:[#allocation33_spill] sm:$0xff] }
 0x789   :  { %v19240_v59 = vpop.permute.xlu0 %14531  ;;  %v14377_v40 = vpop.permute.xlu1 %14376  ;;  %v19242_v33 = vpack.c.bf16 %v6530_v49, %v6529_v26  ;;  %v2808_v52 = vadd.f32 %v19089_v53, %v21868_v29 }
 0x78a   :  { %v14378_v1 = vunpack.i.l.bf16 %v14377_v40  ;;  %14516 = vrot.lane.b32.xlu1 %v21867_v12, %s15999_s13  ;;  %v4249_v12 = vmax.f32 %v2813_v25, 0.0 }
 0x78b   :  { %5687 = vrot.lane.b32.xlu0 %v4591_v7, %s16000_s26  ;;  %6906 = vmatprep.mubr.bf16.mxu1 %v19242_v33  ;;  %v14374_v7 = vunpack.i.h.bf16 %v19058_v8 }
 0x78c   :  { %v5949_v35 = vsel %vm5896_vm1, %v5848_v13, %v14378_v1  ;;  %6907 = vmatmul.mubr.bf16.gmra.mrb[196].mxu1 %v18966_v9  ;;  %v14379_v9 = vunpack.i.h.bf16 %v14377_v40  ;;  %v4248_v1 = vmax.f32 %v2808_v52, 0.0  ;;  %v21870_v13 = vld [vmem:[#allocation112_spill] sm:$0xff] }
 0x78d   :  { %v19258_v26 = vpop.permute.xlu0 %14541  ;;  %v14387_v44 = vpop.permute.xlu1 %14386  ;;  %v19261_v45 = vsel %vm5997_vm2, %v5949_v35, %v14383_v36  ;;  %v3392_v27 = vadd.f32 %v19089_v53, %v21870_v13 }
 0x78e   :  { %v14389_v49 = vunpack.i.h.bf16 %v14387_v44  ;;  %v14388_v18 = vunpack.i.l.bf16 %v14387_v44  ;;  %v14525_v32 = vpack.i.bf16 %v19261_v45, %v19265_v56  ;;  %v5849_v52 = vsel %vm5795_vm0, %v4248_v1, %v14374_v7  ;;  %v21871_v44 = vld [vmem:[#allocation35_spill] sm:$0xff] }
 0x78f   :  { %4891 = vrot.lane.b32.xlu0 %v4393_v6, %s15998_s17  ;;  %v5950_v25 = vsel %vm5896_vm1, %v5849_v52, %v14379_v9  ;;  %v4192_v6 = vadd.f32 %v19089_v53, %v19044_v60  ;;  %v21873_v9 = vld [vmem:[#allocation129_spill] sm:$0xff]  ;;  %v14394_v60 = vunpack.i.h.bf16 %v19066_v3 }
 0x790   :  { %v6531_v36 = vsel %vm6494_vm3, %v18894_v46, %v14388_v18  ;;  %v6532_v8 = vsel %vm6494_vm3, %v18919_v20, %v14389_v49  ;;  %14526 = vrot.lane.b32.xlu1 %v14525_v32, %s16001_s10  ;;  %v14384_v46 = vunpack.i.h.bf16 %v19062_v55  ;;  %v5850_v20 = vsel %vm5795_vm0, %v4249_v12, %v14393_v22  ;;  %v21872_v55 = vld [vmem:[#allocation36_spill] sm:$0xff] }
 0x791   :  { %v19279_v40 = vpop.permute.xlu0 %14551  ;;  %v14397_v29 = vpop.permute.xlu1 %14396  ;;  %v19281_v35 = vpack.c.bf16 %v6532_v8, %v6531_v36  ;;  %v2816_v49 = vadd.f32 %v19089_v53, %v21871_v44  ;;  %v2821_v18 = vadd.f32 %v19089_v53, %v21872_v55  ;;  %v4394_v22 = vmax.f32 %v3392_v27, 0.0 }
 0x792   :  { %v14398_v58 = vunpack.i.l.bf16 %v14397_v29  ;;  %v19307_v12 = vsel %vm5997_vm2, %v5950_v25, %v14384_v46  ;;  %v14399_v13 = vunpack.i.h.bf16 %v14397_v29  ;;  %v4594_v52 = vmax.f32 %v4192_v6, 0.0 }
 0x793   :  { %14826 = vrot.lane.b32.xlu0 %v18908_v62, %s16000_s26  ;;  %6914 = vmatprep.mubr.bf16.mxu1 %v19281_v35  ;;  %v14423_v46 = vunpack.i.l.bf16 %v19078_v24  ;;  %v14404_v6 = vunpack.i.h.bf16 %v19070_v48  ;;  %v21876_v48 = vld [vmem:[#allocation130_spill] sm:$0xff] }
 0x794   :  { %v5951_v7 = vsel %vm5896_vm1, %v5850_v20, %v14398_v58  ;;  %6915 = vmatmul.mubr.bf16.gmra.mrb[200].mxu1 %v19001_v11  ;;  %14536 = vrot.lane.b32.xlu1 %v21873_v9, %s15999_s13  ;;  %v14413_v11 = vunpack.i.l.bf16 %v19074_v23  ;;  %v4250_v58 = vmax.f32 %v2816_v49, 0.0  ;;  %v4251_v20 = vmax.f32 %v2821_v18, 0.0  ;;  %v21875_v9 = vld [vmem:[#allocation38_spill] sm:$0xff] }
 0x795   :  { %v19300_v62 = vpop.permute.xlu0 %14561  ;;  %v14407_v32 = vpop.permute.xlu1 %14406  ;;  %v19303_v1 = vsel %vm5997_vm2, %v5951_v7, %v14403_v28 }
 0x796   :  { %v14409_v36 = vunpack.i.h.bf16 %v14407_v32  ;;  %v14408_v8 = vunpack.i.l.bf16 %v14407_v32  ;;  %v14545_v27 = vpack.i.bf16 %v19303_v1, %v19307_v12  ;;  %v5851_v7 = vsel %vm5795_vm0, %v4250_v58, %v14394_v60  ;;  %v15504_v58 = vld [vmem:[%s21584_s5 + $0x24] ss:$8 sps:$4 sm:$0xff]  }
 0x797   :  { %4893 = vrot.lane.b32.xlu0 %v4394_v22, %s15998_s17  ;;  %v5952_v55 = vsel %vm5896_vm1, %v5851_v7, %v14399_v13  ;;  %v2829_v32 = vadd.f32 %v19089_v53, %v21875_v9  ;;  %v14414_v13 = vunpack.i.h.bf16 %v19074_v23  ;;  %7278 = vmatprep.subr.bf16.mxu1 %v15504_v58 }
 0x798   :  { %v6533_v28 = vsel %vm6494_vm3, %v18927_v16, %v14408_v8  ;;  %v6534_v3 = vsel %vm6494_vm3, %v18955_v63, %v14409_v36  ;;  %14546 = vrot.lane.b32.xlu1 %v14545_v27, %s16001_s10  ;;  %v5852_v16 = vsel %vm5795_vm0, %v4251_v20, %v14413_v11  ;;  %v21874_v63 = vld [vmem:[#allocation37_spill] sm:$0xff]  ;;  %v15502_v11 = vld [vmem:[%s21584_s5 + $0x20] ss:$8 sps:$4 sm:$0xff]  }
 0x799   :  { %v19319_v25 = vpop.permute.xlu0 %14571  ;;  %v14417_v29 = vpop.permute.xlu1 %14416  ;;  %v19321_v44 = vpack.c.bf16 %v6534_v3, %v6533_v28  ;;  %v2824_v18 = vadd.f32 %v19089_v53, %v21874_v63  ;;  %v14433_v28 = vunpack.i.l.bf16 %v19082_v43  ;;  %7279 = vmatpush1.bf16.msra.mxu1 %v15502_v11  ;;  %v21879_v11 = vld [vmem:[#allocation57_spill] sm:$0xff] }
 0x79a   :  { %v14418_v49 = vunpack.i.l.bf16 %v14417_v29  ;;  %v14419_v3 = vunpack.i.h.bf16 %v14417_v29 }
 0x79b   :  { %6922 = vmatprep.mubr.bf16.mxu1 %v19321_v44  ;;  %5693 = vrot.lane.b32.xlu0 %v4594_v52, %s16000_s26  ;;  %v19347_v52 = vsel %vm5997_vm2, %v5952_v55, %v14404_v6  ;;  %v4253_v6 = vmax.f32 %v2829_v32, 0.0 }
 0x79c   :  { %v5953_v22 = vsel %vm5896_vm1, %v5852_v16, %v14418_v49  ;;  %6923 = vmatmul.mubr.bf16.gmra.mrb[204].mxu1 %v19116_v38  ;;  %14556 = vrot.lane.b32.xlu1 %v21876_v48, %s15999_s13  ;;  %v14443_v49 = vunpack.i.l.bf16 %v19097_v42  ;;  %v21878_v48 = vld [vmem:[#allocation40_spill] sm:$0xff] }
 0x79d   :  { %v19337_v60 = vpop.permute.xlu0 %14581  ;;  %v14427_v36 = vpop.permute.xlu1 %14426  ;;  %v19340_v8 = vsel %vm5997_vm2, %v5953_v22, %v14423_v46  ;;  %v4252_v46 = vmax.f32 %v2824_v18, 0.0  ;;  %v14424_v18 = vunpack.i.h.bf16 %v19078_v24  ;;  %v21877_v22 = vld [vmem:[#allocation39_spill] sm:$0xff]  ;;  %v5854_v9 = vsel %vm5795_vm0, %v4253_v6, %v14433_v28 }
 0x79e   :  { %v14429_v27 = vunpack.i.h.bf16 %v14427_v36  ;;  %v14428_v38 = vunpack.i.l.bf16 %v14427_v36  ;;  %v14565_v20 = vpack.i.bf16 %v19340_v8, %v19347_v52  ;;  %v2837_v36 = vadd.f32 %v19089_v53, %v21878_v48 }
 0x79f   :  { %v5853_v63 = vsel %vm5795_vm0, %v4252_v46, %v14414_v13  ;;  %v2904_v24 = vadd.f32 %v19089_v53, %v21879_v11  ;;  %v14434_v13 = vunpack.i.h.bf16 %v19082_v43 }
 0x7a0   :  { %v6535_v7 = vsel %vm6494_vm3, %v18958_v2, %v14428_v38  ;;  %v6536_v23 = vsel %vm6494_vm3, %v18981_v4, %v14429_v27  ;;  %14566 = vrot.lane.b32.xlu1 %v14565_v20, %s16001_s10  ;;  %v2832_v4 = vadd.f32 %v19089_v53, %v21877_v22  ;;  %v5954_v32 = vsel %vm5896_vm1, %v5853_v63, %v14419_v3  ;;  %v21880_v38 = vld [vmem:[#allocation131_spill] sm:$0xff] }
 0x7a1   :  { %v19361_v16 = vpop.permute.xlu0 %14591  ;;  %v14437_v55 = vpop.permute.xlu1 %14436  ;;  %v19363_v29 = vpack.c.bf16 %v6536_v23, %v6535_v7  ;;  %v19387_v23 = vsel %vm5997_vm2, %v5954_v32, %v14424_v18  ;;  %v14453_v53 = vunpack.i.l.bf16 %v19103_v31  ;;  %v4255_v6 = vmax.f32 %v2837_v36, 0.0 }
 0x7a2   :  { %v14438_v2 = vunpack.i.l.bf16 %v14437_v55  ;;  %v14439_v20 = vunpack.i.h.bf16 %v14437_v55  ;;  %v14463_v18 = vunpack.i.l.bf16 %v19123_v5 }
 0x7a3   :  { %6929 = vmatprep.mubr.bf16.mxu1 %v19363_v29  ;;  %v5856_v48 = vsel %vm5795_vm0, %v4255_v6, %v14453_v53 }
 0x7a4   :  { %v5955_v27 = vsel %vm5896_vm1, %v5854_v9, %v14438_v2  ;;  %6930 = vmatmul.mubr.bf16.gmra.mrb[208].mxu1 %v19157_v39  ;;  %14576 = vrot.lane.b32.xlu1 %v21880_v38, %s15999_s13  ;;  %v4254_v39 = vmax.f32 %v2832_v4, 0.0  ;;  %v14444_v2 = vunpack.i.h.bf16 %v19097_v42  ;;  %v4272_v9 = vmax.f32 %v2904_v24, 0.0 }
 0x7a5   :  { %v19381_v58 = vpop.permute.xlu0 %14601  ;;  %v14447_v28 = vpop.permute.xlu1 %14446  ;;  %v19384_v3 = vsel %vm5997_vm2, %v5955_v27, %v14443_v49  ;;  %v21881_v27 = vld [vmem:[#allocation132_spill] sm:$0xff] }
 0x7a6   :  { %v14449_v46 = vunpack.i.h.bf16 %v14447_v28  ;;  %v14448_v7 = vunpack.i.l.bf16 %v14447_v28  ;;  %v14585_v43 = vpack.i.bf16 %v19384_v3, %v19387_v23  ;;  %v5855_v55 = vsel %vm5795_vm0, %v4254_v39, %v14434_v13 }
 0x7a8   :  { %v6537_v63 = vsel %vm6494_vm3, %v18989_v37, %v14448_v7  ;;  %v6538_v49 = vsel %vm6494_vm3, %v19022_v41, %v14449_v46  ;;  %14586 = vrot.lane.b32.xlu1 %v14585_v43, %s16001_s10  ;;  %v5956_v37 = vsel %vm5896_vm1, %v5855_v55, %v14439_v20 }
 0x7a9   :  { %v19400_v22 = vpop.permute.xlu0 %14611  ;;  %v19402_v31 = vpop.permute.xlu1 %14456  ;;  %v19404_v4 = vpack.c.bf16 %v6538_v49, %v6537_v63  ;;  %v19421_v24 = vsel %vm5997_vm2, %v5956_v37, %v14444_v2 }
 0x7aa   :  { %v14614_v32 = vunpack.i.h.bf16 %v19400_v22  ;;  %v14458_v41 = vunpack.i.l.bf16 %v19402_v31 }
 0x7ab   :  { %6937 = vmatprep.mubr.bf16.mxu1 %v19404_v4 }
 0x7ac   :  { %v19412_v42 = vsel %vm5795_vm0, %v4272_v9, %v14614_v32  ;;  %v5957_v36 = vsel %vm5896_vm1, %v5856_v48, %v14458_v41  ;;  %6938 = vmatmul.mubr.bf16.gmra.mrb[212].mxu1 %v19198_v47  ;;  %14596 = vrot.lane.b32.xlu1 %v21881_v27, %s15999_s13  ;;  %v21882_v47 = vld [vmem:[#allocation133_spill] sm:$0xff] }
 0x7ad   :  { %v19418_v11 = vpop.permute.xlu0 %14621  ;;  %v19424_v13 = vsel %vm5997_vm2, %v5957_v36, %v14463_v18 }
 0x7ae   :  { %v14605_v38 = vpack.i.bf16 %v19424_v13, %v19421_v24 }
 0x7b0   :  { %14606 = vrot.lane.b32.xlu1 %v14605_v38, %s16001_s10 }
 0x7b1   :  { %v19429_v28 = vpop.permute.xlu0 %14631 }
 0x7b4   :  { %14616 = vrot.lane.b32.xlu1 %v21882_v47, %s15999_s13 }
 0x7b5   :  { %v19433_v20 = vpop.permute.xlu0 %14641 }
 0x7b9   :  { %v19435_v46 = vpop.permute.xlu0 %14651 }
 0x7bd   :  { %v19437_v7 = vpop.permute.xlu0 %14661 }
 0x7bf   :  { %v19439_v39 = vpop.f32.mrb[148].mxu1 }
 0x7c0   :  { %21883 = vst [vmem:[#allocation146_spill] sm:$0xff] %v19439_v39  ;;  %v6816_v53 = vpop.f32.mrb[149].mxu1 }
 0x7c1   :  { %v19441_v43 = vpop.permute.xlu0 %14671  ;;  %v19443_v6 = vpop.f32.mrb[150].mxu1 }
 0x7c2   :  { %21884 = vst [vmem:[#allocation5_spill] sm:$0xff] %v19441_v43  ;;  %21885 = vst [vmem:[#allocation6_spill] sm:$0xff] %v19443_v6  ;;  %v6819_v63 = vpop.f32.mrb[151].mxu1 }
 0x7c5   :  { %v19445_v49 = vpop.permute.xlu0 %14681 }
 0x7c6   :  { %21886 = vst [vmem:[#allocation81_spill] sm:$0xff] %v19445_v49 }
 0x7c7   :  { %v19447_v55 = vpop.f32.mrb[152].mxu1 }
 0x7c8   :  { %21887 = vst [vmem:[#allocation114_spill] sm:$0xff] %v19447_v55  ;;  %v6824_v2 = vpop.f32.mrb[153].mxu1 }
 0x7c9   :  { %v19449_v18 = vpop.permute.xlu0 %14691  ;;  %v19451_v9 = vpop.f32.mrb[154].mxu1 }
 0x7ca   :  { %21888 = vst [vmem:[#allocation147_spill] sm:$0xff] %v19449_v18  ;;  %21889 = vst [vmem:[#allocation8_spill] sm:$0xff] %v19451_v9  ;;  %v6827_v37 = vpop.f32.mrb[155].mxu1 }
 0x7cd   :  { %v19453_v32 = vpop.permute.xlu0 %14701 }
 0x7ce   :  { %21890 = vst [vmem:[#allocation7_spill] sm:$0xff] %v19453_v32 }
 0x7cf   :  { %v19455_v41 = vpop.f32.mrb[156].mxu1 }
 0x7d0   :  { %21891 = vst [vmem:[#allocation82_spill] sm:$0xff] %v19455_v41  ;;  %v6832_v48 = vpop.f32.mrb[157].mxu1 }
 0x7d1   :  { %v19457_v36 = vpop.permute.xlu0 %14711  ;;  %v19459_v27 = vpop.f32.mrb[158].mxu1 }
 0x7d2   :  { %21892 = vst [vmem:[#allocation115_spill] sm:$0xff] %v19457_v36  ;;  %21893 = vst [vmem:[#allocation148_spill] sm:$0xff] %v19459_v27  ;;  %v6835_v38 = vpop.f32.mrb[159].mxu1 }
 0x7d3   :  { %v19478_v38 = vld [vmem:[%s21582_s2] ss:$0 sm:$0xff] }
 0x7d5   :  { %v19461_v47 = vpop.permute.xlu0 %14721 }
 0x7d6   :  { %21894 = vst [vmem:[#allocation83_spill] sm:$0xff] %v19461_v47 }
 0x7d8   :  { %v19463_v53 = vpop.f32.mrb[160].mxu1 }
 0x7d9   :  { %21895 = vst [vmem:[#allocation116_spill] sm:$0xff] %v19463_v53  ;;  %v6840_v63 = vpop.f32.mrb[161].mxu1  ;;  %v19465_v2 = vpop.permute.xlu0 %14731 }
 0x7da   :  { %21896 = vst [vmem:[#allocation149_spill] sm:$0xff] %v19465_v2  ;;  %v19467_v55 = vpop.f32.mrb[162].mxu1  ;;  %v21901_v63 = vld [vmem:[#allocation42_spill] sm:$0xff] }
 0x7db   :  { %21897 = vst [vmem:[#allocation84_spill] sm:$0xff] %v19467_v55  ;;  %v6843_v37 = vpop.f32.mrb[163].mxu1  ;;  %v2845_v53 = vadd.f32 %v19478_v38, %v21901_v63  ;;  %v14464_v63 = vunpack.i.h.bf16 %v19123_v5 }
 0x7dc   :  { %v14459_v37 = vunpack.i.h.bf16 %v19402_v31  ;;  %v14483_v31 = vunpack.i.l.bf16 %v19155_v30 }
 0x7dd   :  { %v19469_v9 = vpop.permute.xlu0 %14741  ;;  %v4257_v36 = vmax.f32 %v2845_v53, 0.0  ;;  %v21905_v53 = vld [vmem:[#allocation43_spill] sm:$0xff] }
 0x7de   :  { %21898 = vst [vmem:[#allocation117_spill] sm:$0xff] %v19469_v9 }
 0x7e0   :  { %v19471_v39 = vpop.f32.mrb[164].mxu1 }
 0x7e1   :  { %21899 = vst [vmem:[#allocation150_spill] sm:$0xff] %v19471_v39  ;;  %v6848_v48 = vpop.f32.mrb[165].mxu1  ;;  %v19473_v41 = vpop.permute.xlu0 %14751 }
 0x7e2   :  { %21900 = vst [vmem:[#allocation85_spill] sm:$0xff] %v19473_v41  ;;  %v6849_v6 = vpop.f32.mrb[166].mxu1  ;;  %v21903_v48 = vld [vmem:[#allocation73_spill] sm:$0xff] }
 0x7e3   :  { %v6850_v27 = vpop.f32.mrb[167].mxu1  ;;  %v14467_v2 = vpop.permute.xlu1 %14466  ;;  %v2968_v39 = vadd.f32 %v19478_v38, %v21903_v48  ;;  %v14473_v6 = vunpack.i.l.bf16 %v19143_v34  ;;  %v5958_v48 = vsel %vm5896_vm1, %v19119_v57, %v14459_v37  ;;  %v2848_v57 = vadd.f32 %v19478_v38, %v21905_v53 }
 0x7e4   :  { %v14469_v55 = vunpack.i.h.bf16 %v14467_v2  ;;  %v14468_v9 = vunpack.i.l.bf16 %v14467_v2 }
 0x7e5   :  { %v19483_v47 = vpop.permute.xlu0 %14761 }
 0x7e6   :  { %21902 = vst [vmem:[#allocation151_spill] sm:$0xff] %v19483_v47  ;;  %v6539_v27 = vsel %vm6494_vm3, %v19025_v14, %v14468_v9  ;;  %v6540_v41 = vsel %vm6494_vm3, %v19131_v50, %v14469_v55  ;;  %v4288_v14 = vmax.f32 %v2968_v39, 0.0  ;;  %v5858_v50 = vsel %vm5795_vm0, %v4257_v36, %v14473_v6  ;;  %v21906_v6 = vld [vmem:[#allocation44_spill] sm:$0xff] }
 0x7e7   :  { %v14477_v32 = vpop.permute.xlu1 %14476  ;;  %v19496_v47 = vpack.c.bf16 %v6540_v41, %v6539_v27  ;;  %v19515_v39 = vsel %vm5997_vm2, %v5958_v48, %v14464_v63  ;;  %v14493_v63 = vunpack.i.l.bf16 %v19171_v54 }
 0x7e8   :  { %v19494_v2 = vpop.f32.mrb[168].mxu1  ;;  %v14478_v18 = vunpack.i.l.bf16 %v14477_v32 }
 0x7e9   :  { %v6855_v49 = vpop.f32.mrb[169].mxu1  ;;  %v19500_v43 = vpop.permute.xlu0 %14771  ;;  %6945 = vmatprep.mubr.bf16.mxu1 %v19496_v47 }
 0x7ea   :  { %v14774_v55 = vunpack.i.h.bf16 %v19500_v43  ;;  %v19504_v5 = vpop.f32.mrb[170].mxu1  ;;  %v5959_v9 = vsel %vm5896_vm1, %v5858_v50, %v14478_v18  ;;  %6946 = vmatmul.mubr.bf16.gmra.mrb[216].mxu1 %v19242_v33  ;;  %v2853_v18 = vadd.f32 %v19478_v38, %v21906_v6  ;;  %v14474_v33 = vunpack.i.h.bf16 %v19143_v34 }
 0x7eb   :  { %21904 = vst [vmem:[#allocation86_spill] sm:$0xff] %v19504_v5  ;;  %v6858_v41 = vpop.f32.mrb[171].mxu1  ;;  %v19518_v36 = vsel %vm5997_vm2, %v5959_v9, %v14483_v31  ;;  %v14479_v50 = vunpack.i.h.bf16 %v14477_v32  ;;  %v14484_v32 = vunpack.i.h.bf16 %v19155_v30 }
 0x7ec   :  { %v19512_v49 = vsel %vm5795_vm0, %v4288_v14, %v14774_v55  ;;  %v14625_v37 = vpack.i.bf16 %v19518_v36, %v19515_v39  ;;  %v4258_v14 = vmax.f32 %v2848_v57, 0.0  ;;  %v4259_v6 = vmax.f32 %v2853_v18, 0.0  ;;  %v21909_v18 = vld [vmem:[#allocation45_spill] sm:$0xff] }
 0x7ee   :  { %v14487_v27 = vpop.permute.xlu1 %14486  ;;  %14626 = vrot.lane.b32.xlu1 %v14625_v37, %s16001_s10  ;;  %v5859_v34 = vsel %vm5795_vm0, %v4258_v14, %v14474_v33  ;;  %v2856_v33 = vadd.f32 %v19478_v38, %v21909_v18 }
 0x7ef   :  { %v14489_v41 = vunpack.i.h.bf16 %v14487_v27  ;;  %v14488_v53 = vunpack.i.l.bf16 %v14487_v27  ;;  %v5960_v5 = vsel %vm5896_vm1, %v5859_v34, %v14479_v50 }
 0x7f0   :  { %v19527_v48 = vpop.f32.mrb[172].mxu1  ;;  %v19550_v50 = vsel %vm5997_vm2, %v5960_v5, %v14484_v32  ;;  %v4260_v5 = vmax.f32 %v2856_v33, 0.0  ;;  %v14513_v32 = vunpack.i.l.bf16 %v19206_v17 }
 0x7f1   :  { %21907 = vst [vmem:[#allocation154_spill] sm:$0xff] %v19527_v48  ;;  %v6863_v31 = vpop.f32.mrb[173].mxu1  ;;  %v6541_v55 = vsel %vm6494_vm3, %v19136_v19, %v14488_v53  ;;  %v6542_v9 = vsel %vm6494_vm3, %v19174_v0, %v14489_v41  ;;  %v5860_v53 = vsel %vm5795_vm0, %v4259_v6, %v14493_v63  ;;  %v14503_v0 = vunpack.i.l.bf16 %v19188_v51  ;;  %v21910_v63 = vld [vmem:[#allocation46_spill] sm:$0xff] }
 0x7f2   :  { %v19535_v27 = vpop.f32.mrb[174].mxu1  ;;  %v14497_v37 = vpop.permute.xlu1 %14496  ;;  %v19537_v57 = vpack.c.bf16 %v6542_v9, %v6541_v55  ;;  %v21908_v31 = vld [vmem:[#allocation134_spill] sm:$0xff]  ;;  %v2861_v55 = vadd.f32 %v19478_v38, %v21910_v63  ;;  %v14494_v9 = vunpack.i.h.bf16 %v19171_v54  ;;  %v14523_v63 = vunpack.i.l.bf16 %v19226_v21 }
 0x7f3   :  { %v14498_v48 = vunpack.i.l.bf16 %v14497_v37  ;;  %14636 = vrot.lane.b32.xlu1 %v21908_v31, %s15999_s13  ;;  %v6866_v19 = vpop.f32.mrb[175].mxu1 }
 0x7f4   :  { %6953 = vmatprep.mubr.bf16.mxu1 %v19537_v57  ;;  %v4261_v18 = vmax.f32 %v2861_v55, 0.0 }
 0x7f5   :  { %v5961_v30 = vsel %vm5896_vm1, %v5860_v53, %v14498_v48  ;;  %6954 = vmatmul.mubr.bf16.gmra.mrb[220].mxu1 %v19281_v35  ;;  %v14499_v35 = vunpack.i.h.bf16 %v14497_v37  ;;  %v5861_v37 = vsel %vm5795_vm0, %v4260_v5, %v14494_v9 }
 0x7f6   :  { %v19553_v41 = vsel %vm5997_vm2, %v5961_v30, %v14503_v0 }
 0x7f7   :  { %v14645_v14 = vpack.i.bf16 %v19553_v41, %v19550_v50  ;;  %v5962_v33 = vsel %vm5896_vm1, %v5861_v37, %v14499_v35 }
 0x7f8   :  { %v14507_v48 = vpop.permute.xlu1 %14506  ;;  %v19560_v6 = vpop.f32.mrb[176].mxu1 }
 0x7f9   :  { %v14509_v34 = vunpack.i.h.bf16 %v14507_v48  ;;  %v14508_v31 = vunpack.i.l.bf16 %v14507_v48  ;;  %v6871_v19 = vpop.f32.mrb[177].mxu1  ;;  %14646 = vrot.lane.b32.xlu1 %v14645_v14, %s16001_s10 }
 0x7fa   :  { %v19564_v53 = vpop.f32.mrb[178].mxu1 }
 0x7fb   :  { %21911 = vst [vmem:[#allocation87_spill] sm:$0xff] %v19564_v53  ;;  %v6874_v0 = vpop.f32.mrb[179].mxu1  ;;  %v6543_v30 = vsel %vm6494_vm3, %v19177_v61, %v14508_v31  ;;  %v6544_v54 = vsel %vm6494_vm3, %v19213_v10, %v14509_v34  ;;  %v21912_v53 = vld [vmem:[#allocation135_spill] sm:$0xff]  ;;  %v5862_v61 = vsel %vm5795_vm0, %v4261_v18, %v14513_v32  ;;  %v21914_v32 = vld [vmem:[#allocation48_spill] sm:$0xff] }
 0x7fc   :  { %v14517_v48 = vpop.permute.xlu1 %14516  ;;  %v19572_v19 = vpack.c.bf16 %v6544_v54, %v6543_v30  ;;  %v14504_v0 = vunpack.i.h.bf16 %v19188_v51  ;;  %v21913_v34 = vld [vmem:[#allocation47_spill] sm:$0xff] }
 0x7fd   :  { %v14518_v14 = vunpack.i.l.bf16 %v14517_v48  ;;  %14656 = vrot.lane.b32.xlu1 %v21912_v53, %s15999_s13  ;;  %v2864_v31 = vadd.f32 %v19478_v38, %v21913_v34  ;;  %v2869_v53 = vadd.f32 %v19478_v38, %v21914_v32  ;;  %v14519_v37 = vunpack.i.h.bf16 %v14517_v48  ;;  %v21915_v48 = vld [vmem:[#allocation136_spill] sm:$0xff] }
 0x7fe   :  { %6961 = vmatprep.mubr.bf16.mxu1 %v19572_v19  ;;  %v19585_v9 = vsel %vm5997_vm2, %v5962_v33, %v14504_v0  ;;  %v14533_v0 = vunpack.i.l.bf16 %v19240_v59 }
 0x7ff   :  { %v5963_v10 = vsel %vm5896_vm1, %v5862_v61, %v14518_v14  ;;  %6962 = vmatmul.mubr.bf16.gmra.mrb[224].mxu1 %v19321_v44  ;;  %v14514_v44 = vunpack.i.h.bf16 %v19206_v17  ;;  %v4262_v14 = vmax.f32 %v2864_v31, 0.0  ;;  %v4263_v61 = vmax.f32 %v2869_v53, 0.0 }
 0x800   :  { %v19582_v55 = vpop.f32.mrb[180].mxu1  ;;  %v19588_v35 = vsel %vm5997_vm2, %v5963_v10, %v14523_v63  ;;  %v14524_v17 = vunpack.i.h.bf16 %v19226_v21 }
 0x801   :  { %v6879_v51 = vpop.f32.mrb[181].mxu1  ;;  %v14665_v5 = vpack.i.bf16 %v19588_v35, %v19585_v9 }
 0x802   :  { %v19596_v30 = vpop.f32.mrb[182].mxu1  ;;  %v14527_v54 = vpop.permute.xlu1 %14526  ;;  %v5863_v51 = vsel %vm5795_vm0, %v4262_v14, %v14514_v44  ;;  %v21917_v44 = vld [vmem:[#allocation50_spill] sm:$0xff] }
 0x803   :  { %14666 = vrot.lane.b32.xlu1 %v14665_v5, %s16001_s10  ;;  %v6882_v18 = vpop.f32.mrb[183].mxu1  ;;  %v14529_v63 = vunpack.i.h.bf16 %v14527_v54  ;;  %v14528_v33 = vunpack.i.l.bf16 %v14527_v54  ;;  %v14543_v5 = vunpack.i.l.bf16 %v19258_v26  ;;  %v5964_v53 = vsel %vm5896_vm1, %v5863_v51, %v14519_v37 }
 0x804   :  { %v21916_v18 = vld [vmem:[#allocation49_spill] sm:$0xff]  ;;  %v2877_v21 = vadd.f32 %v19478_v38, %v21917_v44  ;;  %v19623_v37 = vsel %vm5997_vm2, %v5964_v53, %v14524_v17 }
 0x805   :  { %v6545_v10 = vsel %vm6494_vm3, %v19216_v15, %v14528_v33  ;;  %v6546_v34 = vsel %vm6494_vm3, %v19265_v56, %v14529_v63  ;;  %v2872_v15 = vadd.f32 %v19478_v38, %v21916_v18  ;;  %v5864_v56 = vsel %vm5795_vm0, %v4263_v61, %v14533_v0 }
 0x806   :  { %v14537_v32 = vpop.permute.xlu1 %14536  ;;  %v19610_v31 = vpack.c.bf16 %v6546_v34, %v6545_v10  ;;  %v14534_v33 = vunpack.i.h.bf16 %v19240_v59  ;;  %v4265_v18 = vmax.f32 %v2877_v21, 0.0  ;;  %v21918_v21 = vld [vmem:[#allocation51_spill] sm:$0xff] }
 0x807   :  { %14676 = vrot.lane.b32.xlu1 %v21915_v48, %s15999_s13  ;;  %v14538_v54 = vunpack.i.l.bf16 %v14537_v32  ;;  %v14539_v34 = vunpack.i.h.bf16 %v14537_v32  ;;  %v4264_v48 = vmax.f32 %v2872_v15, 0.0  ;;  %v14563_v32 = vunpack.i.l.bf16 %v19300_v62 }
 0x808   :  { %6968 = vmatprep.mubr.bf16.mxu1 %v19610_v31 }
 0x809   :  { %v5965_v63 = vsel %vm5896_vm1, %v5864_v56, %v14538_v54  ;;  %6969 = vmatmul.mubr.bf16.gmra.mrb[228].mxu1 %v19363_v29  ;;  %v14553_v54 = vunpack.i.l.bf16 %v19279_v40  ;;  %v5865_v17 = vsel %vm5795_vm0, %v4264_v48, %v14534_v33 }
 0x80a   :  { %v14547_v14 = vpop.permute.xlu1 %14546  ;;  %v19626_v10 = vsel %vm5997_vm2, %v5965_v63, %v14543_v5  ;;  %v14544_v5 = vunpack.i.h.bf16 %v19258_v26  ;;  %v5966_v15 = vsel %vm5896_vm1, %v5865_v17, %v14539_v34  ;;  %v2880_v63 = vadd.f32 %v19478_v38, %v21918_v21 }
 0x80b   :  { %v14549_v0 = vunpack.i.h.bf16 %v14547_v14  ;;  %v14548_v61 = vunpack.i.l.bf16 %v14547_v14  ;;  %v14685_v51 = vpack.i.bf16 %v19626_v10, %v19623_v37  ;;  %v21920_v14 = vld [vmem:[#allocation137_spill] sm:$0xff]  ;;  %v14554_v34 = vunpack.i.h.bf16 %v19279_v40 }
 0x80c   :  { %v14573_v17 = vunpack.i.l.bf16 %v19319_v25 }
 0x80d   :  { %14686 = vrot.lane.b32.xlu1 %v14685_v51, %s16001_s10  ;;  %v6547_v59 = vsel %vm6494_vm3, %v19261_v45, %v14548_v61  ;;  %v6548_v29 = vsel %vm6494_vm3, %v19307_v12, %v14549_v0  ;;  %v5866_v45 = vsel %vm5795_vm0, %v4265_v18, %v14553_v54  ;;  %v21919_v12 = vld [vmem:[#allocation52_spill] sm:$0xff]  ;;  %v19654_v61 = vsel %vm5997_vm2, %v5966_v15, %v14544_v5 }
 0x80e   :  { %v14557_v53 = vpop.permute.xlu1 %14556  ;;  %v19639_v56 = vpack.c.bf16 %v6548_v29, %v6547_v59  ;;  %v2885_v33 = vadd.f32 %v19478_v38, %v21919_v12  ;;  %v4266_v29 = vmax.f32 %v2880_v63, 0.0  ;;  %v21921_v12 = vld [vmem:[#allocation53_spill] sm:$0xff] }
 0x80f   :  { %v14558_v44 = vunpack.i.l.bf16 %v14557_v53  ;;  %v14559_v48 = vunpack.i.h.bf16 %v14557_v53  ;;  %v14583_v53 = vunpack.i.l.bf16 %v19337_v60 }
 0x810   :  { %6976 = vmatprep.mubr.bf16.mxu1 %v19639_v56  ;;  %v5867_v5 = vsel %vm5795_vm0, %v4266_v29, %v14554_v34  ;;  %v14574_v34 = vunpack.i.h.bf16 %v19319_v25 }
 0x811   :  { %v5967_v26 = vsel %vm5896_vm1, %v5866_v45, %v14558_v44  ;;  %14696 = vrot.lane.b32.xlu1 %v21920_v14, %s15999_s13  ;;  %6977 = vmatmul.mubr.bf16.gmra.mrb[232].mxu1 %v19404_v4  ;;  %v4267_v44 = vmax.f32 %v2885_v33, 0.0  ;;  %v5968_v63 = vsel %vm5896_vm1, %v5867_v5, %v14559_v48  ;;  %v2888_v33 = vadd.f32 %v19478_v38, %v21921_v12  ;;  %v21923_v14 = vld [vmem:[#allocation138_spill] sm:$0xff] }
 0x812   :  { %v14567_v0 = vpop.permute.xlu1 %14566  ;;  %v19657_v51 = vsel %vm5997_vm2, %v5967_v26, %v14563_v32  ;;  %v14564_v32 = vunpack.i.h.bf16 %v19300_v62 }
 0x813   :  { %v14569_v54 = vunpack.i.h.bf16 %v14567_v0  ;;  %v14568_v18 = vunpack.i.l.bf16 %v14567_v0  ;;  %v14705_v59 = vpack.i.bf16 %v19657_v51, %v19654_v61 }
 0x814   :  { %v19685_v48 = vsel %vm5997_vm2, %v5968_v63, %v14564_v32  ;;  %v14584_v32 = vunpack.i.h.bf16 %v19337_v60 }
 0x815   :  { %14706 = vrot.lane.b32.xlu1 %v14705_v59, %s16001_s10  ;;  %v6549_v40 = vsel %vm6494_vm3, %v19303_v1, %v14568_v18  ;;  %v6550_v4 = vsel %vm6494_vm3, %v19347_v52, %v14569_v54  ;;  %v5868_v1 = vsel %vm5795_vm0, %v4267_v44, %v14573_v17  ;;  %v21922_v52 = vld [vmem:[#allocation54_spill] sm:$0xff]  ;;  %v4268_v44 = vmax.f32 %v2888_v33, 0.0  ;;  %v21924_v33 = vld [vmem:[#allocation55_spill] sm:$0xff] }
 0x816   :  { %v14577_v15 = vpop.permute.xlu1 %14576  ;;  %v19670_v21 = vpack.c.bf16 %v6550_v4, %v6549_v40  ;;  %v2893_v26 = vadd.f32 %v19478_v38, %v21922_v52  ;;  %v14593_v40 = vunpack.i.l.bf16 %v19361_v16 }
 0x817   :  { %v14578_v45 = vunpack.i.l.bf16 %v14577_v15  ;;  %v14579_v18 = vunpack.i.h.bf16 %v14577_v15  ;;  %v5869_v5 = vsel %vm5795_vm0, %v4268_v44, %v14574_v34 }
 0x818   :  { %6984 = vmatprep.mubr.bf16.mxu1 %v19670_v21  ;;  %v4269_v4 = vmax.f32 %v2893_v26, 0.0  ;;  %v21926_v26 = vld [vmem:[#allocation139_spill] sm:$0xff] }
 0x819   :  { %v5969_v62 = vsel %vm5896_vm1, %v5868_v1, %v14578_v45  ;;  %14716 = vrot.lane.b32.xlu1 %v21923_v14, %s15999_s13  ;;  %6985 = vmatmul.mubr.bf16.gmra.mrb[236].mxu1 %v19496_v47  ;;  %v5970_v45 = vsel %vm5896_vm1, %v5869_v5, %v14579_v18  ;;  %v2896_v1 = vadd.f32 %v19478_v38, %v21924_v33  ;;  %v14623_v5 = vunpack.i.l.bf16 %v19418_v11 }
 0x81a   :  { %v14587_v0 = vpop.permute.xlu1 %14586  ;;  %v19688_v54 = vsel %vm5997_vm2, %v5969_v62, %v14583_v53  ;;  %v14603_v53 = vunpack.i.l.bf16 %v19381_v58  ;;  %v14594_v62 = vunpack.i.h.bf16 %v19361_v16  ;;  %v19716_v34 = vsel %vm5997_vm2, %v5970_v45, %v14584_v32 }
 0x81b   :  { %v14589_v59 = vunpack.i.h.bf16 %v14587_v0  ;;  %v14588_v29 = vunpack.i.l.bf16 %v14587_v0  ;;  %v14725_v17 = vpack.i.bf16 %v19688_v54, %v19685_v48  ;;  %v4270_v44 = vmax.f32 %v2896_v1, 0.0  ;;  %v21928_v1 = vld [vmem:[#allocation141_spill] sm:$0xff] }
 0x81d   :  { %14726 = vrot.lane.b32.xlu1 %v14725_v17, %s16001_s10  ;;  %v6551_v25 = vsel %vm6494_vm3, %v19340_v8, %v14588_v29  ;;  %v6552_v47 = vsel %vm6494_vm3, %v19387_v23, %v14589_v59  ;;  %v5870_v8 = vsel %vm5795_vm0, %v4269_v4, %v14593_v40  ;;  %v21925_v23 = vld [vmem:[#allocation56_spill] sm:$0xff]  ;;  %v14613_v40 = vunpack.i.l.bf16 %v19400_v22 }
 0x81e   :  { %v14597_v15 = vpop.permute.xlu1 %14596  ;;  %v19701_v63 = vpack.c.bf16 %v6552_v47, %v6551_v25  ;;  %v2901_v52 = vadd.f32 %v19478_v38, %v21925_v23  ;;  %v5871_v25 = vsel %vm5795_vm0, %v4270_v44, %v14594_v62  ;;  %v14604_v47 = vunpack.i.h.bf16 %v19381_v58 }
 0x81f   :  { %v14598_v12 = vunpack.i.l.bf16 %v14597_v15  ;;  %v14599_v18 = vunpack.i.h.bf16 %v14597_v15 }
 0x820   :  { %6992 = vmatprep.mubr.bf16.mxu1 %v19701_v63  ;;  %v4271_v4 = vmax.f32 %v2901_v52, 0.0 }
 0x821   :  { %v5971_v60 = vsel %vm5896_vm1, %v5870_v8, %v14598_v12  ;;  %14736 = vrot.lane.b32.xlu1 %v21926_v26, %s15999_s13  ;;  %6993 = vmatmul.mubr.bf16.gmra.mrb[240].mxu1 %v19537_v57  ;;  %v5972_v22 = vsel %vm5896_vm1, %v5871_v25, %v14599_v18  ;;  %v15505_v18 = vld [vmem:[%s21584_s5 + $0x30] ss:$8 sps:$4 sm:$0xff]  }
 0x822   :  { %v14607_v14 = vpop.permute.xlu1 %14606  ;;  %v19719_v0 = vsel %vm5997_vm2, %v5971_v60, %v14603_v53  ;;  %v5872_v45 = vsel %vm5795_vm0, %v4271_v4, %v14613_v40  ;;  %v19742_v58 = vsel %vm5997_vm2, %v5972_v22, %v14604_v47 }
 0x823   :  { %v14609_v59 = vunpack.i.h.bf16 %v14607_v14  ;;  %v14608_v29 = vunpack.i.l.bf16 %v14607_v14  ;;  %v14745_v17 = vpack.i.bf16 %v19719_v0, %v19716_v34 }
 0x825   :  { %14746 = vrot.lane.b32.xlu1 %v14745_v17, %s16001_s10  ;;  %v6553_v16 = vsel %vm6494_vm3, %v19384_v3, %v14608_v29  ;;  %v6554_v57 = vsel %vm6494_vm3, %v19421_v24, %v14609_v59  ;;  %v21927_v24 = vld [vmem:[#allocation140_spill] sm:$0xff] }
 0x826   :  { %v14617_v32 = vpop.permute.xlu1 %14616  ;;  %v19732_v53 = vpack.c.bf16 %v6554_v57, %v6553_v16  ;;  %v15507_v59 = vld [vmem:[%s21584_s5 + $0x34] ss:$8 sps:$4 sm:$0xff]   ;;  %v21929_v57 = vld [vmem:[#allocation58_spill] sm:$0xff] }
 0x827   :  { %v14618_v15 = vunpack.i.l.bf16 %v14617_v32  ;;  %7280 = vmatprep.subr.bf16.mxu1 %v15507_v59  ;;  %v2909_v25 = vadd.f32 %v19478_v38, %v21929_v57  ;;  %v14619_v22 = vunpack.i.h.bf16 %v14617_v32 }
 0x828   :  { %7000 = vmatprep.mubr.bf16.mxu1 %v19732_v53  ;;  %7281 = vmatpush1.bf16.msra.mxu1 %v15505_v18 }
 0x829   :  { %v5973_v3 = vsel %vm5896_vm1, %v5872_v45, %v14618_v15  ;;  %14756 = vrot.lane.b32.xlu1 %v21927_v24, %s15999_s13  ;;  %7001 = vmatmul.mubr.bf16.gmra.mrb[244].mxu1 %v19572_v19  ;;  %v14633_v24 = vunpack.i.l.bf16 %v19429_v28  ;;  %v5974_v32 = vsel %vm5896_vm1, %v19412_v42, %v14619_v22  ;;  %v21931_v22 = vld [vmem:[#allocation60_spill] sm:$0xff] }
 0x82a   :  { %v19745_v12 = vsel %vm5997_vm2, %v5973_v3, %v14623_v5 }
 0x82b   :  { %v14765_v33 = vpack.i.bf16 %v19745_v12, %v19742_v58 }
 0x82d   :  { %14766 = vrot.lane.b32.xlu1 %v14765_v33, %s16001_s10 }
 0x831   :  { %14776 = vrot.lane.b32.xlu1 %v21928_v1, %s15999_s13 }
 0x840   :  { %v19752_v8 = vpop.f32.mrb[184].mxu1 }
 0x841   :  { %v6887_v23 = vpop.f32.mrb[185].mxu1 }
 0x842   :  { %v6888_v52 = vpop.f32.mrb[186].mxu1  ;;  %v4273_v23 = vmax.f32 %v2909_v25, 0.0 }
 0x843   :  { %v6889_v60 = vpop.f32.mrb[187].mxu1  ;;  %v14624_v52 = vunpack.i.h.bf16 %v19418_v11 }
 0x844   :  { %v14643_v60 = vunpack.i.l.bf16 %v19433_v20  ;;  %v5874_v59 = vsel %vm5795_vm0, %v4273_v23, %v14633_v24  ;;  %v14653_v23 = vunpack.i.l.bf16 %v19435_v46 }
 0x845   :  { %v19796_v57 = vsel %vm5997_vm2, %v5974_v32, %v14624_v52 }
 0x84b   :  { %v19754_v19 = vpop.f32.mrb[188].mxu1 }
 0x84c   :  { %v6894_v26 = vpop.f32.mrb[189].mxu1 }
 0x84d   :  { %v19756_v62 = vpop.f32.mrb[190].mxu1 }
 0x84e   :  { %v6897_v14 = vpop.f32.mrb[191].mxu1 }
 0x855   :  { %v19764_v29 = vpop.f32.mrb[192].mxu1 }
 0x856   :  { %v6902_v17 = vpop.f32.mrb[193].mxu1 }
 0x857   :  { %v19766_v44 = vpop.f32.mrb[194].mxu1  ;;  %v21930_v17 = vld [vmem:[#allocation59_spill] sm:$0xff] }
 0x858   :  { %v6905_v40 = vpop.f32.mrb[195].mxu1 }
 0x859   :  { %v2912_v40 = vadd.f32 %v19478_v38, %v21930_v17 }
 0x85f   :  { %v19768_v4 = vpop.f32.mrb[196].mxu1 }
 0x860   :  { %v6910_v16 = vpop.f32.mrb[197].mxu1  ;;  %v14627_v47 = vpop.permute.xlu1 %14626 }
 0x861   :  { %v19772_v5 = vpop.f32.mrb[198].mxu1  ;;  %v14629_v15 = vunpack.i.h.bf16 %v14627_v47  ;;  %v14628_v45 = vunpack.i.l.bf16 %v14627_v47 }
 0x862   :  { %v6913_v3 = vpop.f32.mrb[199].mxu1 }
 0x863   :  { %v6555_v33 = vsel %vm6494_vm3, %v19424_v13, %v14628_v45  ;;  %v6556_v1 = vsel %vm6494_vm3, %v19515_v39, %v14629_v15  ;;  %v2917_v15 = vadd.f32 %v19478_v38, %v21931_v22 }
 0x864   :  { %v19781_v14 = vpack.c.bf16 %v6556_v1, %v6555_v33  ;;  %v4274_v1 = vmax.f32 %v2912_v40, 0.0  ;;  %v21932_v40 = vld [vmem:[#allocation142_spill] sm:$0xff] }
 0x865   :  { %v14637_v26 = vpop.permute.xlu1 %14636  ;;  %v4275_v32 = vmax.f32 %v2917_v15, 0.0  ;;  %v21933_v15 = vld [vmem:[#allocation61_spill] sm:$0xff] }
 0x866   :  { %v14638_v18 = vunpack.i.l.bf16 %v14637_v26  ;;  %7007 = vmatprep.mubr.bf16.mxu1 %v19781_v14  ;;  %v14639_v3 = vunpack.i.h.bf16 %v14637_v26 }
 0x867   :  { %v19787_v13 = vpop.f32.mrb[200].mxu1  ;;  %7008 = vmatmul.mubr.bf16.gmra.mrb[248].mxu1 %v19610_v31  ;;  %v14634_v31 = vunpack.i.h.bf16 %v19429_v28  ;;  %v14644_v28 = vunpack.i.h.bf16 %v19433_v20 }
 0x868   :  { %v5975_v39 = vsel %vm5896_vm1, %v5874_v59, %v14638_v18  ;;  %v6918_v11 = vpop.f32.mrb[201].mxu1 }
 0x869   :  { %v19793_v16 = vpop.f32.mrb[202].mxu1  ;;  %v19799_v42 = vsel %vm5997_vm2, %v5975_v39, %v14643_v60  ;;  %v5875_v18 = vsel %vm5795_vm0, %v4274_v1, %v14634_v31  ;;  %v2920_v31 = vadd.f32 %v19478_v38, %v21933_v15 }
 0x86a   :  { %v6921_v25 = vpop.f32.mrb[203].mxu1  ;;  %v14785_v47 = vpack.i.bf16 %v19799_v42, %v19796_v57  ;;  %v5976_v11 = vsel %vm5896_vm1, %v5875_v18, %v14639_v3 }
 0x86b   :  { %v14647_v45 = vpop.permute.xlu1 %14646  ;;  %v5876_v25 = vsel %vm5795_vm0, %v4275_v32, %v14653_v23  ;;  %v14654_v23 = vunpack.i.h.bf16 %v19435_v46  ;;  %v4276_v18 = vmax.f32 %v2920_v31, 0.0 }
 0x86c   :  { %v14649_v24 = vunpack.i.h.bf16 %v14647_v45  ;;  %v14648_v33 = vunpack.i.l.bf16 %v14647_v45  ;;  %14786 = vrot.lane.b32.xlu1 %v14785_v47, %s16001_s10  ;;  %v19829_v45 = vsel %vm5997_vm2, %v5976_v11, %v14644_v28  ;;  %v21935_v28 = vld [vmem:[#allocation5_spill] sm:$0xff] }
 0x86d   :  { %v14673_v11 = vunpack.i.l.bf16 %v21935_v28  ;;  %v5877_v46 = vsel %vm5795_vm0, %v4276_v18, %v14654_v23  ;;  %v21939_v18 = vld [vmem:[#allocation144_spill] sm:$0xff] }
 0x86e   :  { %v6557_v52 = vsel %vm6494_vm3, %v19518_v36, %v14648_v33  ;;  %v6558_v60 = vsel %vm6494_vm3, %v19550_v50, %v14649_v24  ;;  %v14663_v50 = vunpack.i.l.bf16 %v19437_v7  ;;  %v21934_v33 = vld [vmem:[#allocation62_spill] sm:$0xff] }
 0x86f   :  { %v14657_v59 = vpop.permute.xlu1 %14656  ;;  %v19814_v26 = vpop.f32.mrb[204].mxu1  ;;  %v19816_v39 = vpack.c.bf16 %v6558_v60, %v6557_v52  ;;  %v2925_v1 = vadd.f32 %v19478_v38, %v21934_v33  ;;  %v21937_v33 = vld [vmem:[#allocation143_spill] sm:$0xff] }
 0x870   :  { %v14658_v17 = vunpack.i.l.bf16 %v14657_v59  ;;  %14796 = vrot.lane.b32.xlu1 %v21932_v40, %s15999_s13  ;;  %v6926_v36 = vpop.f32.mrb[205].mxu1  ;;  %v14659_v60 = vunpack.i.h.bf16 %v14657_v59  ;;  %v21936_v59 = vld [vmem:[#allocation81_spill] sm:$0xff] }
 0x871   :  { %v6927_v47 = vpop.f32.mrb[206].mxu1  ;;  %7015 = vmatprep.mubr.bf16.mxu1 %v19816_v39 }
 0x872   :  { %v5977_v20 = vsel %vm5896_vm1, %v5876_v25, %v14658_v17  ;;  %v6928_v22 = vpop.f32.mrb[207].mxu1  ;;  %7016 = vmatmul.mubr.bf16.gmra.mrb[252].mxu1 %v19639_v56  ;;  %v14683_v47 = vunpack.i.l.bf16 %v21936_v59  ;;  %v5978_v31 = vsel %vm5896_vm1, %v5877_v46, %v14659_v60 }
 0x873   :  { %v19832_v3 = vsel %vm5997_vm2, %v5977_v20, %v14663_v50  ;;  %v4277_v50 = vmax.f32 %v2925_v1, 0.0 }
 0x874   :  { %v14805_v24 = vpack.i.bf16 %v19832_v3, %v19829_v45 }
 0x875   :  { %v14667_v52 = vpop.permute.xlu1 %14666 }
 0x876   :  { %v14669_v56 = vunpack.i.h.bf16 %v14667_v52  ;;  %v14668_v32 = vunpack.i.l.bf16 %v14667_v52  ;;  %14806 = vrot.lane.b32.xlu1 %v14805_v24, %s16001_s10  ;;  %v14664_v52 = vunpack.i.h.bf16 %v19437_v7  ;;  %v3789_v7 = vadd.f32 %v19478_v38, %v21939_v18 }
 0x877   :  { %v19841_v17 = vpop.f32.mrb[208].mxu1 }
 0x878   :  { %v6933_v40 = vpop.f32.mrb[209].mxu1  ;;  %v6559_v36 = vsel %vm6494_vm3, %v19553_v41, %v14668_v32  ;;  %v6560_v25 = vsel %vm6494_vm3, %v19585_v9, %v14669_v56  ;;  %v5878_v9 = vsel %vm5795_vm0, %v4277_v50, %v14673_v11  ;;  %v19862_v23 = vsel %vm5997_vm2, %v5978_v31, %v14664_v52  ;;  %v21938_v56 = vld [vmem:[#allocation63_spill] sm:$0xff] }
 0x879   :  { %v14677_v20 = vpop.permute.xlu1 %14676  ;;  %v19849_v22 = vpop.f32.mrb[210].mxu1  ;;  %v19851_v15 = vpack.c.bf16 %v6560_v25, %v6559_v36  ;;  %v2928_v32 = vadd.f32 %v19478_v38, %v21938_v56  ;;  %v21940_v40 = vld [vmem:[#allocation64_spill] sm:$0xff]  ;;  %v4493_v52 = vmax.f32 %v3789_v7, 0.0 }
 0x87a   :  { %v14678_v24 = vunpack.i.l.bf16 %v14677_v20  ;;  %14816 = vrot.lane.b32.xlu1 %v21937_v33, %s15999_s13  ;;  %v6936_v41 = vpop.f32.mrb[211].mxu1  ;;  %v2933_v36 = vadd.f32 %v19478_v38, %v21940_v40 }
 0x87b   :  { %7023 = vmatprep.mubr.bf16.mxu1 %v19851_v15  ;;  %v4278_v41 = vmax.f32 %v2928_v32, 0.0 }
 0x87c   :  { %v5979_v1 = vsel %vm5896_vm1, %v5878_v9, %v14678_v24  ;;  %7024 = vmatmul.mubr.bf16.gmra.mrb[0].mxu1 %v19670_v21  ;;  %v14674_v21 = vunpack.i.h.bf16 %v21935_v28  ;;  %v21942_v9 = vld [vmem:[#allocation147_spill] sm:$0xff]  ;;  %v4279_v18 = vmax.f32 %v2933_v36, 0.0 }
 0x87d   :  { %v19865_v60 = vsel %vm5997_vm2, %v5979_v1, %v14683_v47  ;;  %v14679_v47 = vunpack.i.h.bf16 %v14677_v20  ;;  %v14693_v1 = vunpack.i.l.bf16 %v21942_v9  ;;  %v14684_v20 = vunpack.i.h.bf16 %v21936_v59 }
 0x87e   :  { %v14820_v11 = vpack.i.bf16 %v19865_v60, %v19862_v23 }
 0x87f   :  { %v19875_v25 = vpop.f32.mrb[212].mxu1  ;;  %v14687_v50 = vpop.permute.xlu1 %14686 }
 0x880   :  { %21941 = vst [vmem:[#allocation155_spill] sm:$0xff] %v19875_v25  ;;  %14821 = vrot.lane.b32.xlu1 %v14820_v11, %s16001_s10  ;;  %v6941_v46 = vpop.f32.mrb[213].mxu1  ;;  %v14689_v31 = vunpack.i.h.bf16 %v14687_v50  ;;  %v14688_v24 = vunpack.i.l.bf16 %v14687_v50  ;;  %v5879_v11 = vsel %vm5795_vm0, %v4278_v41, %v14674_v21 }
 0x881   :  { %v19879_v33 = vpop.f32.mrb[214].mxu1  ;;  %v21943_v46 = vld [vmem:[#allocation7_spill] sm:$0xff]  ;;  %v5980_v7 = vsel %vm5896_vm1, %v5879_v11, %v14679_v47  ;;  %v14694_v47 = vunpack.i.h.bf16 %v21942_v9 }
 0x882   :  { %v6944_v56 = vpop.f32.mrb[215].mxu1  ;;  %v6561_v40 = vsel %vm6494_vm3, %v19588_v35, %v14688_v24  ;;  %v6562_v28 = vsel %vm6494_vm3, %v19623_v37, %v14689_v31  ;;  %v14703_v50 = vunpack.i.l.bf16 %v21943_v46  ;;  %v5880_v24 = vsel %vm5795_vm0, %v4279_v18, %v14693_v1  ;;  %v21945_v37 = vld [vmem:[#allocation66_spill] sm:$0xff]  ;;  %v21946_v31 = vld [vmem:[#allocation145_spill] sm:$0xff] }
 0x883   :  { %v14697_v25 = vpop.permute.xlu1 %14696  ;;  %v19890_v32 = vpack.c.bf16 %v6562_v28, %v6561_v40  ;;  %v21944_v56 = vld [vmem:[#allocation65_spill] sm:$0xff]  ;;  %v2941_v59 = vadd.f32 %v19478_v38, %v21945_v37  ;;  %v3792_v41 = vadd.f32 %v19478_v38, %v21946_v31  ;;  %v19905_v40 = vsel %vm5997_vm2, %v5980_v7, %v14684_v20 }
 0x884   :  { %5291 = vrot.lane.b32.xlu1 %v4493_v52, %s15999_s13  ;;  %v14698_v36 = vunpack.i.l.bf16 %v14697_v25  ;;  %v2936_v35 = vadd.f32 %v19478_v38, %v21944_v56  ;;  %v14699_v18 = vunpack.i.h.bf16 %v14697_v25  ;;  %v14704_v25 = vunpack.i.h.bf16 %v21943_v46  ;;  %v21950_v46 = vld [vmem:[#allocation68_spill] sm:$0xff] }
 0x885   :  { %7031 = vmatprep.mubr.bf16.mxu1 %v19890_v32  ;;  %v4281_v37 = vmax.f32 %v2941_v59, 0.0 }
 0x886   :  { %v5981_v21 = vsel %vm5896_vm1, %v5880_v24, %v14698_v36  ;;  %7032 = vmatmul.mubr.bf16.gmra.mrb[4].mxu1 %v19701_v63  ;;  %v4280_v56 = vmax.f32 %v2936_v35, 0.0  ;;  %v21947_v63 = vld [vmem:[#allocation115_spill] sm:$0xff]  ;;  %v4494_v35 = vmax.f32 %v3792_v41, 0.0 }
 0x887   :  { %v14707_v52 = vpop.permute.xlu1 %14706  ;;  %v19908_v1 = vsel %vm5997_vm2, %v5981_v21, %v14703_v50  ;;  %v14713_v24 = vunpack.i.l.bf16 %v21947_v63  ;;  %v21948_v50 = vld [vmem:[#allocation83_spill] sm:$0xff] }
 0x888   :  { %v14709_v28 = vunpack.i.h.bf16 %v14707_v52  ;;  %v14708_v11 = vunpack.i.l.bf16 %v14707_v52  ;;  %v14830_v36 = vpack.i.bf16 %v19908_v1, %v19905_v40  ;;  %v5881_v20 = vsel %vm5795_vm0, %v4280_v56, %v14694_v47 }
 0x889   :  { %v14723_v7 = vunpack.i.l.bf16 %v21948_v50  ;;  %v5982_v59 = vsel %vm5896_vm1, %v5881_v20, %v14699_v18  ;;  %v5882_v47 = vsel %vm5795_vm0, %v4281_v37, %v14713_v24  ;;  %v14714_v18 = vunpack.i.h.bf16 %v21947_v63 }
 0x88a   :  { %14831 = vrot.lane.b32.xlu1 %v14830_v36, %s16001_s10  ;;  %v6563_v38 = vsel %vm6494_vm3, %v19626_v10, %v14708_v11  ;;  %v6564_v9 = vsel %vm6494_vm3, %v19654_v61, %v14709_v28  ;;  %v19927_v10 = vld [vmem:[%s21582_s2] ss:$0 sm:$0xff]  ;;  %v21949_v11 = vld [vmem:[#allocation67_spill] sm:$0xff]  ;;  %v19940_v56 = vsel %vm5997_vm2, %v5982_v59, %v14704_v25 }
 0x88b   :  { %v14717_v21 = vpop.permute.xlu1 %14716  ;;  %v19921_v31 = vpack.c.bf16 %v6564_v9, %v6563_v38  ;;  %v2944_v61 = vadd.f32 %v19927_v10, %v21949_v11  ;;  %v2949_v28 = vadd.f32 %v19927_v10, %v21950_v46  ;;  %v21951_v11 = vld [vmem:[#allocation149_spill] sm:$0xff] }
 0x88c   :  { %v14718_v52 = vunpack.i.l.bf16 %v14717_v21  ;;  %v14719_v24 = vunpack.i.h.bf16 %v14717_v21  ;;  %v21952_v21 = vld [vmem:[#allocation117_spill] sm:$0xff] }
 0x88d   :  { %7039 = vmatprep.mubr.bf16.mxu1 %v19921_v31  ;;  %v14743_v59 = vunpack.i.l.bf16 %v21952_v21 }
 0x88e   :  { %v5983_v41 = vsel %vm5896_vm1, %v5882_v47, %v14718_v52  ;;  %5293 = vrot.lane.b32.xlu1 %v4494_v35, %s15999_s13  ;;  %7040 = vmatmul.mubr.bf16.gmra.mrb[8].mxu1 %v19732_v53  ;;  %v4282_v52 = vmax.f32 %v2944_v61, 0.0  ;;  %v14733_v35 = vunpack.i.l.bf16 %v21951_v11  ;;  %v4283_v47 = vmax.f32 %v2949_v28, 0.0 }
 0x88f   :  { %v14727_v36 = vpop.permute.xlu1 %14726  ;;  %v19943_v38 = vsel %vm5997_vm2, %v5983_v41, %v14723_v7  ;;  %v14724_v7 = vunpack.i.h.bf16 %v21948_v50 }
 0x890   :  { %v14729_v37 = vunpack.i.h.bf16 %v14727_v36  ;;  %v14728_v9 = vunpack.i.l.bf16 %v14727_v36  ;;  %v14835_v20 = vpack.i.bf16 %v19943_v38, %v19940_v56  ;;  %v5883_v25 = vsel %vm5795_vm0, %v4282_v52, %v14714_v18  ;;  %v21953_v36 = vld [vmem:[#allocation69_spill] sm:$0xff] }
 0x891   :  { %v5984_v61 = vsel %vm5896_vm1, %v5883_v25, %v14719_v24 }
 0x892   :  { %14836 = vrot.lane.b32.xlu1 %v14835_v20, %s16001_s10  ;;  %v6565_v53 = vsel %vm6494_vm3, %v19657_v51, %v14728_v9  ;;  %v6566_v63 = vsel %vm6494_vm3, %v19685_v48, %v14729_v37  ;;  %v2952_v20 = vadd.f32 %v19927_v10, %v21953_v36  ;;  %v5884_v51 = vsel %vm5795_vm0, %v4283_v47, %v14733_v35  ;;  %v21954_v48 = vld [vmem:[#allocation70_spill] sm:$0xff]  ;;  %v21955_v36 = vld [vmem:[#allocation85_spill] sm:$0xff] }
 0x893   :  { %v14737_v46 = vpop.permute.xlu1 %14736  ;;  %v19956_v41 = vpack.c.bf16 %v6566_v63, %v6565_v53  ;;  %v2957_v18 = vadd.f32 %v19927_v10, %v21954_v48  ;;  %v14734_v37 = vunpack.i.h.bf16 %v21951_v11  ;;  %v19969_v24 = vsel %vm5997_vm2, %v5984_v61, %v14724_v7 }
 0x894   :  { %v14738_v28 = vunpack.i.l.bf16 %v14737_v46  ;;  %v14739_v53 = vunpack.i.h.bf16 %v14737_v46  ;;  %v4284_v25 = vmax.f32 %v2952_v20, 0.0  ;;  %v21956_v46 = vld [vmem:[#allocation151_spill] sm:$0xff] }
 0x895   :  { %7046 = vmatprep.mubr.bf16.mxu1 %v19956_v41  ;;  %v14763_v61 = vunpack.i.l.bf16 %v21956_v46 }
 0x896   :  { %v5985_v50 = vsel %vm5896_vm1, %v5884_v51, %v14738_v28  ;;  %7047 = vmatmul.mubr.bf16.gmra.mrb[12].mxu1 %v19781_v14  ;;  %v14753_v28 = vunpack.i.l.bf16 %v21955_v36  ;;  %v4285_v51 = vmax.f32 %v2957_v18, 0.0  ;;  %v5885_v7 = vsel %vm5795_vm0, %v4284_v25, %v14734_v37 }
 0x897   :  { %v14747_v9 = vpop.permute.xlu1 %14746  ;;  %v19972_v52 = vsel %vm5997_vm2, %v5985_v50, %v14743_v59  ;;  %v14744_v59 = vunpack.i.h.bf16 %v21952_v21  ;;  %v5986_v20 = vsel %vm5896_vm1, %v5885_v7, %v14739_v53 }
 0x898   :  { %v14749_v35 = vunpack.i.h.bf16 %v14747_v9  ;;  %v14748_v47 = vunpack.i.l.bf16 %v14747_v9  ;;  %v14840_v63 = vpack.i.bf16 %v19972_v52, %v19969_v24  ;;  %v21957_v9 = vld [vmem:[#allocation71_spill] sm:$0xff] }
 0x899   :  { %v19998_v53 = vsel %vm5997_vm2, %v5986_v20, %v14744_v59 }
 0x89a   :  { %14841 = vrot.lane.b32.xlu0 %v14840_v63, %s16001_s10  ;;  %v6567_v14 = vsel %vm6494_vm3, %v19688_v54, %v14748_v47  ;;  %v6568_v11 = vsel %vm6494_vm3, %v19716_v34, %v14749_v35  ;;  %v2960_v63 = vadd.f32 %v19927_v10, %v21957_v9  ;;  %v5886_v54 = vsel %vm5795_vm0, %v4285_v51, %v14753_v28  ;;  %v21958_v34 = vld [vmem:[#allocation72_spill] sm:$0xff] }
 0x89b   :  { %v14757_v48 = vpop.permute.xlu1 %14756  ;;  %v19985_v50 = vpack.c.bf16 %v6568_v11, %v6567_v14  ;;  %v2965_v37 = vadd.f32 %v19927_v10, %v21958_v34  ;;  %v14754_v35 = vunpack.i.h.bf16 %v21955_v36 }
 0x89c   :  { %v14758_v18 = vunpack.i.l.bf16 %v14757_v48  ;;  %v14759_v14 = vunpack.i.h.bf16 %v14757_v48  ;;  %v4286_v7 = vmax.f32 %v2960_v63, 0.0  ;;  %v14764_v48 = vunpack.i.h.bf16 %v21956_v46 }
 0x89d   :  { %7054 = vmatprep.mubr.bf16.mxu1 %v19985_v50  ;;  %v4287_v9 = vmax.f32 %v2965_v37, 0.0 }
 0x89e   :  { %v5987_v21 = vsel %vm5896_vm1, %v5886_v54, %v14758_v18  ;;  %7055 = vmatmul.mubr.bf16.gmra.mrb[16].mxu1 %v19816_v39  ;;  %v14773_v18 = vunpack.i.l.bf16 %v19500_v43  ;;  %v14782_v39 = vpop.permute.xlu0 %14781 }
 0x89f   :  { %v14767_v47 = vpop.permute.xlu1 %14766  ;;  %v20001_v25 = vsel %vm5997_vm2, %v5987_v21, %v14763_v61  ;;  %v5887_v61 = vsel %vm5795_vm0, %v4286_v7, %v14754_v35  ;;  %v14783_v20 = vunpack.i.l.bf16 %v14782_v39 }
 0x8a0   :  { %v14769_v28 = vunpack.i.h.bf16 %v14767_v47  ;;  %v14768_v51 = vunpack.i.l.bf16 %v14767_v47  ;;  %v14845_v11 = vpack.i.bf16 %v20001_v25, %v19998_v53  ;;  %v5988_v43 = vsel %vm5896_vm1, %v5887_v61, %v14759_v14 }
 0x8a1   :  { %v5888_v37 = vsel %vm5795_vm0, %v4287_v9, %v14773_v18 }
 0x8a2   :  { %14846 = vrot.lane.b32.xlu1 %v14845_v11, %s16001_s10  ;;  %v6569_v36 = vsel %vm6494_vm3, %v19719_v0, %v14768_v51  ;;  %v6570_v59 = vsel %vm6494_vm3, %v19742_v58, %v14769_v28  ;;  %v20021_v58 = vsel %vm5997_vm2, %v5988_v43, %v14764_v48  ;;  %v21964_v43 = vld [vmem:[#allocation74_spill] sm:$0xff] }
 0x8a3   :  { %v14777_v54 = vpop.permute.xlu1 %14776  ;;  %v20013_v34 = vpack.c.bf16 %v6570_v59, %v6569_v36  ;;  %v14792_v59 = vpop.permute.xlu0 %14791 }
 0x8a4   :  { %v14778_v63 = vunpack.i.l.bf16 %v14777_v54 }
 0x8a5   :  { %7062 = vmatprep.mubr.bf16.mxu1 %v20013_v34 }
 0x8a6   :  { %v5989_v0 = vsel %vm5896_vm1, %v5888_v37, %v14778_v63  ;;  %7063 = vmatmul.mubr.bf16.gmra.mrb[20].mxu1 %v19851_v15  ;;  %v2973_v63 = vadd.f32 %v19927_v10, %v21964_v43 }
 0x8a7   :  { %v20024_v46 = vsel %vm5997_vm2, %v5989_v0, %v14783_v20  ;;  %v20039_v48 = vpop.permute.xlu0 %14801 }
 0x8a8   :  { %v14850_v21 = vpack.i.bf16 %v20024_v46, %v20021_v58  ;;  %v14803_v43 = vunpack.i.l.bf16 %v20039_v48 }
 0x8aa   :  { %14851 = vrot.lane.b32.xlu0 %v14850_v21, %s16001_s10  ;;  %v14779_v21 = vunpack.i.h.bf16 %v14777_v54 }
 0x8bd   :  { %v20029_v35 = vpop.f32.mrb[216].mxu1 }
 0x8be   :  { %v6949_v47 = vpop.f32.mrb[217].mxu1 }
 0x8bf   :  { %v20031_v14 = vpop.f32.mrb[218].mxu1 }
 0x8c0   :  { %21959 = vst [vmem:[#allocation88_spill] sm:$0xff] %v20031_v14  ;;  %v6952_v28 = vpop.f32.mrb[219].mxu1  ;;  %v21970_v14 = vld [vmem:[#allocation77_spill] sm:$0xff] }
 0x8c8   :  { %v20033_v51 = vpop.f32.mrb[220].mxu1 }
 0x8c9   :  { %21960 = vst [vmem:[#allocation2_spill] sm:$0xff] %v20033_v51  ;;  %v6957_v15 = vpop.f32.mrb[221].mxu1 }
 0x8ca   :  { %v20035_v11 = vpop.f32.mrb[222].mxu1 }
 0x8cb   :  { %21961 = vst [vmem:[#allocation156_spill] sm:$0xff] %v20035_v11  ;;  %v6960_v7 = vpop.f32.mrb[223].mxu1  ;;  %v14784_v11 = vunpack.i.h.bf16 %v14782_v39 }
 0x8cc   :  { %v14793_v7 = vunpack.i.l.bf16 %v14792_v59 }
 0x8d2   :  { %v20037_v18 = vpop.f32.mrb[224].mxu1 }
 0x8d3   :  { %21962 = vst [vmem:[#allocation89_spill] sm:$0xff] %v20037_v18  ;;  %v6965_v9 = vpop.f32.mrb[225].mxu1 }
 0x8d4   :  { %v6966_v36 = vpop.f32.mrb[226].mxu1  ;;  %v20047_v9 = vpop.permute.xlu0 %14811 }
 0x8d5   :  { %v6967_v61 = vpop.f32.mrb[227].mxu1 }
 0x8dc   :  { %v20041_v20 = vpop.f32.mrb[228].mxu1 }
 0x8dd   :  { %21963 = vst [vmem:[#allocation157_spill] sm:$0xff] %v20041_v20  ;;  %v6972_v0 = vpop.f32.mrb[229].mxu1  ;;  %v4289_v20 = vmax.f32 %v2973_v63, 0.0 }
 0x8de   :  { %v14787_v37 = vpop.permute.xlu1 %14786  ;;  %v20045_v15 = vpop.f32.mrb[230].mxu1 }
 0x8df   :  { %v14789_v47 = vunpack.i.h.bf16 %v14787_v37  ;;  %v14788_v28 = vunpack.i.l.bf16 %v14787_v37  ;;  %21965 = vst [vmem:[#allocation9_spill] sm:$0xff] %v20045_v15  ;;  %v6975_v18 = vpop.f32.mrb[231].mxu1  ;;  %v5990_v37 = vsel %vm5896_vm1, %v19512_v49, %v14779_v21  ;;  %v5688_v21 = vpop.permute.xlu0 %5687 }
 0x8e0   :  { %v5890_v18 = vsel %vm5795_vm0, %v4289_v20, %v14793_v7  ;;  %v21969_v7 = vld [vmem:[#allocation76_spill] sm:$0xff] }
 0x8e1   :  { %v6571_v36 = vsel %vm6494_vm3, %v19745_v12, %v14788_v28  ;;  %v6572_v61 = vsel %vm6494_vm3, %v19796_v57, %v14789_v47  ;;  %v21967_v57 = vld [vmem:[#allocation75_spill] sm:$0xff]  ;;  %v20067_v47 = vsel %vm5997_vm2, %v5990_v37, %v14784_v11 }
 0x8e2   :  { %v14797_v0 = vpop.permute.xlu1 %14796  ;;  %v20054_v54 = vpack.c.bf16 %v6572_v61, %v6571_v36  ;;  %v2976_v39 = vadd.f32 %v19927_v10, %v21967_v57  ;;  %v2981_v36 = vadd.f32 %v19927_v10, %v21969_v7 }
 0x8e3   :  { %v14798_v15 = vunpack.i.l.bf16 %v14797_v0  ;;  %v14799_v57 = vunpack.i.h.bf16 %v14797_v0 }
 0x8e4   :  { %7070 = vmatprep.mubr.bf16.mxu1 %v20054_v54  ;;  %v20061_v28 = vpop.f32.mrb[232].mxu1  ;;  %v4290_v11 = vmax.f32 %v2976_v39, 0.0 }
 0x8e5   :  { %v5991_v12 = vsel %vm5896_vm1, %v5890_v18, %v14798_v15  ;;  %21966 = vst [vmem:[#allocation10_spill] sm:$0xff] %v20061_v28  ;;  %7071 = vmatmul.mubr.bf16.gmra.mrb[24].mxu1 %v19890_v32  ;;  %v6980_v63 = vpop.f32.mrb[233].mxu1  ;;  %v14794_v32 = vunpack.i.h.bf16 %v14792_v59  ;;  %v14804_v59 = vunpack.i.h.bf16 %v20039_v48 }
 0x8e6   :  { %v20070_v49 = vsel %vm5997_vm2, %v5991_v12, %v14803_v43  ;;  %v20072_v20 = vpop.f32.mrb[234].mxu1  ;;  %v14813_v43 = vunpack.i.l.bf16 %v20047_v9 }
 0x8e7   :  { %21968 = vst [vmem:[#allocation152_spill] sm:$0xff] %v20072_v20  ;;  %v14855_v15 = vpack.i.bf16 %v20070_v49, %v20067_v47  ;;  %v6983_v61 = vpop.f32.mrb[235].mxu1  ;;  %v4291_v20 = vmax.f32 %v2981_v36, 0.0  ;;  %v5891_v7 = vsel %vm5795_vm0, %v4290_v11, %v14794_v32  ;;  %v21971_v32 = vld [vmem:[#allocation78_spill] sm:$0xff] }
 0x8e8   :  { %v14807_v18 = vpop.permute.xlu1 %14806 }
 0x8e9   :  { %v14809_v63 = vunpack.i.h.bf16 %v14807_v18  ;;  %v14808_v28 = vunpack.i.l.bf16 %v14807_v18  ;;  %14856 = vrot.lane.b32.xlu1 %v14855_v15, %s16001_s10  ;;  %v4892_v18 = vpop.permute.xlu0 %4891  ;;  %v5992_v15 = vsel %vm5896_vm1, %v5891_v7, %v14799_v57  ;;  %v2989_v57 = vadd.f32 %v19927_v10, %v21971_v32 }
 0x8eb   :  { %v6573_v37 = vsel %vm6494_vm3, %v19799_v42, %v14808_v28  ;;  %v6574_v12 = vsel %vm6494_vm3, %v19829_v45, %v14809_v63  ;;  %v2984_v42 = vadd.f32 %v19927_v10, %v21970_v14  ;;  %v5892_v28 = vsel %vm5795_vm0, %v4291_v20, %v14813_v43 }
 0x8ec   :  { %v14817_v61 = vpop.permute.xlu1 %14816  ;;  %v20086_v0 = vpack.c.bf16 %v6574_v12, %v6573_v37  ;;  %v20089_v51 = vpop.f32.mrb[236].mxu1  ;;  %v14814_v63 = vunpack.i.h.bf16 %v20047_v9  ;;  %v20103_v37 = vsel %vm5997_vm2, %v5992_v15, %v14804_v59 }
 0x8ed   :  { %v14818_v39 = vunpack.i.l.bf16 %v14817_v61  ;;  %v6988_v45 = vpop.f32.mrb[237].mxu1  ;;  %v14819_v20 = vunpack.i.h.bf16 %v14817_v61  ;;  %v4292_v12 = vmax.f32 %v2984_v42, 0.0 }
 0x8ee   :  { %7078 = vmatprep.mubr.bf16.mxu1 %v20086_v0  ;;  %v20096_v48 = vpop.f32.mrb[238].mxu1  ;;  %v4293_v45 = vmax.f32 %v2989_v57, 0.0 }
 0x8ef   :  { %v5993_v36 = vsel %vm5896_vm1, %v5892_v28, %v14818_v39  ;;  %7079 = vmatmul.mubr.bf16.gmra.mrb[28].mxu1 %v19921_v31  ;;  %v6991_v11 = vpop.f32.mrb[239].mxu1  ;;  %v14827_v39 = vpop.permute.xlu0 %14826  ;;  %v5893_v9 = vsel %vm5795_vm0, %v4292_v12, %v14814_v63 }
 0x8f0   :  { %v20106_v14 = vsel %vm5997_vm2, %v5993_v36, %v5688_v21  ;;  %v14828_v32 = vunpack.i.l.bf16 %v14827_v39  ;;  %v5994_v59 = vsel %vm5896_vm1, %v5893_v9, %v14819_v20  ;;  %v5894_v42 = vsel %vm5795_vm0, %v4293_v45, %v4892_v18  ;;  %v21972_v18 = vld [vmem:[#allocation79_spill] sm:$0xff] }
 0x8f1   :  { %v14860_v43 = vpack.i.bf16 %v20106_v14, %v20103_v37  ;;  %v14829_v36 = vunpack.i.h.bf16 %v14827_v39  ;;  %v2992_v39 = vadd.f32 %v19927_v10, %v21972_v18 }
 0x8f2   :  { %v14822_v7 = vpop.permute.xlu1 %14821  ;;  %v20126_v20 = vsel %vm5997_vm2, %v5994_v59, %v14828_v32 }
 0x8f3   :  { %v14824_v31 = vunpack.i.h.bf16 %v14822_v7  ;;  %v14823_v28 = vunpack.i.l.bf16 %v14822_v7  ;;  %14861 = vrot.lane.b32.xlu0 %v14860_v43, %s16001_s10  ;;  %v4894_v45 = vpop.permute.xlu0 %4893 }
 0x8f4   :  { %v20113_v15 = vpop.f32.mrb[240].mxu1 }
 0x8f5   :  { %v6575_v21 = vsel %vm6494_vm3, %v19832_v3, %v14823_v28  ;;  %v6576_v61 = vsel %vm6494_vm3, %v19862_v23, %v14824_v31  ;;  %v6996_v7 = vpop.f32.mrb[241].mxu1 }
 0x8f6   :  { %v5292_v11 = vpop.permute.xlu1 %5291  ;;  %v20120_v43 = vpack.c.bf16 %v6576_v61, %v6575_v21  ;;  %v20123_v63 = vpop.f32.mrb[242].mxu1  ;;  %v4294_v21 = vmax.f32 %v2992_v39, 0.0 }
 0x8f7   :  { %v5995_v57 = vsel %vm5896_vm1, %v5894_v42, %v5292_v11  ;;  %v6999_v3 = vpop.f32.mrb[243].mxu1 }
 0x8f8   :  { %v20129_v12 = vsel %vm5997_vm2, %v5995_v57, %v14829_v36  ;;  %7085 = vmatprep.mubr.bf16.mxu1 %v20120_v43  ;;  %v5895_v10 = vsel %vm5795_vm0, %v4294_v21, %v4894_v45  ;;  %v15510_v57 = vld [vmem:[%s21584_s5 + $0x4] ss:$8 sps:$4 sm:$0xff]   ;;  %v5694_v3 = vpop.permute.xlu0 %5693 }
 0x8f9   :  { %v14865_v23 = vpack.i.bf16 %v20129_v12, %v20126_v20  ;;  %7086 = vmatmul.mubr.bf16.gmra.mrb[32].mxu1 %v19956_v41  ;;  %7342 = vmatprep.subr.bf16.mxu1 %v15510_v57 }
 0x8fb   :  { %14866 = vrot.lane.b32.xlu1 %v14865_v23, %s16001_s10 }
 0x8fc   :  { %v14832_v31 = vpop.permute.xlu1 %14831  ;;  %v20138_v28 = vpop.f32.mrb[244].mxu1 }
 0x8fd   :  { %v14834_v9 = vunpack.i.h.bf16 %v14832_v31  ;;  %v14833_v32 = vunpack.i.l.bf16 %v14832_v31  ;;  %v7004_v59 = vpop.f32.mrb[245].mxu1 }
 0x8fe   :  { %v7005_v61 = vpop.f32.mrb[246].mxu1 }
 0x8ff   :  { %v7006_v42 = vpop.f32.mrb[247].mxu1  ;;  %v6577_v36 = vsel %vm6494_vm3, %v19865_v60, %v14833_v32  ;;  %v6578_v41 = vsel %vm6494_vm3, %v19905_v40, %v14834_v9 }
 0x900   :  { %v5294_v11 = vpop.permute.xlu1 %5293  ;;  %v20145_v7 = vpack.c.bf16 %v6578_v41, %v6577_v36 }
 0x901   :  { %v5996_v23 = vsel %vm5896_vm1, %v5895_v10, %v5294_v11 }
 0x902   :  { %7093 = vmatprep.mubr.bf16.mxu1 %v20145_v7  ;;  %v6097_v18 = vsel %vm5997_vm2, %v5996_v23, %v5694_v3 }
 0x903   :  { %6482 = vrot.lane.b32.xlu0 %v6097_v18, %s16001_s10  ;;  %7094 = vmatmul.mubr.bf16.gmra.mrb[36].mxu1 %v19985_v50 }
 0x904   :  { %v14837_v60 = vpop.permute.xlu1 %14836 }
 0x905   :  { %v14839_v40 = vunpack.i.h.bf16 %v14837_v60  ;;  %v14838_v39 = vunpack.i.l.bf16 %v14837_v60 }
 0x907   :  { %v6579_v31 = vsel %vm6494_vm3, %v19908_v1, %v14838_v39  ;;  %v6580_v45 = vsel %vm6494_vm3, %v19940_v56, %v14839_v40 }
 0x908   :  { %v20159_v9 = vpack.c.bf16 %v6580_v45, %v6579_v31 }
 0x90a   :  { %7101 = vmatprep.mubr.bf16.mxu1 %v20159_v9 }
 0x90b   :  { %7102 = vmatmul.mubr.bf16.gmra.mrb[40].mxu1 %v20013_v34 }
 0x90c   :  { %v14842_v32 = vpop.permute.xlu0 %14841 }
 0x90d   :  { %v14844_v59 = vunpack.i.h.bf16 %v14842_v32  ;;  %v14843_v21 = vunpack.i.l.bf16 %v14842_v32 }
 0x90f   :  { %v6581_v50 = vsel %vm6494_vm3, %v19943_v38, %v14843_v21  ;;  %v6582_v61 = vsel %vm6494_vm3, %v19969_v24, %v14844_v59 }
 0x910   :  { %v20167_v42 = vpack.c.bf16 %v6582_v61, %v6581_v50 }
 0x912   :  { %7109 = vmatprep.mubr.bf16.mxu1 %v20167_v42 }
 0x913   :  { %7110 = vmatmul.mubr.bf16.gmra.mrb[44].mxu1 %v20054_v54 }
 0x914   :  { %v14847_v1 = vpop.permute.xlu1 %14846 }
 0x915   :  { %v14849_v56 = vunpack.i.h.bf16 %v14847_v1  ;;  %v14848_v36 = vunpack.i.l.bf16 %v14847_v1 }
 0x917   :  { %v20173_v34 = vsel %vm6494_vm3, %v19972_v52, %v14848_v36  ;;  %v6584_v41 = vsel %vm6494_vm3, %v19998_v53, %v14849_v56 }
 0x918   :  { %v6638_v38 = vpack.c.bf16 %v6584_v41, %v20173_v34 }
 0x91a   :  { %7117 = vmatprep.mubr.bf16.mxu1 %v6638_v38 }
 0x91b   :  { %7118 = vmatmul.mubr.bf16.gmra.mrb[48].mxu1 %v20086_v0 }
 0x91c   :  { %v14852_v24 = vpop.permute.xlu0 %14851 }
 0x91d   :  { %v14854_v10 = vunpack.i.h.bf16 %v14852_v24  ;;  %v14853_v11 = vunpack.i.l.bf16 %v14852_v24 }
 0x91f   :  { %v6585_v54 = vsel %vm6494_vm3, %v20001_v25, %v14853_v11  ;;  %v6586_v57 = vsel %vm6494_vm3, %v20021_v58, %v14854_v10 }
 0x920   :  { %v6639_v3 = vpack.c.bf16 %v6586_v57, %v6585_v54 }
 0x922   :  { %7124 = vmatprep.mubr.bf16.mxu1 %v6639_v3 }
 0x923   :  { %7125 = vmatmul.mubr.bf16.gmra.mrb[52].mxu1 %v20120_v43 }
 0x93a   :  { %v20184_v52 = vpop.f32.mrb[248].mxu1 }
 0x93b   :  { %v7011_v53 = vpop.f32.mrb[249].mxu1 }
 0x93c   :  { %v20186_v23 = vpop.f32.mrb[250].mxu1 }
 0x93d   :  { %v7014_v18 = vpop.f32.mrb[251].mxu1 }
 0x945   :  { %v20188_v0 = vpop.f32.mrb[252].mxu1 }
 0x946   :  { %v7019_v60 = vpop.f32.mrb[253].mxu1 }
 0x947   :  { %v20190_v40 = vpop.f32.mrb[254].mxu1 }
 0x948   :  { %v7022_v39 = vpop.f32.mrb[255].mxu1 }
 0x94f   :  { %v20192_v25 = vpop.f32.mrb[0].mxu1 }
 0x950   :  { %v7027_v31 = vpop.f32.mrb[1].mxu1 }
 0x951   :  { %v20194_v58 = vpop.f32.mrb[2].mxu1 }
 0x952   :  { %v7030_v45 = vpop.f32.mrb[3].mxu1 }
 0x959   :  { %v20196_v32 = vpop.f32.mrb[4].mxu1 }
 0x95a   :  { %v7035_v59 = vpop.f32.mrb[5].mxu1 }
 0x95b   :  { %v14857_v43 = vpop.permute.xlu1 %14856  ;;  %v20198_v61 = vpop.f32.mrb[6].mxu1 }
 0x95c   :  { %v14859_v21 = vunpack.i.h.bf16 %v14857_v43  ;;  %v14858_v50 = vunpack.i.l.bf16 %v14857_v43  ;;  %v7038_v1 = vpop.f32.mrb[7].mxu1 }
 0x95e   :  { %v6587_v56 = vsel %vm6494_vm3, %v20024_v46, %v14858_v50  ;;  %v6588_v36 = vsel %vm6494_vm3, %v20067_v47, %v14859_v21 }
 0x95f   :  { %v6640_v41 = vpack.c.bf16 %v6588_v36, %v6587_v56 }
 0x961   :  { %7132 = vmatprep.mubr.bf16.mxu1 %v6640_v41  ;;  %v20204_v38 = vpop.f32.mrb[8].mxu1 }
 0x962   :  { %7133 = vmatmul.mubr.bf16.gmra.mrb[56].mxu1 %v20145_v7  ;;  %v7043_v24 = vpop.f32.mrb[9].mxu1 }
 0x963   :  { %v7044_v10 = vpop.f32.mrb[10].mxu1 }
 0x964   :  { %v7045_v11 = vpop.f32.mrb[11].mxu1  ;;  %v6643_v10 = vpack.c.bf16 %v20173_v34, %v20173_v34  ;;  %v15513_v34 = vld [vmem:[%s21584_s5 + $0x14] ss:$8 sps:$4 sm:$0xff]  }
 0x965   :  { %v14862_v54 = vpop.permute.xlu0 %14861 }
 0x966   :  { %v14864_v57 = vunpack.i.h.bf16 %v14862_v54  ;;  %v14863_v3 = vunpack.i.l.bf16 %v14862_v54 }
 0x968   :  { %v6589_v53 = vsel %vm6494_vm3, %v20070_v49, %v14863_v3  ;;  %v6590_v46 = vsel %vm6494_vm3, %v20103_v37, %v14864_v57  ;;  %v21974_v57 = vmov 0  }
 0x969   :  { %v6641_v18 = vpack.c.bf16 %v6590_v46, %v6589_v53  ;;  %v20211_v47 = vpop.f32.mrb[12].mxu1  ;;  %v15508_v53 = vld [vmem:[%s21584_s5] ss:$8 sps:$4 sm:$0xff]  }
 0x96a   :  { %v7050_v60 = vpop.f32.mrb[13].mxu1  ;;  %v21975_v46 = vld [vmem:[#allocation146_spill] sm:$0xff] }
 0x96b   :  { %7140 = vmatprep.mubr.bf16.mxu1 %v6641_v18  ;;  %v20213_v39 = vpop.f32.mrb[14].mxu1 }
 0x96c   :  { %7141 = vmatmul.mubr.bf16.gmra.mrb[60].mxu1 %v20159_v9  ;;  %v7053_v31 = vpop.f32.mrb[15].mxu1 }
 0x96d   :  { %v14867_v7 = vpop.permute.xlu1 %14866 }
 0x96e   :  { %v14869_v45 = vunpack.i.h.bf16 %v14867_v7  ;;  %v14868_v43 = vunpack.i.l.bf16 %v14867_v7  ;;  %v15511_v7 = vld [vmem:[%s21584_s5 + $0x10] ss:$8 sps:$4 sm:$0xff]  }
 0x970   :  { %v6591_v59 = vsel %vm6494_vm3, %v20106_v14, %v14868_v43  ;;  %v6592_v49 = vsel %vm6494_vm3, %v20126_v20, %v14869_v45  ;;  %v20230_v14 = vld [vmem:[%s21585_s4] ss:$0 sm:$0xff]  ;;  %v15516_v45 = vld [vmem:[%s21584_s5 + $0x44] ss:$8 sps:$4 sm:$0xff]  }
 0x971   :  { %v6642_v37 = vpack.c.bf16 %v6592_v49, %v6591_v59  ;;  %v20220_v21 = vpop.f32.mrb[16].mxu1  ;;  %v21973_v20 = vld [vmem:[#allocation6_spill] sm:$0xff]  ;;  %v6815_v18 = vadd.f32 %v20230_v14, %v21975_v46 }
 0x972   :  { %v7058_v50 = vpop.f32.mrb[17].mxu1  ;;  %v6818_v24 = vadd.f32 %v20230_v14, %v21973_v20  ;;  %v15514_v43 = vld [vmem:[%s21584_s5 + $0x40] ss:$8 sps:$4 sm:$0xff]  }
 0x973   :  { %7148 = vmatprep.mubr.bf16.mxu1 %v6642_v37  ;;  %v20222_v1 = vpop.f32.mrb[18].mxu1  ;;  %v7164_v31 = vmax.f32 %v6815_v18, 0.0  ;;  %v21976_v49 = vld [vmem:[#allocation114_spill] sm:$0xff]  ;;  %v15519_v50 = vld [vmem:[%s21584_s5 + $0x54] ss:$8 sps:$4 sm:$0xff]  }
 0x974   :  { %7149 = vmatmul.mubr.bf16.gmra.mrb[64].mxu1 %v20167_v42  ;;  %v7061_v9 = vpop.f32.mrb[19].mxu1  ;;  %v7165_v3 = vmax.f32 %v6818_v24, 0.0  ;;  %v6823_v37 = vadd.f32 %v20230_v14, %v21976_v49  ;;  %v21977_v24 = vld [vmem:[#allocation8_spill] sm:$0xff]  ;;  %v15526_v46 = vld [vmem:[%s21584_s5 + $0x80] ss:$8 sps:$4 sm:$0xff]  }
 0x975   :  { %v6483_v56 = vpop.permute.xlu0 %6482  ;;  %v7245_v59 = vpack.c.bf16 %v7164_v31, %v7164_v31  ;;  %v15517_v9 = vld [vmem:[%s21584_s5 + $0x50] ss:$8 sps:$4 sm:$0xff]  }
 0x976   :  { %v6593_v36 = vsel %vm6494_vm3, %v20129_v12, %v6483_v56  ;;  %v7250_v60 = vpack.c.bf16 %v7165_v3, %v7165_v3  ;;  %v7166_v56 = vmax.f32 %v6823_v37, 0.0  ;;  %v15529_v31 = vld [vmem:[%s21584_s5 + $0x90] ss:$8 sps:$4 sm:$0xff]  }
 0x977   :  { %v6644_v41 = vpack.c.bf16 %v6593_v36, %v6593_v36  ;;  %v15522_v36 = vld [vmem:[%s21584_s5 + $0x64] ss:$8 sps:$4 sm:$0xff]   ;;  %v21979_v37 = vld [vmem:[#allocation148_spill] sm:$0xff] }
 0x978   :  { %v7383_v20 = vpack.c.bf16 %v7166_v56, %v7166_v56  ;;  %v15535_v56 = vld [vmem:[%s21584_s5 + $0xb0] ss:$8 sps:$4 sm:$0xff]  }
 0x979   :  { %v20236_v11 = vpop.f32.mrb[20].mxu1  ;;  %7156 = vmatprep.mubr.bf16.mxu1 %v6644_v41  ;;  %v15520_v41 = vld [vmem:[%s21584_s5 + $0x60] ss:$8 sps:$4 sm:$0xff]  }
 0x97a   :  { %v7066_v42 = vpop.f32.mrb[21].mxu1 }
 0x97b   :  { %v20238_v54 = vpop.f32.mrb[22].mxu1  ;;  %v15525_v42 = vld [vmem:[%s21584_s5 + $0x74] ss:$8 sps:$4 sm:$0xff]  }
 0x97c   :  { %7157 = vmatmul.mubr.bf16.gmra.mrb[68].mxu1 %v6643_v10  ;;  %v7069_v12 = vpop.f32.mrb[23].mxu1  ;;  %v6826_v10 = vadd.f32 %v20230_v14, %v21977_v24 }
 0x97d   :  { %7310 = vmatprep.mubr.bf16.mxu1 %v21974_v57  ;;  %v15523_v12 = vld [vmem:[%s21584_s5 + $0x70] ss:$8 sps:$4 sm:$0xff]  }
 0x97e   :  { %v7167_v3 = vmax.f32 %v6826_v10, 0.0  ;;  %v21980_v10 = vld [vmem:[#allocation116_spill] sm:$0xff] }
 0x980   :  { %v7454_v18 = vpack.c.bf16 %v7167_v3, %v7167_v3  ;;  %v15541_v3 = vld [vmem:[%s21584_s5 + $0xd0] ss:$8 sps:$4 sm:$0xff]  }
 0x984   :  { %13452 = vmatmul.mubr.msk.bf16.vlgmr.msra.gmra.mrb[72].mxu1 %vm5896_vm1, %v7250_v60  ;;  %v21978_v60 = vld [vmem:[#allocation82_spill] sm:$0xff] }
 0x985   :  { %7343 = vmatpush1.bf16.msra.mxu1 %v15508_v53  ;;  %7374 = vmatprep.mubr.bf16.mxu1 %v21974_v57  ;;  %v15528_v53 = vld [vmem:[%s21584_s5 + $0x84] ss:$8 sps:$4 sm:$0xff]  }
 0x986   :  { %7344 = vmatprep.subr.bf16.mxu1 %v15513_v34  ;;  %v6831_v34 = vadd.f32 %v20230_v14, %v21978_v60 }
 0x989   :  { %7345 = vmatpush1.bf16.msra.mxu1 %v15511_v7  ;;  %v15531_v7 = vld [vmem:[%s21584_s5 + $0x94] ss:$8 sps:$4 sm:$0xff]  }
 0x98a   :  { %7411 = vmatprep.subr.bf16.mxu1 %v15516_v45  ;;  %v7168_v45 = vmax.f32 %v6831_v34, 0.0  ;;  %v21981_v34 = vld [vmem:[#allocation84_spill] sm:$0xff] }
 0x98c   :  { %13457 = vmatmul.mubr.msk.bf16.vlgmr.msra.gmra.mrb[76].mxu1 %vm5896_vm1, %v7245_v59  ;;  %v15532_v59 = vld [vmem:[%s21584_s5 + $0xa0] ss:$8 sps:$4 sm:$0xff]   ;;  %v7525_v49 = vpack.c.bf16 %v7168_v45, %v7168_v45  ;;  %v15547_v45 = vld [vmem:[%s21584_s5 + $0xf0] ss:$8 sps:$4 sm:$0xff]  }
 0x98d   :  { %7412 = vmatpush1.bf16.msra.mxu1 %v15514_v43  ;;  %7443 = vmatprep.mubr.bf16.mxu1 %v21974_v57  ;;  %v15534_v43 = vld [vmem:[%s21584_s5 + $0xa4] ss:$8 sps:$4 sm:$0xff]  }
 0x98e   :  { %7413 = vmatprep.subr.bf16.mxu1 %v15519_v50  ;;  %v6834_v50 = vadd.f32 %v20230_v14, %v21979_v37 }
 0x991   :  { %7414 = vmatpush1.bf16.msra.mxu1 %v15517_v9  ;;  %v15537_v9 = vld [vmem:[%s21584_s5 + $0xb4] ss:$8 sps:$4 sm:$0xff]  }
 0x992   :  { %7482 = vmatprep.subr.bf16.mxu1 %v15522_v36  ;;  %v7169_v36 = vmax.f32 %v6834_v50, 0.0  ;;  %v15550_v50 = vld [vmem:[%s21584_s5 + $0x100] ss:$8 sps:$4 sm:$0xff]  }
 0x994   :  { %13462 = vmatmul.mubr.msk.bf16.vlgmr.msra.gmra.mrb[80].mxu1 %vm5896_vm1, %v7383_v20  ;;  %v15538_v20 = vld [vmem:[%s21584_s5 + $0xc0] ss:$8 sps:$4 sm:$0xff]   ;;  %v7596_v24 = vpack.c.bf16 %v7169_v36, %v7169_v36 }
 0x995   :  { %7483 = vmatpush1.bf16.msra.mxu1 %v15520_v41  ;;  %7514 = vmatprep.mubr.bf16.mxu1 %v21974_v57  ;;  %v15540_v41 = vld [vmem:[%s21584_s5 + $0xc4] ss:$8 sps:$4 sm:$0xff]  }
 0x996   :  { %7484 = vmatprep.subr.bf16.mxu1 %v15525_v42  ;;  %v6839_v42 = vadd.f32 %v20230_v14, %v21980_v10  ;;  %v15553_v10 = vld [vmem:[%s21584_s5 + $0x110] ss:$8 sps:$4 sm:$0xff]  }
 0x999   :  { %7485 = vmatpush1.bf16.msra.mxu1 %v15523_v12  ;;  %v15543_v12 = vld [vmem:[%s21584_s5 + $0xd4] ss:$8 sps:$4 sm:$0xff]  }
 0x99a   :  { %7553 = vmatprep.subr.bf16.mxu1 %v15528_v53  ;;  %v7170_v53 = vmax.f32 %v6839_v42, 0.0 }
 0x99c   :  { %13467 = vmatmul.mubr.msk.bf16.vlgmr.msra.gmra.mrb[84].mxu1 %vm5896_vm1, %v7454_v18  ;;  %v15544_v18 = vld [vmem:[%s21584_s5 + $0xe0] ss:$8 sps:$4 sm:$0xff]   ;;  %v7667_v60 = vpack.c.bf16 %v7170_v53, %v7170_v53 }
 0x99d   :  { %7554 = vmatpush1.bf16.msra.mxu1 %v15526_v46  ;;  %7585 = vmatprep.mubr.bf16.mxu1 %v21974_v57  ;;  %v15546_v46 = vld [vmem:[%s21584_s5 + $0xe4] ss:$8 sps:$4 sm:$0xff]  }
 0x99e   :  { %7555 = vmatprep.subr.bf16.mxu1 %v15531_v7  ;;  %v6842_v7 = vadd.f32 %v20230_v14, %v21981_v34 }
 0x9a1   :  { %7556 = vmatpush1.bf16.msra.mxu1 %v15529_v31  ;;  %v15549_v31 = vld [vmem:[%s21584_s5 + $0xf4] ss:$8 sps:$4 sm:$0xff]  }
 0x9a2   :  { %7624 = vmatprep.subr.bf16.mxu1 %v15534_v43  ;;  %v7171_v43 = vmax.f32 %v6842_v7, 0.0 }
 0x9a4   :  { %13472 = vmatmul.mubr.msk.bf16.vlgmr.msra.gmra.mrb[88].mxu1 %vm5896_vm1, %v7525_v49 }
 0x9a5   :  { %7625 = vmatpush1.bf16.msra.mxu1 %v15532_v59  ;;  %7656 = vmatprep.mubr.bf16.mxu1 %v21974_v57  ;;  %v15552_v59 = vld [vmem:[%s21584_s5 + $0x104] ss:$8 sps:$4 sm:$0xff]  }
 0x9a6   :  { %7626 = vmatprep.subr.bf16.mxu1 %v15537_v9  ;;  %v7738_v9 = vpack.c.bf16 %v7171_v43, %v7171_v43  ;;  %v15564_v43 = vld [vmem:[%s21584_s5 + $0x144] ss:$8 sps:$4 sm:$0xff]  }
 0x9a9   :  { %7627 = vmatpush1.bf16.msra.mxu1 %v15535_v56  ;;  %v21982_v56 = vld [vmem:[#allocation150_spill] sm:$0xff] }
 0x9aa   :  { %7695 = vmatprep.subr.bf16.mxu1 %v15540_v41  ;;  %v6847_v36 = vadd.f32 %v20230_v14, %v21982_v56  ;;  %v15567_v56 = vld [vmem:[%s21584_s5 + $0x154] ss:$8 sps:$4 sm:$0xff]  }
 0x9ac   :  { %13477 = vmatmul.mubr.msk.bf16.vlgmr.msra.gmra.mrb[92].mxu1 %vm5896_vm1, %v7596_v24  ;;  %v7172_v42 = vmax.f32 %v6847_v36, 0.0 }
 0x9ad   :  { %7696 = vmatpush1.bf16.msra.mxu1 %v15538_v20  ;;  %7727 = vmatprep.mubr.bf16.mxu1 %v21974_v57  ;;  %v15555_v20 = vld [vmem:[%s21584_s5 + $0x114] ss:$8 sps:$4 sm:$0xff]  }
 0x9ae   :  { %7697 = vmatprep.subr.bf16.mxu1 %v15543_v12  ;;  %v15558_v12 = vld [vmem:[%s21584_s5 + $0x124] ss:$8 sps:$4 sm:$0xff]   ;;  %v7809_v53 = vpack.c.bf16 %v7172_v42, %v7172_v42 }
 0x9b1   :  { %7698 = vmatpush1.bf16.msra.mxu1 %v15541_v3  ;;  %v15556_v3 = vld [vmem:[%s21584_s5 + $0x120] ss:$8 sps:$4 sm:$0xff]  }
 0x9b2   :  { %7766 = vmatprep.subr.bf16.mxu1 %v15546_v46  ;;  %v6854_v46 = vadd.f32 %v20230_v14, %v19494_v2 }
 0x9b4   :  { %13482 = vmatmul.mubr.msk.bf16.vlgmr.msra.gmra.mrb[96].mxu1 %vm5896_vm1, %v7667_v60  ;;  %v15561_v60 = vld [vmem:[%s21584_s5 + $0x134] ss:$8 sps:$4 sm:$0xff]   ;;  %v7173_v2 = vmax.f32 %v6854_v46, 0.0 }
 0x9b5   :  { %7767 = vmatpush1.bf16.msra.mxu1 %v15544_v18  ;;  %7798 = vmatprep.mubr.bf16.mxu1 %v21974_v57 }
 0x9b6   :  { %7768 = vmatprep.subr.bf16.mxu1 %v15549_v31 }
 0x9b8   :  { %v20353_v49 = vpop.f32.mrb[24].mxu1 }
 0x9b9   :  { %v7074_v37 = vpop.f32.mrb[25].mxu1  ;;  %7769 = vmatpush1.bf16.msra.mxu1 %v15547_v45  ;;  %v15559_v45 = vld [vmem:[%s21584_s5 + $0x130] ss:$8 sps:$4 sm:$0xff]  }
 0x9ba   :  { %v20360_v41 = vpop.f32.mrb[26].mxu1  ;;  %7837 = vmatprep.subr.bf16.mxu1 %v15552_v59  ;;  %v15562_v59 = vld [vmem:[%s21584_s5 + $0x140] ss:$8 sps:$4 sm:$0xff]   ;;  %v7880_v37 = vpack.c.bf16 %v7173_v2, %v7173_v2  ;;  %v15576_v2 = vld [vmem:[%s21584_s5 + $0x184] ss:$8 sps:$4 sm:$0xff]  }
 0x9bb   :  { %v7077_v24 = vpop.f32.mrb[27].mxu1 }
 0x9bc   :  { %13487 = vmatmul.mubr.msk.bf16.vlgmr.msra.gmra.mrb[100].mxu1 %vm5896_vm1, %v7738_v9  ;;  %v15565_v24 = vld [vmem:[%s21584_s5 + $0x150] ss:$8 sps:$4 sm:$0xff]  }
 0x9bd   :  { %7838 = vmatpush1.bf16.msra.mxu1 %v15550_v50  ;;  %7869 = vmatprep.mubr.bf16.mxu1 %v21974_v57  ;;  %v21983_v50 = vld [vmem:[#allocation86_spill] sm:$0xff] }
 0x9be   :  { %7839 = vmatprep.subr.bf16.mxu1 %v15555_v20  ;;  %v6857_v9 = vadd.f32 %v20230_v14, %v21983_v50  ;;  %v15574_v50 = vld [vmem:[%s21584_s5 + $0x180] ss:$8 sps:$4 sm:$0xff]  }
 0x9c1   :  { %7840 = vmatpush1.bf16.msra.mxu1 %v15553_v10  ;;  %v7174_v10 = vmax.f32 %v6857_v9, 0.0 }
 0x9c2   :  { %v20378_v18 = vpop.f32.mrb[28].mxu1  ;;  %7908 = vmatprep.subr.bf16.mxu1 %v15558_v12  ;;  %v15570_v12 = vld [vmem:[%s21584_s5 + $0x164] ss:$8 sps:$4 sm:$0xff]  }
 0x9c3   :  { %v7082_v34 = vpop.f32.mrb[29].mxu1  ;;  %v7951_v46 = vpack.c.bf16 %v7174_v10, %v7174_v10  ;;  %v15577_v10 = vld [vmem:[%s21584_s5 + $0x190] ss:$8 sps:$4 sm:$0xff]  }
 0x9c4   :  { %v7083_v7 = vpop.f32.mrb[30].mxu1  ;;  %13492 = vmatmul.mubr.msk.bf16.vlgmr.msra.gmra.mrb[104].mxu1 %vm5896_vm1, %v7809_v53  ;;  %v15568_v53 = vld [vmem:[%s21584_s5 + $0x160] ss:$8 sps:$4 sm:$0xff]  }
 0x9c5   :  { %7909 = vmatpush1.bf16.msra.mxu1 %v15556_v3  ;;  %v7084_v31 = vpop.f32.mrb[31].mxu1  ;;  %7940 = vmatprep.mubr.bf16.mxu1 %v21974_v57  ;;  %v15573_v7 = vld [vmem:[%s21584_s5 + $0x174] ss:$8 sps:$4 sm:$0xff]  }
 0x9c6   :  { %7910 = vmatprep.subr.bf16.mxu1 %v15561_v60  ;;  %v21984_v60 = vld [vmem:[#allocation154_spill] sm:$0xff]  ;;  %v15571_v31 = vld [vmem:[%s21584_s5 + $0x170] ss:$8 sps:$4 sm:$0xff]  }
 0x9c7   :  { %v6862_v34 = vadd.f32 %v20230_v14, %v21984_v60  ;;  %v15580_v60 = vld [vmem:[%s21584_s5 + $0x1a0] ss:$8 sps:$4 sm:$0xff]  }
 0x9c9   :  { %7911 = vmatpush1.bf16.msra.mxu1 %v15559_v45  ;;  %v7175_v45 = vmax.f32 %v6862_v34, 0.0 }
 0x9ca   :  { %7979 = vmatprep.subr.bf16.mxu1 %v15564_v43 }
 0x9cb   :  { %v8022_v9 = vpack.c.bf16 %v7175_v45, %v7175_v45  ;;  %v15585_v45 = vld [vmem:[%s21584_s5 + $0x1b4] ss:$8 sps:$4 sm:$0xff]  }
 0x9cc   :  { %v20399_v36 = vpop.f32.mrb[32].mxu1  ;;  %13497 = vmatmul.mubr.msk.bf16.vlgmr.msra.gmra.mrb[108].mxu1 %vm5896_vm1, %v7880_v37 }
 0x9cd   :  { %v7089_v20 = vpop.f32.mrb[33].mxu1  ;;  %7980 = vmatpush1.bf16.msra.mxu1 %v15562_v59  ;;  %8011 = vmatprep.mubr.bf16.mxu1 %v21974_v57 }
 0x9ce   :  { %v20406_v42 = vpop.f32.mrb[34].mxu1  ;;  %7981 = vmatprep.subr.bf16.mxu1 %v15567_v56  ;;  %v6865_v56 = vadd.f32 %v20230_v14, %v19535_v27  ;;  %v15582_v27 = vld [vmem:[%s21584_s5 + $0x1a4] ss:$8 sps:$4 sm:$0xff]  }
 0x9cf   :  { %v7092_v3 = vpop.f32.mrb[35].mxu1 }
 0x9d1   :  { %7982 = vmatpush1.bf16.msra.mxu1 %v15565_v24  ;;  %v15579_v24 = vld [vmem:[%s21584_s5 + $0x194] ss:$8 sps:$4 sm:$0xff]  }
 0x9d2   :  { %8050 = vmatprep.subr.bf16.mxu1 %v15570_v12  ;;  %v7176_v12 = vmax.f32 %v6865_v56, 0.0 }
 0x9d4   :  { %13502 = vmatmul.mubr.msk.bf16.vlgmr.msra.gmra.mrb[112].mxu1 %vm5896_vm1, %v7951_v46  ;;  %v8093_v34 = vpack.c.bf16 %v7176_v12, %v7176_v12 }
 0x9d5   :  { %8051 = vmatpush1.bf16.msra.mxu1 %v15568_v53  ;;  %8082 = vmatprep.mubr.bf16.mxu1 %v21974_v57 }
 0x9d6   :  { %8052 = vmatprep.subr.bf16.mxu1 %v15573_v7  ;;  %v20427_v43 = vpop.f32.mrb[36].mxu1  ;;  %v6870_v7 = vadd.f32 %v20230_v14, %v19560_v6  ;;  %v15588_v6 = vld [vmem:[%s21584_s5 + $0x1c4] ss:$8 sps:$4 sm:$0xff]  }
 0x9d7   :  { %v7097_v59 = vpop.f32.mrb[37].mxu1 }
 0x9d8   :  { %v20429_v37 = vpop.f32.mrb[38].mxu1  ;;  %v7177_v59 = vmax.f32 %v6870_v7, 0.0  ;;  %v15594_v7 = vld [vmem:[%s21584_s5 + $0x1e4] ss:$8 sps:$4 sm:$0xff]  }
 0x9d9   :  { %8053 = vmatpush1.bf16.msra.mxu1 %v15571_v31  ;;  %v7100_v20 = vpop.f32.mrb[39].mxu1 }
 0x9da   :  { %8121 = vmatprep.subr.bf16.mxu1 %v15576_v2  ;;  %v15583_v2 = vld [vmem:[%s21584_s5 + $0x1b0] ss:$8 sps:$4 sm:$0xff]   ;;  %v15586_v20 = vld [vmem:[%s21584_s5 + $0x1c0] ss:$8 sps:$4 sm:$0xff]  }
 0x9dc   :  { %13507 = vmatmul.mubr.msk.bf16.vlgmr.msra.gmra.mrb[116].mxu1 %vm5896_vm1, %v8022_v9 }
 0x9dd   :  { %8122 = vmatpush1.bf16.msra.mxu1 %v15574_v50  ;;  %8153 = vmatprep.mubr.bf16.mxu1 %v21974_v57 }
 0x9de   :  { %8123 = vmatprep.subr.bf16.mxu1 %v15579_v24  ;;  %v20447_v3 = vpop.f32.mrb[40].mxu1  ;;  %v8164_v24 = vpack.c.bf16 %v7177_v59, %v7177_v59  ;;  %v15592_v59 = vld [vmem:[%s21584_s5 + $0x1e0] ss:$8 sps:$4 sm:$0xff]  }
 0x9df   :  { %v7105_v53 = vpop.f32.mrb[41].mxu1 }
 0x9e0   :  { %v20449_v46 = vpop.f32.mrb[42].mxu1  ;;  %v15591_v53 = vld [vmem:[%s21584_s5 + $0x1d4] ss:$8 sps:$4 sm:$0xff]  }
 0x9e1   :  { %8124 = vmatpush1.bf16.msra.mxu1 %v15577_v10  ;;  %v7108_v31 = vpop.f32.mrb[43].mxu1  ;;  %v21985_v10 = vld [vmem:[#allocation87_spill] sm:$0xff] }
 0x9e2   :  { %8192 = vmatprep.subr.bf16.mxu1 %v15582_v27  ;;  %v6873_v12 = vadd.f32 %v20230_v14, %v21985_v10  ;;  %v15595_v10 = vld [vmem:[%s21584_s5 + $0x1f0] ss:$8 sps:$4 sm:$0xff]  }
 0x9e4   :  { %13512 = vmatmul.mubr.msk.bf16.vlgmr.msra.gmra.mrb[120].mxu1 %vm5896_vm1, %v8093_v34  ;;  %v7178_v34 = vmax.f32 %v6873_v12, 0.0 }
 0x9e5   :  { %8193 = vmatpush1.bf16.msra.mxu1 %v15580_v60  ;;  %8224 = vmatprep.mubr.bf16.mxu1 %v21974_v57  ;;  %v15589_v60 = vld [vmem:[%s21584_s5 + $0x1d0] ss:$8 sps:$4 sm:$0xff]  }
 0x9e6   :  { %8194 = vmatprep.subr.bf16.mxu1 %v15585_v45  ;;  %v20467_v50 = vpop.f32.mrb[44].mxu1 }
 0x9e7   :  { %v7113_v9 = vpop.f32.mrb[45].mxu1 }
 0x9e8   :  { %v20469_v56 = vpop.f32.mrb[46].mxu1  ;;  %v6878_v9 = vadd.f32 %v20230_v14, %v19582_v55  ;;  %v15600_v55 = vld [vmem:[%s21584_s5 + $0x204] ss:$8 sps:$4 sm:$0xff]  }
 0x9e9   :  { %8195 = vmatpush1.bf16.msra.mxu1 %v15583_v2  ;;  %v7116_v27 = vpop.f32.mrb[47].mxu1 }
 0x9ea   :  { %8263 = vmatprep.subr.bf16.mxu1 %v15588_v6  ;;  %v8235_v6 = vpack.c.bf16 %v7178_v34, %v7178_v34  ;;  %v7179_v12 = vmax.f32 %v6878_v9, 0.0  ;;  %v15598_v34 = vld [vmem:[%s21584_s5 + $0x200] ss:$8 sps:$4 sm:$0xff]  }
 0x9ec   :  { %13517 = vmatmul.mubr.msk.bf16.vlgmr.msra.gmra.mrb[124].mxu1 %vm5896_vm1, %v8164_v24  ;;  %v15597_v24 = vld [vmem:[%s21584_s5 + $0x1f4] ss:$8 sps:$4 sm:$0xff]  }
 0x9ed   :  { %8264 = vmatpush1.bf16.msra.mxu1 %v15586_v20  ;;  %8295 = vmatprep.mubr.bf16.mxu1 %v21974_v57 }
 0x9ee   :  { %8265 = vmatprep.subr.bf16.mxu1 %v15591_v53  ;;  %v20487_v31 = vpop.f32.mrb[48].mxu1 }
 0x9ef   :  { %v7121_v45 = vpop.f32.mrb[49].mxu1 }
 0x9f0   :  { %v7122_v2 = vpop.f32.mrb[50].mxu1  ;;  %v6881_v45 = vadd.f32 %v20230_v14, %v19596_v30  ;;  %v15606_v30 = vld [vmem:[%s21584_s5 + $0x224] ss:$8 sps:$4 sm:$0xff]  }
 0x9f1   :  { %8266 = vmatpush1.bf16.msra.mxu1 %v15589_v60  ;;  %v7123_v20 = vpop.f32.mrb[51].mxu1 }
 0x9f2   :  { %8334 = vmatprep.subr.bf16.mxu1 %v15594_v7  ;;  %v8306_v7 = vpack.c.bf16 %v7179_v12, %v7179_v12  ;;  %v7180_v9 = vmax.f32 %v6881_v45, 0.0  ;;  %v15604_v20 = vld [vmem:[%s21584_s5 + $0x220] ss:$8 sps:$4 sm:$0xff]   ;;  %v15609_v12 = vld [vmem:[%s21584_s5 + $0x234] ss:$8 sps:$4 sm:$0xff]   ;;  %v6893_v45 = vadd.f32 %v20230_v14, %v19754_v19 }
 0x9f3   :  { %v15618_v19 = vld [vmem:[%s21584_s5 + $0x264] ss:$8 sps:$4 sm:$0xff]  }
 0x9f4   :  { %13522 = vmatmul.mubr.msk.bf16.vlgmr.msra.gmra.mrb[128].mxu1 %vm5896_vm1, %v8235_v6  ;;  %v15601_v6 = vld [vmem:[%s21584_s5 + $0x210] ss:$8 sps:$4 sm:$0xff]  }
 0x9f5   :  { %8335 = vmatpush1.bf16.msra.mxu1 %v15592_v59  ;;  %8366 = vmatprep.mubr.bf16.mxu1 %v21974_v57  ;;  %v15603_v59 = vld [vmem:[%s21584_s5 + $0x214] ss:$8 sps:$4 sm:$0xff]  }
 0x9f6   :  { %8336 = vmatprep.subr.bf16.mxu1 %v15597_v24  ;;  %v20505_v27 = vpop.f32.mrb[52].mxu1  ;;  %v8377_v24 = vpack.c.bf16 %v7180_v9, %v7180_v9  ;;  %v15616_v9 = vld [vmem:[%s21584_s5 + $0x260] ss:$8 sps:$4 sm:$0xff]  }
 0x9f7   :  { %v7128_v53 = vpop.f32.mrb[53].mxu1 }
 0x9f8   :  { %v20507_v60 = vpop.f32.mrb[54].mxu1 }
 0x9f9   :  { %8337 = vmatpush1.bf16.msra.mxu1 %v15595_v10  ;;  %v7131_v2 = vpop.f32.mrb[55].mxu1  ;;  %v6886_v10 = vadd.f32 %v20230_v14, %v19752_v8  ;;  %v15612_v8 = vld [vmem:[%s21584_s5 + $0x244] ss:$8 sps:$4 sm:$0xff]  }
 0x9fa   :  { %8405 = vmatprep.subr.bf16.mxu1 %v15600_v55  ;;  %v15607_v55 = vld [vmem:[%s21584_s5 + $0x230] ss:$8 sps:$4 sm:$0xff]   ;;  %v15615_v2 = vld [vmem:[%s21584_s5 + $0x254] ss:$8 sps:$4 sm:$0xff]  }
 0x9fb   :  { %v7181_v53 = vmax.f32 %v6886_v10, 0.0  ;;  %v15619_v10 = vld [vmem:[%s21584_s5 + $0x270] ss:$8 sps:$4 sm:$0xff]  }
 0x9fc   :  { %13527 = vmatmul.mubr.msk.bf16.vlgmr.msra.gmra.mrb[132].mxu1 %vm5896_vm1, %v8306_v7 }
 0x9fd   :  { %8406 = vmatpush1.bf16.msra.mxu1 %v15598_v34  ;;  %8437 = vmatprep.mubr.bf16.mxu1 %v21974_v57  ;;  %v15610_v34 = vld [vmem:[%s21584_s5 + $0x240] ss:$8 sps:$4 sm:$0xff]   ;;  %v8448_v7 = vpack.c.bf16 %v7181_v53, %v7181_v53 }
 0x9fe   :  { %8407 = vmatprep.subr.bf16.mxu1 %v15603_v59  ;;  %v15613_v59 = vld [vmem:[%s21584_s5 + $0x250] ss:$8 sps:$4 sm:$0xff]  }
 0xa01   :  { %8408 = vmatpush1.bf16.msra.mxu1 %v15601_v6  ;;  %v7182_v6 = vmax.f32 %v6893_v45, 0.0 }
 0xa02   :  { %8476 = vmatprep.subr.bf16.mxu1 %v15606_v30 }
 0xa03   :  { %v8519_v30 = vpack.c.bf16 %v7182_v6, %v7182_v6  ;;  %v6904_v6 = vadd.f32 %v20230_v14, %v19766_v44  ;;  %v15636_v44 = vld [vmem:[%s21584_s5 + $0x2c4] ss:$8 sps:$4 sm:$0xff]  }
 0xa04   :  { %13532 = vmatmul.mubr.msk.bf16.vlgmr.msra.gmra.mrb[136].mxu1 %vm5896_vm1, %v8377_v24  ;;  %v15621_v24 = vld [vmem:[%s21584_s5 + $0x274] ss:$8 sps:$4 sm:$0xff]  }
 0xa05   :  { %8477 = vmatpush1.bf16.msra.mxu1 %v15604_v20  ;;  %8508 = vmatprep.mubr.bf16.mxu1 %v21974_v57  ;;  %v6896_v20 = vadd.f32 %v20230_v14, %v19756_v62  ;;  %v15624_v62 = vld [vmem:[%s21584_s5 + $0x284] ss:$8 sps:$4 sm:$0xff]  }
 0xa06   :  { %8478 = vmatprep.subr.bf16.mxu1 %v15609_v12 }
 0xa07   :  { %v7183_v12 = vmax.f32 %v6896_v20, 0.0  ;;  %v15634_v20 = vld [vmem:[%s21584_s5 + $0x2c0] ss:$8 sps:$4 sm:$0xff]  }
 0xa09   :  { %8479 = vmatpush1.bf16.msra.mxu1 %v15607_v55  ;;  %v15622_v55 = vld [vmem:[%s21584_s5 + $0x280] ss:$8 sps:$4 sm:$0xff]   ;;  %v8590_v53 = vpack.c.bf16 %v7183_v12, %v7183_v12  ;;  %v15639_v12 = vld [vmem:[%s21584_s5 + $0x2d4] ss:$8 sps:$4 sm:$0xff]  }
 0xa0a   :  { %8547 = vmatprep.subr.bf16.mxu1 %v15612_v8  ;;  %v6901_v8 = vadd.f32 %v20230_v14, %v19764_v29  ;;  %v15630_v29 = vld [vmem:[%s21584_s5 + $0x2a4] ss:$8 sps:$4 sm:$0xff]  }
 0xa0c   :  { %13537 = vmatmul.mubr.msk.bf16.vlgmr.msra.gmra.mrb[140].mxu1 %vm5896_vm1, %v8448_v7  ;;  %v15625_v7 = vld [vmem:[%s21584_s5 + $0x290] ss:$8 sps:$4 sm:$0xff]   ;;  %v7184_v45 = vmax.f32 %v6901_v8, 0.0 }
 0xa0d   :  { %8548 = vmatpush1.bf16.msra.mxu1 %v15610_v34  ;;  %8579 = vmatprep.mubr.bf16.mxu1 %v21974_v57  ;;  %v15627_v34 = vld [vmem:[%s21584_s5 + $0x294] ss:$8 sps:$4 sm:$0xff]  }
 0xa0e   :  { %8549 = vmatprep.subr.bf16.mxu1 %v15615_v2  ;;  %v15628_v2 = vld [vmem:[%s21584_s5 + $0x2a0] ss:$8 sps:$4 sm:$0xff]  }
 0xa11   :  { %8550 = vmatpush1.bf16.msra.mxu1 %v15613_v59  ;;  %v8661_v59 = vpack.c.bf16 %v7184_v45, %v7184_v45 }
 0xa12   :  { %8618 = vmatprep.subr.bf16.mxu1 %v15618_v19  ;;  %v15633_v19 = vld [vmem:[%s21584_s5 + $0x2b4] ss:$8 sps:$4 sm:$0xff]  }
 0xa14   :  { %13542 = vmatmul.mubr.msk.bf16.vlgmr.msra.gmra.mrb[144].mxu1 %vm5896_vm1, %v8519_v30  ;;  %v7185_v30 = vmax.f32 %v6904_v6, 0.0 }
 0xa15   :  { %8619 = vmatpush1.bf16.msra.mxu1 %v15616_v9  ;;  %8650 = vmatprep.mubr.bf16.mxu1 %v21974_v57  ;;  %v15631_v9 = vld [vmem:[%s21584_s5 + $0x2b0] ss:$8 sps:$4 sm:$0xff]  }
 0xa16   :  { %8620 = vmatprep.subr.bf16.mxu1 %v15621_v24  ;;  %v8732_v24 = vpack.c.bf16 %v7185_v30, %v7185_v30 }
 0xa19   :  { %8621 = vmatpush1.bf16.msra.mxu1 %v15619_v10  ;;  %v6909_v10 = vadd.f32 %v20230_v14, %v19768_v4  ;;  %v15642_v4 = vld [vmem:[%s21584_s5 + $0x2e4] ss:$8 sps:$4 sm:$0xff]  }
 0xa1a   :  { %8689 = vmatprep.subr.bf16.mxu1 %v15624_v62  ;;  %v15637_v62 = vld [vmem:[%s21584_s5 + $0x2d0] ss:$8 sps:$4 sm:$0xff]  }
 0xa1c   :  { %13547 = vmatmul.mubr.msk.bf16.vlgmr.msra.gmra.mrb[148].mxu1 %vm5896_vm1, %v8590_v53  ;;  %v15640_v53 = vld [vmem:[%s21584_s5 + $0x2e0] ss:$8 sps:$4 sm:$0xff]  }
 0xa1d   :  { %8690 = vmatpush1.bf16.msra.mxu1 %v15622_v55  ;;  %8721 = vmatprep.mubr.bf16.mxu1 %v21974_v57  ;;  %v7186_v55 = vmax.f32 %v6909_v10, 0.0 }
 0xa1e   :  { %8691 = vmatprep.subr.bf16.mxu1 %v15627_v34  ;;  %v6912_v34 = vadd.f32 %v20230_v14, %v19772_v5  ;;  %v15648_v5 = vld [vmem:[%s21584_s5 + $0x304] ss:$8 sps:$4 sm:$0xff]  }
 0xa1f   :  { %v8803_v8 = vpack.c.bf16 %v7186_v55, %v7186_v55 }
 0xa21   :  { %8692 = vmatpush1.bf16.msra.mxu1 %v15625_v7  ;;  %v15645_v7 = vld [vmem:[%s21584_s5 + $0x2f4] ss:$8 sps:$4 sm:$0xff]  }
 0xa22   :  { %8760 = vmatprep.subr.bf16.mxu1 %v15630_v29  ;;  %v15643_v29 = vld [vmem:[%s21584_s5 + $0x2f0] ss:$8 sps:$4 sm:$0xff]  }
 0xa24   :  { %13552 = vmatmul.mubr.msk.bf16.vlgmr.msra.gmra.mrb[152].mxu1 %vm5896_vm1, %v8661_v59 }
 0xa25   :  { %8761 = vmatpush1.bf16.msra.mxu1 %v15628_v2  ;;  %8792 = vmatprep.mubr.bf16.mxu1 %v21974_v57  ;;  %v7187_v2 = vmax.f32 %v6912_v34, 0.0 }
 0xa26   :  { %8762 = vmatprep.subr.bf16.mxu1 %v15633_v19 }
 0xa27   :  { %v8874_v30 = vpack.c.bf16 %v7187_v2, %v7187_v2 }
 0xa29   :  { %8763 = vmatpush1.bf16.msra.mxu1 %v15631_v9  ;;  %v15646_v9 = vld [vmem:[%s21584_s5 + $0x300] ss:$8 sps:$4 sm:$0xff]  }
 0xa2a   :  { %8831 = vmatprep.subr.bf16.mxu1 %v15636_v44  ;;  %v6917_v44 = vadd.f32 %v20230_v14, %v19787_v13  ;;  %v15654_v13 = vld [vmem:[%s21584_s5 + $0x324] ss:$8 sps:$4 sm:$0xff]  }
 0xa2c   :  { %13557 = vmatmul.mubr.msk.bf16.vlgmr.msra.gmra.mrb[156].mxu1 %vm5896_vm1, %v8732_v24  ;;  %v15649_v24 = vld [vmem:[%s21584_s5 + $0x310] ss:$8 sps:$4 sm:$0xff]   ;;  %v7188_v10 = vmax.f32 %v6917_v44, 0.0  ;;  %v6925_v44 = vadd.f32 %v20230_v14, %v19814_v26  ;;  %v15666_v26 = vld [vmem:[%s21584_s5 + $0x364] ss:$8 sps:$4 sm:$0xff]  }
 0xa2d   :  { %8832 = vmatpush1.bf16.msra.mxu1 %v15634_v20  ;;  %8863 = vmatprep.mubr.bf16.mxu1 %v21974_v57  ;;  %v15651_v20 = vld [vmem:[%s21584_s5 + $0x314] ss:$8 sps:$4 sm:$0xff]  }
 0xa2e   :  { %8833 = vmatprep.subr.bf16.mxu1 %v15639_v12 }
 0xa31   :  { %8834 = vmatpush1.bf16.msra.mxu1 %v15637_v62 }
 0xa32   :  { %8902 = vmatprep.subr.bf16.mxu1 %v15642_v4  ;;  %v15652_v4 = vld [vmem:[%s21584_s5 + $0x320] ss:$8 sps:$4 sm:$0xff]  }
 0xa34   :  { %13562 = vmatmul.mubr.msk.bf16.vlgmr.msra.gmra.mrb[160].mxu1 %vm5896_vm1, %v8803_v8  ;;  %v6920_v8 = vadd.f32 %v20230_v14, %v19793_v16  ;;  %v15660_v16 = vld [vmem:[%s21584_s5 + $0x344] ss:$8 sps:$4 sm:$0xff]  }
 0xa35   :  { %v20630_v45 = vpop.f32.mrb[56].mxu1  ;;  %8903 = vmatpush1.bf16.msra.mxu1 %v15640_v53  ;;  %8934 = vmatprep.mubr.bf16.mxu1 %v21974_v57  ;;  %v8945_v53 = vpack.c.bf16 %v7188_v10, %v7188_v10  ;;  %v15661_v10 = vld [vmem:[%s21584_s5 + $0x350] ss:$8 sps:$4 sm:$0xff]  }
 0xa36   :  { %v7136_v59 = vpop.f32.mrb[57].mxu1  ;;  %8904 = vmatprep.subr.bf16.mxu1 %v15645_v7  ;;  %v15657_v7 = vld [vmem:[%s21584_s5 + $0x334] ss:$8 sps:$4 sm:$0xff]   ;;  %v7189_v2 = vmax.f32 %v6920_v8, 0.0  ;;  %v15664_v8 = vld [vmem:[%s21584_s5 + $0x360] ss:$8 sps:$4 sm:$0xff]  }
 0xa37   :  { %v20639_v6 = vpop.f32.mrb[58].mxu1 }
 0xa38   :  { %v7139_v19 = vpop.f32.mrb[59].mxu1 }
 0xa39   :  { %8905 = vmatpush1.bf16.msra.mxu1 %v15643_v29  ;;  %v15655_v29 = vld [vmem:[%s21584_s5 + $0x330] ss:$8 sps:$4 sm:$0xff]  }
 0xa3a   :  { %8973 = vmatprep.subr.bf16.mxu1 %v15648_v5 }
 0xa3c   :  { %13567 = vmatmul.mubr.msk.bf16.vlgmr.msra.gmra.mrb[164].mxu1 %vm5896_vm1, %v8874_v30  ;;  %v9016_v30 = vpack.c.bf16 %v7189_v2, %v7189_v2  ;;  %v15669_v2 = vld [vmem:[%s21584_s5 + $0x374] ss:$8 sps:$4 sm:$0xff]  }
 0xa3d   :  { %8974 = vmatpush1.bf16.msra.mxu1 %v15646_v9  ;;  %9005 = vmatprep.mubr.bf16.mxu1 %v21974_v57  ;;  %v15658_v9 = vld [vmem:[%s21584_s5 + $0x340] ss:$8 sps:$4 sm:$0xff]  }
 0xa3e   :  { %8975 = vmatprep.subr.bf16.mxu1 %v15651_v20 }
 0xa3f   :  { %v20657_v12 = vpop.f32.mrb[60].mxu1 }
 0xa40   :  { %v7144_v62 = vpop.f32.mrb[61].mxu1 }
 0xa41   :  { %8976 = vmatpush1.bf16.msra.mxu1 %v15649_v24  ;;  %v20659_v55 = vpop.f32.mrb[62].mxu1  ;;  %v15663_v24 = vld [vmem:[%s21584_s5 + $0x354] ss:$8 sps:$4 sm:$0xff]  }
 0xa42   :  { %v7147_v34 = vpop.f32.mrb[63].mxu1  ;;  %9044 = vmatprep.subr.bf16.mxu1 %v15654_v13  ;;  %v7190_v13 = vmax.f32 %v6925_v44, 0.0 }
 0xa44   :  { %13572 = vmatmul.mubr.msk.bf16.vlgmr.msra.gmra.mrb[168].mxu1 %vm5896_vm1, %v8945_v53  ;;  %v9087_v34 = vpack.c.bf16 %v7190_v13, %v7190_v13 }
 0xa45   :  { %9045 = vmatpush1.bf16.msra.mxu1 %v15652_v4  ;;  %9076 = vmatprep.mubr.bf16.mxu1 %v21974_v57 }
 0xa46   :  { %9046 = vmatprep.subr.bf16.mxu1 %v15657_v7  ;;  %v6932_v7 = vadd.f32 %v20230_v14, %v19841_v17  ;;  %v15672_v17 = vld [vmem:[%s21584_s5 + $0x384] ss:$8 sps:$4 sm:$0xff]  }
 0xa47   :  { %v20677_v59 = vpop.f32.mrb[64].mxu1 }
 0xa48   :  { %v7152_v5 = vpop.f32.mrb[65].mxu1 }
 0xa49   :  { %9047 = vmatpush1.bf16.msra.mxu1 %v15655_v29  ;;  %v20679_v19 = vpop.f32.mrb[66].mxu1  ;;  %v7191_v5 = vmax.f32 %v6932_v7, 0.0 }
 0xa4a   :  { %v7155_v20 = vpop.f32.mrb[67].mxu1  ;;  %9115 = vmatprep.subr.bf16.mxu1 %v15660_v16  ;;  %v15667_v16 = vld [vmem:[%s21584_s5 + $0x370] ss:$8 sps:$4 sm:$0xff]  }
 0xa4b   :  { %v15670_v20 = vld [vmem:[%s21584_s5 + $0x380] ss:$8 sps:$4 sm:$0xff]  }
 0xa4c   :  { %13577 = vmatmul.mubr.msk.bf16.vlgmr.msra.gmra.mrb[172].mxu1 %vm5896_vm1, %v9016_v30 }
 0xa4d   :  { %9116 = vmatpush1.bf16.msra.mxu1 %v15658_v9  ;;  %9147 = vmatprep.mubr.bf16.mxu1 %v21974_v57 }
 0xa4e   :  { %9117 = vmatprep.subr.bf16.mxu1 %v15663_v24  ;;  %v9158_v24 = vpack.c.bf16 %v7191_v5, %v7191_v5 }
 0xa4f   :  { %v20697_v62 = vpop.f32.mrb[68].mxu1 }
 0xa50   :  { %v7160_v4 = vpop.f32.mrb[69].mxu1 }
 0xa51   :  { %9118 = vmatpush1.bf16.msra.mxu1 %v15661_v10  ;;  %v7161_v53 = vpop.f32.mrb[70].mxu1  ;;  %v6935_v10 = vadd.f32 %v20230_v14, %v19849_v22  ;;  %v15673_v4 = vld [vmem:[%s21584_s5 + $0x390] ss:$8 sps:$4 sm:$0xff]   ;;  %v15678_v22 = vld [vmem:[%s21584_s5 + $0x3a4] ss:$8 sps:$4 sm:$0xff]  }
 0xa52   :  { %v7162_v29 = vpop.f32.mrb[71].mxu1  ;;  %9186 = vmatprep.subr.bf16.mxu1 %v15666_v26  ;;  %v15675_v26 = vld [vmem:[%s21584_s5 + $0x394] ss:$8 sps:$4 sm:$0xff]  }
 0xa53   :  { %v7192_v53 = vmax.f32 %v6935_v10, 0.0  ;;  %v15684_v10 = vld [vmem:[%s21584_s5 + $0x3c4] ss:$8 sps:$4 sm:$0xff]  }
 0xa54   :  { %13582 = vmatmul.mubr.msk.bf16.vlgmr.msra.gmra.mrb[176].mxu1 %vm5896_vm1, %v9087_v34 }
 0xa55   :  { %9187 = vmatpush1.bf16.msra.mxu1 %v15664_v8  ;;  %9218 = vmatprep.mubr.bf16.mxu1 %v21974_v57  ;;  %v9229_v5 = vpack.c.bf16 %v7192_v53, %v7192_v53 }
 0xa56   :  { %9188 = vmatprep.subr.bf16.mxu1 %v15669_v2 }
 0xa57   :  { %v7312_v9 = vpop.f32.mrb[72].mxu1 }
 0xa58   :  { %v7314_v30 = vpop.f32.mrb[73].mxu1 }
 0xa59   :  { %9189 = vmatpush1.bf16.msra.mxu1 %v15667_v16  ;;  %v7316_v44 = vpop.f32.mrb[74].mxu1  ;;  %v15676_v16 = vld [vmem:[%s21584_s5 + $0x3a0] ss:$8 sps:$4 sm:$0xff]  }
 0xa5a   :  { %v7317_v13 = vpop.f32.mrb[75].mxu1  ;;  %9257 = vmatprep.subr.bf16.mxu1 %v15672_v17  ;;  %v21986_v17 = vld [vmem:[#allocation155_spill] sm:$0xff] }
 0xa5b   :  { %v6940_v44 = vadd.f32 %v20230_v14, %v21986_v17 }
 0xa5c   :  { %13587 = vmatmul.mubr.msk.bf16.vlgmr.msra.gmra.mrb[180].mxu1 %vm5896_vm1, %v9158_v24  ;;  %v15681_v24 = vld [vmem:[%s21584_s5 + $0x3b4] ss:$8 sps:$4 sm:$0xff]  }
 0xa5d   :  { %9258 = vmatpush1.bf16.msra.mxu1 %v15670_v20  ;;  %9289 = vmatprep.mubr.bf16.mxu1 %v21974_v57 }
 0xa5e   :  { %9259 = vmatprep.subr.bf16.mxu1 %v15675_v26 }
 0xa5f   :  { %v7376_v8 = vpop.f32.mrb[76].mxu1 }
 0xa60   :  { %v7377_v34 = vadd.f32 %v7376_v8, %v7312_v9  ;;  %v7378_v7 = vpop.f32.mrb[77].mxu1  ;;  %v15679_v9 = vld [vmem:[%s21584_s5 + $0x3b0] ss:$8 sps:$4 sm:$0xff]   ;;  %v15682_v8 = vld [vmem:[%s21584_s5 + $0x3c0] ss:$8 sps:$4 sm:$0xff]  }
 0xa61   :  { %v7379_v29 = vadd.f32 %v7378_v7, %v7314_v30  ;;  %9260 = vmatpush1.bf16.msra.mxu1 %v15673_v4  ;;  %v7380_v2 = vpop.f32.mrb[78].mxu1  ;;  %v7193_v30 = vmax.f32 %v6940_v44, 0.0 }
 0xa62   :  { %v7381_v20 = vpop.f32.mrb[79].mxu1  ;;  %9328 = vmatprep.subr.bf16.mxu1 %v15678_v22  ;;  %v6943_v2 = vadd.f32 %v20230_v14, %v19879_v33  ;;  %v15690_v33 = vld [vmem:[%s21584_s5 + $0x3e4] ss:$8 sps:$4 sm:$0xff]  }
 0xa63   :  { %v9300_v7 = vpack.c.bf16 %v7193_v30, %v7193_v30  ;;  %v15688_v30 = vld [vmem:[%s21584_s5 + $0x3e0] ss:$8 sps:$4 sm:$0xff]  }
 0xa64   :  { %13592 = vmatmul.mubr.msk.bf16.vlgmr.msra.gmra.mrb[184].mxu1 %vm5896_vm1, %v9229_v5  ;;  %v15687_v5 = vld [vmem:[%s21584_s5 + $0x3d4] ss:$8 sps:$4 sm:$0xff]  }
 0xa65   :  { %9329 = vmatpush1.bf16.msra.mxu1 %v15676_v16  ;;  %9360 = vmatprep.mubr.bf16.mxu1 %v21974_v57 }
 0xa66   :  { %9330 = vmatprep.subr.bf16.mxu1 %v15681_v24 }
 0xa67   :  { %v7445_v13 = vpop.f32.mrb[80].mxu1 }
 0xa68   :  { %v7452_v26 = vadd.f32 %v7445_v13, %v7377_v34  ;;  %v7447_v4 = vpop.f32.mrb[81].mxu1  ;;  %v15685_v34 = vld [vmem:[%s21584_s5 + $0x3d0] ss:$8 sps:$4 sm:$0xff]   ;;  %v6948_v13 = vadd.f32 %v20230_v14, %v20029_v35  ;;  %v15696_v35 = vld [vmem:[%s21584_s5 + $0x404] ss:$8 sps:$4 sm:$0xff]  }
 0xa69   :  { %v7453_v53 = vadd.f32 %v7447_v4, %v7379_v29  ;;  %9331 = vmatpush1.bf16.msra.mxu1 %v15679_v9  ;;  %v7449_v22 = vpop.f32.mrb[82].mxu1  ;;  %v7194_v29 = vmax.f32 %v6943_v2, 0.0 }
 0xa6a   :  { %v7450_v16 = vpop.f32.mrb[83].mxu1  ;;  %9399 = vmatprep.subr.bf16.mxu1 %v15684_v10  ;;  %v15693_v22 = vld [vmem:[%s21584_s5 + $0x3f4] ss:$8 sps:$4 sm:$0xff]  }
 0xa6b   :  { %v9371_v10 = vpack.c.bf16 %v7194_v29, %v7194_v29 }
 0xa6c   :  { %13597 = vmatmul.mubr.msk.bf16.vlgmr.msra.gmra.mrb[188].mxu1 %vm5896_vm1, %v9300_v7 }
 0xa6d   :  { %9400 = vmatpush1.bf16.msra.mxu1 %v15682_v8  ;;  %9431 = vmatprep.mubr.bf16.mxu1 %v21974_v57 }
 0xa6e   :  { %9401 = vmatprep.subr.bf16.mxu1 %v15687_v5 }
 0xa6f   :  { %v7516_v17 = vpop.f32.mrb[84].mxu1 }
 0xa70   :  { %v7523_v44 = vadd.f32 %v7516_v17, %v7452_v26  ;;  %v7518_v20 = vpop.f32.mrb[85].mxu1  ;;  %v15691_v26 = vld [vmem:[%s21584_s5 + $0x3f0] ss:$8 sps:$4 sm:$0xff]  }
 0xa71   :  { %v7524_v24 = vadd.f32 %v7518_v20, %v7453_v53  ;;  %9402 = vmatpush1.bf16.msra.mxu1 %v15685_v34  ;;  %v7520_v9 = vpop.f32.mrb[86].mxu1  ;;  %v7195_v53 = vmax.f32 %v6948_v13, 0.0  ;;  %v15694_v34 = vld [vmem:[%s21584_s5 + $0x400] ss:$8 sps:$4 sm:$0xff]  }
 0xa72   :  { %v7521_v4 = vpop.f32.mrb[87].mxu1  ;;  %9470 = vmatprep.subr.bf16.mxu1 %v15690_v33  ;;  %v21987_v33 = vld [vmem:[#allocation88_spill] sm:$0xff] }
 0xa73   :  { %v9442_v29 = vpack.c.bf16 %v7195_v53, %v7195_v53  ;;  %v6951_v17 = vadd.f32 %v20230_v14, %v21987_v33  ;;  %v15699_v9 = vld [vmem:[%s21584_s5 + $0x414] ss:$8 sps:$4 sm:$0xff]   ;;  %v15700_v53 = vld [vmem:[%s21584_s5 + $0x420] ss:$8 sps:$4 sm:$0xff]  }
 0xa74   :  { %13602 = vmatmul.mubr.msk.bf16.vlgmr.msra.gmra.mrb[192].mxu1 %vm5896_vm1, %v9371_v10 }
 0xa75   :  { %9471 = vmatpush1.bf16.msra.mxu1 %v15688_v30  ;;  %9502 = vmatprep.mubr.bf16.mxu1 %v21974_v57  ;;  %v15702_v30 = vld [vmem:[%s21584_s5 + $0x424] ss:$8 sps:$4 sm:$0xff]  }
 0xa76   :  { %9472 = vmatprep.subr.bf16.mxu1 %v15693_v22 }
 0xa77   :  { %v7587_v8 = vpop.f32.mrb[88].mxu1 }
 0xa78   :  { %v7594_v7 = vadd.f32 %v7587_v8, %v7523_v44  ;;  %v7589_v2 = vpop.f32.mrb[89].mxu1  ;;  %v15697_v44 = vld [vmem:[%s21584_s5 + $0x410] ss:$8 sps:$4 sm:$0xff]   ;;  %v21988_v8 = vld [vmem:[#allocation2_spill] sm:$0xff] }
 0xa79   :  { %v7595_v16 = vadd.f32 %v7589_v2, %v7524_v24  ;;  %9473 = vmatpush1.bf16.msra.mxu1 %v15691_v26  ;;  %v7591_v5 = vpop.f32.mrb[90].mxu1  ;;  %v7196_v24 = vmax.f32 %v6951_v17, 0.0  ;;  %v6956_v2 = vadd.f32 %v20230_v14, %v21988_v8  ;;  %v15708_v14 = vld [vmem:[%s21584_s5 + $0x444] ss:$8 sps:$4 sm:$0xff]  }
 0xa7a   :  { %v7592_v20 = vpop.f32.mrb[91].mxu1  ;;  %9541 = vmatprep.subr.bf16.mxu1 %v15696_v35 }
 0xa7b   :  { %v9513_v35 = vpack.c.bf16 %v7196_v24, %v7196_v24 }
 0xa7c   :  { %13607 = vmatmul.mubr.msk.bf16.vlgmr.msra.gmra.mrb[196].mxu1 %vm5896_vm1, %v9442_v29 }
 0xa7d   :  { %9542 = vmatpush1.bf16.msra.mxu1 %v15694_v34  ;;  %9573 = vmatprep.mubr.bf16.mxu1 %v21974_v57  ;;  %v15705_v34 = vld [vmem:[%s21584_s5 + $0x434] ss:$8 sps:$4 sm:$0xff]  }
 0xa7e   :  { %9543 = vmatprep.subr.bf16.mxu1 %v15699_v9 }
 0xa7f   :  { %v7658_v10 = vpop.f32.mrb[92].mxu1 }
 0xa80   :  { %v7665_v13 = vadd.f32 %v7658_v10, %v7594_v7  ;;  %v7660_v4 = vpop.f32.mrb[93].mxu1  ;;  %v15703_v7 = vld [vmem:[%s21584_s5 + $0x430] ss:$8 sps:$4 sm:$0xff]  }
 0xa81   :  { %v7666_v22 = vadd.f32 %v7660_v4, %v7595_v16  ;;  %9544 = vmatpush1.bf16.msra.mxu1 %v15697_v44  ;;  %v7662_v26 = vpop.f32.mrb[94].mxu1  ;;  %v7197_v16 = vmax.f32 %v6956_v2, 0.0  ;;  %v15706_v44 = vld [vmem:[%s21584_s5 + $0x440] ss:$8 sps:$4 sm:$0xff]   ;;  %v21989_v10 = vld [vmem:[#allocation156_spill] sm:$0xff] }
 0xa82   :  { %v7663_v5 = vpop.f32.mrb[95].mxu1  ;;  %9612 = vmatprep.subr.bf16.mxu1 %v15702_v30  ;;  %v20817_v30 = vld [vmem:[%s21585_s4] ss:$0 sm:$0xff] }
 0xa83   :  { %v9584_v24 = vpack.c.bf16 %v7197_v16, %v7197_v16  ;;  %v6959_v4 = vadd.f32 %v20817_v30, %v21989_v10  ;;  %v15712_v16 = vld [vmem:[%s21584_s5 + $0x460] ss:$8 sps:$4 sm:$0xff]  }
 0xa84   :  { %13612 = vmatmul.mubr.msk.bf16.vlgmr.msra.gmra.mrb[200].mxu1 %vm5896_vm1, %v9513_v35  ;;  %v15714_v35 = vld [vmem:[%s21584_s5 + $0x464] ss:$8 sps:$4 sm:$0xff]  }
 0xa85   :  { %9613 = vmatpush1.bf16.msra.mxu1 %v15700_v53  ;;  %9644 = vmatprep.mubr.bf16.mxu1 %v21974_v57  ;;  %v7198_v53 = vmax.f32 %v6959_v4, 0.0 }
 0xa86   :  { %9614 = vmatprep.subr.bf16.mxu1 %v15705_v34 }
 0xa87   :  { %v7729_v29 = vpop.f32.mrb[96].mxu1 }
 0xa88   :  { %v7736_v33 = vadd.f32 %v7729_v29, %v7665_v13  ;;  %v7731_v17 = vpop.f32.mrb[97].mxu1  ;;  %v15711_v13 = vld [vmem:[%s21584_s5 + $0x454] ss:$8 sps:$4 sm:$0xff]  }
 0xa89   :  { %v7737_v20 = vadd.f32 %v7731_v17, %v7666_v22  ;;  %9615 = vmatpush1.bf16.msra.mxu1 %v15703_v7  ;;  %v7733_v9 = vpop.f32.mrb[98].mxu1  ;;  %v15709_v22 = vld [vmem:[%s21584_s5 + $0x450] ss:$8 sps:$4 sm:$0xff]  }
 0xa8a   :  { %v7734_v26 = vpop.f32.mrb[99].mxu1  ;;  %9683 = vmatprep.subr.bf16.mxu1 %v15708_v14  ;;  %v9655_v14 = vpack.c.bf16 %v7198_v53, %v7198_v53  ;;  %v21990_v29 = vld [vmem:[#allocation89_spill] sm:$0xff]  ;;  %v15718_v53 = vld [vmem:[%s21584_s5 + $0x480] ss:$8 sps:$4 sm:$0xff]  }
 0xa8b   :  { %v6964_v17 = vadd.f32 %v20817_v30, %v21990_v29 }
 0xa8c   :  { %13617 = vmatmul.mubr.msk.bf16.vlgmr.msra.gmra.mrb[204].mxu1 %vm5896_vm1, %v9584_v24  ;;  %v15720_v24 = vld [vmem:[%s21584_s5 + $0x484] ss:$8 sps:$4 sm:$0xff]  }
 0xa8d   :  { %9684 = vmatpush1.bf16.msra.mxu1 %v15706_v44  ;;  %9715 = vmatprep.mubr.bf16.mxu1 %v21974_v57  ;;  %v15717_v44 = vld [vmem:[%s21584_s5 + $0x474] ss:$8 sps:$4 sm:$0xff]  }
 0xa8e   :  { %9685 = vmatprep.subr.bf16.mxu1 %v15711_v13 }
 0xa8f   :  { %v7800_v8 = vpop.f32.mrb[100].mxu1 }
 0xa90   :  { %v7807_v2 = vadd.f32 %v7800_v8, %v7736_v33  ;;  %v7802_v5 = vpop.f32.mrb[101].mxu1  ;;  %v15715_v33 = vld [vmem:[%s21584_s5 + $0x470] ss:$8 sps:$4 sm:$0xff]  }
 0xa91   :  { %v7808_v34 = vadd.f32 %v7802_v5, %v7737_v20  ;;  %9686 = vmatpush1.bf16.msra.mxu1 %v15709_v22  ;;  %v7804_v7 = vpop.f32.mrb[102].mxu1  ;;  %v7199_v20 = vmax.f32 %v6964_v17, 0.0  ;;  %v21991_v8 = vld [vmem:[#allocation157_spill] sm:$0xff] }
 0xa92   :  { %v7805_v9 = vpop.f32.mrb[103].mxu1  ;;  %9754 = vmatprep.subr.bf16.mxu1 %v15714_v35  ;;  %v6971_v5 = vadd.f32 %v20817_v30, %v21991_v8 }
 0xa93   :  { %v9726_v35 = vpack.c.bf16 %v7199_v20, %v7199_v20  ;;  %v15724_v20 = vld [vmem:[%s21584_s5 + $0x4a0] ss:$8 sps:$4 sm:$0xff]  }
 0xa94   :  { %13622 = vmatmul.mubr.msk.bf16.vlgmr.msra.gmra.mrb[208].mxu1 %vm5896_vm1, %v9655_v14  ;;  %v15726_v14 = vld [vmem:[%s21584_s5 + $0x4a4] ss:$8 sps:$4 sm:$0xff]  }
 0xa95   :  { %9755 = vmatpush1.bf16.msra.mxu1 %v15712_v16  ;;  %9786 = vmatprep.mubr.bf16.mxu1 %v21974_v57  ;;  %v15723_v16 = vld [vmem:[%s21584_s5 + $0x494] ss:$8 sps:$4 sm:$0xff]  }
 0xa96   :  { %9756 = vmatprep.subr.bf16.mxu1 %v15717_v44 }
 0xa97   :  { %v7871_v10 = vpop.f32.mrb[104].mxu1 }
 0xa98   :  { %v7878_v4 = vadd.f32 %v7871_v10, %v7807_v2  ;;  %v7873_v26 = vpop.f32.mrb[105].mxu1  ;;  %v15721_v2 = vld [vmem:[%s21584_s5 + $0x490] ss:$8 sps:$4 sm:$0xff]  }
 0xa99   :  { %v7879_v13 = vadd.f32 %v7873_v26, %v7808_v34  ;;  %9757 = vmatpush1.bf16.msra.mxu1 %v15715_v33  ;;  %v7875_v22 = vpop.f32.mrb[106].mxu1  ;;  %v7200_v34 = vmax.f32 %v6971_v5, 0.0  ;;  %v21992_v10 = vld [vmem:[#allocation9_spill] sm:$0xff] }
 0xa9a   :  { %v7876_v7 = vpop.f32.mrb[107].mxu1  ;;  %9825 = vmatprep.subr.bf16.mxu1 %v15720_v24  ;;  %v6974_v26 = vadd.f32 %v20817_v30, %v21992_v10 }
 0xa9b   :  { %v9797_v24 = vpack.c.bf16 %v7200_v34, %v7200_v34  ;;  %v15730_v34 = vld [vmem:[%s21584_s5 + $0x4c0] ss:$8 sps:$4 sm:$0xff]  }
 0xa9c   :  { %13627 = vmatmul.mubr.msk.bf16.vlgmr.msra.gmra.mrb[212].mxu1 %vm5896_vm1, %v9726_v35  ;;  %v15732_v35 = vld [vmem:[%s21584_s5 + $0x4c4] ss:$8 sps:$4 sm:$0xff]  }
 0xa9d   :  { %9826 = vmatpush1.bf16.msra.mxu1 %v15718_v53  ;;  %9857 = vmatprep.mubr.bf16.mxu1 %v21974_v57  ;;  %v15729_v53 = vld [vmem:[%s21584_s5 + $0x4b4] ss:$8 sps:$4 sm:$0xff]  }
 0xa9e   :  { %9827 = vmatprep.subr.bf16.mxu1 %v15723_v16 }
 0xa9f   :  { %v7942_v29 = vpop.f32.mrb[108].mxu1 }
 0xaa0   :  { %v7949_v17 = vadd.f32 %v7942_v29, %v7878_v4  ;;  %v7944_v9 = vpop.f32.mrb[109].mxu1  ;;  %v15727_v4 = vld [vmem:[%s21584_s5 + $0x4b0] ss:$8 sps:$4 sm:$0xff]   ;;  %v21993_v29 = vld [vmem:[#allocation10_spill] sm:$0xff] }
 0xaa1   :  { %v7950_v44 = vadd.f32 %v7944_v9, %v7879_v13  ;;  %9828 = vmatpush1.bf16.msra.mxu1 %v15721_v2  ;;  %v7946_v33 = vpop.f32.mrb[110].mxu1  ;;  %v7201_v13 = vmax.f32 %v6974_v26, 0.0  ;;  %v6979_v9 = vadd.f32 %v20817_v30, %v21993_v29 }
 0xaa2   :  { %v7947_v22 = vpop.f32.mrb[111].mxu1  ;;  %9896 = vmatprep.subr.bf16.mxu1 %v15726_v14 }
 0xaa3   :  { %v9868_v14 = vpack.c.bf16 %v7201_v13, %v7201_v13  ;;  %v15736_v13 = vld [vmem:[%s21584_s5 + $0x4e0] ss:$8 sps:$4 sm:$0xff]  }
 0xaa4   :  { %13632 = vmatmul.mubr.msk.bf16.vlgmr.msra.gmra.mrb[216].mxu1 %vm5896_vm1, %v9797_v24  ;;  %v15738_v24 = vld [vmem:[%s21584_s5 + $0x4e4] ss:$8 sps:$4 sm:$0xff]  }
 0xaa5   :  { %9897 = vmatpush1.bf16.msra.mxu1 %v15724_v20  ;;  %9928 = vmatprep.mubr.bf16.mxu1 %v21974_v57  ;;  %v15735_v20 = vld [vmem:[%s21584_s5 + $0x4d4] ss:$8 sps:$4 sm:$0xff]  }
 0xaa6   :  { %9898 = vmatprep.subr.bf16.mxu1 %v15729_v53 }
 0xaa7   :  { %v8013_v8 = vpop.f32.mrb[112].mxu1 }
 0xaa8   :  { %v8020_v5 = vadd.f32 %v8013_v8, %v7949_v17  ;;  %v8015_v7 = vpop.f32.mrb[113].mxu1  ;;  %v15733_v17 = vld [vmem:[%s21584_s5 + $0x4d0] ss:$8 sps:$4 sm:$0xff]  }
 0xaa9   :  { %v8021_v16 = vadd.f32 %v8015_v7, %v7950_v44  ;;  %9899 = vmatpush1.bf16.msra.mxu1 %v15727_v4  ;;  %v8017_v2 = vpop.f32.mrb[114].mxu1  ;;  %v7202_v44 = vmax.f32 %v6979_v9, 0.0  ;;  %v21994_v8 = vld [vmem:[#allocation152_spill] sm:$0xff] }
 0xaaa   :  { %v8018_v33 = vpop.f32.mrb[115].mxu1  ;;  %9967 = vmatprep.subr.bf16.mxu1 %v15732_v35  ;;  %v6982_v7 = vadd.f32 %v20817_v30, %v21994_v8 }
 0xaab   :  { %v9939_v35 = vpack.c.bf16 %v7202_v44, %v7202_v44  ;;  %v15742_v44 = vld [vmem:[%s21584_s5 + $0x500] ss:$8 sps:$4 sm:$0xff]  }
 0xaac   :  { %13637 = vmatmul.mubr.msk.bf16.vlgmr.msra.gmra.mrb[220].mxu1 %vm5896_vm1, %v9868_v14  ;;  %v15744_v14 = vld [vmem:[%s21584_s5 + $0x504] ss:$8 sps:$4 sm:$0xff]  }
 0xaad   :  { %9968 = vmatpush1.bf16.msra.mxu1 %v15730_v34  ;;  %9999 = vmatprep.mubr.bf16.mxu1 %v21974_v57  ;;  %v15741_v34 = vld [vmem:[%s21584_s5 + $0x4f4] ss:$8 sps:$4 sm:$0xff]  }
 0xaae   :  { %9969 = vmatprep.subr.bf16.mxu1 %v15735_v20 }
 0xaaf   :  { %v8084_v10 = vpop.f32.mrb[116].mxu1 }
 0xab0   :  { %v8091_v26 = vadd.f32 %v8084_v10, %v8020_v5  ;;  %v8086_v22 = vpop.f32.mrb[117].mxu1  ;;  %v15739_v5 = vld [vmem:[%s21584_s5 + $0x4f0] ss:$8 sps:$4 sm:$0xff]   ;;  %v6987_v10 = vadd.f32 %v20817_v30, %v20089_v51  ;;  %v15750_v51 = vld [vmem:[%s21584_s5 + $0x524] ss:$8 sps:$4 sm:$0xff]  }
 0xab1   :  { %v8092_v53 = vadd.f32 %v8086_v22, %v8021_v16  ;;  %9970 = vmatpush1.bf16.msra.mxu1 %v15733_v17  ;;  %v8088_v4 = vpop.f32.mrb[118].mxu1  ;;  %v7203_v16 = vmax.f32 %v6982_v7, 0.0 }
 0xab2   :  { %v8089_v2 = vpop.f32.mrb[119].mxu1  ;;  %10038 = vmatprep.subr.bf16.mxu1 %v15738_v24  ;;  %v15747_v4 = vld [vmem:[%s21584_s5 + $0x514] ss:$8 sps:$4 sm:$0xff]  }
 0xab3   :  { %v10010_v24 = vpack.c.bf16 %v7203_v16, %v7203_v16  ;;  %v6990_v16 = vadd.f32 %v20817_v30, %v20096_v48  ;;  %v15756_v48 = vld [vmem:[%s21584_s5 + $0x544] ss:$8 sps:$4 sm:$0xff]  }
 0xab4   :  { %13642 = vmatmul.mubr.msk.bf16.vlgmr.msra.gmra.mrb[224].mxu1 %vm5896_vm1, %v9939_v35 }
 0xab5   :  { %10039 = vmatpush1.bf16.msra.mxu1 %v15736_v13  ;;  %10070 = vmatprep.mubr.bf16.mxu1 %v21974_v57 }
 0xab6   :  { %10040 = vmatprep.subr.bf16.mxu1 %v15741_v34  ;;  %v15748_v34 = vld [vmem:[%s21584_s5 + $0x520] ss:$8 sps:$4 sm:$0xff]  }
 0xab7   :  { %v8155_v29 = vpop.f32.mrb[120].mxu1 }
 0xab8   :  { %v8162_v9 = vadd.f32 %v8155_v29, %v8091_v26  ;;  %v8157_v33 = vpop.f32.mrb[121].mxu1  ;;  %v15745_v26 = vld [vmem:[%s21584_s5 + $0x510] ss:$8 sps:$4 sm:$0xff]   ;;  %v15753_v29 = vld [vmem:[%s21584_s5 + $0x534] ss:$8 sps:$4 sm:$0xff]  }
 0xab9   :  { %v8163_v20 = vadd.f32 %v8157_v33, %v8092_v53  ;;  %10041 = vmatpush1.bf16.msra.mxu1 %v15739_v5  ;;  %v8159_v17 = vpop.f32.mrb[122].mxu1  ;;  %v7204_v53 = vmax.f32 %v6987_v10, 0.0  ;;  %v7205_v33 = vmax.f32 %v6990_v16, 0.0  ;;  %v15760_v16 = vld [vmem:[%s21584_s5 + $0x560] ss:$8 sps:$4 sm:$0xff]  }
 0xaba   :  { %v8160_v22 = vpop.f32.mrb[123].mxu1  ;;  %10109 = vmatprep.subr.bf16.mxu1 %v15744_v14 }
 0xabb   :  { %v10081_v5 = vpack.c.bf16 %v7204_v53, %v7204_v53  ;;  %v15754_v22 = vld [vmem:[%s21584_s5 + $0x540] ss:$8 sps:$4 sm:$0xff]  }
 0xabc   :  { %13647 = vmatmul.mubr.msk.bf16.vlgmr.msra.gmra.mrb[228].mxu1 %vm5896_vm1, %v10010_v24 }
 0xabd   :  { %10110 = vmatpush1.bf16.msra.mxu1 %v15742_v44  ;;  %10141 = vmatprep.mubr.bf16.mxu1 %v21974_v57 }
 0xabe   :  { %10111 = vmatprep.subr.bf16.mxu1 %v15747_v4  ;;  %v10152_v4 = vpack.c.bf16 %v7205_v33, %v7205_v33  ;;  %v15765_v33 = vld [vmem:[%s21584_s5 + $0x574] ss:$8 sps:$4 sm:$0xff]  }
 0xabf   :  { %v8226_v13 = vpop.f32.mrb[124].mxu1 }
 0xac0   :  { %v8233_v35 = vadd.f32 %v8226_v13, %v8162_v9  ;;  %v8228_v8 = vpop.f32.mrb[125].mxu1  ;;  %v15751_v9 = vld [vmem:[%s21584_s5 + $0x530] ss:$8 sps:$4 sm:$0xff]  }
 0xac1   :  { %v8234_v7 = vadd.f32 %v8228_v8, %v8163_v20  ;;  %10112 = vmatpush1.bf16.msra.mxu1 %v15745_v26  ;;  %v8230_v2 = vpop.f32.mrb[126].mxu1  ;;  %v6995_v26 = vadd.f32 %v20817_v30, %v20113_v15  ;;  %v15757_v13 = vld [vmem:[%s21584_s5 + $0x550] ss:$8 sps:$4 sm:$0xff]   ;;  %v15762_v15 = vld [vmem:[%s21584_s5 + $0x564] ss:$8 sps:$4 sm:$0xff]  }
 0xac2   :  { %v8231_v14 = vpop.f32.mrb[127].mxu1  ;;  %10180 = vmatprep.subr.bf16.mxu1 %v15750_v51  ;;  %v15759_v51 = vld [vmem:[%s21584_s5 + $0x554] ss:$8 sps:$4 sm:$0xff]  }
 0xac4   :  { %13652 = vmatmul.mubr.msk.bf16.vlgmr.msra.gmra.mrb[232].mxu1 %vm5896_vm1, %v10081_v5 }
 0xac5   :  { %10181 = vmatpush1.bf16.msra.mxu1 %v15748_v34  ;;  %10212 = vmatprep.mubr.bf16.mxu1 %v21974_v57 }
 0xac6   :  { %10182 = vmatprep.subr.bf16.mxu1 %v15753_v29  ;;  %v6998_v29 = vadd.f32 %v20817_v30, %v20123_v63  ;;  %v15768_v63 = vld [vmem:[%s21584_s5 + $0x584] ss:$8 sps:$4 sm:$0xff]  }
 0xac7   :  { %v8297_v20 = vpop.f32.mrb[128].mxu1 }
 0xac8   :  { %v8304_v17 = vadd.f32 %v8297_v20, %v8233_v35  ;;  %v8299_v44 = vpop.f32.mrb[129].mxu1  ;;  %v7206_v35 = vmax.f32 %v6995_v26, 0.0  ;;  %v7207_v20 = vmax.f32 %v6998_v29, 0.0  ;;  %v7010_v29 = vadd.f32 %v20817_v30, %v20184_v52  ;;  %v15780_v52 = vld [vmem:[%s21584_s5 + $0x5c4] ss:$8 sps:$4 sm:$0xff]  }
 0xac9   :  { %v8305_v24 = vadd.f32 %v8299_v44, %v8234_v7  ;;  %10183 = vmatpush1.bf16.msra.mxu1 %v15751_v9  ;;  %v8301_v10 = vpop.f32.mrb[130].mxu1 }
 0xaca   :  { %v8302_v53 = vpop.f32.mrb[131].mxu1  ;;  %10251 = vmatprep.subr.bf16.mxu1 %v15756_v48  ;;  %v10223_v14 = vpack.c.bf16 %v7206_v35, %v7206_v35  ;;  %v15763_v48 = vld [vmem:[%s21584_s5 + $0x570] ss:$8 sps:$4 sm:$0xff]   ;;  %v10294_v26 = vpack.c.bf16 %v7207_v20, %v7207_v20  ;;  %v7209_v20 = vmax.f32 %v7010_v29, 0.0  ;;  %v15789_v29 = vld [vmem:[%s21584_s5 + $0x5f4] ss:$8 sps:$4 sm:$0xff]  }
 0xacb   :  { %v7003_v53 = vadd.f32 %v20817_v30, %v20138_v28  ;;  %v15769_v35 = vld [vmem:[%s21584_s5 + $0x590] ss:$8 sps:$4 sm:$0xff]   ;;  %v15774_v28 = vld [vmem:[%s21584_s5 + $0x5a4] ss:$8 sps:$4 sm:$0xff]  }
 0xacc   :  { %13657 = vmatmul.mubr.msk.bf16.vlgmr.msra.gmra.mrb[236].mxu1 %vm5896_vm1, %v10152_v4  ;;  %v15766_v4 = vld [vmem:[%s21584_s5 + $0x580] ss:$8 sps:$4 sm:$0xff]  }
 0xacd   :  { %10252 = vmatpush1.bf16.msra.mxu1 %v15754_v22  ;;  %10283 = vmatprep.mubr.bf16.mxu1 %v21974_v57 }
 0xace   :  { %10253 = vmatprep.subr.bf16.mxu1 %v15759_v51 }
 0xacf   :  { %v8368_v8 = vpop.f32.mrb[132].mxu1 }
 0xad0   :  { %v8375_v7 = vadd.f32 %v8368_v8, %v8304_v17  ;;  %v8370_v2 = vpop.f32.mrb[133].mxu1 }
 0xad1   :  { %v8376_v34 = vadd.f32 %v8370_v2, %v8305_v24  ;;  %10254 = vmatpush1.bf16.msra.mxu1 %v15757_v13  ;;  %v8372_v5 = vpop.f32.mrb[134].mxu1  ;;  %v15771_v13 = vld [vmem:[%s21584_s5 + $0x594] ss:$8 sps:$4 sm:$0xff]  }
 0xad2   :  { %v8373_v9 = vpop.f32.mrb[135].mxu1  ;;  %10322 = vmatprep.subr.bf16.mxu1 %v15762_v15  ;;  %v7208_v15 = vmax.f32 %v7003_v53, 0.0 }
 0xad4   :  { %13662 = vmatmul.mubr.msk.bf16.vlgmr.msra.gmra.mrb[240].mxu1 %vm5896_vm1, %v10223_v14  ;;  %v10365_v14 = vpack.c.bf16 %v7208_v15, %v7208_v15 }
 0xad5   :  { %10323 = vmatpush1.bf16.msra.mxu1 %v15760_v16  ;;  %10354 = vmatprep.mubr.bf16.mxu1 %v21974_v57  ;;  %v15772_v16 = vld [vmem:[%s21584_s5 + $0x5a0] ss:$8 sps:$4 sm:$0xff]  }
 0xad6   :  { %10324 = vmatprep.subr.bf16.mxu1 %v15765_v33  ;;  %v15777_v33 = vld [vmem:[%s21584_s5 + $0x5b4] ss:$8 sps:$4 sm:$0xff]  }
 0xad7   :  { %v8439_v17 = vpop.f32.mrb[136].mxu1 }
 0xad8   :  { %v8446_v44 = vadd.f32 %v8439_v17, %v8375_v7  ;;  %v8441_v24 = vpop.f32.mrb[137].mxu1 }
 0xad9   :  { %v8447_v10 = vadd.f32 %v8441_v24, %v8376_v34  ;;  %10325 = vmatpush1.bf16.msra.mxu1 %v15763_v48  ;;  %v8443_v22 = vpop.f32.mrb[138].mxu1  ;;  %v15775_v48 = vld [vmem:[%s21584_s5 + $0x5b0] ss:$8 sps:$4 sm:$0xff]  }
 0xada   :  { %v8444_v51 = vpop.f32.mrb[139].mxu1  ;;  %10393 = vmatprep.subr.bf16.mxu1 %v15768_v63  ;;  %v15778_v22 = vld [vmem:[%s21584_s5 + $0x5c0] ss:$8 sps:$4 sm:$0xff]  }
 0xadb   :  { %v15783_v51 = vld [vmem:[%s21584_s5 + $0x5d4] ss:$8 sps:$4 sm:$0xff]  }
 0xadc   :  { %13667 = vmatmul.mubr.msk.bf16.vlgmr.msra.gmra.mrb[244].mxu1 %vm5896_vm1, %v10294_v26  ;;  %v7013_v26 = vadd.f32 %v20817_v30, %v20186_v23  ;;  %v15786_v23 = vld [vmem:[%s21584_s5 + $0x5e4] ss:$8 sps:$4 sm:$0xff]  }
 0xadd   :  { %10394 = vmatpush1.bf16.msra.mxu1 %v15766_v4  ;;  %10425 = vmatprep.mubr.bf16.mxu1 %v21974_v57  ;;  %v10436_v4 = vpack.c.bf16 %v7209_v20, %v7209_v20 }
 0xade   :  { %10395 = vmatprep.subr.bf16.mxu1 %v15771_v13  ;;  %v15781_v13 = vld [vmem:[%s21584_s5 + $0x5d0] ss:$8 sps:$4 sm:$0xff]  }
 0xadf   :  { %v8510_v8 = vpop.f32.mrb[140].mxu1 }
 0xae0   :  { %v8517_v7 = vadd.f32 %v8510_v8, %v8446_v44  ;;  %v8512_v2 = vpop.f32.mrb[141].mxu1 }
 0xae1   :  { %v8518_v34 = vadd.f32 %v8512_v2, %v8447_v10  ;;  %10396 = vmatpush1.bf16.msra.mxu1 %v15769_v35  ;;  %v8514_v5 = vpop.f32.mrb[142].mxu1  ;;  %v7210_v35 = vmax.f32 %v7013_v26, 0.0  ;;  %v15793_v26 = vld [vmem:[%s21584_s5 + $0x610] ss:$8 sps:$4 sm:$0xff]  }
 0xae2   :  { %v8515_v9 = vpop.f32.mrb[143].mxu1  ;;  %10464 = vmatprep.subr.bf16.mxu1 %v15774_v28 }
 0xae3   :  { %v10507_v5 = vpack.c.bf16 %v7210_v35, %v7210_v35  ;;  %v15787_v9 = vld [vmem:[%s21584_s5 + $0x5f0] ss:$8 sps:$4 sm:$0xff]  }
 0xae4   :  { %13672 = vmatmul.mubr.msk.bf16.vlgmr.msra.gmra.mrb[248].mxu1 %vm5896_vm1, %v10365_v14 }
 0xae5   :  { %10465 = vmatpush1.bf16.msra.mxu1 %v15772_v16  ;;  %10496 = vmatprep.mubr.bf16.mxu1 %v21974_v57  ;;  %v7018_v16 = vadd.f32 %v20817_v30, %v20188_v0  ;;  %v15792_v0 = vld [vmem:[%s21584_s5 + $0x604] ss:$8 sps:$4 sm:$0xff]  }
 0xae6   :  { %10466 = vmatprep.subr.bf16.mxu1 %v15777_v33 }
 0xae7   :  { %v8581_v63 = vpop.f32.mrb[144].mxu1  ;;  %v7211_v33 = vmax.f32 %v7018_v16, 0.0 }
 0xae8   :  { %v8588_v17 = vadd.f32 %v8581_v63, %v8517_v7  ;;  %v8583_v44 = vpop.f32.mrb[145].mxu1 }
 0xae9   :  { %v8589_v24 = vadd.f32 %v8583_v44, %v8518_v34  ;;  %10467 = vmatpush1.bf16.msra.mxu1 %v15775_v48  ;;  %v8585_v10 = vpop.f32.mrb[146].mxu1  ;;  %v15784_v34 = vld [vmem:[%s21584_s5 + $0x5e0] ss:$8 sps:$4 sm:$0xff]  }
 0xaea   :  { %v8586_v53 = vpop.f32.mrb[147].mxu1  ;;  %10535 = vmatprep.subr.bf16.mxu1 %v15780_v52  ;;  %v15790_v44 = vld [vmem:[%s21584_s5 + $0x600] ss:$8 sps:$4 sm:$0xff]   ;;  %v7021_v10 = vadd.f32 %v20817_v30, %v20190_v40  ;;  %v15798_v40 = vld [vmem:[%s21584_s5 + $0x624] ss:$8 sps:$4 sm:$0xff]  }
 0xaec   :  { %13677 = vmatmul.mubr.msk.bf16.vlgmr.msra.gmra.mrb[252].mxu1 %vm5896_vm1, %v10436_v4  ;;  %v15795_v4 = vld [vmem:[%s21584_s5 + $0x614] ss:$8 sps:$4 sm:$0xff]   ;;  %v7212_v53 = vmax.f32 %v7021_v10, 0.0 }
 0xaed   :  { %10536 = vmatpush1.bf16.msra.mxu1 %v15778_v22  ;;  %10567 = vmatprep.mubr.bf16.mxu1 %v21974_v57 }
 0xaee   :  { %10537 = vmatprep.subr.bf16.mxu1 %v15783_v51 }
 0xaef   :  { %v8652_v15 = vpop.f32.mrb[148].mxu1 }
 0xaf0   :  { %v8659_v28 = vadd.f32 %v8652_v15, %v8588_v17  ;;  %v8654_v8 = vpop.f32.mrb[149].mxu1 }
 0xaf1   :  { %v8660_v7 = vadd.f32 %v8654_v8, %v8589_v24  ;;  %10538 = vmatpush1.bf16.msra.mxu1 %v15781_v13  ;;  %v8656_v2 = vpop.f32.mrb[150].mxu1  ;;  %v10578_v24 = vpack.c.bf16 %v7211_v33, %v7211_v33  ;;  %v10649_v8 = vpack.c.bf16 %v7212_v53, %v7212_v53 }
 0xaf2   :  { %v8657_v14 = vpop.f32.mrb[151].mxu1  ;;  %10606 = vmatprep.subr.bf16.mxu1 %v15786_v23 }
 0xaf4   :  { %13682 = vmatmul.mubr.msk.bf16.vlgmr.msra.gmra.mrb[0].mxu1 %vm5896_vm1, %v10507_v5  ;;  %v15799_v5 = vld [vmem:[%s21584_s5 + $0x630] ss:$8 sps:$4 sm:$0xff]  }
 0xaf5   :  { %10607 = vmatpush1.bf16.msra.mxu1 %v15784_v34  ;;  %10638 = vmatprep.mubr.bf16.mxu1 %v21974_v57  ;;  %v15801_v34 = vld [vmem:[%s21584_s5 + $0x634] ss:$8 sps:$4 sm:$0xff]  }
 0xaf6   :  { %10608 = vmatprep.subr.bf16.mxu1 %v15789_v29 }
 0xaf7   :  { %v8723_v48 = vpop.f32.mrb[152].mxu1 }
 0xaf8   :  { %v8730_v20 = vadd.f32 %v8723_v48, %v8659_v28  ;;  %v8725_v52 = vpop.f32.mrb[153].mxu1  ;;  %v15796_v28 = vld [vmem:[%s21584_s5 + $0x620] ss:$8 sps:$4 sm:$0xff]  }
 0xaf9   :  { %v8731_v63 = vadd.f32 %v8725_v52, %v8660_v7  ;;  %10609 = vmatpush1.bf16.msra.mxu1 %v15787_v9  ;;  %v8727_v17 = vpop.f32.mrb[154].mxu1  ;;  %v7026_v7 = vadd.f32 %v20817_v30, %v20192_v25  ;;  %v15804_v25 = vld [vmem:[%s21584_s5 + $0x644] ss:$8 sps:$4 sm:$0xff]   ;;  %v15802_v48 = vld [vmem:[%s21584_s5 + $0x640] ss:$8 sps:$4 sm:$0xff]   ;;  %v7029_v52 = vadd.f32 %v20817_v30, %v20194_v58 }
 0xafa   :  { %v8728_v22 = vpop.f32.mrb[155].mxu1  ;;  %10677 = vmatprep.subr.bf16.mxu1 %v15792_v0  ;;  %v15807_v17 = vld [vmem:[%s21584_s5 + $0x654] ss:$8 sps:$4 sm:$0xff]   ;;  %v15810_v58 = vld [vmem:[%s21584_s5 + $0x664] ss:$8 sps:$4 sm:$0xff]  }
 0xafb   :  { %v7213_v16 = vmax.f32 %v7026_v7, 0.0 }
 0xafc   :  { %13687 = vmatmul.mubr.msk.bf16.vlgmr.msra.gmra.mrb[4].mxu1 %vm5896_vm1, %v10578_v24  ;;  %v7214_v24 = vmax.f32 %v7029_v52, 0.0 }
 0xafd   :  { %10678 = vmatpush1.bf16.msra.mxu1 %v15790_v44  ;;  %10709 = vmatprep.mubr.bf16.mxu1 %v21974_v57  ;;  %v15805_v44 = vld [vmem:[%s21584_s5 + $0x650] ss:$8 sps:$4 sm:$0xff]  }
 0xafe   :  { %10679 = vmatprep.subr.bf16.mxu1 %v15795_v4 }
 0xaff   :  { %v8794_v51 = vpop.f32.mrb[156].mxu1 }
 0xb00   :  { %v8801_v13 = vadd.f32 %v8794_v51, %v8730_v20  ;;  %v8796_v35 = vpop.f32.mrb[157].mxu1  ;;  %v10720_v20 = vpack.c.bf16 %v7213_v16, %v7213_v16  ;;  %v10791_v51 = vpack.c.bf16 %v7214_v24, %v7214_v24  ;;  %v15814_v16 = vld [vmem:[%s21584_s5 + $0x680] ss:$8 sps:$4 sm:$0xff]  }
 0xb01   :  { %v8802_v23 = vadd.f32 %v8796_v35, %v8731_v63  ;;  %10680 = vmatpush1.bf16.msra.mxu1 %v15793_v26  ;;  %v8798_v15 = vpop.f32.mrb[158].mxu1 }
 0xb02   :  { %v8799_v2 = vpop.f32.mrb[159].mxu1  ;;  %10748 = vmatprep.subr.bf16.mxu1 %v15798_v40  ;;  %v15808_v40 = vld [vmem:[%s21584_s5 + $0x660] ss:$8 sps:$4 sm:$0xff]   ;;  %v15811_v15 = vld [vmem:[%s21584_s5 + $0x670] ss:$8 sps:$4 sm:$0xff]  }
 0xb04   :  { %13692 = vmatmul.mubr.msk.bf16.vlgmr.msra.gmra.mrb[8].mxu1 %vm5896_vm1, %v10649_v8 }
 0xb05   :  { %10749 = vmatpush1.bf16.msra.mxu1 %v15796_v28  ;;  %10780 = vmatprep.mubr.bf16.mxu1 %v21974_v57 }
 0xb06   :  { %10750 = vmatprep.subr.bf16.mxu1 %v15801_v34 }
 0xb07   :  { %v8865_v14 = vpop.f32.mrb[160].mxu1 }
 0xb08   :  { %v8872_v29 = vadd.f32 %v8865_v14, %v8801_v13  ;;  %v8867_v9 = vpop.f32.mrb[161].mxu1  ;;  %v7034_v13 = vadd.f32 %v20817_v30, %v20196_v32  ;;  %v15816_v32 = vld [vmem:[%s21584_s5 + $0x684] ss:$8 sps:$4 sm:$0xff]   ;;  %v7037_v14 = vadd.f32 %v20817_v30, %v20198_v61 }
 0xb09   :  { %v8873_v33 = vadd.f32 %v8867_v9, %v8802_v23  ;;  %10751 = vmatpush1.bf16.msra.mxu1 %v15799_v5  ;;  %v8869_v0 = vpop.f32.mrb[162].mxu1  ;;  %v15813_v23 = vld [vmem:[%s21584_s5 + $0x674] ss:$8 sps:$4 sm:$0xff]   ;;  %v15822_v61 = vld [vmem:[%s21584_s5 + $0x6a4] ss:$8 sps:$4 sm:$0xff]  }
 0xb0a   :  { %v8870_v63 = vpop.f32.mrb[163].mxu1  ;;  %10819 = vmatprep.subr.bf16.mxu1 %v15804_v25  ;;  %v7215_v28 = vmax.f32 %v7034_v13, 0.0  ;;  %v15819_v9 = vld [vmem:[%s21584_s5 + $0x694] ss:$8 sps:$4 sm:$0xff]   ;;  %v7216_v0 = vmax.f32 %v7037_v14, 0.0 }
 0xb0c   :  { %13697 = vmatmul.mubr.msk.bf16.vlgmr.msra.gmra.mrb[12].mxu1 %vm5896_vm1, %v10720_v20  ;;  %v10862_v25 = vpack.c.bf16 %v7215_v28, %v7215_v28  ;;  %v10933_v24 = vpack.c.bf16 %v7216_v0, %v7216_v0  ;;  %v7049_v28 = vadd.f32 %v20817_v30, %v20211_v47  ;;  %v15834_v47 = vld [vmem:[%s21584_s5 + $0x6e4] ss:$8 sps:$4 sm:$0xff]  }
 0xb0d   :  { %10820 = vmatpush1.bf16.msra.mxu1 %v15802_v48  ;;  %10851 = vmatprep.mubr.bf16.mxu1 %v21974_v57 }
 0xb0e   :  { %10821 = vmatprep.subr.bf16.mxu1 %v15807_v17 }
 0xb0f   :  { %v8936_v10 = vpop.f32.mrb[164].mxu1 }
 0xb10   :  { %v8943_v22 = vadd.f32 %v8936_v10, %v8872_v29  ;;  %v8938_v4 = vpop.f32.mrb[165].mxu1 }
 0xb11   :  { %v8944_v26 = vadd.f32 %v8938_v4, %v8873_v33  ;;  %10822 = vmatpush1.bf16.msra.mxu1 %v15805_v44  ;;  %v8940_v53 = vpop.f32.mrb[166].mxu1  ;;  %v15817_v33 = vld [vmem:[%s21584_s5 + $0x690] ss:$8 sps:$4 sm:$0xff]   ;;  %v15820_v44 = vld [vmem:[%s21584_s5 + $0x6a0] ss:$8 sps:$4 sm:$0xff]  }
 0xb12   :  { %v8941_v35 = vpop.f32.mrb[167].mxu1  ;;  %10890 = vmatprep.subr.bf16.mxu1 %v15810_v58  ;;  %v7042_v58 = vadd.f32 %v20817_v30, %v20204_v38  ;;  %v15823_v4 = vld [vmem:[%s21584_s5 + $0x6b0] ss:$8 sps:$4 sm:$0xff]   ;;  %v15828_v38 = vld [vmem:[%s21584_s5 + $0x6c4] ss:$8 sps:$4 sm:$0xff]  }
 0xb14   :  { %13702 = vmatmul.mubr.msk.bf16.vlgmr.msra.gmra.mrb[16].mxu1 %vm5896_vm1, %v10791_v51 }
 0xb15   :  { %10891 = vmatpush1.bf16.msra.mxu1 %v15808_v40  ;;  %10922 = vmatprep.mubr.bf16.mxu1 %v21974_v57 }
 0xb16   :  { %10892 = vmatprep.subr.bf16.mxu1 %v15813_v23  ;;  %v15826_v23 = vld [vmem:[%s21584_s5 + $0x6c0] ss:$8 sps:$4 sm:$0xff]  }
 0xb17   :  { %v9007_v8 = vpop.f32.mrb[168].mxu1 }
 0xb18   :  { %v9014_v7 = vadd.f32 %v9007_v8, %v8943_v22  ;;  %v9009_v2 = vpop.f32.mrb[169].mxu1  ;;  %v15825_v22 = vld [vmem:[%s21584_s5 + $0x6b4] ss:$8 sps:$4 sm:$0xff]  }
 0xb19   :  { %v9015_v34 = vadd.f32 %v9009_v2, %v8944_v26  ;;  %10893 = vmatpush1.bf16.msra.mxu1 %v15811_v15  ;;  %v9011_v5 = vpop.f32.mrb[170].mxu1  ;;  %v7217_v26 = vmax.f32 %v7042_v58, 0.0  ;;  %v15831_v8 = vld [vmem:[%s21584_s5 + $0x6d4] ss:$8 sps:$4 sm:$0xff]   ;;  %v7218_v2 = vmax.f32 %v7049_v28, 0.0 }
 0xb1a   :  { %v9012_v29 = vpop.f32.mrb[171].mxu1  ;;  %10961 = vmatprep.subr.bf16.mxu1 %v15816_v32  ;;  %v15838_v58 = vld [vmem:[%s21584_s5 + $0x700] ss:$8 sps:$4 sm:$0xff]  }
 0xb1b   :  { %v11004_v15 = vpack.c.bf16 %v7217_v26, %v7217_v26  ;;  %v15832_v29 = vld [vmem:[%s21584_s5 + $0x6e0] ss:$8 sps:$4 sm:$0xff]   ;;  %v15843_v26 = vld [vmem:[%s21584_s5 + $0x714] ss:$8 sps:$4 sm:$0xff]  }
 0xb1c   :  { %13707 = vmatmul.mubr.msk.bf16.vlgmr.msra.gmra.mrb[20].mxu1 %vm5896_vm1, %v10862_v25 }
 0xb1d   :  { %10962 = vmatpush1.bf16.msra.mxu1 %v15814_v16  ;;  %10993 = vmatprep.mubr.bf16.mxu1 %v21974_v57 }
 0xb1e   :  { %10963 = vmatprep.subr.bf16.mxu1 %v15819_v9  ;;  %v11075_v9 = vpack.c.bf16 %v7218_v2, %v7218_v2  ;;  %v15847_v2 = vld [vmem:[%s21584_s5 + $0x730] ss:$8 sps:$4 sm:$0xff]  }
 0xb1f   :  { %v9078_v48 = vpop.f32.mrb[172].mxu1 }
 0xb20   :  { %v9085_v20 = vadd.f32 %v9078_v48, %v9014_v7  ;;  %v9080_v52 = vpop.f32.mrb[173].mxu1  ;;  %v15829_v7 = vld [vmem:[%s21584_s5 + $0x6d0] ss:$8 sps:$4 sm:$0xff]  }
 0xb21   :  { %v9086_v63 = vadd.f32 %v9080_v52, %v9015_v34  ;;  %10964 = vmatpush1.bf16.msra.mxu1 %v15817_v33  ;;  %v9082_v17 = vpop.f32.mrb[174].mxu1  ;;  %v7052_v33 = vadd.f32 %v20817_v30, %v20213_v39  ;;  %v15835_v48 = vld [vmem:[%s21584_s5 + $0x6f0] ss:$8 sps:$4 sm:$0xff]   ;;  %v15840_v39 = vld [vmem:[%s21584_s5 + $0x704] ss:$8 sps:$4 sm:$0xff]  }
 0xb22   :  { %v9083_v10 = vpop.f32.mrb[175].mxu1  ;;  %11032 = vmatprep.subr.bf16.mxu1 %v15822_v61  ;;  %v15837_v61 = vld [vmem:[%s21584_s5 + $0x6f4] ss:$8 sps:$4 sm:$0xff]  }
 0xb24   :  { %13712 = vmatmul.mubr.msk.bf16.vlgmr.msra.gmra.mrb[24].mxu1 %vm5896_vm1, %v10933_v24 }
 0xb25   :  { %11033 = vmatpush1.bf16.msra.mxu1 %v15820_v44  ;;  %11064 = vmatprep.mubr.bf16.mxu1 %v21974_v57 }
 0xb26   :  { %11034 = vmatprep.subr.bf16.mxu1 %v15825_v22  ;;  %v7057_v22 = vadd.f32 %v20817_v30, %v20220_v21  ;;  %v15846_v21 = vld [vmem:[%s21584_s5 + $0x724] ss:$8 sps:$4 sm:$0xff]  }
 0xb27   :  { %v9149_v53 = vpop.f32.mrb[176].mxu1 }
 0xb28   :  { %v9156_v40 = vadd.f32 %v9149_v53, %v9085_v20  ;;  %v9151_v51 = vpop.f32.mrb[177].mxu1  ;;  %v7219_v20 = vmax.f32 %v7052_v33, 0.0  ;;  %v7220_v53 = vmax.f32 %v7057_v22, 0.0  ;;  %v7065_v33 = vadd.f32 %v20817_v30, %v20236_v11  ;;  %v15858_v11 = vld [vmem:[%s21584_s5 + $0x764] ss:$8 sps:$4 sm:$0xff]  }
 0xb29   :  { %v9157_v13 = vadd.f32 %v9151_v51, %v9086_v63  ;;  %11035 = vmatpush1.bf16.msra.mxu1 %v15823_v4  ;;  %v9153_v35 = vpop.f32.mrb[178].mxu1 }
 0xb2a   :  { %v9154_v32 = vpop.f32.mrb[179].mxu1  ;;  %11103 = vmatprep.subr.bf16.mxu1 %v15828_v38  ;;  %v11146_v10 = vpack.c.bf16 %v7219_v20, %v7219_v20  ;;  %v15841_v38 = vld [vmem:[%s21584_s5 + $0x710] ss:$8 sps:$4 sm:$0xff]   ;;  %v11217_v28 = vpack.c.bf16 %v7220_v53, %v7220_v53  ;;  %v7222_v20 = vmax.f32 %v7065_v33, 0.0 }
 0xb2b   :  { %v7060_v32 = vadd.f32 %v20817_v30, %v20222_v1  ;;  %v15852_v1 = vld [vmem:[%s21584_s5 + $0x744] ss:$8 sps:$4 sm:$0xff]   ;;  %v15871_v33 = vld [vmem:[%s21584_s5 + $0x7b0] ss:$8 sps:$4 sm:$0xff]  }
 0xb2c   :  { %13717 = vmatmul.mubr.msk.bf16.vlgmr.msra.gmra.mrb[28].mxu1 %vm5896_vm1, %v11004_v15  ;;  %v15844_v15 = vld [vmem:[%s21584_s5 + $0x720] ss:$8 sps:$4 sm:$0xff]  }
 0xb2d   :  { %11104 = vmatpush1.bf16.msra.mxu1 %v15826_v23  ;;  %11135 = vmatprep.mubr.bf16.mxu1 %v21974_v57 }
 0xb2e   :  { %11105 = vmatprep.subr.bf16.mxu1 %v15831_v8 }
 0xb2f   :  { %v9220_v34 = vpop.f32.mrb[180].mxu1 }
 0xb30   :  { %v9227_v5 = vadd.f32 %v9220_v34, %v9156_v40  ;;  %v9222_v16 = vpop.f32.mrb[181].mxu1 }
 0xb31   :  { %v9228_v25 = vadd.f32 %v9222_v16, %v9157_v13  ;;  %11106 = vmatpush1.bf16.msra.mxu1 %v15829_v7  ;;  %v9224_v14 = vpop.f32.mrb[182].mxu1  ;;  %v15849_v7 = vld [vmem:[%s21584_s5 + $0x734] ss:$8 sps:$4 sm:$0xff]  }
 0xb32   :  { %v9225_v0 = vpop.f32.mrb[183].mxu1  ;;  %11174 = vmatprep.subr.bf16.mxu1 %v15834_v47  ;;  %v7221_v47 = vmax.f32 %v7060_v32, 0.0  ;;  %v15867_v32 = vld [vmem:[%s21584_s5 + $0x794] ss:$8 sps:$4 sm:$0xff]  }
 0xb34   :  { %13722 = vmatmul.mubr.msk.bf16.vlgmr.msra.gmra.mrb[32].mxu1 %vm5896_vm1, %v11075_v9  ;;  %v11288_v9 = vpack.c.bf16 %v7221_v47, %v7221_v47 }
 0xb35   :  { %11175 = vmatpush1.bf16.msra.mxu1 %v15832_v29  ;;  %11206 = vmatprep.mubr.bf16.mxu1 %v21974_v57  ;;  %v15850_v29 = vld [vmem:[%s21584_s5 + $0x740] ss:$8 sps:$4 sm:$0xff]  }
 0xb36   :  { %11176 = vmatprep.subr.bf16.mxu1 %v15837_v61  ;;  %v15855_v61 = vld [vmem:[%s21584_s5 + $0x754] ss:$8 sps:$4 sm:$0xff]  }
 0xb37   :  { %v9291_v52 = vpop.f32.mrb[184].mxu1 }
 0xb38   :  { %v9298_v63 = vadd.f32 %v9291_v52, %v9227_v5  ;;  %v9293_v17 = vpop.f32.mrb[185].mxu1 }
 0xb39   :  { %v9299_v44 = vadd.f32 %v9293_v17, %v9228_v25  ;;  %11177 = vmatpush1.bf16.msra.mxu1 %v15835_v48  ;;  %v9295_v24 = vpop.f32.mrb[186].mxu1  ;;  %v15853_v48 = vld [vmem:[%s21584_s5 + $0x750] ss:$8 sps:$4 sm:$0xff]  }
 0xb3a   :  { %v9296_v4 = vpop.f32.mrb[187].mxu1  ;;  %11245 = vmatprep.subr.bf16.mxu1 %v15840_v39  ;;  %v15856_v24 = vld [vmem:[%s21584_s5 + $0x760] ss:$8 sps:$4 sm:$0xff]  }
 0xb3b   :  { %v15861_v4 = vld [vmem:[%s21584_s5 + $0x774] ss:$8 sps:$4 sm:$0xff]  }
 0xb3c   :  { %13727 = vmatmul.mubr.msk.bf16.vlgmr.msra.gmra.mrb[36].mxu1 %vm5896_vm1, %v11146_v10  ;;  %v7068_v10 = vadd.f32 %v20817_v30, %v20238_v54  ;;  %v15864_v54 = vld [vmem:[%s21584_s5 + $0x784] ss:$8 sps:$4 sm:$0xff]  }
 0xb3d   :  { %11246 = vmatpush1.bf16.msra.mxu1 %v15838_v58  ;;  %11277 = vmatprep.mubr.bf16.mxu1 %v21974_v57  ;;  %v11359_v58 = vpack.c.bf16 %v7222_v20, %v7222_v20 }
 0xb3e   :  { %11247 = vmatprep.subr.bf16.mxu1 %v15843_v26  ;;  %v15859_v26 = vld [vmem:[%s21584_s5 + $0x770] ss:$8 sps:$4 sm:$0xff]  }
 0xb3f   :  { %v9362_v40 = vpop.f32.mrb[188].mxu1 }
 0xb40   :  { %v9369_v51 = vadd.f32 %v9362_v40, %v9298_v63  ;;  %v9364_v13 = vpop.f32.mrb[189].mxu1 }
 0xb41   :  { %v9370_v35 = vadd.f32 %v9364_v13, %v9299_v44  ;;  %11248 = vmatpush1.bf16.msra.mxu1 %v15841_v38  ;;  %v9366_v23 = vpop.f32.mrb[190].mxu1  ;;  %v7223_v38 = vmax.f32 %v7068_v10, 0.0 }
 0xb42   :  { %v9367_v8 = vpop.f32.mrb[191].mxu1  ;;  %11316 = vmatprep.subr.bf16.mxu1 %v15846_v21 }
 0xb43   :  { %v11430_v23 = vpack.c.bf16 %v7223_v38, %v7223_v38  ;;  %v15865_v8 = vld [vmem:[%s21584_s5 + $0x790] ss:$8 sps:$4 sm:$0xff]  }
 0xb44   :  { %13732 = vmatmul.mubr.msk.bf16.vlgmr.msra.gmra.mrb[40].mxu1 %vm5896_vm1, %v11217_v28 }
 0xb45   :  { %11317 = vmatpush1.bf16.msra.mxu1 %v15844_v15  ;;  %11348 = vmatprep.mubr.bf16.mxu1 %v21974_v57  ;;  %v7073_v15 = vadd.f32 %v20817_v30, %v20353_v49  ;;  %v15870_v49 = vld [vmem:[%s21584_s5 + $0x7a4] ss:$8 sps:$4 sm:$0xff]  }
 0xb46   :  { %11318 = vmatprep.subr.bf16.mxu1 %v15849_v7 }
 0xb47   :  { %v9433_v34 = vpop.f32.mrb[192].mxu1  ;;  %v7224_v7 = vmax.f32 %v7073_v15, 0.0 }
 0xb48   :  { %v9440_v5 = vadd.f32 %v9433_v34, %v9369_v51  ;;  %v9435_v16 = vpop.f32.mrb[193].mxu1 }
 0xb49   :  { %v9441_v25 = vadd.f32 %v9435_v16, %v9370_v35  ;;  %11319 = vmatpush1.bf16.msra.mxu1 %v15847_v2  ;;  %v9437_v14 = vpop.f32.mrb[194].mxu1  ;;  %v15862_v35 = vld [vmem:[%s21584_s5 + $0x780] ss:$8 sps:$4 sm:$0xff]   ;;  %v11501_v16 = vpack.c.bf16 %v7224_v7, %v7224_v7 }
 0xb4a   :  { %v9438_v0 = vpop.f32.mrb[195].mxu1  ;;  %11387 = vmatprep.subr.bf16.mxu1 %v15852_v1 }
 0xb4c   :  { %13737 = vmatmul.mubr.msk.bf16.vlgmr.msra.gmra.mrb[44].mxu1 %vm5896_vm1, %v11288_v9  ;;  %v15873_v9 = vld [vmem:[%s21584_s5 + $0x7b4] ss:$8 sps:$4 sm:$0xff]  }
 0xb4d   :  { %11388 = vmatpush1.bf16.msra.mxu1 %v15850_v29  ;;  %11419 = vmatprep.mubr.bf16.mxu1 %v21974_v57 }
 0xb4e   :  { %11389 = vmatprep.subr.bf16.mxu1 %v15855_v61 }
 0xb4f   :  { %v9504_v39 = vpop.f32.mrb[196].mxu1 }
 0xb50   :  { %v9511_v52 = vadd.f32 %v9504_v39, %v9440_v5  ;;  %v9506_v63 = vpop.f32.mrb[197].mxu1  ;;  %v15868_v5 = vld [vmem:[%s21584_s5 + $0x7a0] ss:$8 sps:$4 sm:$0xff]  }
 0xb51   :  { %v9512_v17 = vadd.f32 %v9506_v63, %v9441_v25  ;;  %11390 = vmatpush1.bf16.msra.mxu1 %v15853_v48  ;;  %v9508_v44 = vpop.f32.mrb[198].mxu1  ;;  %v21254_v25 = vld [vmem:[%s21585_s4] ss:$0 sm:$0xff] }
 0xb52   :  { %v9509_v22 = vpop.f32.mrb[199].mxu1  ;;  %11458 = vmatprep.subr.bf16.mxu1 %v15858_v11  ;;  %v7076_v14 = vadd.f32 %v21254_v25, %v20360_v41  ;;  %v15876_v41 = vld [vmem:[%s21584_s5 + $0x7c4] ss:$8 sps:$4 sm:$0xff]  }
 0xb54   :  { %13742 = vmatmul.mubr.msk.bf16.vlgmr.msra.gmra.mrb[48].mxu1 %vm5896_vm1, %v11359_v58  ;;  %v7225_v0 = vmax.f32 %v7076_v14, 0.0  ;;  %v15877_v58 = vld [vmem:[%s21584_s5 + $0x7d0] ss:$8 sps:$4 sm:$0xff]  }
 0xb55   :  { %11459 = vmatpush1.bf16.msra.mxu1 %v15856_v24  ;;  %11490 = vmatprep.mubr.bf16.mxu1 %v21974_v57  ;;  %v15879_v24 = vld [vmem:[%s21584_s5 + $0x7d4] ss:$8 sps:$4 sm:$0xff]  }
 0xb56   :  { %11460 = vmatprep.subr.bf16.mxu1 %v15861_v4  ;;  %v11572_v63 = vpack.c.bf16 %v7225_v0, %v7225_v0  ;;  %v15892_v0 = vld [vmem:[%s21584_s5 + $0x820] ss:$8 sps:$4 sm:$0xff]  }
 0xb57   :  { %v9575_v53 = vpop.f32.mrb[200].mxu1 }
 0xb58   :  { %v9582_v21 = vadd.f32 %v9575_v53, %v9511_v52  ;;  %v9577_v40 = vpop.f32.mrb[201].mxu1  ;;  %v15874_v52 = vld [vmem:[%s21584_s5 + $0x7c0] ss:$8 sps:$4 sm:$0xff]  }
 0xb59   :  { %v9583_v51 = vadd.f32 %v9577_v40, %v9512_v17  ;;  %11461 = vmatpush1.bf16.msra.mxu1 %v15859_v26  ;;  %v9579_v13 = vpop.f32.mrb[202].mxu1  ;;  %v7081_v17 = vadd.f32 %v21254_v25, %v20378_v18  ;;  %v15882_v18 = vld [vmem:[%s21584_s5 + $0x7e4] ss:$8 sps:$4 sm:$0xff]   ;;  %v15880_v53 = vld [vmem:[%s21584_s5 + $0x7e0] ss:$8 sps:$4 sm:$0xff]   ;;  %v7088_v40 = vadd.f32 %v21254_v25, %v20399_v36 }
 0xb5a   :  { %v9580_v28 = vpop.f32.mrb[203].mxu1  ;;  %11529 = vmatprep.subr.bf16.mxu1 %v15864_v54  ;;  %v15885_v13 = vld [vmem:[%s21584_s5 + $0x7f4] ss:$8 sps:$4 sm:$0xff]   ;;  %v15888_v36 = vld [vmem:[%s21584_s5 + $0x804] ss:$8 sps:$4 sm:$0xff]  }
 0xb5b   :  { %v7226_v10 = vmax.f32 %v7081_v17, 0.0 }
 0xb5c   :  { %13747 = vmatmul.mubr.msk.bf16.vlgmr.msra.gmra.mrb[52].mxu1 %vm5896_vm1, %v11430_v23  ;;  %v7227_v23 = vmax.f32 %v7088_v40, 0.0 }
 0xb5d   :  { %11530 = vmatpush1.bf16.msra.mxu1 %v15862_v35  ;;  %11561 = vmatprep.mubr.bf16.mxu1 %v21974_v57  ;;  %v15883_v35 = vld [vmem:[%s21584_s5 + $0x7f0] ss:$8 sps:$4 sm:$0xff]  }
 0xb5e   :  { %11531 = vmatprep.subr.bf16.mxu1 %v15867_v32 }
 0xb5f   :  { %v9646_v30 = vpop.f32.mrb[204].mxu1 }
 0xb60   :  { %v9653_v2 = vadd.f32 %v9646_v30, %v9582_v21  ;;  %v9648_v47 = vpop.f32.mrb[205].mxu1  ;;  %v11643_v21 = vpack.c.bf16 %v7226_v10, %v7226_v10  ;;  %v11714_v30 = vpack.c.bf16 %v7227_v23, %v7227_v23  ;;  %v7104_v23 = vadd.f32 %v21254_v25, %v20447_v3  ;;  %v15912_v3 = vld [vmem:[%s21584_s5 + $0x884] ss:$8 sps:$4 sm:$0xff]  }
 0xb61   :  { %v9654_v1 = vadd.f32 %v9648_v47, %v9583_v51  ;;  %11532 = vmatpush1.bf16.msra.mxu1 %v15865_v8  ;;  %v9650_v34 = vpop.f32.mrb[206].mxu1 }
 0xb62   :  { %v9651_v29 = vpop.f32.mrb[207].mxu1  ;;  %11600 = vmatprep.subr.bf16.mxu1 %v15870_v49  ;;  %v15886_v49 = vld [vmem:[%s21584_s5 + $0x800] ss:$8 sps:$4 sm:$0xff]   ;;  %v15889_v34 = vld [vmem:[%s21584_s5 + $0x810] ss:$8 sps:$4 sm:$0xff]  }
 0xb64   :  { %13752 = vmatmul.mubr.msk.bf16.vlgmr.msra.gmra.mrb[56].mxu1 %vm5896_vm1, %v11501_v16 }
 0xb65   :  { %11601 = vmatpush1.bf16.msra.mxu1 %v15868_v5  ;;  %11632 = vmatprep.mubr.bf16.mxu1 %v21974_v57 }
 0xb66   :  { %11602 = vmatprep.subr.bf16.mxu1 %v15873_v9 }
 0xb67   :  { %v9717_v61 = vpop.f32.mrb[208].mxu1 }
 0xb68   :  { %v9724_v48 = vadd.f32 %v9717_v61, %v9653_v2  ;;  %v9719_v20 = vpop.f32.mrb[209].mxu1  ;;  %v7091_v2 = vadd.f32 %v21254_v25, %v20406_v42  ;;  %v15894_v42 = vld [vmem:[%s21584_s5 + $0x824] ss:$8 sps:$4 sm:$0xff]   ;;  %v7096_v61 = vadd.f32 %v21254_v25, %v20427_v43 }
 0xb69   :  { %v9725_v11 = vadd.f32 %v9719_v20, %v9654_v1  ;;  %11603 = vmatpush1.bf16.msra.mxu1 %v15871_v33  ;;  %v9721_v39 = vpop.f32.mrb[210].mxu1  ;;  %v15891_v1 = vld [vmem:[%s21584_s5 + $0x814] ss:$8 sps:$4 sm:$0xff]   ;;  %v15900_v43 = vld [vmem:[%s21584_s5 + $0x844] ss:$8 sps:$4 sm:$0xff]  }
 0xb6a   :  { %v9722_v44 = vpop.f32.mrb[211].mxu1  ;;  %11671 = vmatprep.subr.bf16.mxu1 %v15876_v41  ;;  %v7228_v5 = vmax.f32 %v7091_v2, 0.0  ;;  %v15897_v20 = vld [vmem:[%s21584_s5 + $0x834] ss:$8 sps:$4 sm:$0xff]   ;;  %v7229_v39 = vmax.f32 %v7096_v61, 0.0 }
 0xb6b   :  { %v15916_v61 = vld [vmem:[%s21584_s5 + $0x8a0] ss:$8 sps:$4 sm:$0xff]  }
 0xb6c   :  { %13757 = vmatmul.mubr.msk.bf16.vlgmr.msra.gmra.mrb[60].mxu1 %vm5896_vm1, %v11572_v63  ;;  %v11785_v41 = vpack.c.bf16 %v7228_v5, %v7228_v5  ;;  %v11856_v10 = vpack.c.bf16 %v7229_v39, %v7229_v39  ;;  %v15921_v39 = vld [vmem:[%s21584_s5 + $0x8b4] ss:$8 sps:$4 sm:$0xff]  }
 0xb6d   :  { %11672 = vmatpush1.bf16.msra.mxu1 %v15874_v52  ;;  %11703 = vmatprep.mubr.bf16.mxu1 %v21974_v57 }
 0xb6e   :  { %11673 = vmatprep.subr.bf16.mxu1 %v15879_v24 }
 0xb6f   :  { %v9788_v22 = vpop.f32.mrb[212].mxu1 }
 0xb70   :  { %v9795_v4 = vadd.f32 %v9788_v22, %v9724_v48  ;;  %v9790_v26 = vpop.f32.mrb[213].mxu1 }
 0xb71   :  { %v9796_v38 = vadd.f32 %v9790_v26, %v9725_v11  ;;  %11674 = vmatpush1.bf16.msra.mxu1 %v15877_v58  ;;  %v9792_v54 = vpop.f32.mrb[214].mxu1  ;;  %v15895_v11 = vld [vmem:[%s21584_s5 + $0x830] ss:$8 sps:$4 sm:$0xff]   ;;  %v15898_v58 = vld [vmem:[%s21584_s5 + $0x840] ss:$8 sps:$4 sm:$0xff]  }
 0xb72   :  { %v9793_v51 = vpop.f32.mrb[215].mxu1  ;;  %11742 = vmatprep.subr.bf16.mxu1 %v15882_v18  ;;  %v7099_v18 = vadd.f32 %v21254_v25, %v20429_v37  ;;  %v15901_v26 = vld [vmem:[%s21584_s5 + $0x850] ss:$8 sps:$4 sm:$0xff]   ;;  %v15906_v37 = vld [vmem:[%s21584_s5 + $0x864] ss:$8 sps:$4 sm:$0xff]  }
 0xb74   :  { %13762 = vmatmul.mubr.msk.bf16.vlgmr.msra.gmra.mrb[64].mxu1 %vm5896_vm1, %v11643_v21 }
 0xb75   :  { %11743 = vmatpush1.bf16.msra.mxu1 %v15880_v53  ;;  %11774 = vmatprep.mubr.bf16.mxu1 %v21974_v57 }
 0xb76   :  { %11744 = vmatprep.subr.bf16.mxu1 %v15885_v13  ;;  %v15904_v13 = vld [vmem:[%s21584_s5 + $0x860] ss:$8 sps:$4 sm:$0xff]  }
 0xb77   :  { %v9859_v15 = vpop.f32.mrb[216].mxu1 }
 0xb78   :  { %v9866_v28 = vadd.f32 %v9859_v15, %v9795_v4  ;;  %v9861_v32 = vpop.f32.mrb[217].mxu1  ;;  %v15903_v4 = vld [vmem:[%s21584_s5 + $0x854] ss:$8 sps:$4 sm:$0xff]  }
 0xb79   :  { %v9867_v8 = vadd.f32 %v9861_v32, %v9796_v38  ;;  %11745 = vmatpush1.bf16.msra.mxu1 %v15883_v35  ;;  %v9863_v7 = vpop.f32.mrb[218].mxu1  ;;  %v7230_v38 = vmax.f32 %v7099_v18, 0.0  ;;  %v15909_v15 = vld [vmem:[%s21584_s5 + $0x874] ss:$8 sps:$4 sm:$0xff]   ;;  %v7231_v32 = vmax.f32 %v7104_v23, 0.0  ;;  %v7120_v23 = vadd.f32 %v21254_v25, %v20487_v31 }
 0xb7a   :  { %v9864_v47 = vpop.f32.mrb[219].mxu1  ;;  %11813 = vmatprep.subr.bf16.mxu1 %v15888_v36  ;;  %v15936_v31 = vld [vmem:[%s21584_s5 + $0x904] ss:$8 sps:$4 sm:$0xff]  }
 0xb7b   :  { %v11927_v35 = vpack.c.bf16 %v7230_v38, %v7230_v38  ;;  %v15910_v47 = vld [vmem:[%s21584_s5 + $0x880] ss:$8 sps:$4 sm:$0xff]   ;;  %v15925_v38 = vld [vmem:[%s21584_s5 + $0x8d0] ss:$8 sps:$4 sm:$0xff]  }
 0xb7c   :  { %13767 = vmatmul.mubr.msk.bf16.vlgmr.msra.gmra.mrb[68].mxu1 %vm5896_vm1, %v11714_v30 }
 0xb7d   :  { %11814 = vmatpush1.bf16.msra.mxu1 %v15886_v49  ;;  %11845 = vmatprep.mubr.bf16.mxu1 %v21974_v57 }
 0xb7e   :  { %11815 = vmatprep.subr.bf16.mxu1 %v15891_v1  ;;  %v11998_v1 = vpack.c.bf16 %v7231_v32, %v7231_v32  ;;  %v7235_v32 = vmax.f32 %v7120_v23, 0.0 }
 0xb7f   :  { %v9930_v16 = vpop.f32.mrb[220].mxu1 }
 0xb80   :  { %v9937_v14 = vadd.f32 %v9930_v16, %v9866_v28  ;;  %v9932_v29 = vpop.f32.mrb[221].mxu1  ;;  %v15907_v28 = vld [vmem:[%s21584_s5 + $0x870] ss:$8 sps:$4 sm:$0xff]  }
 0xb81   :  { %v9938_v9 = vadd.f32 %v9932_v29, %v9867_v8  ;;  %11816 = vmatpush1.bf16.msra.mxu1 %v15889_v34  ;;  %v9934_v33 = vpop.f32.mrb[222].mxu1  ;;  %v7107_v34 = vadd.f32 %v21254_v25, %v20449_v46  ;;  %v15913_v16 = vld [vmem:[%s21584_s5 + $0x890] ss:$8 sps:$4 sm:$0xff]   ;;  %v15918_v46 = vld [vmem:[%s21584_s5 + $0x8a4] ss:$8 sps:$4 sm:$0xff]  }
 0xb82   :  { %v9935_v48 = vpop.f32.mrb[223].mxu1  ;;  %11884 = vmatprep.subr.bf16.mxu1 %v15894_v42  ;;  %v15915_v42 = vld [vmem:[%s21584_s5 + $0x894] ss:$8 sps:$4 sm:$0xff]  }
 0xb84   :  { %13772 = vmatmul.mubr.msk.bf16.vlgmr.msra.gmra.mrb[72].mxu1 %vm5896_vm1, %v11785_v41 }
 0xb85   :  { %11885 = vmatpush1.bf16.msra.mxu1 %v15892_v0  ;;  %11916 = vmatprep.mubr.bf16.mxu1 %v21974_v57 }
 0xb86   :  { %11886 = vmatprep.subr.bf16.mxu1 %v15897_v20  ;;  %v7112_v20 = vadd.f32 %v21254_v25, %v20467_v50  ;;  %v15924_v50 = vld [vmem:[%s21584_s5 + $0x8c4] ss:$8 sps:$4 sm:$0xff]  }
 0xb87   :  { %v10001_v52 = vpop.f32.mrb[224].mxu1 }
 0xb88   :  { %v10008_v63 = vadd.f32 %v10001_v52, %v9937_v14  ;;  %v10003_v17 = vpop.f32.mrb[225].mxu1  ;;  %v7232_v14 = vmax.f32 %v7107_v34, 0.0  ;;  %v7233_v52 = vmax.f32 %v7112_v20, 0.0  ;;  %v15945_v20 = vld [vmem:[%s21584_s5 + $0x934] ss:$8 sps:$4 sm:$0xff]  }
 0xb89   :  { %v10009_v44 = vadd.f32 %v10003_v17, %v9938_v9  ;;  %11887 = vmatpush1.bf16.msra.mxu1 %v15895_v11  ;;  %v10005_v24 = vpop.f32.mrb[226].mxu1 }
 0xb8a   :  { %v10006_v22 = vpop.f32.mrb[227].mxu1  ;;  %11955 = vmatprep.subr.bf16.mxu1 %v15900_v43  ;;  %v12069_v48 = vpack.c.bf16 %v7232_v14, %v7232_v14  ;;  %v15919_v43 = vld [vmem:[%s21584_s5 + $0x8b0] ss:$8 sps:$4 sm:$0xff]   ;;  %v12140_v18 = vpack.c.bf16 %v7233_v52, %v7233_v52 }
 0xb8b   :  { %v7115_v22 = vadd.f32 %v21254_v25, %v20469_v56  ;;  %v15930_v56 = vld [vmem:[%s21584_s5 + $0x8e4] ss:$8 sps:$4 sm:$0xff]  }
 0xb8c   :  { %13777 = vmatmul.mubr.msk.bf16.vlgmr.msra.gmra.mrb[76].mxu1 %vm5896_vm1, %v11856_v10  ;;  %v15922_v10 = vld [vmem:[%s21584_s5 + $0x8c0] ss:$8 sps:$4 sm:$0xff]  }
 0xb8d   :  { %11956 = vmatpush1.bf16.msra.mxu1 %v15898_v58  ;;  %11987 = vmatprep.mubr.bf16.mxu1 %v21974_v57 }
 0xb8e   :  { %11957 = vmatprep.subr.bf16.mxu1 %v15903_v4 }
 0xb8f   :  { %v10072_v54 = vpop.f32.mrb[228].mxu1 }
 0xb90   :  { %v10079_v53 = vadd.f32 %v10072_v54, %v10008_v63  ;;  %v10074_v21 = vpop.f32.mrb[229].mxu1 }
 0xb91   :  { %v10080_v40 = vadd.f32 %v10074_v21, %v10009_v44  ;;  %11958 = vmatpush1.bf16.msra.mxu1 %v15901_v26  ;;  %v10076_v51 = vpop.f32.mrb[230].mxu1  ;;  %v15927_v26 = vld [vmem:[%s21584_s5 + $0x8d4] ss:$8 sps:$4 sm:$0xff]  }
 0xb92   :  { %v10077_v36 = vpop.f32.mrb[231].mxu1  ;;  %12026 = vmatprep.subr.bf16.mxu1 %v15906_v37  ;;  %v7234_v37 = vmax.f32 %v7115_v22, 0.0  ;;  %v15949_v22 = vld [vmem:[%s21584_s5 + $0x950] ss:$8 sps:$4 sm:$0xff]  }
 0xb94   :  { %13782 = vmatmul.mubr.msk.bf16.vlgmr.msra.gmra.mrb[80].mxu1 %vm5896_vm1, %v11927_v35  ;;  %v12211_v35 = vpack.c.bf16 %v7234_v37, %v7234_v37 }
 0xb95   :  { %12027 = vmatpush1.bf16.msra.mxu1 %v15904_v13  ;;  %12058 = vmatprep.mubr.bf16.mxu1 %v21974_v57  ;;  %v15928_v13 = vld [vmem:[%s21584_s5 + $0x8e0] ss:$8 sps:$4 sm:$0xff]  }
 0xb96   :  { %12028 = vmatprep.subr.bf16.mxu1 %v15909_v15  ;;  %v15933_v15 = vld [vmem:[%s21584_s5 + $0x8f4] ss:$8 sps:$4 sm:$0xff]  }
 0xb97   :  { %v10143_v8 = vpop.f32.mrb[232].mxu1 }
 0xb98   :  { %v10150_v7 = vadd.f32 %v10143_v8, %v10079_v53  ;;  %v10145_v49 = vpop.f32.mrb[233].mxu1 }
 0xb99   :  { %v10151_v30 = vadd.f32 %v10145_v49, %v10080_v40  ;;  %12029 = vmatpush1.bf16.msra.mxu1 %v15907_v28  ;;  %v10147_v2 = vpop.f32.mrb[234].mxu1  ;;  %v15931_v28 = vld [vmem:[%s21584_s5 + $0x8f0] ss:$8 sps:$4 sm:$0xff]  }
 0xb9a   :  { %v10148_v5 = vpop.f32.mrb[235].mxu1  ;;  %12097 = vmatprep.subr.bf16.mxu1 %v15912_v3  ;;  %v15934_v2 = vld [vmem:[%s21584_s5 + $0x900] ss:$8 sps:$4 sm:$0xff]  }
 0xb9b   :  { %v15939_v5 = vld [vmem:[%s21584_s5 + $0x914] ss:$8 sps:$4 sm:$0xff]  }
 0xb9c   :  { %13787 = vmatmul.mubr.msk.bf16.vlgmr.msra.gmra.mrb[84].mxu1 %vm5896_vm1, %v11998_v1  ;;  %v7127_v1 = vadd.f32 %v21254_v25, %v20505_v27  ;;  %v15942_v27 = vld [vmem:[%s21584_s5 + $0x924] ss:$8 sps:$4 sm:$0xff]  }
 0xb9d   :  { %12098 = vmatpush1.bf16.msra.mxu1 %v15910_v47  ;;  %12129 = vmatprep.mubr.bf16.mxu1 %v21974_v57  ;;  %v12282_v47 = vpack.c.bf16 %v7235_v32, %v7235_v32 }
 0xb9e   :  { %12099 = vmatprep.subr.bf16.mxu1 %v15915_v42  ;;  %v15937_v42 = vld [vmem:[%s21584_s5 + $0x910] ss:$8 sps:$4 sm:$0xff]  }
 0xb9f   :  { %v10214_v29 = vpop.f32.mrb[236].mxu1 }
 0xba0   :  { %v10221_v9 = vadd.f32 %v10214_v29, %v10150_v7  ;;  %v10216_v33 = vpop.f32.mrb[237].mxu1 }
 0xba1   :  { %v10222_v0 = vadd.f32 %v10216_v33, %v10151_v30  ;;  %12100 = vmatpush1.bf16.msra.mxu1 %v15913_v16  ;;  %v10218_v41 = vpop.f32.mrb[238].mxu1  ;;  %v7236_v16 = vmax.f32 %v7127_v1, 0.0 }
 0xba2   :  { %v10219_v11 = vpop.f32.mrb[239].mxu1  ;;  %12168 = vmatprep.subr.bf16.mxu1 %v15918_v46 }
 0xba3   :  { %v12353_v41 = vpack.c.bf16 %v7236_v16, %v7236_v16  ;;  %v15943_v11 = vld [vmem:[%s21584_s5 + $0x930] ss:$8 sps:$4 sm:$0xff]  }
 0xba4   :  { %13792 = vmatmul.mubr.msk.bf16.vlgmr.msra.gmra.mrb[88].mxu1 %vm5896_vm1, %v12069_v48 }
 0xba5   :  { %12169 = vmatpush1.bf16.msra.mxu1 %v15916_v61  ;;  %12200 = vmatprep.mubr.bf16.mxu1 %v21974_v57  ;;  %v7130_v61 = vadd.f32 %v21254_v25, %v20507_v60  ;;  %v15948_v60 = vld [vmem:[%s21584_s5 + $0x944] ss:$8 sps:$4 sm:$0xff]  }
 0xba6   :  { %12170 = vmatprep.subr.bf16.mxu1 %v15921_v39 }
 0xba7   :  { %v10285_v63 = vpop.f32.mrb[240].mxu1  ;;  %v7237_v39 = vmax.f32 %v7130_v61, 0.0 }
 0xba8   :  { %v10292_v17 = vadd.f32 %v10285_v63, %v10221_v9  ;;  %v10287_v44 = vpop.f32.mrb[241].mxu1 }
 0xba9   :  { %v10293_v24 = vadd.f32 %v10287_v44, %v10222_v0  ;;  %12171 = vmatpush1.bf16.msra.mxu1 %v15919_v43  ;;  %v10289_v58 = vpop.f32.mrb[242].mxu1  ;;  %v15940_v0 = vld [vmem:[%s21584_s5 + $0x920] ss:$8 sps:$4 sm:$0xff]  }
 0xbaa   :  { %v10290_v4 = vpop.f32.mrb[243].mxu1  ;;  %12239 = vmatprep.subr.bf16.mxu1 %v15924_v50  ;;  %v15946_v44 = vld [vmem:[%s21584_s5 + $0x940] ss:$8 sps:$4 sm:$0xff]   ;;  %v7135_v58 = vadd.f32 %v21254_v25, %v20630_v45  ;;  %v15954_v45 = vld [vmem:[%s21584_s5 + $0x964] ss:$8 sps:$4 sm:$0xff]  }
 0xbac   :  { %13797 = vmatmul.mubr.msk.bf16.vlgmr.msra.gmra.mrb[92].mxu1 %vm5896_vm1, %v12140_v18  ;;  %v15951_v18 = vld [vmem:[%s21584_s5 + $0x954] ss:$8 sps:$4 sm:$0xff]   ;;  %v7238_v4 = vmax.f32 %v7135_v58, 0.0 }
 0xbad   :  { %12240 = vmatpush1.bf16.msra.mxu1 %v15922_v10  ;;  %12271 = vmatprep.mubr.bf16.mxu1 %v21974_v57 }
 0xbae   :  { %12241 = vmatprep.subr.bf16.mxu1 %v15927_v26 }
 0xbaf   :  { %v10356_v54 = vpop.f32.mrb[244].mxu1 }
 0xbb0   :  { %v10363_v53 = vadd.f32 %v10356_v54, %v10292_v17  ;;  %v10358_v21 = vpop.f32.mrb[245].mxu1 }
 0xbb1   :  { %v10364_v40 = vadd.f32 %v10358_v21, %v10293_v24  ;;  %12242 = vmatpush1.bf16.msra.mxu1 %v15925_v38  ;;  %v10360_v51 = vpop.f32.mrb[246].mxu1  ;;  %v12424_v24 = vpack.c.bf16 %v7237_v39, %v7237_v39  ;;  %v12495_v21 = vpack.c.bf16 %v7238_v4, %v7238_v4  ;;  %v15970_v39 = vld [vmem:[%s21584_s5 + $0x9c0] ss:$8 sps:$4 sm:$0xff]  }
 0xbb2   :  { %v10361_v36 = vpop.f32.mrb[247].mxu1  ;;  %12310 = vmatprep.subr.bf16.mxu1 %v15930_v56 }
 0xbb4   :  { %13802 = vmatmul.mubr.msk.bf16.vlgmr.msra.gmra.mrb[96].mxu1 %vm5896_vm1, %v12211_v35  ;;  %v15955_v35 = vld [vmem:[%s21584_s5 + $0x970] ss:$8 sps:$4 sm:$0xff]  }
 0xbb5   :  { %12311 = vmatpush1.bf16.msra.mxu1 %v15928_v13  ;;  %12342 = vmatprep.mubr.bf16.mxu1 %v21974_v57  ;;  %v15957_v13 = vld [vmem:[%s21584_s5 + $0x974] ss:$8 sps:$4 sm:$0xff]  }
 0xbb6   :  { %12312 = vmatprep.subr.bf16.mxu1 %v15933_v15 }
 0xbb7   :  { %v10427_v3 = vpop.f32.mrb[248].mxu1 }
 0xbb8   :  { %v10434_v8 = vadd.f32 %v10427_v3, %v10363_v53  ;;  %v10429_v7 = vpop.f32.mrb[249].mxu1  ;;  %v15952_v53 = vld [vmem:[%s21584_s5 + $0x960] ss:$8 sps:$4 sm:$0xff]  }
 0xbb9   :  { %v10435_v49 = vadd.f32 %v10429_v7, %v10364_v40  ;;  %12313 = vmatpush1.bf16.msra.mxu1 %v15931_v28  ;;  %v10431_v30 = vpop.f32.mrb[250].mxu1  ;;  %v7138_v40 = vadd.f32 %v21254_v25, %v20639_v6  ;;  %v15960_v6 = vld [vmem:[%s21584_s5 + $0x984] ss:$8 sps:$4 sm:$0xff]   ;;  %v15958_v3 = vld [vmem:[%s21584_s5 + $0x980] ss:$8 sps:$4 sm:$0xff]   ;;  %v7143_v7 = vadd.f32 %v21254_v25, %v20657_v12 }
 0xbba   :  { %v10432_v34 = vpop.f32.mrb[251].mxu1  ;;  %12381 = vmatprep.subr.bf16.mxu1 %v15936_v31  ;;  %v15963_v30 = vld [vmem:[%s21584_s5 + $0x994] ss:$8 sps:$4 sm:$0xff]   ;;  %v15966_v12 = vld [vmem:[%s21584_s5 + $0x9a4] ss:$8 sps:$4 sm:$0xff]  }
 0xbbb   :  { %v7239_v23 = vmax.f32 %v7138_v40, 0.0 }
 0xbbc   :  { %13807 = vmatmul.mubr.msk.bf16.vlgmr.msra.gmra.mrb[100].mxu1 %vm5896_vm1, %v12282_v47  ;;  %v7240_v47 = vmax.f32 %v7143_v7, 0.0 }
 0xbbd   :  { %12382 = vmatpush1.bf16.msra.mxu1 %v15934_v2  ;;  %12413 = vmatprep.mubr.bf16.mxu1 %v21974_v57  ;;  %v15961_v2 = vld [vmem:[%s21584_s5 + $0x990] ss:$8 sps:$4 sm:$0xff]  }
 0xbbe   :  { %12383 = vmatprep.subr.bf16.mxu1 %v15939_v5 }
 0xbbf   :  { %v10498_v14 = vpop.f32.mrb[252].mxu1 }
 0xbc0   :  { %v10505_v46 = vadd.f32 %v10498_v14, %v10434_v8  ;;  %v10500_v29 = vpop.f32.mrb[253].mxu1  ;;  %v12566_v8 = vpack.c.bf16 %v7239_v23, %v7239_v23  ;;  %v12637_v14 = vpack.c.bf16 %v7240_v47, %v7240_v47  ;;  %v7159_v23 = vadd.f32 %v21254_v25, %v20697_v62 }
 0xbc1   :  { %v10506_v9 = vadd.f32 %v10500_v29, %v10435_v49  ;;  %12384 = vmatpush1.bf16.msra.mxu1 %v15937_v42  ;;  %v10502_v33 = vpop.f32.mrb[254].mxu1 }
 0xbc2   :  { %v10503_v48 = vpop.f32.mrb[255].mxu1  ;;  %12452 = vmatprep.subr.bf16.mxu1 %v15942_v27  ;;  %v15964_v27 = vld [vmem:[%s21584_s5 + $0x9a0] ss:$8 sps:$4 sm:$0xff]   ;;  %v15967_v33 = vld [vmem:[%s21584_s5 + $0x9b0] ss:$8 sps:$4 sm:$0xff]  }
 0xbc4   :  { %13812 = vmatmul.mubr.msk.bf16.vlgmr.msra.gmra.mrb[104].mxu1 %vm5896_vm1, %v12353_v41 }
 0xbc5   :  { %12453 = vmatpush1.bf16.msra.mxu1 %v15940_v0  ;;  %12484 = vmatprep.mubr.bf16.mxu1 %v21974_v57 }
 0xbc6   :  { %12454 = vmatprep.subr.bf16.mxu1 %v15945_v20 }
 0xbc7   :  { %v10569_v43 = vpop.f32.mrb[0].mxu1 }
 0xbc8   :  { %v10576_v52 = vadd.f32 %v10569_v43, %v10505_v46  ;;  %v10571_v50 = vpop.f32.mrb[1].mxu1  ;;  %v7146_v46 = vadd.f32 %v21254_v25, %v20659_v55  ;;  %v15972_v55 = vld [vmem:[%s21584_s5 + $0x9c4] ss:$8 sps:$4 sm:$0xff]   ;;  %v7151_v43 = vadd.f32 %v21254_v25, %v20677_v59 }
 0xbc9   :  { %v10577_v63 = vadd.f32 %v10571_v50, %v10506_v9  ;;  %12455 = vmatpush1.bf16.msra.mxu1 %v15943_v11  ;;  %v10573_v17 = vpop.f32.mrb[2].mxu1  ;;  %v15969_v9 = vld [vmem:[%s21584_s5 + $0x9b4] ss:$8 sps:$4 sm:$0xff]   ;;  %v15978_v59 = vld [vmem:[%s21584_s5 + $0x9e4] ss:$8 sps:$4 sm:$0xff]  }
 0xbca   :  { %v10574_v10 = vpop.f32.mrb[3].mxu1  ;;  %12523 = vmatprep.subr.bf16.mxu1 %v15948_v60  ;;  %v7241_v0 = vmax.f32 %v7146_v46, 0.0  ;;  %v15975_v50 = vld [vmem:[%s21584_s5 + $0x9d4] ss:$8 sps:$4 sm:$0xff]   ;;  %v7242_v17 = vmax.f32 %v7151_v43, 0.0 }
 0xbcc   :  { %13817 = vmatmul.mubr.msk.bf16.vlgmr.msra.gmra.mrb[108].mxu1 %vm5896_vm1, %v12424_v24  ;;  %v12708_v60 = vpack.c.bf16 %v7241_v0, %v7241_v0  ;;  %v12779_v4 = vpack.c.bf16 %v7242_v17, %v7242_v17 }
 0xbcd   :  { %12524 = vmatpush1.bf16.msra.mxu1 %v15946_v44  ;;  %12555 = vmatprep.mubr.bf16.mxu1 %v21974_v57 }
 0xbce   :  { %12525 = vmatprep.subr.bf16.mxu1 %v15951_v18 }
 0xbcf   :  { %v10640_v26 = vpop.f32.mrb[4].mxu1 }
 0xbd0   :  { %v10647_v38 = vadd.f32 %v10640_v26, %v10576_v52  ;;  %v10642_v37 = vpop.f32.mrb[5].mxu1 }
 0xbd1   :  { %v10648_v56 = vadd.f32 %v10642_v37, %v10577_v63  ;;  %12526 = vmatpush1.bf16.msra.mxu1 %v15949_v22  ;;  %v10644_v54 = vpop.f32.mrb[6].mxu1  ;;  %v15973_v63 = vld [vmem:[%s21584_s5 + $0x9d0] ss:$8 sps:$4 sm:$0xff]   ;;  %v15976_v22 = vld [vmem:[%s21584_s5 + $0x9e0] ss:$8 sps:$4 sm:$0xff]  }
 0xbd2   :  { %v10645_v51 = vpop.f32.mrb[7].mxu1  ;;  %12594 = vmatprep.subr.bf16.mxu1 %v15954_v45  ;;  %v7154_v45 = vadd.f32 %v21254_v25, %v20679_v19  ;;  %v15979_v37 = vld [vmem:[%s21584_s5 + $0x9f0] ss:$8 sps:$4 sm:$0xff]   ;;  %v15984_v19 = vld [vmem:[%s21584_s5 + $0xa04] ss:$8 sps:$4 sm:$0xff]  }
 0xbd4   :  { %13822 = vmatmul.mubr.msk.bf16.vlgmr.msra.gmra.mrb[112].mxu1 %vm5896_vm1, %v12495_v21 }
 0xbd5   :  { %12595 = vmatpush1.bf16.msra.mxu1 %v15952_v53  ;;  %12626 = vmatprep.mubr.bf16.mxu1 %v21974_v57 }
 0xbd6   :  { %12596 = vmatprep.subr.bf16.mxu1 %v15957_v13  ;;  %v15982_v13 = vld [vmem:[%s21584_s5 + $0xa00] ss:$8 sps:$4 sm:$0xff]  }
 0xbd7   :  { %v10711_v36 = vpop.f32.mrb[8].mxu1 }
 0xbd8   :  { %v10718_v15 = vadd.f32 %v10711_v36, %v10647_v38  ;;  %v10713_v28 = vpop.f32.mrb[9].mxu1  ;;  %v15981_v38 = vld [vmem:[%s21584_s5 + $0x9f4] ss:$8 sps:$4 sm:$0xff]  }
 0xbd9   :  { %v10719_v32 = vadd.f32 %v10713_v28, %v10648_v56  ;;  %12597 = vmatpush1.bf16.msra.mxu1 %v15955_v35  ;;  %v10715_v31 = vpop.f32.mrb[10].mxu1  ;;  %v7243_v56 = vmax.f32 %v7154_v45, 0.0  ;;  %v15987_v36 = vld [vmem:[%s21584_s5 + $0xa14] ss:$8 sps:$4 sm:$0xff]   ;;  %v7244_v28 = vmax.f32 %v7159_v23, 0.0 }
 0xbda   :  { %v10716_v49 = vpop.f32.mrb[11].mxu1  ;;  %12665 = vmatprep.subr.bf16.mxu1 %v15960_v6 }
 0xbdb   :  { %v12850_v35 = vpack.c.bf16 %v7243_v56, %v7243_v56 }
 0xbdc   :  { %13827 = vmatmul.mubr.msk.bf16.vlgmr.msra.gmra.mrb[116].mxu1 %vm5896_vm1, %v12566_v8  ;;  %v12921_v8 = vpack.c.bf16 %v7244_v28, %v7244_v28 }
 0xbdd   :  { %12666 = vmatpush1.bf16.msra.mxu1 %v15958_v3  ;;  %12697 = vmatprep.mubr.bf16.mxu1 %v21974_v57 }
 0xbde   :  { %12667 = vmatprep.subr.bf16.mxu1 %v15963_v30 }
 0xbdf   :  { %v10782_v1 = vpop.f32.mrb[12].mxu1 }
 0xbe0   :  { %v10789_v34 = vadd.f32 %v10782_v1, %v10718_v15  ;;  %v10784_v5 = vpop.f32.mrb[13].mxu1  ;;  %v15985_v15 = vld [vmem:[%s21584_s5 + $0xa10] ss:$8 sps:$4 sm:$0xff]  }
 0xbe1   :  { %v10790_v42 = vadd.f32 %v10784_v5, %v10719_v32  ;;  %12668 = vmatpush1.bf16.msra.mxu1 %v15961_v2  ;;  %v10786_v16 = vpop.f32.mrb[14].mxu1 }
 0xbe2   :  { %v10787_v29 = vpop.f32.mrb[15].mxu1  ;;  %12736 = vmatprep.subr.bf16.mxu1 %v15966_v12 }
 0xbe4   :  { %13832 = vmatmul.mubr.msk.bf16.vlgmr.msra.gmra.mrb[120].mxu1 %vm5896_vm1, %v12637_v14 }
 0xbe5   :  { %12737 = vmatpush1.bf16.msra.mxu1 %v15964_v27  ;;  %12768 = vmatprep.mubr.bf16.mxu1 %v21974_v57 }
 0xbe6   :  { %12738 = vmatprep.subr.bf16.mxu1 %v15969_v9 }
 0xbe7   :  { %v10853_v41 = vpop.f32.mrb[16].mxu1 }
 0xbe8   :  { %v10860_v61 = vadd.f32 %v10853_v41, %v10789_v34  ;;  %v10855_v48 = vpop.f32.mrb[17].mxu1 }
 0xbe9   :  { %v10861_v20 = vadd.f32 %v10855_v48, %v10790_v42  ;;  %12739 = vmatpush1.bf16.msra.mxu1 %v15967_v33  ;;  %v10857_v11 = vpop.f32.mrb[18].mxu1 }
 0xbea   :  { %v10858_v52 = vpop.f32.mrb[19].mxu1  ;;  %12807 = vmatprep.subr.bf16.mxu1 %v15972_v55 }
 0xbec   :  { %13837 = vmatmul.mubr.msk.bf16.vlgmr.msra.gmra.mrb[124].mxu1 %vm5896_vm1, %v12708_v60 }
 0xbed   :  { %12808 = vmatpush1.bf16.msra.mxu1 %v15970_v39  ;;  %12839 = vmatprep.mubr.bf16.mxu1 %v21974_v57 }
 0xbee   :  { %12809 = vmatprep.subr.bf16.mxu1 %v15975_v50 }
 0xbef   :  { %v10924_v44 = vpop.f32.mrb[20].mxu1 }
 0xbf0   :  { %v10931_v24 = vadd.f32 %v10924_v44, %v10860_v61  ;;  %v10926_v58 = vpop.f32.mrb[21].mxu1 }
 0xbf1   :  { %v10932_v10 = vadd.f32 %v10926_v58, %v10861_v20  ;;  %12810 = vmatpush1.bf16.msra.mxu1 %v15973_v63  ;;  %v10928_v18 = vpop.f32.mrb[22].mxu1 }
 0xbf2   :  { %v10929_v26 = vpop.f32.mrb[23].mxu1  ;;  %12878 = vmatprep.subr.bf16.mxu1 %v15978_v59 }
 0xbf4   :  { %13842 = vmatmul.mubr.msk.bf16.vlgmr.msra.gmra.mrb[128].mxu1 %vm5896_vm1, %v12779_v4 }
 0xbf5   :  { %12879 = vmatpush1.bf16.msra.mxu1 %v15976_v22  ;;  %12910 = vmatprep.mubr.bf16.mxu1 %v21974_v57 }
 0xbf6   :  { %12880 = vmatprep.subr.bf16.mxu1 %v15981_v38 }
 0xbf7   :  { %v10995_v54 = vpop.f32.mrb[24].mxu1 }
 0xbf8   :  { %v11002_v53 = vadd.f32 %v10995_v54, %v10931_v24  ;;  %v10997_v21 = vpop.f32.mrb[25].mxu1 }
 0xbf9   :  { %v11003_v40 = vadd.f32 %v10997_v21, %v10932_v10  ;;  %12881 = vmatpush1.bf16.msra.mxu1 %v15979_v37  ;;  %v10999_v51 = vpop.f32.mrb[26].mxu1 }
 0xbfa   :  { %v11000_v6 = vpop.f32.mrb[27].mxu1  ;;  %12949 = vmatprep.subr.bf16.mxu1 %v15984_v19 }
 0xbfc   :  { %13847 = vmatmul.mubr.msk.bf16.vlgmr.msra.gmra.mrb[132].mxu1 %vm5896_vm1, %v12850_v35 }
 0xbfd   :  { %12950 = vmatpush1.bf16.msra.mxu1 %v15982_v13  ;;  %12981 = vmatprep.mubr.bf16.mxu1 %v21974_v57 }
 0xbfe   :  { %12951 = vmatprep.subr.bf16.mxu1 %v15987_v36 }
 0xbff   :  { %v11066_v32 = vpop.f32.mrb[28].mxu1 }
 0xc00   :  { %v11073_v31 = vadd.f32 %v11066_v32, %v11002_v53  ;;  %v11068_v62 = vpop.f32.mrb[29].mxu1 }
 0xc01   :  { %v11074_v25 = vadd.f32 %v11068_v62, %v11003_v40  ;;  %12952 = vmatpush1.bf16.msra.mxu1 %v15985_v15  ;;  %v11070_v3 = vpop.f32.mrb[30].mxu1 }
 0xc02   :  { %v11071_v7 = vpop.f32.mrb[31].mxu1 }
 0xc04   :  { %13852 = vmatmul.mubr.msk.bf16.vlgmr.msra.gmra.mrb[136].mxu1 %vm5896_vm1, %v12921_v8 }
 0xc07   :  { %v11137_v49 = vpop.f32.mrb[32].mxu1 }
 0xc08   :  { %v11144_v30 = vadd.f32 %v11137_v49, %v11073_v31  ;;  %v11139_v2 = vpop.f32.mrb[33].mxu1 }
 0xc09   :  { %v11145_v47 = vadd.f32 %v11139_v2, %v11074_v25  ;;  %v11141_v12 = vpop.f32.mrb[34].mxu1 }
 0xc0a   :  { %v11142_v1 = vpop.f32.mrb[35].mxu1 }
 0xc0f   :  { %v11208_v34 = vpop.f32.mrb[36].mxu1 }
 0xc10   :  { %v11215_v57 = vadd.f32 %v11208_v34, %v11144_v30  ;;  %v11210_v5 = vpop.f32.mrb[37].mxu1 }
 0xc11   :  { %v11216_v42 = vadd.f32 %v11210_v5, %v11145_v47  ;;  %v11212_v16 = vpop.f32.mrb[38].mxu1 }
 0xc12   :  { %v11213_v27 = vpop.f32.mrb[39].mxu1 }
 0xc17   :  { %v11279_v14 = vpop.f32.mrb[40].mxu1 }
 0xc18   :  { %v11286_v46 = vadd.f32 %v11279_v14, %v11215_v57  ;;  %v11281_v29 = vpop.f32.mrb[41].mxu1 }
 0xc19   :  { %v11287_v9 = vadd.f32 %v11281_v29, %v11216_v42  ;;  %v11283_v33 = vpop.f32.mrb[42].mxu1 }
 0xc1a   :  { %v11284_v0 = vpop.f32.mrb[43].mxu1 }
 0xc1f   :  { %v11350_v55 = vpop.f32.mrb[44].mxu1 }
 0xc20   :  { %v11357_v41 = vadd.f32 %v11350_v55, %v11286_v46  ;;  %v11352_v61 = vpop.f32.mrb[45].mxu1 }
 0xc21   :  { %v11358_v48 = vadd.f32 %v11352_v61, %v11287_v9  ;;  %v11354_v20 = vpop.f32.mrb[46].mxu1 }
 0xc22   :  { %v11355_v11 = vpop.f32.mrb[47].mxu1 }
 0xc27   :  { %v11421_v39 = vpop.f32.mrb[48].mxu1 }
 0xc28   :  { %v11428_v60 = vadd.f32 %v11421_v39, %v11357_v41  ;;  %v11423_v43 = vpop.f32.mrb[49].mxu1 }
 0xc29   :  { %v11429_v52 = vadd.f32 %v11423_v43, %v11358_v48  ;;  %v11425_v50 = vpop.f32.mrb[50].mxu1 }
 0xc2a   :  { %v11426_v63 = vpop.f32.mrb[51].mxu1 }
 0xc2f   :  { %v11492_v17 = vpop.f32.mrb[52].mxu1 }
 0xc30   :  { %v11499_v59 = vadd.f32 %v11492_v17, %v11428_v60  ;;  %v11494_v44 = vpop.f32.mrb[53].mxu1 }
 0xc31   :  { %v11500_v24 = vadd.f32 %v11494_v44, %v11429_v52  ;;  %v11496_v58 = vpop.f32.mrb[54].mxu1 }
 0xc32   :  { %v11497_v10 = vpop.f32.mrb[55].mxu1 }
 0xc37   :  { %v11563_v18 = vpop.f32.mrb[56].mxu1 }
 0xc38   :  { %v11570_v22 = vadd.f32 %v11563_v18, %v11499_v59  ;;  %v11565_v4 = vpop.f32.mrb[57].mxu1 }
 0xc39   :  { %v11571_v45 = vadd.f32 %v11565_v4, %v11500_v24  ;;  %v11567_v26 = vpop.f32.mrb[58].mxu1 }
 0xc3a   :  { %v11568_v38 = vpop.f32.mrb[59].mxu1 }
 0xc3f   :  { %v11634_v37 = vpop.f32.mrb[60].mxu1 }
 0xc40   :  { %v11641_v56 = vadd.f32 %v11634_v37, %v11570_v22  ;;  %v11636_v19 = vpop.f32.mrb[61].mxu1 }
 0xc41   :  { %v11642_v54 = vadd.f32 %v11636_v19, %v11571_v45  ;;  %v11638_v53 = vpop.f32.mrb[62].mxu1 }
 0xc42   :  { %v11639_v21 = vpop.f32.mrb[63].mxu1 }
 0xc47   :  { %v11705_v40 = vpop.f32.mrb[64].mxu1 }
 0xc48   :  { %v11712_v51 = vadd.f32 %v11705_v40, %v11641_v56  ;;  %v11707_v13 = vpop.f32.mrb[65].mxu1 }
 0xc49   :  { %v11713_v35 = vadd.f32 %v11707_v13, %v11642_v54  ;;  %v11709_v23 = vpop.f32.mrb[66].mxu1 }
 0xc4a   :  { %v11710_v6 = vpop.f32.mrb[67].mxu1 }
 0xc4f   :  { %v11776_v36 = vpop.f32.mrb[68].mxu1 }
 0xc50   :  { %v11783_v15 = vadd.f32 %v11776_v36, %v11712_v51  ;;  %v11778_v28 = vpop.f32.mrb[69].mxu1 }
 0xc51   :  { %v11784_v32 = vadd.f32 %v11778_v28, %v11713_v35  ;;  %v11780_v31 = vpop.f32.mrb[70].mxu1 }
 0xc52   :  { %v11781_v62 = vpop.f32.mrb[71].mxu1 }
 0xc57   :  { %v11847_v25 = vpop.f32.mrb[72].mxu1 }
 0xc58   :  { %v11854_v3 = vadd.f32 %v11847_v25, %v11783_v15  ;;  %v11849_v8 = vpop.f32.mrb[73].mxu1 }
 0xc59   :  { %v11855_v7 = vadd.f32 %v11849_v8, %v11784_v32  ;;  %v11851_v49 = vpop.f32.mrb[74].mxu1 }
 0xc5a   :  { %v11852_v30 = vpop.f32.mrb[75].mxu1 }
 0xc5f   :  { %v11918_v2 = vpop.f32.mrb[76].mxu1 }
 0xc60   :  { %v11925_v47 = vadd.f32 %v11918_v2, %v11854_v3  ;;  %v11920_v12 = vpop.f32.mrb[77].mxu1 }
 0xc61   :  { %v11926_v1 = vadd.f32 %v11920_v12, %v11855_v7  ;;  %v11922_v34 = vpop.f32.mrb[78].mxu1 }
 0xc62   :  { %v11923_v57 = vpop.f32.mrb[79].mxu1 }
 0xc67   :  { %v11989_v5 = vpop.f32.mrb[80].mxu1 }
 0xc68   :  { %v11996_v42 = vadd.f32 %v11989_v5, %v11925_v47  ;;  %v11991_v16 = vpop.f32.mrb[81].mxu1 }
 0xc69   :  { %v11997_v27 = vadd.f32 %v11991_v16, %v11926_v1  ;;  %v11993_v14 = vpop.f32.mrb[82].mxu1 }
 0xc6a   :  { %v11994_v46 = vpop.f32.mrb[83].mxu1 }
 0xc6f   :  { %v12060_v29 = vpop.f32.mrb[84].mxu1 }
 0xc70   :  { %v12067_v9 = vadd.f32 %v12060_v29, %v11996_v42  ;;  %v12062_v33 = vpop.f32.mrb[85].mxu1 }
 0xc71   :  { %v12068_v0 = vadd.f32 %v12062_v33, %v11997_v27  ;;  %v12064_v55 = vpop.f32.mrb[86].mxu1 }
 0xc72   :  { %v12065_v41 = vpop.f32.mrb[87].mxu1 }
 0xc77   :  { %v12131_v61 = vpop.f32.mrb[88].mxu1 }
 0xc78   :  { %v12138_v48 = vadd.f32 %v12131_v61, %v12067_v9  ;;  %v12133_v20 = vpop.f32.mrb[89].mxu1 }
 0xc79   :  { %v12139_v11 = vadd.f32 %v12133_v20, %v12068_v0  ;;  %v12135_v39 = vpop.f32.mrb[90].mxu1  ;;  %v12994_v20 = vlaneseq }
 0xc7a   :  { %v12136_v60 = vpop.f32.mrb[91].mxu1 }
 0xc7f   :  { %v12202_v43 = vpop.f32.mrb[92].mxu1 }
 0xc80   :  { %v12209_v52 = vadd.f32 %v12202_v43, %v12138_v48  ;;  %v12204_v50 = vpop.f32.mrb[93].mxu1 }
 0xc81   :  { %v12210_v63 = vadd.f32 %v12204_v50, %v12139_v11  ;;  %v12206_v17 = vpop.f32.mrb[94].mxu1  ;;  %v12995_v11 = vshrl.u32 %v12994_v20, 7 }
 0xc82   :  { %v12207_v59 = vpop.f32.mrb[95].mxu1 }
 0xc83   :  { %v12996_v17 = vsub.s32 0, %v12995_v11  ;;  %v12992_v59 = vld [vmem:[%s21586_s6] sm:$0x3] }
 0xc87   :  { %v12273_v44 = vpop.f32.mrb[96].mxu1 }
 0xc88   :  { %v12280_v24 = vadd.f32 %v12273_v44, %v12209_v52  ;;  %v12275_v58 = vpop.f32.mrb[97].mxu1  ;;  %v13000_v44 = vsub.s32 1, %v12995_v11 }
 0xc89   :  { %v12281_v10 = vadd.f32 %v12275_v58, %v12210_v63  ;;  %v12277_v18 = vpop.f32.mrb[98].mxu1 }
 0xc8a   :  { %v12278_v22 = vpop.f32.mrb[99].mxu1 }
 0xc8f   :  { %v12344_v4 = vpop.f32.mrb[100].mxu1 }
 0xc90   :  { %v12351_v45 = vadd.f32 %v12344_v4, %v12280_v24  ;;  %v12346_v26 = vpop.f32.mrb[101].mxu1  ;;  %v12997_v24 = vrot.slane %v12992_v59, %v12996_v17 }
 0xc91   :  { %v12352_v38 = vadd.f32 %v12346_v26, %v12281_v10  ;;  %v12348_v37 = vpop.f32.mrb[102].mxu1  ;;  %v13001_v10 = vrot.slane %v12992_v59, %v13000_v44 }
 0xc92   :  { %v12349_v56 = vpop.f32.mrb[103].mxu1 }
 0xc97   :  { %v12415_v19 = vpop.f32.mrb[104].mxu1 }
 0xc98   :  { %v12422_v54 = vadd.f32 %v12415_v19, %v12351_v45  ;;  %v12417_v53 = vpop.f32.mrb[105].mxu1 }
 0xc99   :  { %v12423_v21 = vadd.f32 %v12417_v53, %v12352_v38  ;;  %v12419_v40 = vpop.f32.mrb[106].mxu1 }
 0xc9a   :  { %v12420_v51 = vpop.f32.mrb[107].mxu1 }
 0xc9f   :  { %v12486_v13 = vpop.f32.mrb[108].mxu1 }
 0xca0   :  { %v12493_v35 = vadd.f32 %v12486_v13, %v12422_v54  ;;  %v12488_v23 = vpop.f32.mrb[109].mxu1 }
 0xca1   :  { %v12494_v6 = vadd.f32 %v12488_v23, %v12423_v21  ;;  %v12490_v36 = vpop.f32.mrb[110].mxu1 }
 0xca2   :  { %v12491_v15 = vpop.f32.mrb[111].mxu1 }
 0xca7   :  { %v12557_v28 = vpop.f32.mrb[112].mxu1 }
 0xca8   :  { %v12564_v32 = vadd.f32 %v12557_v28, %v12493_v35  ;;  %v12559_v31 = vpop.f32.mrb[113].mxu1 }
 0xca9   :  { %v12565_v62 = vadd.f32 %v12559_v31, %v12494_v6  ;;  %v12561_v25 = vpop.f32.mrb[114].mxu1 }
 0xcaa   :  { %v12562_v3 = vpop.f32.mrb[115].mxu1 }
 0xcaf   :  { %v12628_v8 = vpop.f32.mrb[116].mxu1 }
 0xcb0   :  { %v12635_v7 = vadd.f32 %v12628_v8, %v12564_v32  ;;  %v12630_v49 = vpop.f32.mrb[117].mxu1 }
 0xcb1   :  { %v12636_v30 = vadd.f32 %v12630_v49, %v12565_v62  ;;  %v12632_v2 = vpop.f32.mrb[118].mxu1 }
 0xcb2   :  { %v12633_v47 = vpop.f32.mrb[119].mxu1 }
 0xcb7   :  { %v12699_v12 = vpop.f32.mrb[120].mxu1 }
 0xcb8   :  { %v12706_v1 = vadd.f32 %v12699_v12, %v12635_v7  ;;  %v12701_v34 = vpop.f32.mrb[121].mxu1 }
 0xcb9   :  { %v12707_v57 = vadd.f32 %v12701_v34, %v12636_v30  ;;  %v12703_v5 = vpop.f32.mrb[122].mxu1 }
 0xcba   :  { %v12704_v42 = vpop.f32.mrb[123].mxu1 }
 0xcbf   :  { %v12770_v16 = vpop.f32.mrb[124].mxu1 }
 0xcc0   :  { %v12777_v27 = vadd.f32 %v12770_v16, %v12706_v1  ;;  %v12772_v14 = vpop.f32.mrb[125].mxu1 }
 0xcc1   :  { %v12778_v46 = vadd.f32 %v12772_v14, %v12707_v57  ;;  %v12774_v29 = vpop.f32.mrb[126].mxu1 }
 0xcc2   :  { %v12775_v9 = vpop.f32.mrb[127].mxu1 }
 0xcc7   :  { %v12841_v33 = vpop.f32.mrb[128].mxu1 }
 0xcc8   :  { %v12848_v0 = vadd.f32 %v12841_v33, %v12777_v27  ;;  %v12843_v55 = vpop.f32.mrb[129].mxu1 }
 0xcc9   :  { %v12849_v41 = vadd.f32 %v12843_v55, %v12778_v46  ;;  %v12845_v61 = vpop.f32.mrb[130].mxu1 }
 0xcca   :  { %v12846_v48 = vpop.f32.mrb[131].mxu1 }
 0xccf   :  { %v12912_v39 = vpop.f32.mrb[132].mxu1 }
 0xcd0   :  { %v12919_v60 = vadd.f32 %v12912_v39, %v12848_v0  ;;  %v12914_v43 = vpop.f32.mrb[133].mxu1 }
 0xcd1   :  { %v12920_v52 = vadd.f32 %v12914_v43, %v12849_v41  ;;  %v12916_v50 = vpop.f32.mrb[134].mxu1 }
 0xcd2   :  { %v12917_v63 = vpop.f32.mrb[135].mxu1 }
 0xcd7   :  { %v12983_v58 = vpop.f32.mrb[136].mxu1 }
 0xcd8   :  { %v12990_v18 = vadd.f32 %v12983_v58, %v12919_v60  ;;  %v12985_v22 = vpop.f32.mrb[137].mxu1 }
 0xcd9   :  { %v12991_v4 = vadd.f32 %v12985_v22, %v12920_v52  ;;  %v12987_v45 = vpop.f32.mrb[138].mxu1 }
 0xcda   :  { %v13004_v26 = vadd.f32 %v12997_v24, %v12990_v18  ;;  %v12988_v38 = vpop.f32.mrb[139].mxu1 }
 0xcdb   :  { %v13005_v37 = vadd.f32 %v13001_v10, %v12991_v4 }
 0xcdc   :  { %v13006_v56 = vmax.f32 %v13004_v26, 0.0 }
 0xcdd   :  { %v13007_v19 = vmax.f32 %v13005_v37, 0.0 }
 0xcde   :  { %13008 = vst [vmem:[%s21587_s7] sm:$0xff] %v13006_v56 }
 0xcdf   :  { %13009 = vst [vmem:[%s21587_s7 + $0x8] sm:$0xff] %v13007_v19 }

</bundles_post_ra>
